<compile_context>
chip_gen: v7x
topology: tpu7x:2x2x1
jax: 0.10.0
libtpu: 0.0.40
codegen_flags: <defaults>
</compile_context>

<pallas_src>
import functools

import numpy as np

import jax
import jax.numpy as jnp
from jax.experimental import pallas as pl
from jax.experimental.pallas import tpu as pltpu

_VMEM = pl.BlockSpec(memory_space=pltpu.MemorySpace.VMEM)
_BN_EPS = 1e-5
_STEM_K = 64        # 7*7=49 im2col taps, zero-padded to a sublane-friendly 64
_SHIFT_W = 512      # width of the merged per-conv shift blob (max Cout)


# ----------------------- host-side conv "tap" machinery -----------------------

def _out_size(h, k, s, p):
    return (h + 2 * p - k) // s + 1


def _tap_select(n, h, w, kh, kw, stride, pad):
    """One 0/1 row-selection matrix per kernel tap.

    Returns (taps, (ho, wo)) where taps is a list of (tap_index, S) with
    S[m_out, m_in] = 1 iff output row m_out's tap (di, dj) reads the valid
    input row m_in (rows are (batch, i, j) flattened).  Taps that only ever
    read zero-padding are dropped entirely.
    """
    ho, wo = _out_size(h, kh, stride, pad), _out_size(w, kw, stride, pad)
    m_out, m_in = n * ho * wo, n * h * w
    taps = []
    for di in range(kh):
        for dj in range(kw):
            s = np.zeros((m_out, m_in), np.float32)
            for b in range(n):
                for i in range(ho):
                    ii = i * stride + di - pad
                    if not (0 <= ii < h):
                        continue
                    for j in range(wo):
                        jj = j * stride + dj - pad
                        if 0 <= jj < w:
                            s[(b * ho + i) * wo + j, (b * h + ii) * w + jj] = 1.0
            if s.any():
                taps.append((di * kw + dj, s))
    return taps, (ho, wo)


def _im2col(x, kh, kw, stride, pad):
    """XLA im2col used only for the raw 1-channel network input (tiny)."""
    n, h, w, c = x.shape
    xp = jnp.pad(x, ((0, 0), (pad, pad), (pad, pad), (0, 0)))
    ho, wo = _out_size(h, kh, stride, pad), _out_size(w, kw, stride, pad)
    cols = []
    for i in range(kh):
        for j in range(kw):
            cols.append(xp[:, i:i + (ho - 1) * stride + 1:stride,
                           j:j + (wo - 1) * stride + 1:stride, :])
    return jnp.concatenate(cols, axis=-1).reshape(n * ho * wo, kh * kw * c)


# ----------------------------- the fused kernel -----------------------------

def _make_fused_kernel(n_pool_taps, stage_metas):
    """Whole network: stem + 4 residual stages (8 basic blocks) + FC/softmax."""

    def conv_apply(it, shifts_ref, x_bf, cmeta):
        # Conv as ONE GEMM: concat the T tap-gathers along channels (all
        # offsets are multiples of 128) and multiply by the K-stacked weights.
        s_ref = None if cmeta["identity"] else next(it)
        w_ref = next(it)
        if cmeta["identity"]:
            g = x_bf
        else:
            parts = [
                jnp.dot(s_ref[t], x_bf,
                        preferred_element_type=jnp.float32).astype(jnp.bfloat16)
                for t in range(cmeta["n_taps"])
            ]
            g = parts[0] if len(parts) == 1 else jnp.concatenate(parts, axis=-1)
        y = jnp.dot(g, w_ref[...], preferred_element_type=jnp.float32)
        r = cmeta["shift_row"]
        return y + shifts_ref[r:r + 1, :cmeta["cout"]]

    def kernel(*refs):
        o_ref = refs[-1]
        it = iter(refs[:-1])
        p_ref = next(it)       # (m_stem, 64)  bf16 im2col patches
        wx_ref = next(it)      # (64, 128)     bf16 folded pre_conv+conv1+BN weights
        sm_ref = next(it)      # (m_stem, 128) f32  per-position shift map
        pool_ref = next(it)    # (9, 32, 128)  bf16 max-pool selections
        shifts_ref = next(it)  # (19, 512)     f32  merged per-conv BN shifts

        # ---- stem: GEMM + shift + ReLU, then max-pool as max of 9 selection GEMMs
        # (exact: post-ReLU activations >= 0, padded taps contribute 0). ----
        h = jnp.dot(p_ref[...], wx_ref[...], preferred_element_type=jnp.float32)
        h = jnp.maximum(h + sm_ref[...], 0.0).astype(jnp.bfloat16)
        x = None
        for t in range(n_pool_taps):
            v = jnp.dot(pool_ref[t], h, preferred_element_type=jnp.float32)
            x = v if x is None else jnp.maximum(x, v)          # (32, 128) f32

        # ---- 4 residual stages, 2 basic blocks each; values stay in VMEM ----
        for blocks in stage_metas:
            for bmeta in blocks:
                x_bf = x.astype(jnp.bfloat16)
                hb = jnp.maximum(conv_apply(it, shifts_ref, x_bf, bmeta["conv1"]),
                                 0.0)
                hb = conv_apply(it, shifts_ref, hb.astype(jnp.bfloat16),
                                bmeta["conv2"])
                if bmeta["down"] is not None:
                    identity = conv_apply(it, shifts_ref, x_bf, bmeta["down"])
                else:
                    identity = x
                x = jnp.maximum(hb + identity, 0.0)

        # ---- adaptive avg-pool to 1x1 is the identity (spatial is already 1x1);
        # head: FC (512 -> classes) + softmax. ----
        fcw_ref = next(it)
        fcb_ref = next(it)
        logits = jnp.dot(x.astype(jnp.bfloat16), fcw_ref[...],
                         preferred_element_type=jnp.float32) + fcb_ref[...]
        m = jnp.max(logits, axis=-1, keepdims=True)
        e = jnp.exp(logits - m)
        o_ref[...] = (e / jnp.sum(e, axis=-1, keepdims=True)).astype(o_ref.dtype)

    return kernel


# ----------------------------- parameter folding -----------------------------

def _fold_bn(bn):
    gamma, beta, mean, var = (np.asarray(a, np.float32) for a in bn)
    scale = gamma / np.sqrt(var + _BN_EPS)
    return scale, beta - scale * mean


def _prep_conv(w, bn, n, h, wsp, stride, pad):
    """Fold BN scale into K-stacked (T*Cin_pad, Cout_pad) weights + tap gathers."""
    w_np = np.asarray(w, np.float32)
    cout, cin, kh, kw = w_np.shape
    cin_p, cout_p = max(cin, 128), max(cout, 128)
    scale, shift = _fold_bn(bn)
    taps, (ho, wo) = _tap_select(n, h, wsp, kh, kw, stride, pad)
    t_n = len(taps)

    w_stack = np.zeros((t_n * cin_p, cout_p), np.float32)
    for idx, (ti, _) in enumerate(taps):
        wt = w_np[:, :, ti // kw, ti % kw].T * scale[None, :]       # (cin, cout)
        w_stack[idx * cin_p: idx * cin_p + cin, :cout] = wt

    m_in, m_out = n * h * wsp, n * ho * wo
    identity = (t_n == 1 and m_in == m_out and
                bool(np.array_equal(taps[0][1], np.eye(m_in, dtype=np.float32))))

    arrays = []
    if not identity:
        arrays.append(jnp.asarray(np.stack([s for _, s in taps], 0), jnp.bfloat16))
    arrays.append(jnp.asarray(w_stack, jnp.bfloat16))

    shift_row = np.zeros((_SHIFT_W,), np.float32)
    shift_row[:cout] = shift                                        # padded lanes 0
    meta = {"n_taps": t_n, "identity": identity, "cout": cout_p}
    return arrays, meta, shift_row, (ho, wo)


def prepare_params(params, n=2, hw=16, class_num=10):
    # ---- stem: fold 1x1 pre_conv (weight + bias) and BN1 into the 7x7 conv ----
    pre_w = np.asarray(params["pre_conv_w"], np.float32).reshape(-1)    # (3,)
    pre_b = np.asarray(params["pre_conv_b"], np.float32)                # (3,)
    w1 = np.asarray(params["conv1_w"], np.float32)                      # (64,3,7,7)
    scale1, shift1 = _fold_bn(params["bn1"])
    wx = np.einsum("ocij,c->ijo", w1, pre_w).reshape(49, 64) * scale1[None, :]
    wb = np.einsum("ocij,c->ijo", w1, pre_b).reshape(49, 64) * scale1[None, :]

    stem_taps, (ho, wo) = _tap_select(n, hw, hw, 7, 7, 2, 3)
    m_stem = n * ho * wo
    # Per-output-position tap validity: propagates the pre_conv bias through the
    # 7x7 taps exactly, accounting for zero padding at the borders.
    valid = np.zeros((m_stem, 49), np.float32)
    for ti, s in stem_taps:
        valid[:, ti] = s.sum(axis=1)
    shift_map = valid @ wb + shift1[None, :]                            # (128, 64)

    wx_pad = np.zeros((_STEM_K, 128), np.float32)
    wx_pad[:49, :64] = wx
    sm_pad = np.zeros((m_stem, 128), np.float32)
    sm_pad[:, :64] = shift_map

    pool_taps, (hp, wp) = _tap_select(n, ho, wo, 3, 3, 2, 1)
    pool_s = np.stack([s for _, s in pool_taps], 0)                     # (9,32,128)

    # ---- four residual stages, two basic blocks each ----
    conv_arrays, stage_metas, shift_rows = [], [], []
    h, w = hp, wp
    block_iter = iter(params["blocks"])
    for _ in range(4):
        blocks_meta = []
        for _ in range(2):
            blk = next(block_iter)
            stride = blk["stride"]
            a1, m1, sr1, (ho, wo) = _prep_conv(blk["conv1"], blk["bn1"],
                                               n, h, w, stride, 1)
            m1["shift_row"] = len(shift_rows); shift_rows.append(sr1)
            a2, m2, sr2, _ = _prep_conv(blk["conv2"], blk["bn2"], n, ho, wo, 1, 1)
            m2["shift_row"] = len(shift_rows); shift_rows.append(sr2)
            bmeta = {"conv1": m1, "conv2": m2, "down": None}
            barrays = a1 + a2
            if "down_conv" in blk:
                ad, md, srd, _ = _prep_conv(blk["down_conv"], blk["down_bn"],
                                            n, h, w, stride, 0)
                md["shift_row"] = len(shift_rows); shift_rows.append(srd)
                bmeta["down"] = md
                barrays += ad
            conv_arrays += barrays
            blocks_meta.append(bmeta)
            h, w = ho, wo
        stage_metas.append(blocks_meta)

    const_arrays = (
        [jnp.asarray(wx_pad, jnp.bfloat16),
         jnp.asarray(sm_pad, jnp.float32),
         jnp.asarray(pool_s, jnp.bfloat16),
         jnp.asarray(np.stack(shift_rows, 0), jnp.float32)]
        + conv_arrays
        + [jnp.asarray(params["fc_w"], jnp.bfloat16),
           jnp.asarray(params["fc_b"], jnp.float32).reshape(1, class_num)]
    )
    return {
        "classes": class_num,
        "n_pool_taps": len(pool_taps),
        "stage_metas": stage_metas,
        "const_arrays": const_arrays,
    }


def init_params(key, class_num):
    keys = iter(jax.random.split(key, 64))

    def conv(cout, cin, k):
        fan_in = cin * k * k
        return jax.random.normal(next(keys), (cout, cin, k, k),
                                 jnp.float32) * (1.0 / fan_in) ** 0.5

    def bn(c):
        # inference-mode BN: (gamma, beta, running_mean, running_var)
        return (jnp.ones((c,), jnp.float32), jnp.zeros((c,), jnp.float32),
                jnp.zeros((c,), jnp.float32), jnp.ones((c,), jnp.float32))

    params = {
        "pre_conv_w": jax.random.normal(next(keys), (3, 1, 1, 1), jnp.float32),
        "pre_conv_b": jax.random.normal(next(keys), (3,), jnp.float32) * 0.1,
        "conv1_w": conv(64, 3, 7),
        "bn1": bn(64),
    }
    blocks = []
    for cin, cout, stride in [(64, 64, 1), (64, 128, 2),
                              (128, 256, 2), (256, 512, 2)]:
        for bidx in range(2):
            s = stride if bidx == 0 else 1
            in_c = cin if bidx == 0 else cout
            blk = {"stride": s,
                   "conv1": conv(cout, in_c, 3), "bn1": bn(cout),
                   "conv2": conv(cout, cout, 3), "bn2": bn(cout)}
            if s != 1 or in_c != cout:
                blk["down_conv"] = conv(cout, in_c, 1)
                blk["down_bn"] = bn(cout)
            blocks.append(blk)
    params["blocks"] = blocks
    params["fc_w"] = jax.random.normal(next(keys), (512, class_num),
                                       jnp.float32) * 0.05
    params["fc_b"] = jnp.zeros((class_num,), jnp.float32)
    return params


# ----------------------------- forward pass -----------------------------

def imgnet_forward(prep, x_nchw):
    n = x_nchw.shape[0]
    x = jnp.transpose(x_nchw, (0, 2, 3, 1)).astype(jnp.float32)     # NHWC, C=1

    # The only XLA glue: im2col of the raw 1-channel input, emitted in bf16 and
    # zero-padded to K=64 so the stem GEMM is tile-aligned (~12 KiB).
    patches = _im2col(x, 7, 7, 2, 3).astype(jnp.bfloat16)
    patches = jnp.pad(patches, ((0, 0), (0, _STEM_K - patches.shape[1])))

    inputs = (patches, *prep["const_arrays"])
    return pl.pallas_call(
        _make_fused_kernel(prep["n_pool_taps"], prep["stage_metas"]),
        out_shape=jax.ShapeDtypeStruct((n, prep["classes"]), jnp.float32),
        in_specs=[_VMEM] * len(inputs),
        out_specs=_VMEM,
        compiler_params=pltpu.CompilerParams(vmem_limit_bytes=32 * 1024 * 1024),
    )(*inputs)


# ----------------------------- main -----------------------------

if __name__ == "__main__":
    key = jax.random.PRNGKey(0)
    pkey, xkey = jax.random.split(key)

    class_num = 10
    params = init_params(pkey, class_num)
    prep = prepare_params(params, n=2, hw=16, class_num=class_num)

    # NCHW input, 1 channel as required by ImgNet's first conv.
    x = jax.random.normal(xkey, (2, 1, 16, 16), jnp.float32)

    fwd = jax.jit(functools.partial(imgnet_forward, prep))
    probs = fwd(x)
    jax.block_until_ready(probs)

    assert probs.shape == (2, class_num)
    row_sums = jnp.sum(probs, axis=1)
    assert bool(jnp.all(jnp.abs(row_sums - 1.0) < 1e-4))
    assert bool(jnp.all(probs >= 0.0))
    print("KERNEL_OK")
</pallas_src>

<mosaic_0001>
module attributes {stable_mosaic.version = 11 : i64} {
  func.func @kernel(%arg0: memref<128x64xbf16, #tpu.memory_space<vmem>>, %arg1: memref<64x128xbf16, #tpu.memory_space<vmem>>, %arg2: memref<128x128xf32, #tpu.memory_space<vmem>>, %arg3: memref<9x32x128xbf16, #tpu.memory_space<vmem>>, %arg4: memref<19x512xf32, #tpu.memory_space<vmem>>, %arg5: memref<9x32x32xbf16, #tpu.memory_space<vmem>>, %arg6: memref<1152x128xbf16, #tpu.memory_space<vmem>>, %arg7: memref<9x32x32xbf16, #tpu.memory_space<vmem>>, %arg8: memref<1152x128xbf16, #tpu.memory_space<vmem>>, %arg9: memref<9x32x32xbf16, #tpu.memory_space<vmem>>, %arg10: memref<1152x128xbf16, #tpu.memory_space<vmem>>, %arg11: memref<9x32x32xbf16, #tpu.memory_space<vmem>>, %arg12: memref<1152x128xbf16, #tpu.memory_space<vmem>>, %arg13: memref<9x8x32xbf16, #tpu.memory_space<vmem>>, %arg14: memref<1152x128xbf16, #tpu.memory_space<vmem>>, %arg15: memref<9x8x8xbf16, #tpu.memory_space<vmem>>, %arg16: memref<1152x128xbf16, #tpu.memory_space<vmem>>, %arg17: memref<1x8x32xbf16, #tpu.memory_space<vmem>>, %arg18: memref<128x128xbf16, #tpu.memory_space<vmem>>, %arg19: memref<9x8x8xbf16, #tpu.memory_space<vmem>>, %arg20: memref<1152x128xbf16, #tpu.memory_space<vmem>>, %arg21: memref<9x8x8xbf16, #tpu.memory_space<vmem>>, %arg22: memref<1152x128xbf16, #tpu.memory_space<vmem>>, %arg23: memref<4x2x8xbf16, #tpu.memory_space<vmem>>, %arg24: memref<512x256xbf16, #tpu.memory_space<vmem>>, %arg25: memref<256x256xbf16, #tpu.memory_space<vmem>>, %arg26: memref<1x2x8xbf16, #tpu.memory_space<vmem>>, %arg27: memref<128x256xbf16, #tpu.memory_space<vmem>>, %arg28: memref<256x256xbf16, #tpu.memory_space<vmem>>, %arg29: memref<256x256xbf16, #tpu.memory_space<vmem>>, %arg30: memref<256x512xbf16, #tpu.memory_space<vmem>>, %arg31: memref<512x512xbf16, #tpu.memory_space<vmem>>, %arg32: memref<256x512xbf16, #tpu.memory_space<vmem>>, %arg33: memref<512x512xbf16, #tpu.memory_space<vmem>>, %arg34: memref<512x512xbf16, #tpu.memory_space<vmem>>, %arg35: memref<512x10xbf16, #tpu.memory_space<vmem>>, %arg36: memref<1x10xf32, #tpu.memory_space<vmem>>, %arg37: memref<2x10xf32, #tpu.memory_space<vmem>>) attributes {dimension_semantics = [], scalar_prefetch = 0 : i64, scratch_operands = 0 : i64, tpu.core_type = #tpu.core_type<tc>} {
    %c0 = arith.constant 0 : index
    %c0_0 = arith.constant 0 : index
    %0 = vector.load %arg0[%c0, %c0_0] : memref<128x64xbf16, #tpu.memory_space<vmem>>, vector<128x64xbf16>
    %c0_1 = arith.constant 0 : index
    %c0_2 = arith.constant 0 : index
    %1 = vector.load %arg1[%c0_1, %c0_2] : memref<64x128xbf16, #tpu.memory_space<vmem>>, vector<64x128xbf16>
    %cst = arith.constant dense<0.000000e+00> : vector<128x128xf32>
    %2 = tpu.matmul %0, %1, %cst {dimension_numbers = #tpu.dot_dimension_numbers<[1], [0], [0], [1], [0, 0, 1, 1], [], []>} : vector<128x64xbf16>, vector<64x128xbf16>, vector<128x128xf32> -> vector<128x128xf32>
    %c0_3 = arith.constant 0 : index
    %c0_4 = arith.constant 0 : index
    %3 = vector.load %arg2[%c0_3, %c0_4] : memref<128x128xf32, #tpu.memory_space<vmem>>, vector<128x128xf32>
    %4 = arith.addf %2, %3 : vector<128x128xf32>
    %cst_5 = arith.constant 0.000000e+00 : f32
    %5 = vector.broadcast %cst_5 : f32 to vector<128x128xf32>
    %6 = arith.maximumf %4, %5 : vector<128x128xf32>
    %7 = arith.truncf %6 : vector<128x128xf32> to vector<128x128xbf16>
    %c0_6 = arith.constant 0 : index
    %c0_7 = arith.constant 0 : index
    %c0_8 = arith.constant 0 : index
    %8 = vector.load %arg3[%c0_6, %c0_7, %c0_8] : memref<9x32x128xbf16, #tpu.memory_space<vmem>>, vector<1x32x128xbf16>
    %9 = vector.shape_cast %8 : vector<1x32x128xbf16> to vector<32x128xbf16>
    %cst_9 = arith.constant dense<0.000000e+00> : vector<32x128xf32>
    %10 = tpu.matmul %9, %7, %cst_9 {dimension_numbers = #tpu.dot_dimension_numbers<[1], [0], [0], [1], [0, 0, 1, 1], [], []>} : vector<32x128xbf16>, vector<128x128xbf16>, vector<32x128xf32> -> vector<32x128xf32>
    %c1 = arith.constant 1 : index
    %c0_10 = arith.constant 0 : index
    %c0_11 = arith.constant 0 : index
    %11 = vector.load %arg3[%c1, %c0_10, %c0_11] : memref<9x32x128xbf16, #tpu.memory_space<vmem>>, vector<1x32x128xbf16>
    %12 = vector.shape_cast %11 : vector<1x32x128xbf16> to vector<32x128xbf16>
    %cst_12 = arith.constant dense<0.000000e+00> : vector<32x128xf32>
    %13 = tpu.matmul %12, %7, %cst_12 {dimension_numbers = #tpu.dot_dimension_numbers<[1], [0], [0], [1], [0, 0, 1, 1], [], []>} : vector<32x128xbf16>, vector<128x128xbf16>, vector<32x128xf32> -> vector<32x128xf32>
    %14 = arith.maximumf %10, %13 : vector<32x128xf32>
    %c2 = arith.constant 2 : index
    %c0_13 = arith.constant 0 : index
    %c0_14 = arith.constant 0 : index
    %15 = vector.load %arg3[%c2, %c0_13, %c0_14] : memref<9x32x128xbf16, #tpu.memory_space<vmem>>, vector<1x32x128xbf16>
    %16 = vector.shape_cast %15 : vector<1x32x128xbf16> to vector<32x128xbf16>
    %cst_15 = arith.constant dense<0.000000e+00> : vector<32x128xf32>
    %17 = tpu.matmul %16, %7, %cst_15 {dimension_numbers = #tpu.dot_dimension_numbers<[1], [0], [0], [1], [0, 0, 1, 1], [], []>} : vector<32x128xbf16>, vector<128x128xbf16>, vector<32x128xf32> -> vector<32x128xf32>
    %18 = arith.maximumf %14, %17 : vector<32x128xf32>
    %c3 = arith.constant 3 : index
    %c0_16 = arith.constant 0 : index
    %c0_17 = arith.constant 0 : index
    %19 = vector.load %arg3[%c3, %c0_16, %c0_17] : memref<9x32x128xbf16, #tpu.memory_space<vmem>>, vector<1x32x128xbf16>
    %20 = vector.shape_cast %19 : vector<1x32x128xbf16> to vector<32x128xbf16>
    %cst_18 = arith.constant dense<0.000000e+00> : vector<32x128xf32>
    %21 = tpu.matmul %20, %7, %cst_18 {dimension_numbers = #tpu.dot_dimension_numbers<[1], [0], [0], [1], [0, 0, 1, 1], [], []>} : vector<32x128xbf16>, vector<128x128xbf16>, vector<32x128xf32> -> vector<32x128xf32>
    %22 = arith.maximumf %18, %21 : vector<32x128xf32>
    %c4 = arith.constant 4 : index
    %c0_19 = arith.constant 0 : index
    %c0_20 = arith.constant 0 : index
    %23 = vector.load %arg3[%c4, %c0_19, %c0_20] : memref<9x32x128xbf16, #tpu.memory_space<vmem>>, vector<1x32x128xbf16>
    %24 = vector.shape_cast %23 : vector<1x32x128xbf16> to vector<32x128xbf16>
    %cst_21 = arith.constant dense<0.000000e+00> : vector<32x128xf32>
    %25 = tpu.matmul %24, %7, %cst_21 {dimension_numbers = #tpu.dot_dimension_numbers<[1], [0], [0], [1], [0, 0, 1, 1], [], []>} : vector<32x128xbf16>, vector<128x128xbf16>, vector<32x128xf32> -> vector<32x128xf32>
    %26 = arith.maximumf %22, %25 : vector<32x128xf32>
    %c5 = arith.constant 5 : index
    %c0_22 = arith.constant 0 : index
    %c0_23 = arith.constant 0 : index
    %27 = vector.load %arg3[%c5, %c0_22, %c0_23] : memref<9x32x128xbf16, #tpu.memory_space<vmem>>, vector<1x32x128xbf16>
    %28 = vector.shape_cast %27 : vector<1x32x128xbf16> to vector<32x128xbf16>
    %cst_24 = arith.constant dense<0.000000e+00> : vector<32x128xf32>
    %29 = tpu.matmul %28, %7, %cst_24 {dimension_numbers = #tpu.dot_dimension_numbers<[1], [0], [0], [1], [0, 0, 1, 1], [], []>} : vector<32x128xbf16>, vector<128x128xbf16>, vector<32x128xf32> -> vector<32x128xf32>
    %30 = arith.maximumf %26, %29 : vector<32x128xf32>
    %c6 = arith.constant 6 : index
    %c0_25 = arith.constant 0 : index
    %c0_26 = arith.constant 0 : index
    %31 = vector.load %arg3[%c6, %c0_25, %c0_26] : memref<9x32x128xbf16, #tpu.memory_space<vmem>>, vector<1x32x128xbf16>
    %32 = vector.shape_cast %31 : vector<1x32x128xbf16> to vector<32x128xbf16>
    %cst_27 = arith.constant dense<0.000000e+00> : vector<32x128xf32>
    %33 = tpu.matmul %32, %7, %cst_27 {dimension_numbers = #tpu.dot_dimension_numbers<[1], [0], [0], [1], [0, 0, 1, 1], [], []>} : vector<32x128xbf16>, vector<128x128xbf16>, vector<32x128xf32> -> vector<32x128xf32>
    %34 = arith.maximumf %30, %33 : vector<32x128xf32>
    %c7 = arith.constant 7 : index
    %c0_28 = arith.constant 0 : index
    %c0_29 = arith.constant 0 : index
    %35 = vector.load %arg3[%c7, %c0_28, %c0_29] : memref<9x32x128xbf16, #tpu.memory_space<vmem>>, vector<1x32x128xbf16>
    %36 = vector.shape_cast %35 : vector<1x32x128xbf16> to vector<32x128xbf16>
    %cst_30 = arith.constant dense<0.000000e+00> : vector<32x128xf32>
    %37 = tpu.matmul %36, %7, %cst_30 {dimension_numbers = #tpu.dot_dimension_numbers<[1], [0], [0], [1], [0, 0, 1, 1], [], []>} : vector<32x128xbf16>, vector<128x128xbf16>, vector<32x128xf32> -> vector<32x128xf32>
    %38 = arith.maximumf %34, %37 : vector<32x128xf32>
    %c8 = arith.constant 8 : index
    %c0_31 = arith.constant 0 : index
    %c0_32 = arith.constant 0 : index
    %39 = vector.load %arg3[%c8, %c0_31, %c0_32] : memref<9x32x128xbf16, #tpu.memory_space<vmem>>, vector<1x32x128xbf16>
    %40 = vector.shape_cast %39 : vector<1x32x128xbf16> to vector<32x128xbf16>
    %cst_33 = arith.constant dense<0.000000e+00> : vector<32x128xf32>
    %41 = tpu.matmul %40, %7, %cst_33 {dimension_numbers = #tpu.dot_dimension_numbers<[1], [0], [0], [1], [0, 0, 1, 1], [], []>} : vector<32x128xbf16>, vector<128x128xbf16>, vector<32x128xf32> -> vector<32x128xf32>
    %42 = arith.maximumf %38, %41 : vector<32x128xf32>
    %43 = arith.truncf %42 : vector<32x128xf32> to vector<32x128xbf16>
    %c0_34 = arith.constant 0 : index
    %c0_35 = arith.constant 0 : index
    %c0_36 = arith.constant 0 : index
    %44 = vector.load %arg5[%c0_34, %c0_35, %c0_36] : memref<9x32x32xbf16, #tpu.memory_space<vmem>>, vector<1x32x32xbf16>
    %45 = vector.shape_cast %44 : vector<1x32x32xbf16> to vector<32x32xbf16>
    %cst_37 = arith.constant dense<0.000000e+00> : vector<32x128xf32>
    %46 = tpu.matmul %45, %43, %cst_37 {dimension_numbers = #tpu.dot_dimension_numbers<[1], [0], [0], [1], [0, 0, 1, 1], [], []>} : vector<32x32xbf16>, vector<32x128xbf16>, vector<32x128xf32> -> vector<32x128xf32>
    %47 = arith.truncf %46 : vector<32x128xf32> to vector<32x128xbf16>
    %c1_38 = arith.constant 1 : index
    %c0_39 = arith.constant 0 : index
    %c0_40 = arith.constant 0 : index
    %48 = vector.load %arg5[%c1_38, %c0_39, %c0_40] : memref<9x32x32xbf16, #tpu.memory_space<vmem>>, vector<1x32x32xbf16>
    %49 = vector.shape_cast %48 : vector<1x32x32xbf16> to vector<32x32xbf16>
    %cst_41 = arith.constant dense<0.000000e+00> : vector<32x128xf32>
    %50 = tpu.matmul %49, %43, %cst_41 {dimension_numbers = #tpu.dot_dimension_numbers<[1], [0], [0], [1], [0, 0, 1, 1], [], []>} : vector<32x32xbf16>, vector<32x128xbf16>, vector<32x128xf32> -> vector<32x128xf32>
    %51 = arith.truncf %50 : vector<32x128xf32> to vector<32x128xbf16>
    %c2_42 = arith.constant 2 : index
    %c0_43 = arith.constant 0 : index
    %c0_44 = arith.constant 0 : index
    %52 = vector.load %arg5[%c2_42, %c0_43, %c0_44] : memref<9x32x32xbf16, #tpu.memory_space<vmem>>, vector<1x32x32xbf16>
    %53 = vector.shape_cast %52 : vector<1x32x32xbf16> to vector<32x32xbf16>
    %cst_45 = arith.constant dense<0.000000e+00> : vector<32x128xf32>
    %54 = tpu.matmul %53, %43, %cst_45 {dimension_numbers = #tpu.dot_dimension_numbers<[1], [0], [0], [1], [0, 0, 1, 1], [], []>} : vector<32x32xbf16>, vector<32x128xbf16>, vector<32x128xf32> -> vector<32x128xf32>
    %55 = arith.truncf %54 : vector<32x128xf32> to vector<32x128xbf16>
    %c3_46 = arith.constant 3 : index
    %c0_47 = arith.constant 0 : index
    %c0_48 = arith.constant 0 : index
    %56 = vector.load %arg5[%c3_46, %c0_47, %c0_48] : memref<9x32x32xbf16, #tpu.memory_space<vmem>>, vector<1x32x32xbf16>
    %57 = vector.shape_cast %56 : vector<1x32x32xbf16> to vector<32x32xbf16>
    %cst_49 = arith.constant dense<0.000000e+00> : vector<32x128xf32>
    %58 = tpu.matmul %57, %43, %cst_49 {dimension_numbers = #tpu.dot_dimension_numbers<[1], [0], [0], [1], [0, 0, 1, 1], [], []>} : vector<32x32xbf16>, vector<32x128xbf16>, vector<32x128xf32> -> vector<32x128xf32>
    %59 = arith.truncf %58 : vector<32x128xf32> to vector<32x128xbf16>
    %c4_50 = arith.constant 4 : index
    %c0_51 = arith.constant 0 : index
    %c0_52 = arith.constant 0 : index
    %60 = vector.load %arg5[%c4_50, %c0_51, %c0_52] : memref<9x32x32xbf16, #tpu.memory_space<vmem>>, vector<1x32x32xbf16>
    %61 = vector.shape_cast %60 : vector<1x32x32xbf16> to vector<32x32xbf16>
    %cst_53 = arith.constant dense<0.000000e+00> : vector<32x128xf32>
    %62 = tpu.matmul %61, %43, %cst_53 {dimension_numbers = #tpu.dot_dimension_numbers<[1], [0], [0], [1], [0, 0, 1, 1], [], []>} : vector<32x32xbf16>, vector<32x128xbf16>, vector<32x128xf32> -> vector<32x128xf32>
    %63 = arith.truncf %62 : vector<32x128xf32> to vector<32x128xbf16>
    %c5_54 = arith.constant 5 : index
    %c0_55 = arith.constant 0 : index
    %c0_56 = arith.constant 0 : index
    %64 = vector.load %arg5[%c5_54, %c0_55, %c0_56] : memref<9x32x32xbf16, #tpu.memory_space<vmem>>, vector<1x32x32xbf16>
    %65 = vector.shape_cast %64 : vector<1x32x32xbf16> to vector<32x32xbf16>
    %cst_57 = arith.constant dense<0.000000e+00> : vector<32x128xf32>
    %66 = tpu.matmul %65, %43, %cst_57 {dimension_numbers = #tpu.dot_dimension_numbers<[1], [0], [0], [1], [0, 0, 1, 1], [], []>} : vector<32x32xbf16>, vector<32x128xbf16>, vector<32x128xf32> -> vector<32x128xf32>
    %67 = arith.truncf %66 : vector<32x128xf32> to vector<32x128xbf16>
    %c6_58 = arith.constant 6 : index
    %c0_59 = arith.constant 0 : index
    %c0_60 = arith.constant 0 : index
    %68 = vector.load %arg5[%c6_58, %c0_59, %c0_60] : memref<9x32x32xbf16, #tpu.memory_space<vmem>>, vector<1x32x32xbf16>
    %69 = vector.shape_cast %68 : vector<1x32x32xbf16> to vector<32x32xbf16>
    %cst_61 = arith.constant dense<0.000000e+00> : vector<32x128xf32>
    %70 = tpu.matmul %69, %43, %cst_61 {dimension_numbers = #tpu.dot_dimension_numbers<[1], [0], [0], [1], [0, 0, 1, 1], [], []>} : vector<32x32xbf16>, vector<32x128xbf16>, vector<32x128xf32> -> vector<32x128xf32>
    %71 = arith.truncf %70 : vector<32x128xf32> to vector<32x128xbf16>
    %c7_62 = arith.constant 7 : index
    %c0_63 = arith.constant 0 : index
    %c0_64 = arith.constant 0 : index
    %72 = vector.load %arg5[%c7_62, %c0_63, %c0_64] : memref<9x32x32xbf16, #tpu.memory_space<vmem>>, vector<1x32x32xbf16>
    %73 = vector.shape_cast %72 : vector<1x32x32xbf16> to vector<32x32xbf16>
    %cst_65 = arith.constant dense<0.000000e+00> : vector<32x128xf32>
    %74 = tpu.matmul %73, %43, %cst_65 {dimension_numbers = #tpu.dot_dimension_numbers<[1], [0], [0], [1], [0, 0, 1, 1], [], []>} : vector<32x32xbf16>, vector<32x128xbf16>, vector<32x128xf32> -> vector<32x128xf32>
    %75 = arith.truncf %74 : vector<32x128xf32> to vector<32x128xbf16>
    %c8_66 = arith.constant 8 : index
    %c0_67 = arith.constant 0 : index
    %c0_68 = arith.constant 0 : index
    %76 = vector.load %arg5[%c8_66, %c0_67, %c0_68] : memref<9x32x32xbf16, #tpu.memory_space<vmem>>, vector<1x32x32xbf16>
    %77 = vector.shape_cast %76 : vector<1x32x32xbf16> to vector<32x32xbf16>
    %cst_69 = arith.constant dense<0.000000e+00> : vector<32x128xf32>
    %78 = tpu.matmul %77, %43, %cst_69 {dimension_numbers = #tpu.dot_dimension_numbers<[1], [0], [0], [1], [0, 0, 1, 1], [], []>} : vector<32x32xbf16>, vector<32x128xbf16>, vector<32x128xf32> -> vector<32x128xf32>
    %79 = arith.truncf %78 : vector<32x128xf32> to vector<32x128xbf16>
    %80 = tpu.concatenate %47, %51, %55, %59, %63, %67, %71, %75, %79 in 1 : vector<32x128xbf16>, vector<32x128xbf16>, vector<32x128xbf16>, vector<32x128xbf16>, vector<32x128xbf16>, vector<32x128xbf16>, vector<32x128xbf16>, vector<32x128xbf16>, vector<32x128xbf16> -> vector<32x1152xbf16>
    %c0_70 = arith.constant 0 : index
    %c0_71 = arith.constant 0 : index
    %81 = vector.load %arg6[%c0_70, %c0_71] : memref<1152x128xbf16, #tpu.memory_space<vmem>>, vector<1152x128xbf16>
    %cst_72 = arith.constant dense<0.000000e+00> : vector<32x128xf32>
    %82 = tpu.matmul %80, %81, %cst_72 {dimension_numbers = #tpu.dot_dimension_numbers<[1], [0], [0], [1], [0, 0, 1, 1], [], []>} : vector<32x1152xbf16>, vector<1152x128xbf16>, vector<32x128xf32> -> vector<32x128xf32>
    %c0_73 = arith.constant 0 : index
    %c0_74 = arith.constant 0 : index
    %83 = vector.load %arg4[%c0_73, %c0_74] : memref<19x512xf32, #tpu.memory_space<vmem>>, vector<1x128xf32>
    %84 = vector.broadcast %83 : vector<1x128xf32> to vector<32x128xf32>
    %85 = arith.addf %82, %84 : vector<32x128xf32>
    %cst_75 = arith.constant 0.000000e+00 : f32
    %86 = vector.broadcast %cst_75 : f32 to vector<32x128xf32>
    %87 = arith.maximumf %85, %86 : vector<32x128xf32>
    %88 = arith.truncf %87 : vector<32x128xf32> to vector<32x128xbf16>
    %c0_76 = arith.constant 0 : index
    %c0_77 = arith.constant 0 : index
    %c0_78 = arith.constant 0 : index
    %89 = vector.load %arg7[%c0_76, %c0_77, %c0_78] : memref<9x32x32xbf16, #tpu.memory_space<vmem>>, vector<1x32x32xbf16>
    %90 = vector.shape_cast %89 : vector<1x32x32xbf16> to vector<32x32xbf16>
    %cst_79 = arith.constant dense<0.000000e+00> : vector<32x128xf32>
    %91 = tpu.matmul %90, %88, %cst_79 {dimension_numbers = #tpu.dot_dimension_numbers<[1], [0], [0], [1], [0, 0, 1, 1], [], []>} : vector<32x32xbf16>, vector<32x128xbf16>, vector<32x128xf32> -> vector<32x128xf32>
    %92 = arith.truncf %91 : vector<32x128xf32> to vector<32x128xbf16>
    %c1_80 = arith.constant 1 : index
    %c0_81 = arith.constant 0 : index
    %c0_82 = arith.constant 0 : index
    %93 = vector.load %arg7[%c1_80, %c0_81, %c0_82] : memref<9x32x32xbf16, #tpu.memory_space<vmem>>, vector<1x32x32xbf16>
    %94 = vector.shape_cast %93 : vector<1x32x32xbf16> to vector<32x32xbf16>
    %cst_83 = arith.constant dense<0.000000e+00> : vector<32x128xf32>
    %95 = tpu.matmul %94, %88, %cst_83 {dimension_numbers = #tpu.dot_dimension_numbers<[1], [0], [0], [1], [0, 0, 1, 1], [], []>} : vector<32x32xbf16>, vector<32x128xbf16>, vector<32x128xf32> -> vector<32x128xf32>
    %96 = arith.truncf %95 : vector<32x128xf32> to vector<32x128xbf16>
    %c2_84 = arith.constant 2 : index
    %c0_85 = arith.constant 0 : index
    %c0_86 = arith.constant 0 : index
    %97 = vector.load %arg7[%c2_84, %c0_85, %c0_86] : memref<9x32x32xbf16, #tpu.memory_space<vmem>>, vector<1x32x32xbf16>
    %98 = vector.shape_cast %97 : vector<1x32x32xbf16> to vector<32x32xbf16>
    %cst_87 = arith.constant dense<0.000000e+00> : vector<32x128xf32>
    %99 = tpu.matmul %98, %88, %cst_87 {dimension_numbers = #tpu.dot_dimension_numbers<[1], [0], [0], [1], [0, 0, 1, 1], [], []>} : vector<32x32xbf16>, vector<32x128xbf16>, vector<32x128xf32> -> vector<32x128xf32>
    %100 = arith.truncf %99 : vector<32x128xf32> to vector<32x128xbf16>
    %c3_88 = arith.constant 3 : index
    %c0_89 = arith.constant 0 : index
    %c0_90 = arith.constant 0 : index
    %101 = vector.load %arg7[%c3_88, %c0_89, %c0_90] : memref<9x32x32xbf16, #tpu.memory_space<vmem>>, vector<1x32x32xbf16>
    %102 = vector.shape_cast %101 : vector<1x32x32xbf16> to vector<32x32xbf16>
    %cst_91 = arith.constant dense<0.000000e+00> : vector<32x128xf32>
    %103 = tpu.matmul %102, %88, %cst_91 {dimension_numbers = #tpu.dot_dimension_numbers<[1], [0], [0], [1], [0, 0, 1, 1], [], []>} : vector<32x32xbf16>, vector<32x128xbf16>, vector<32x128xf32> -> vector<32x128xf32>
    %104 = arith.truncf %103 : vector<32x128xf32> to vector<32x128xbf16>
    %c4_92 = arith.constant 4 : index
    %c0_93 = arith.constant 0 : index
    %c0_94 = arith.constant 0 : index
    %105 = vector.load %arg7[%c4_92, %c0_93, %c0_94] : memref<9x32x32xbf16, #tpu.memory_space<vmem>>, vector<1x32x32xbf16>
    %106 = vector.shape_cast %105 : vector<1x32x32xbf16> to vector<32x32xbf16>
    %cst_95 = arith.constant dense<0.000000e+00> : vector<32x128xf32>
    %107 = tpu.matmul %106, %88, %cst_95 {dimension_numbers = #tpu.dot_dimension_numbers<[1], [0], [0], [1], [0, 0, 1, 1], [], []>} : vector<32x32xbf16>, vector<32x128xbf16>, vector<32x128xf32> -> vector<32x128xf32>
    %108 = arith.truncf %107 : vector<32x128xf32> to vector<32x128xbf16>
    %c5_96 = arith.constant 5 : index
    %c0_97 = arith.constant 0 : index
    %c0_98 = arith.constant 0 : index
    %109 = vector.load %arg7[%c5_96, %c0_97, %c0_98] : memref<9x32x32xbf16, #tpu.memory_space<vmem>>, vector<1x32x32xbf16>
    %110 = vector.shape_cast %109 : vector<1x32x32xbf16> to vector<32x32xbf16>
    %cst_99 = arith.constant dense<0.000000e+00> : vector<32x128xf32>
    %111 = tpu.matmul %110, %88, %cst_99 {dimension_numbers = #tpu.dot_dimension_numbers<[1], [0], [0], [1], [0, 0, 1, 1], [], []>} : vector<32x32xbf16>, vector<32x128xbf16>, vector<32x128xf32> -> vector<32x128xf32>
    %112 = arith.truncf %111 : vector<32x128xf32> to vector<32x128xbf16>
    %c6_100 = arith.constant 6 : index
    %c0_101 = arith.constant 0 : index
    %c0_102 = arith.constant 0 : index
    %113 = vector.load %arg7[%c6_100, %c0_101, %c0_102] : memref<9x32x32xbf16, #tpu.memory_space<vmem>>, vector<1x32x32xbf16>
    %114 = vector.shape_cast %113 : vector<1x32x32xbf16> to vector<32x32xbf16>
    %cst_103 = arith.constant dense<0.000000e+00> : vector<32x128xf32>
    %115 = tpu.matmul %114, %88, %cst_103 {dimension_numbers = #tpu.dot_dimension_numbers<[1], [0], [0], [1], [0, 0, 1, 1], [], []>} : vector<32x32xbf16>, vector<32x128xbf16>, vector<32x128xf32> -> vector<32x128xf32>
    %116 = arith.truncf %115 : vector<32x128xf32> to vector<32x128xbf16>
    %c7_104 = arith.constant 7 : index
    %c0_105 = arith.constant 0 : index
    %c0_106 = arith.constant 0 : index
    %117 = vector.load %arg7[%c7_104, %c0_105, %c0_106] : memref<9x32x32xbf16, #tpu.memory_space<vmem>>, vector<1x32x32xbf16>
    %118 = vector.shape_cast %117 : vector<1x32x32xbf16> to vector<32x32xbf16>
    %cst_107 = arith.constant dense<0.000000e+00> : vector<32x128xf32>
    %119 = tpu.matmul %118, %88, %cst_107 {dimension_numbers = #tpu.dot_dimension_numbers<[1], [0], [0], [1], [0, 0, 1, 1], [], []>} : vector<32x32xbf16>, vector<32x128xbf16>, vector<32x128xf32> -> vector<32x128xf32>
    %120 = arith.truncf %119 : vector<32x128xf32> to vector<32x128xbf16>
    %c8_108 = arith.constant 8 : index
    %c0_109 = arith.constant 0 : index
    %c0_110 = arith.constant 0 : index
    %121 = vector.load %arg7[%c8_108, %c0_109, %c0_110] : memref<9x32x32xbf16, #tpu.memory_space<vmem>>, vector<1x32x32xbf16>
    %122 = vector.shape_cast %121 : vector<1x32x32xbf16> to vector<32x32xbf16>
    %cst_111 = arith.constant dense<0.000000e+00> : vector<32x128xf32>
    %123 = tpu.matmul %122, %88, %cst_111 {dimension_numbers = #tpu.dot_dimension_numbers<[1], [0], [0], [1], [0, 0, 1, 1], [], []>} : vector<32x32xbf16>, vector<32x128xbf16>, vector<32x128xf32> -> vector<32x128xf32>
    %124 = arith.truncf %123 : vector<32x128xf32> to vector<32x128xbf16>
    %125 = tpu.concatenate %92, %96, %100, %104, %108, %112, %116, %120, %124 in 1 : vector<32x128xbf16>, vector<32x128xbf16>, vector<32x128xbf16>, vector<32x128xbf16>, vector<32x128xbf16>, vector<32x128xbf16>, vector<32x128xbf16>, vector<32x128xbf16>, vector<32x128xbf16> -> vector<32x1152xbf16>
    %c0_112 = arith.constant 0 : index
    %c0_113 = arith.constant 0 : index
    %126 = vector.load %arg8[%c0_112, %c0_113] : memref<1152x128xbf16, #tpu.memory_space<vmem>>, vector<1152x128xbf16>
    %cst_114 = arith.constant dense<0.000000e+00> : vector<32x128xf32>
    %127 = tpu.matmul %125, %126, %cst_114 {dimension_numbers = #tpu.dot_dimension_numbers<[1], [0], [0], [1], [0, 0, 1, 1], [], []>} : vector<32x1152xbf16>, vector<1152x128xbf16>, vector<32x128xf32> -> vector<32x128xf32>
    %c1_115 = arith.constant 1 : index
    %c0_116 = arith.constant 0 : index
    %128 = vector.load %arg4[%c1_115, %c0_116] : memref<19x512xf32, #tpu.memory_space<vmem>>, vector<1x128xf32>
    %129 = vector.broadcast %128 : vector<1x128xf32> to vector<32x128xf32>
    %130 = arith.addf %127, %129 : vector<32x128xf32>
    %131 = arith.addf %130, %42 : vector<32x128xf32>
    %cst_117 = arith.constant 0.000000e+00 : f32
    %132 = vector.broadcast %cst_117 : f32 to vector<32x128xf32>
    %133 = arith.maximumf %131, %132 : vector<32x128xf32>
    %134 = arith.truncf %133 : vector<32x128xf32> to vector<32x128xbf16>
    %c0_118 = arith.constant 0 : index
    %c0_119 = arith.constant 0 : index
    %c0_120 = arith.constant 0 : index
    %135 = vector.load %arg9[%c0_118, %c0_119, %c0_120] : memref<9x32x32xbf16, #tpu.memory_space<vmem>>, vector<1x32x32xbf16>
    %136 = vector.shape_cast %135 : vector<1x32x32xbf16> to vector<32x32xbf16>
    %cst_121 = arith.constant dense<0.000000e+00> : vector<32x128xf32>
    %137 = tpu.matmul %136, %134, %cst_121 {dimension_numbers = #tpu.dot_dimension_numbers<[1], [0], [0], [1], [0, 0, 1, 1], [], []>} : vector<32x32xbf16>, vector<32x128xbf16>, vector<32x128xf32> -> vector<32x128xf32>
    %138 = arith.truncf %137 : vector<32x128xf32> to vector<32x128xbf16>
    %c1_122 = arith.constant 1 : index
    %c0_123 = arith.constant 0 : index
    %c0_124 = arith.constant 0 : index
    %139 = vector.load %arg9[%c1_122, %c0_123, %c0_124] : memref<9x32x32xbf16, #tpu.memory_space<vmem>>, vector<1x32x32xbf16>
    %140 = vector.shape_cast %139 : vector<1x32x32xbf16> to vector<32x32xbf16>
    %cst_125 = arith.constant dense<0.000000e+00> : vector<32x128xf32>
    %141 = tpu.matmul %140, %134, %cst_125 {dimension_numbers = #tpu.dot_dimension_numbers<[1], [0], [0], [1], [0, 0, 1, 1], [], []>} : vector<32x32xbf16>, vector<32x128xbf16>, vector<32x128xf32> -> vector<32x128xf32>
    %142 = arith.truncf %141 : vector<32x128xf32> to vector<32x128xbf16>
    %c2_126 = arith.constant 2 : index
    %c0_127 = arith.constant 0 : index
    %c0_128 = arith.constant 0 : index
    %143 = vector.load %arg9[%c2_126, %c0_127, %c0_128] : memref<9x32x32xbf16, #tpu.memory_space<vmem>>, vector<1x32x32xbf16>
    %144 = vector.shape_cast %143 : vector<1x32x32xbf16> to vector<32x32xbf16>
    %cst_129 = arith.constant dense<0.000000e+00> : vector<32x128xf32>
    %145 = tpu.matmul %144, %134, %cst_129 {dimension_numbers = #tpu.dot_dimension_numbers<[1], [0], [0], [1], [0, 0, 1, 1], [], []>} : vector<32x32xbf16>, vector<32x128xbf16>, vector<32x128xf32> -> vector<32x128xf32>
    %146 = arith.truncf %145 : vector<32x128xf32> to vector<32x128xbf16>
    %c3_130 = arith.constant 3 : index
    %c0_131 = arith.constant 0 : index
    %c0_132 = arith.constant 0 : index
    %147 = vector.load %arg9[%c3_130, %c0_131, %c0_132] : memref<9x32x32xbf16, #tpu.memory_space<vmem>>, vector<1x32x32xbf16>
    %148 = vector.shape_cast %147 : vector<1x32x32xbf16> to vector<32x32xbf16>
    %cst_133 = arith.constant dense<0.000000e+00> : vector<32x128xf32>
    %149 = tpu.matmul %148, %134, %cst_133 {dimension_numbers = #tpu.dot_dimension_numbers<[1], [0], [0], [1], [0, 0, 1, 1], [], []>} : vector<32x32xbf16>, vector<32x128xbf16>, vector<32x128xf32> -> vector<32x128xf32>
    %150 = arith.truncf %149 : vector<32x128xf32> to vector<32x128xbf16>
    %c4_134 = arith.constant 4 : index
    %c0_135 = arith.constant 0 : index
    %c0_136 = arith.constant 0 : index
    %151 = vector.load %arg9[%c4_134, %c0_135, %c0_136] : memref<9x32x32xbf16, #tpu.memory_space<vmem>>, vector<1x32x32xbf16>
    %152 = vector.shape_cast %151 : vector<1x32x32xbf16> to vector<32x32xbf16>
    %cst_137 = arith.constant dense<0.000000e+00> : vector<32x128xf32>
    %153 = tpu.matmul %152, %134, %cst_137 {dimension_numbers = #tpu.dot_dimension_numbers<[1], [0], [0], [1], [0, 0, 1, 1], [], []>} : vector<32x32xbf16>, vector<32x128xbf16>, vector<32x128xf32> -> vector<32x128xf32>
    %154 = arith.truncf %153 : vector<32x128xf32> to vector<32x128xbf16>
    %c5_138 = arith.constant 5 : index
    %c0_139 = arith.constant 0 : index
    %c0_140 = arith.constant 0 : index
    %155 = vector.load %arg9[%c5_138, %c0_139, %c0_140] : memref<9x32x32xbf16, #tpu.memory_space<vmem>>, vector<1x32x32xbf16>
    %156 = vector.shape_cast %155 : vector<1x32x32xbf16> to vector<32x32xbf16>
    %cst_141 = arith.constant dense<0.000000e+00> : vector<32x128xf32>
    %157 = tpu.matmul %156, %134, %cst_141 {dimension_numbers = #tpu.dot_dimension_numbers<[1], [0], [0], [1], [0, 0, 1, 1], [], []>} : vector<32x32xbf16>, vector<32x128xbf16>, vector<32x128xf32> -> vector<32x128xf32>
    %158 = arith.truncf %157 : vector<32x128xf32> to vector<32x128xbf16>
    %c6_142 = arith.constant 6 : index
    %c0_143 = arith.constant 0 : index
    %c0_144 = arith.constant 0 : index
    %159 = vector.load %arg9[%c6_142, %c0_143, %c0_144] : memref<9x32x32xbf16, #tpu.memory_space<vmem>>, vector<1x32x32xbf16>
    %160 = vector.shape_cast %159 : vector<1x32x32xbf16> to vector<32x32xbf16>
    %cst_145 = arith.constant dense<0.000000e+00> : vector<32x128xf32>
    %161 = tpu.matmul %160, %134, %cst_145 {dimension_numbers = #tpu.dot_dimension_numbers<[1], [0], [0], [1], [0, 0, 1, 1], [], []>} : vector<32x32xbf16>, vector<32x128xbf16>, vector<32x128xf32> -> vector<32x128xf32>
    %162 = arith.truncf %161 : vector<32x128xf32> to vector<32x128xbf16>
    %c7_146 = arith.constant 7 : index
    %c0_147 = arith.constant 0 : index
    %c0_148 = arith.constant 0 : index
    %163 = vector.load %arg9[%c7_146, %c0_147, %c0_148] : memref<9x32x32xbf16, #tpu.memory_space<vmem>>, vector<1x32x32xbf16>
    %164 = vector.shape_cast %163 : vector<1x32x32xbf16> to vector<32x32xbf16>
    %cst_149 = arith.constant dense<0.000000e+00> : vector<32x128xf32>
    %165 = tpu.matmul %164, %134, %cst_149 {dimension_numbers = #tpu.dot_dimension_numbers<[1], [0], [0], [1], [0, 0, 1, 1], [], []>} : vector<32x32xbf16>, vector<32x128xbf16>, vector<32x128xf32> -> vector<32x128xf32>
    %166 = arith.truncf %165 : vector<32x128xf32> to vector<32x128xbf16>
    %c8_150 = arith.constant 8 : index
    %c0_151 = arith.constant 0 : index
    %c0_152 = arith.constant 0 : index
    %167 = vector.load %arg9[%c8_150, %c0_151, %c0_152] : memref<9x32x32xbf16, #tpu.memory_space<vmem>>, vector<1x32x32xbf16>
    %168 = vector.shape_cast %167 : vector<1x32x32xbf16> to vector<32x32xbf16>
    %cst_153 = arith.constant dense<0.000000e+00> : vector<32x128xf32>
    %169 = tpu.matmul %168, %134, %cst_153 {dimension_numbers = #tpu.dot_dimension_numbers<[1], [0], [0], [1], [0, 0, 1, 1], [], []>} : vector<32x32xbf16>, vector<32x128xbf16>, vector<32x128xf32> -> vector<32x128xf32>
    %170 = arith.truncf %169 : vector<32x128xf32> to vector<32x128xbf16>
    %171 = tpu.concatenate %138, %142, %146, %150, %154, %158, %162, %166, %170 in 1 : vector<32x128xbf16>, vector<32x128xbf16>, vector<32x128xbf16>, vector<32x128xbf16>, vector<32x128xbf16>, vector<32x128xbf16>, vector<32x128xbf16>, vector<32x128xbf16>, vector<32x128xbf16> -> vector<32x1152xbf16>
    %c0_154 = arith.constant 0 : index
    %c0_155 = arith.constant 0 : index
    %172 = vector.load %arg10[%c0_154, %c0_155] : memref<1152x128xbf16, #tpu.memory_space<vmem>>, vector<1152x128xbf16>
    %cst_156 = arith.constant dense<0.000000e+00> : vector<32x128xf32>
    %173 = tpu.matmul %171, %172, %cst_156 {dimension_numbers = #tpu.dot_dimension_numbers<[1], [0], [0], [1], [0, 0, 1, 1], [], []>} : vector<32x1152xbf16>, vector<1152x128xbf16>, vector<32x128xf32> -> vector<32x128xf32>
    %c2_157 = arith.constant 2 : index
    %c0_158 = arith.constant 0 : index
    %174 = vector.load %arg4[%c2_157, %c0_158] : memref<19x512xf32, #tpu.memory_space<vmem>>, vector<1x128xf32>
    %175 = vector.broadcast %174 : vector<1x128xf32> to vector<32x128xf32>
    %176 = arith.addf %173, %175 : vector<32x128xf32>
    %cst_159 = arith.constant 0.000000e+00 : f32
    %177 = vector.broadcast %cst_159 : f32 to vector<32x128xf32>
    %178 = arith.maximumf %176, %177 : vector<32x128xf32>
    %179 = arith.truncf %178 : vector<32x128xf32> to vector<32x128xbf16>
    %c0_160 = arith.constant 0 : index
    %c0_161 = arith.constant 0 : index
    %c0_162 = arith.constant 0 : index
    %180 = vector.load %arg11[%c0_160, %c0_161, %c0_162] : memref<9x32x32xbf16, #tpu.memory_space<vmem>>, vector<1x32x32xbf16>
    %181 = vector.shape_cast %180 : vector<1x32x32xbf16> to vector<32x32xbf16>
    %cst_163 = arith.constant dense<0.000000e+00> : vector<32x128xf32>
    %182 = tpu.matmul %181, %179, %cst_163 {dimension_numbers = #tpu.dot_dimension_numbers<[1], [0], [0], [1], [0, 0, 1, 1], [], []>} : vector<32x32xbf16>, vector<32x128xbf16>, vector<32x128xf32> -> vector<32x128xf32>
    %183 = arith.truncf %182 : vector<32x128xf32> to vector<32x128xbf16>
    %c1_164 = arith.constant 1 : index
    %c0_165 = arith.constant 0 : index
    %c0_166 = arith.constant 0 : index
    %184 = vector.load %arg11[%c1_164, %c0_165, %c0_166] : memref<9x32x32xbf16, #tpu.memory_space<vmem>>, vector<1x32x32xbf16>
    %185 = vector.shape_cast %184 : vector<1x32x32xbf16> to vector<32x32xbf16>
    %cst_167 = arith.constant dense<0.000000e+00> : vector<32x128xf32>
    %186 = tpu.matmul %185, %179, %cst_167 {dimension_numbers = #tpu.dot_dimension_numbers<[1], [0], [0], [1], [0, 0, 1, 1], [], []>} : vector<32x32xbf16>, vector<32x128xbf16>, vector<32x128xf32> -> vector<32x128xf32>
    %187 = arith.truncf %186 : vector<32x128xf32> to vector<32x128xbf16>
    %c2_168 = arith.constant 2 : index
    %c0_169 = arith.constant 0 : index
    %c0_170 = arith.constant 0 : index
    %188 = vector.load %arg11[%c2_168, %c0_169, %c0_170] : memref<9x32x32xbf16, #tpu.memory_space<vmem>>, vector<1x32x32xbf16>
    %189 = vector.shape_cast %188 : vector<1x32x32xbf16> to vector<32x32xbf16>
    %cst_171 = arith.constant dense<0.000000e+00> : vector<32x128xf32>
    %190 = tpu.matmul %189, %179, %cst_171 {dimension_numbers = #tpu.dot_dimension_numbers<[1], [0], [0], [1], [0, 0, 1, 1], [], []>} : vector<32x32xbf16>, vector<32x128xbf16>, vector<32x128xf32> -> vector<32x128xf32>
    %191 = arith.truncf %190 : vector<32x128xf32> to vector<32x128xbf16>
    %c3_172 = arith.constant 3 : index
    %c0_173 = arith.constant 0 : index
    %c0_174 = arith.constant 0 : index
    %192 = vector.load %arg11[%c3_172, %c0_173, %c0_174] : memref<9x32x32xbf16, #tpu.memory_space<vmem>>, vector<1x32x32xbf16>
    %193 = vector.shape_cast %192 : vector<1x32x32xbf16> to vector<32x32xbf16>
    %cst_175 = arith.constant dense<0.000000e+00> : vector<32x128xf32>
    %194 = tpu.matmul %193, %179, %cst_175 {dimension_numbers = #tpu.dot_dimension_numbers<[1], [0], [0], [1], [0, 0, 1, 1], [], []>} : vector<32x32xbf16>, vector<32x128xbf16>, vector<32x128xf32> -> vector<32x128xf32>
    %195 = arith.truncf %194 : vector<32x128xf32> to vector<32x128xbf16>
    %c4_176 = arith.constant 4 : index
    %c0_177 = arith.constant 0 : index
    %c0_178 = arith.constant 0 : index
    %196 = vector.load %arg11[%c4_176, %c0_177, %c0_178] : memref<9x32x32xbf16, #tpu.memory_space<vmem>>, vector<1x32x32xbf16>
    %197 = vector.shape_cast %196 : vector<1x32x32xbf16> to vector<32x32xbf16>
    %cst_179 = arith.constant dense<0.000000e+00> : vector<32x128xf32>
    %198 = tpu.matmul %197, %179, %cst_179 {dimension_numbers = #tpu.dot_dimension_numbers<[1], [0], [0], [1], [0, 0, 1, 1], [], []>} : vector<32x32xbf16>, vector<32x128xbf16>, vector<32x128xf32> -> vector<32x128xf32>
    %199 = arith.truncf %198 : vector<32x128xf32> to vector<32x128xbf16>
    %c5_180 = arith.constant 5 : index
    %c0_181 = arith.constant 0 : index
    %c0_182 = arith.constant 0 : index
    %200 = vector.load %arg11[%c5_180, %c0_181, %c0_182] : memref<9x32x32xbf16, #tpu.memory_space<vmem>>, vector<1x32x32xbf16>
    %201 = vector.shape_cast %200 : vector<1x32x32xbf16> to vector<32x32xbf16>
    %cst_183 = arith.constant dense<0.000000e+00> : vector<32x128xf32>
    %202 = tpu.matmul %201, %179, %cst_183 {dimension_numbers = #tpu.dot_dimension_numbers<[1], [0], [0], [1], [0, 0, 1, 1], [], []>} : vector<32x32xbf16>, vector<32x128xbf16>, vector<32x128xf32> -> vector<32x128xf32>
    %203 = arith.truncf %202 : vector<32x128xf32> to vector<32x128xbf16>
    %c6_184 = arith.constant 6 : index
    %c0_185 = arith.constant 0 : index
    %c0_186 = arith.constant 0 : index
    %204 = vector.load %arg11[%c6_184, %c0_185, %c0_186] : memref<9x32x32xbf16, #tpu.memory_space<vmem>>, vector<1x32x32xbf16>
    %205 = vector.shape_cast %204 : vector<1x32x32xbf16> to vector<32x32xbf16>
    %cst_187 = arith.constant dense<0.000000e+00> : vector<32x128xf32>
    %206 = tpu.matmul %205, %179, %cst_187 {dimension_numbers = #tpu.dot_dimension_numbers<[1], [0], [0], [1], [0, 0, 1, 1], [], []>} : vector<32x32xbf16>, vector<32x128xbf16>, vector<32x128xf32> -> vector<32x128xf32>
    %207 = arith.truncf %206 : vector<32x128xf32> to vector<32x128xbf16>
    %c7_188 = arith.constant 7 : index
    %c0_189 = arith.constant 0 : index
    %c0_190 = arith.constant 0 : index
    %208 = vector.load %arg11[%c7_188, %c0_189, %c0_190] : memref<9x32x32xbf16, #tpu.memory_space<vmem>>, vector<1x32x32xbf16>
    %209 = vector.shape_cast %208 : vector<1x32x32xbf16> to vector<32x32xbf16>
    %cst_191 = arith.constant dense<0.000000e+00> : vector<32x128xf32>
    %210 = tpu.matmul %209, %179, %cst_191 {dimension_numbers = #tpu.dot_dimension_numbers<[1], [0], [0], [1], [0, 0, 1, 1], [], []>} : vector<32x32xbf16>, vector<32x128xbf16>, vector<32x128xf32> -> vector<32x128xf32>
    %211 = arith.truncf %210 : vector<32x128xf32> to vector<32x128xbf16>
    %c8_192 = arith.constant 8 : index
    %c0_193 = arith.constant 0 : index
    %c0_194 = arith.constant 0 : index
    %212 = vector.load %arg11[%c8_192, %c0_193, %c0_194] : memref<9x32x32xbf16, #tpu.memory_space<vmem>>, vector<1x32x32xbf16>
    %213 = vector.shape_cast %212 : vector<1x32x32xbf16> to vector<32x32xbf16>
    %cst_195 = arith.constant dense<0.000000e+00> : vector<32x128xf32>
    %214 = tpu.matmul %213, %179, %cst_195 {dimension_numbers = #tpu.dot_dimension_numbers<[1], [0], [0], [1], [0, 0, 1, 1], [], []>} : vector<32x32xbf16>, vector<32x128xbf16>, vector<32x128xf32> -> vector<32x128xf32>
    %215 = arith.truncf %214 : vector<32x128xf32> to vector<32x128xbf16>
    %216 = tpu.concatenate %183, %187, %191, %195, %199, %203, %207, %211, %215 in 1 : vector<32x128xbf16>, vector<32x128xbf16>, vector<32x128xbf16>, vector<32x128xbf16>, vector<32x128xbf16>, vector<32x128xbf16>, vector<32x128xbf16>, vector<32x128xbf16>, vector<32x128xbf16> -> vector<32x1152xbf16>
    %c0_196 = arith.constant 0 : index
    %c0_197 = arith.constant 0 : index
    %217 = vector.load %arg12[%c0_196, %c0_197] : memref<1152x128xbf16, #tpu.memory_space<vmem>>, vector<1152x128xbf16>
    %cst_198 = arith.constant dense<0.000000e+00> : vector<32x128xf32>
    %218 = tpu.matmul %216, %217, %cst_198 {dimension_numbers = #tpu.dot_dimension_numbers<[1], [0], [0], [1], [0, 0, 1, 1], [], []>} : vector<32x1152xbf16>, vector<1152x128xbf16>, vector<32x128xf32> -> vector<32x128xf32>
    %c3_199 = arith.constant 3 : index
    %c0_200 = arith.constant 0 : index
    %219 = vector.load %arg4[%c3_199, %c0_200] : memref<19x512xf32, #tpu.memory_space<vmem>>, vector<1x128xf32>
    %220 = vector.broadcast %219 : vector<1x128xf32> to vector<32x128xf32>
    %221 = arith.addf %218, %220 : vector<32x128xf32>
    %222 = arith.addf %221, %133 : vector<32x128xf32>
    %cst_201 = arith.constant 0.000000e+00 : f32
    %223 = vector.broadcast %cst_201 : f32 to vector<32x128xf32>
    %224 = arith.maximumf %222, %223 : vector<32x128xf32>
    %225 = arith.truncf %224 : vector<32x128xf32> to vector<32x128xbf16>
    %c0_202 = arith.constant 0 : index
    %c0_203 = arith.constant 0 : index
    %c0_204 = arith.constant 0 : index
    %226 = vector.load %arg13[%c0_202, %c0_203, %c0_204] : memref<9x8x32xbf16, #tpu.memory_space<vmem>>, vector<1x8x32xbf16>
    %227 = vector.shape_cast %226 : vector<1x8x32xbf16> to vector<8x32xbf16>
    %cst_205 = arith.constant dense<0.000000e+00> : vector<8x128xf32>
    %228 = tpu.matmul %227, %225, %cst_205 {dimension_numbers = #tpu.dot_dimension_numbers<[1], [0], [0], [1], [0, 0, 1, 1], [], []>} : vector<8x32xbf16>, vector<32x128xbf16>, vector<8x128xf32> -> vector<8x128xf32>
    %229 = arith.truncf %228 : vector<8x128xf32> to vector<8x128xbf16>
    %c1_206 = arith.constant 1 : index
    %c0_207 = arith.constant 0 : index
    %c0_208 = arith.constant 0 : index
    %230 = vector.load %arg13[%c1_206, %c0_207, %c0_208] : memref<9x8x32xbf16, #tpu.memory_space<vmem>>, vector<1x8x32xbf16>
    %231 = vector.shape_cast %230 : vector<1x8x32xbf16> to vector<8x32xbf16>
    %cst_209 = arith.constant dense<0.000000e+00> : vector<8x128xf32>
    %232 = tpu.matmul %231, %225, %cst_209 {dimension_numbers = #tpu.dot_dimension_numbers<[1], [0], [0], [1], [0, 0, 1, 1], [], []>} : vector<8x32xbf16>, vector<32x128xbf16>, vector<8x128xf32> -> vector<8x128xf32>
    %233 = arith.truncf %232 : vector<8x128xf32> to vector<8x128xbf16>
    %c2_210 = arith.constant 2 : index
    %c0_211 = arith.constant 0 : index
    %c0_212 = arith.constant 0 : index
    %234 = vector.load %arg13[%c2_210, %c0_211, %c0_212] : memref<9x8x32xbf16, #tpu.memory_space<vmem>>, vector<1x8x32xbf16>
    %235 = vector.shape_cast %234 : vector<1x8x32xbf16> to vector<8x32xbf16>
    %cst_213 = arith.constant dense<0.000000e+00> : vector<8x128xf32>
    %236 = tpu.matmul %235, %225, %cst_213 {dimension_numbers = #tpu.dot_dimension_numbers<[1], [0], [0], [1], [0, 0, 1, 1], [], []>} : vector<8x32xbf16>, vector<32x128xbf16>, vector<8x128xf32> -> vector<8x128xf32>
    %237 = arith.truncf %236 : vector<8x128xf32> to vector<8x128xbf16>
    %c3_214 = arith.constant 3 : index
    %c0_215 = arith.constant 0 : index
    %c0_216 = arith.constant 0 : index
    %238 = vector.load %arg13[%c3_214, %c0_215, %c0_216] : memref<9x8x32xbf16, #tpu.memory_space<vmem>>, vector<1x8x32xbf16>
    %239 = vector.shape_cast %238 : vector<1x8x32xbf16> to vector<8x32xbf16>
    %cst_217 = arith.constant dense<0.000000e+00> : vector<8x128xf32>
    %240 = tpu.matmul %239, %225, %cst_217 {dimension_numbers = #tpu.dot_dimension_numbers<[1], [0], [0], [1], [0, 0, 1, 1], [], []>} : vector<8x32xbf16>, vector<32x128xbf16>, vector<8x128xf32> -> vector<8x128xf32>
    %241 = arith.truncf %240 : vector<8x128xf32> to vector<8x128xbf16>
    %c4_218 = arith.constant 4 : index
    %c0_219 = arith.constant 0 : index
    %c0_220 = arith.constant 0 : index
    %242 = vector.load %arg13[%c4_218, %c0_219, %c0_220] : memref<9x8x32xbf16, #tpu.memory_space<vmem>>, vector<1x8x32xbf16>
    %243 = vector.shape_cast %242 : vector<1x8x32xbf16> to vector<8x32xbf16>
    %cst_221 = arith.constant dense<0.000000e+00> : vector<8x128xf32>
    %244 = tpu.matmul %243, %225, %cst_221 {dimension_numbers = #tpu.dot_dimension_numbers<[1], [0], [0], [1], [0, 0, 1, 1], [], []>} : vector<8x32xbf16>, vector<32x128xbf16>, vector<8x128xf32> -> vector<8x128xf32>
    %245 = arith.truncf %244 : vector<8x128xf32> to vector<8x128xbf16>
    %c5_222 = arith.constant 5 : index
    %c0_223 = arith.constant 0 : index
    %c0_224 = arith.constant 0 : index
    %246 = vector.load %arg13[%c5_222, %c0_223, %c0_224] : memref<9x8x32xbf16, #tpu.memory_space<vmem>>, vector<1x8x32xbf16>
    %247 = vector.shape_cast %246 : vector<1x8x32xbf16> to vector<8x32xbf16>
    %cst_225 = arith.constant dense<0.000000e+00> : vector<8x128xf32>
    %248 = tpu.matmul %247, %225, %cst_225 {dimension_numbers = #tpu.dot_dimension_numbers<[1], [0], [0], [1], [0, 0, 1, 1], [], []>} : vector<8x32xbf16>, vector<32x128xbf16>, vector<8x128xf32> -> vector<8x128xf32>
    %249 = arith.truncf %248 : vector<8x128xf32> to vector<8x128xbf16>
    %c6_226 = arith.constant 6 : index
    %c0_227 = arith.constant 0 : index
    %c0_228 = arith.constant 0 : index
    %250 = vector.load %arg13[%c6_226, %c0_227, %c0_228] : memref<9x8x32xbf16, #tpu.memory_space<vmem>>, vector<1x8x32xbf16>
    %251 = vector.shape_cast %250 : vector<1x8x32xbf16> to vector<8x32xbf16>
    %cst_229 = arith.constant dense<0.000000e+00> : vector<8x128xf32>
    %252 = tpu.matmul %251, %225, %cst_229 {dimension_numbers = #tpu.dot_dimension_numbers<[1], [0], [0], [1], [0, 0, 1, 1], [], []>} : vector<8x32xbf16>, vector<32x128xbf16>, vector<8x128xf32> -> vector<8x128xf32>
    %253 = arith.truncf %252 : vector<8x128xf32> to vector<8x128xbf16>
    %c7_230 = arith.constant 7 : index
    %c0_231 = arith.constant 0 : index
    %c0_232 = arith.constant 0 : index
    %254 = vector.load %arg13[%c7_230, %c0_231, %c0_232] : memref<9x8x32xbf16, #tpu.memory_space<vmem>>, vector<1x8x32xbf16>
    %255 = vector.shape_cast %254 : vector<1x8x32xbf16> to vector<8x32xbf16>
    %cst_233 = arith.constant dense<0.000000e+00> : vector<8x128xf32>
    %256 = tpu.matmul %255, %225, %cst_233 {dimension_numbers = #tpu.dot_dimension_numbers<[1], [0], [0], [1], [0, 0, 1, 1], [], []>} : vector<8x32xbf16>, vector<32x128xbf16>, vector<8x128xf32> -> vector<8x128xf32>
    %257 = arith.truncf %256 : vector<8x128xf32> to vector<8x128xbf16>
    %c8_234 = arith.constant 8 : index
    %c0_235 = arith.constant 0 : index
    %c0_236 = arith.constant 0 : index
    %258 = vector.load %arg13[%c8_234, %c0_235, %c0_236] : memref<9x8x32xbf16, #tpu.memory_space<vmem>>, vector<1x8x32xbf16>
    %259 = vector.shape_cast %258 : vector<1x8x32xbf16> to vector<8x32xbf16>
    %cst_237 = arith.constant dense<0.000000e+00> : vector<8x128xf32>
    %260 = tpu.matmul %259, %225, %cst_237 {dimension_numbers = #tpu.dot_dimension_numbers<[1], [0], [0], [1], [0, 0, 1, 1], [], []>} : vector<8x32xbf16>, vector<32x128xbf16>, vector<8x128xf32> -> vector<8x128xf32>
    %261 = arith.truncf %260 : vector<8x128xf32> to vector<8x128xbf16>
    %262 = tpu.concatenate %229, %233, %237, %241, %245, %249, %253, %257, %261 in 1 : vector<8x128xbf16>, vector<8x128xbf16>, vector<8x128xbf16>, vector<8x128xbf16>, vector<8x128xbf16>, vector<8x128xbf16>, vector<8x128xbf16>, vector<8x128xbf16>, vector<8x128xbf16> -> vector<8x1152xbf16>
    %c0_238 = arith.constant 0 : index
    %c0_239 = arith.constant 0 : index
    %263 = vector.load %arg14[%c0_238, %c0_239] : memref<1152x128xbf16, #tpu.memory_space<vmem>>, vector<1152x128xbf16>
    %cst_240 = arith.constant dense<0.000000e+00> : vector<8x128xf32>
    %264 = tpu.matmul %262, %263, %cst_240 {dimension_numbers = #tpu.dot_dimension_numbers<[1], [0], [0], [1], [0, 0, 1, 1], [], []>} : vector<8x1152xbf16>, vector<1152x128xbf16>, vector<8x128xf32> -> vector<8x128xf32>
    %c4_241 = arith.constant 4 : index
    %c0_242 = arith.constant 0 : index
    %265 = vector.load %arg4[%c4_241, %c0_242] : memref<19x512xf32, #tpu.memory_space<vmem>>, vector<1x128xf32>
    %266 = vector.broadcast %265 : vector<1x128xf32> to vector<8x128xf32>
    %267 = arith.addf %264, %266 : vector<8x128xf32>
    %cst_243 = arith.constant 0.000000e+00 : f32
    %268 = vector.broadcast %cst_243 : f32 to vector<8x128xf32>
    %269 = arith.maximumf %267, %268 : vector<8x128xf32>
    %270 = arith.truncf %269 : vector<8x128xf32> to vector<8x128xbf16>
    %c0_244 = arith.constant 0 : index
    %c0_245 = arith.constant 0 : index
    %c0_246 = arith.constant 0 : index
    %271 = vector.load %arg15[%c0_244, %c0_245, %c0_246] : memref<9x8x8xbf16, #tpu.memory_space<vmem>>, vector<1x8x8xbf16>
    %272 = vector.shape_cast %271 : vector<1x8x8xbf16> to vector<8x8xbf16>
    %cst_247 = arith.constant dense<0.000000e+00> : vector<8x128xf32>
    %273 = tpu.matmul %272, %270, %cst_247 {dimension_numbers = #tpu.dot_dimension_numbers<[1], [0], [0], [1], [0, 0, 1, 1], [], []>} : vector<8x8xbf16>, vector<8x128xbf16>, vector<8x128xf32> -> vector<8x128xf32>
    %274 = arith.truncf %273 : vector<8x128xf32> to vector<8x128xbf16>
    %c1_248 = arith.constant 1 : index
    %c0_249 = arith.constant 0 : index
    %c0_250 = arith.constant 0 : index
    %275 = vector.load %arg15[%c1_248, %c0_249, %c0_250] : memref<9x8x8xbf16, #tpu.memory_space<vmem>>, vector<1x8x8xbf16>
    %276 = vector.shape_cast %275 : vector<1x8x8xbf16> to vector<8x8xbf16>
    %cst_251 = arith.constant dense<0.000000e+00> : vector<8x128xf32>
    %277 = tpu.matmul %276, %270, %cst_251 {dimension_numbers = #tpu.dot_dimension_numbers<[1], [0], [0], [1], [0, 0, 1, 1], [], []>} : vector<8x8xbf16>, vector<8x128xbf16>, vector<8x128xf32> -> vector<8x128xf32>
    %278 = arith.truncf %277 : vector<8x128xf32> to vector<8x128xbf16>
    %c2_252 = arith.constant 2 : index
    %c0_253 = arith.constant 0 : index
    %c0_254 = arith.constant 0 : index
    %279 = vector.load %arg15[%c2_252, %c0_253, %c0_254] : memref<9x8x8xbf16, #tpu.memory_space<vmem>>, vector<1x8x8xbf16>
    %280 = vector.shape_cast %279 : vector<1x8x8xbf16> to vector<8x8xbf16>
    %cst_255 = arith.constant dense<0.000000e+00> : vector<8x128xf32>
    %281 = tpu.matmul %280, %270, %cst_255 {dimension_numbers = #tpu.dot_dimension_numbers<[1], [0], [0], [1], [0, 0, 1, 1], [], []>} : vector<8x8xbf16>, vector<8x128xbf16>, vector<8x128xf32> -> vector<8x128xf32>
    %282 = arith.truncf %281 : vector<8x128xf32> to vector<8x128xbf16>
    %c3_256 = arith.constant 3 : index
    %c0_257 = arith.constant 0 : index
    %c0_258 = arith.constant 0 : index
    %283 = vector.load %arg15[%c3_256, %c0_257, %c0_258] : memref<9x8x8xbf16, #tpu.memory_space<vmem>>, vector<1x8x8xbf16>
    %284 = vector.shape_cast %283 : vector<1x8x8xbf16> to vector<8x8xbf16>
    %cst_259 = arith.constant dense<0.000000e+00> : vector<8x128xf32>
    %285 = tpu.matmul %284, %270, %cst_259 {dimension_numbers = #tpu.dot_dimension_numbers<[1], [0], [0], [1], [0, 0, 1, 1], [], []>} : vector<8x8xbf16>, vector<8x128xbf16>, vector<8x128xf32> -> vector<8x128xf32>
    %286 = arith.truncf %285 : vector<8x128xf32> to vector<8x128xbf16>
    %c4_260 = arith.constant 4 : index
    %c0_261 = arith.constant 0 : index
    %c0_262 = arith.constant 0 : index
    %287 = vector.load %arg15[%c4_260, %c0_261, %c0_262] : memref<9x8x8xbf16, #tpu.memory_space<vmem>>, vector<1x8x8xbf16>
    %288 = vector.shape_cast %287 : vector<1x8x8xbf16> to vector<8x8xbf16>
    %cst_263 = arith.constant dense<0.000000e+00> : vector<8x128xf32>
    %289 = tpu.matmul %288, %270, %cst_263 {dimension_numbers = #tpu.dot_dimension_numbers<[1], [0], [0], [1], [0, 0, 1, 1], [], []>} : vector<8x8xbf16>, vector<8x128xbf16>, vector<8x128xf32> -> vector<8x128xf32>
    %290 = arith.truncf %289 : vector<8x128xf32> to vector<8x128xbf16>
    %c5_264 = arith.constant 5 : index
    %c0_265 = arith.constant 0 : index
    %c0_266 = arith.constant 0 : index
    %291 = vector.load %arg15[%c5_264, %c0_265, %c0_266] : memref<9x8x8xbf16, #tpu.memory_space<vmem>>, vector<1x8x8xbf16>
    %292 = vector.shape_cast %291 : vector<1x8x8xbf16> to vector<8x8xbf16>
    %cst_267 = arith.constant dense<0.000000e+00> : vector<8x128xf32>
    %293 = tpu.matmul %292, %270, %cst_267 {dimension_numbers = #tpu.dot_dimension_numbers<[1], [0], [0], [1], [0, 0, 1, 1], [], []>} : vector<8x8xbf16>, vector<8x128xbf16>, vector<8x128xf32> -> vector<8x128xf32>
    %294 = arith.truncf %293 : vector<8x128xf32> to vector<8x128xbf16>
    %c6_268 = arith.constant 6 : index
    %c0_269 = arith.constant 0 : index
    %c0_270 = arith.constant 0 : index
    %295 = vector.load %arg15[%c6_268, %c0_269, %c0_270] : memref<9x8x8xbf16, #tpu.memory_space<vmem>>, vector<1x8x8xbf16>
    %296 = vector.shape_cast %295 : vector<1x8x8xbf16> to vector<8x8xbf16>
    %cst_271 = arith.constant dense<0.000000e+00> : vector<8x128xf32>
    %297 = tpu.matmul %296, %270, %cst_271 {dimension_numbers = #tpu.dot_dimension_numbers<[1], [0], [0], [1], [0, 0, 1, 1], [], []>} : vector<8x8xbf16>, vector<8x128xbf16>, vector<8x128xf32> -> vector<8x128xf32>
    %298 = arith.truncf %297 : vector<8x128xf32> to vector<8x128xbf16>
    %c7_272 = arith.constant 7 : index
    %c0_273 = arith.constant 0 : index
    %c0_274 = arith.constant 0 : index
    %299 = vector.load %arg15[%c7_272, %c0_273, %c0_274] : memref<9x8x8xbf16, #tpu.memory_space<vmem>>, vector<1x8x8xbf16>
    %300 = vector.shape_cast %299 : vector<1x8x8xbf16> to vector<8x8xbf16>
    %cst_275 = arith.constant dense<0.000000e+00> : vector<8x128xf32>
    %301 = tpu.matmul %300, %270, %cst_275 {dimension_numbers = #tpu.dot_dimension_numbers<[1], [0], [0], [1], [0, 0, 1, 1], [], []>} : vector<8x8xbf16>, vector<8x128xbf16>, vector<8x128xf32> -> vector<8x128xf32>
    %302 = arith.truncf %301 : vector<8x128xf32> to vector<8x128xbf16>
    %c8_276 = arith.constant 8 : index
    %c0_277 = arith.constant 0 : index
    %c0_278 = arith.constant 0 : index
    %303 = vector.load %arg15[%c8_276, %c0_277, %c0_278] : memref<9x8x8xbf16, #tpu.memory_space<vmem>>, vector<1x8x8xbf16>
    %304 = vector.shape_cast %303 : vector<1x8x8xbf16> to vector<8x8xbf16>
    %cst_279 = arith.constant dense<0.000000e+00> : vector<8x128xf32>
    %305 = tpu.matmul %304, %270, %cst_279 {dimension_numbers = #tpu.dot_dimension_numbers<[1], [0], [0], [1], [0, 0, 1, 1], [], []>} : vector<8x8xbf16>, vector<8x128xbf16>, vector<8x128xf32> -> vector<8x128xf32>
    %306 = arith.truncf %305 : vector<8x128xf32> to vector<8x128xbf16>
    %307 = tpu.concatenate %274, %278, %282, %286, %290, %294, %298, %302, %306 in 1 : vector<8x128xbf16>, vector<8x128xbf16>, vector<8x128xbf16>, vector<8x128xbf16>, vector<8x128xbf16>, vector<8x128xbf16>, vector<8x128xbf16>, vector<8x128xbf16>, vector<8x128xbf16> -> vector<8x1152xbf16>
    %c0_280 = arith.constant 0 : index
    %c0_281 = arith.constant 0 : index
    %308 = vector.load %arg16[%c0_280, %c0_281] : memref<1152x128xbf16, #tpu.memory_space<vmem>>, vector<1152x128xbf16>
    %cst_282 = arith.constant dense<0.000000e+00> : vector<8x128xf32>
    %309 = tpu.matmul %307, %308, %cst_282 {dimension_numbers = #tpu.dot_dimension_numbers<[1], [0], [0], [1], [0, 0, 1, 1], [], []>} : vector<8x1152xbf16>, vector<1152x128xbf16>, vector<8x128xf32> -> vector<8x128xf32>
    %c5_283 = arith.constant 5 : index
    %c0_284 = arith.constant 0 : index
    %310 = vector.load %arg4[%c5_283, %c0_284] : memref<19x512xf32, #tpu.memory_space<vmem>>, vector<1x128xf32>
    %311 = vector.broadcast %310 : vector<1x128xf32> to vector<8x128xf32>
    %312 = arith.addf %309, %311 : vector<8x128xf32>
    %c0_285 = arith.constant 0 : index
    %c0_286 = arith.constant 0 : index
    %c0_287 = arith.constant 0 : index
    %313 = vector.load %arg17[%c0_285, %c0_286, %c0_287] : memref<1x8x32xbf16, #tpu.memory_space<vmem>>, vector<1x8x32xbf16>
    %314 = vector.shape_cast %313 : vector<1x8x32xbf16> to vector<8x32xbf16>
    %cst_288 = arith.constant dense<0.000000e+00> : vector<8x128xf32>
    %315 = tpu.matmul %314, %225, %cst_288 {dimension_numbers = #tpu.dot_dimension_numbers<[1], [0], [0], [1], [0, 0, 1, 1], [], []>} : vector<8x32xbf16>, vector<32x128xbf16>, vector<8x128xf32> -> vector<8x128xf32>
    %316 = arith.truncf %315 : vector<8x128xf32> to vector<8x128xbf16>
    %c0_289 = arith.constant 0 : index
    %c0_290 = arith.constant 0 : index
    %317 = vector.load %arg18[%c0_289, %c0_290] : memref<128x128xbf16, #tpu.memory_space<vmem>>, vector<128x128xbf16>
    %cst_291 = arith.constant dense<0.000000e+00> : vector<8x128xf32>
    %318 = tpu.matmul %316, %317, %cst_291 {dimension_numbers = #tpu.dot_dimension_numbers<[1], [0], [0], [1], [0, 0, 1, 1], [], []>} : vector<8x128xbf16>, vector<128x128xbf16>, vector<8x128xf32> -> vector<8x128xf32>
    %c6_292 = arith.constant 6 : index
    %c0_293 = arith.constant 0 : index
    %319 = vector.load %arg4[%c6_292, %c0_293] : memref<19x512xf32, #tpu.memory_space<vmem>>, vector<1x128xf32>
    %320 = vector.broadcast %319 : vector<1x128xf32> to vector<8x128xf32>
    %321 = arith.addf %318, %320 : vector<8x128xf32>
    %322 = arith.addf %312, %321 : vector<8x128xf32>
    %cst_294 = arith.constant 0.000000e+00 : f32
    %323 = vector.broadcast %cst_294 : f32 to vector<8x128xf32>
    %324 = arith.maximumf %322, %323 : vector<8x128xf32>
    %325 = arith.truncf %324 : vector<8x128xf32> to vector<8x128xbf16>
    %c0_295 = arith.constant 0 : index
    %c0_296 = arith.constant 0 : index
    %c0_297 = arith.constant 0 : index
    %326 = vector.load %arg19[%c0_295, %c0_296, %c0_297] : memref<9x8x8xbf16, #tpu.memory_space<vmem>>, vector<1x8x8xbf16>
    %327 = vector.shape_cast %326 : vector<1x8x8xbf16> to vector<8x8xbf16>
    %cst_298 = arith.constant dense<0.000000e+00> : vector<8x128xf32>
    %328 = tpu.matmul %327, %325, %cst_298 {dimension_numbers = #tpu.dot_dimension_numbers<[1], [0], [0], [1], [0, 0, 1, 1], [], []>} : vector<8x8xbf16>, vector<8x128xbf16>, vector<8x128xf32> -> vector<8x128xf32>
    %329 = arith.truncf %328 : vector<8x128xf32> to vector<8x128xbf16>
    %c1_299 = arith.constant 1 : index
    %c0_300 = arith.constant 0 : index
    %c0_301 = arith.constant 0 : index
    %330 = vector.load %arg19[%c1_299, %c0_300, %c0_301] : memref<9x8x8xbf16, #tpu.memory_space<vmem>>, vector<1x8x8xbf16>
    %331 = vector.shape_cast %330 : vector<1x8x8xbf16> to vector<8x8xbf16>
    %cst_302 = arith.constant dense<0.000000e+00> : vector<8x128xf32>
    %332 = tpu.matmul %331, %325, %cst_302 {dimension_numbers = #tpu.dot_dimension_numbers<[1], [0], [0], [1], [0, 0, 1, 1], [], []>} : vector<8x8xbf16>, vector<8x128xbf16>, vector<8x128xf32> -> vector<8x128xf32>
    %333 = arith.truncf %332 : vector<8x128xf32> to vector<8x128xbf16>
    %c2_303 = arith.constant 2 : index
    %c0_304 = arith.constant 0 : index
    %c0_305 = arith.constant 0 : index
    %334 = vector.load %arg19[%c2_303, %c0_304, %c0_305] : memref<9x8x8xbf16, #tpu.memory_space<vmem>>, vector<1x8x8xbf16>
    %335 = vector.shape_cast %334 : vector<1x8x8xbf16> to vector<8x8xbf16>
    %cst_306 = arith.constant dense<0.000000e+00> : vector<8x128xf32>
    %336 = tpu.matmul %335, %325, %cst_306 {dimension_numbers = #tpu.dot_dimension_numbers<[1], [0], [0], [1], [0, 0, 1, 1], [], []>} : vector<8x8xbf16>, vector<8x128xbf16>, vector<8x128xf32> -> vector<8x128xf32>
    %337 = arith.truncf %336 : vector<8x128xf32> to vector<8x128xbf16>
    %c3_307 = arith.constant 3 : index
    %c0_308 = arith.constant 0 : index
    %c0_309 = arith.constant 0 : index
    %338 = vector.load %arg19[%c3_307, %c0_308, %c0_309] : memref<9x8x8xbf16, #tpu.memory_space<vmem>>, vector<1x8x8xbf16>
    %339 = vector.shape_cast %338 : vector<1x8x8xbf16> to vector<8x8xbf16>
    %cst_310 = arith.constant dense<0.000000e+00> : vector<8x128xf32>
    %340 = tpu.matmul %339, %325, %cst_310 {dimension_numbers = #tpu.dot_dimension_numbers<[1], [0], [0], [1], [0, 0, 1, 1], [], []>} : vector<8x8xbf16>, vector<8x128xbf16>, vector<8x128xf32> -> vector<8x128xf32>
    %341 = arith.truncf %340 : vector<8x128xf32> to vector<8x128xbf16>
    %c4_311 = arith.constant 4 : index
    %c0_312 = arith.constant 0 : index
    %c0_313 = arith.constant 0 : index
    %342 = vector.load %arg19[%c4_311, %c0_312, %c0_313] : memref<9x8x8xbf16, #tpu.memory_space<vmem>>, vector<1x8x8xbf16>
    %343 = vector.shape_cast %342 : vector<1x8x8xbf16> to vector<8x8xbf16>
    %cst_314 = arith.constant dense<0.000000e+00> : vector<8x128xf32>
    %344 = tpu.matmul %343, %325, %cst_314 {dimension_numbers = #tpu.dot_dimension_numbers<[1], [0], [0], [1], [0, 0, 1, 1], [], []>} : vector<8x8xbf16>, vector<8x128xbf16>, vector<8x128xf32> -> vector<8x128xf32>
    %345 = arith.truncf %344 : vector<8x128xf32> to vector<8x128xbf16>
    %c5_315 = arith.constant 5 : index
    %c0_316 = arith.constant 0 : index
    %c0_317 = arith.constant 0 : index
    %346 = vector.load %arg19[%c5_315, %c0_316, %c0_317] : memref<9x8x8xbf16, #tpu.memory_space<vmem>>, vector<1x8x8xbf16>
    %347 = vector.shape_cast %346 : vector<1x8x8xbf16> to vector<8x8xbf16>
    %cst_318 = arith.constant dense<0.000000e+00> : vector<8x128xf32>
    %348 = tpu.matmul %347, %325, %cst_318 {dimension_numbers = #tpu.dot_dimension_numbers<[1], [0], [0], [1], [0, 0, 1, 1], [], []>} : vector<8x8xbf16>, vector<8x128xbf16>, vector<8x128xf32> -> vector<8x128xf32>
    %349 = arith.truncf %348 : vector<8x128xf32> to vector<8x128xbf16>
    %c6_319 = arith.constant 6 : index
    %c0_320 = arith.constant 0 : index
    %c0_321 = arith.constant 0 : index
    %350 = vector.load %arg19[%c6_319, %c0_320, %c0_321] : memref<9x8x8xbf16, #tpu.memory_space<vmem>>, vector<1x8x8xbf16>
    %351 = vector.shape_cast %350 : vector<1x8x8xbf16> to vector<8x8xbf16>
    %cst_322 = arith.constant dense<0.000000e+00> : vector<8x128xf32>
    %352 = tpu.matmul %351, %325, %cst_322 {dimension_numbers = #tpu.dot_dimension_numbers<[1], [0], [0], [1], [0, 0, 1, 1], [], []>} : vector<8x8xbf16>, vector<8x128xbf16>, vector<8x128xf32> -> vector<8x128xf32>
    %353 = arith.truncf %352 : vector<8x128xf32> to vector<8x128xbf16>
    %c7_323 = arith.constant 7 : index
    %c0_324 = arith.constant 0 : index
    %c0_325 = arith.constant 0 : index
    %354 = vector.load %arg19[%c7_323, %c0_324, %c0_325] : memref<9x8x8xbf16, #tpu.memory_space<vmem>>, vector<1x8x8xbf16>
    %355 = vector.shape_cast %354 : vector<1x8x8xbf16> to vector<8x8xbf16>
    %cst_326 = arith.constant dense<0.000000e+00> : vector<8x128xf32>
    %356 = tpu.matmul %355, %325, %cst_326 {dimension_numbers = #tpu.dot_dimension_numbers<[1], [0], [0], [1], [0, 0, 1, 1], [], []>} : vector<8x8xbf16>, vector<8x128xbf16>, vector<8x128xf32> -> vector<8x128xf32>
    %357 = arith.truncf %356 : vector<8x128xf32> to vector<8x128xbf16>
    %c8_327 = arith.constant 8 : index
    %c0_328 = arith.constant 0 : index
    %c0_329 = arith.constant 0 : index
    %358 = vector.load %arg19[%c8_327, %c0_328, %c0_329] : memref<9x8x8xbf16, #tpu.memory_space<vmem>>, vector<1x8x8xbf16>
    %359 = vector.shape_cast %358 : vector<1x8x8xbf16> to vector<8x8xbf16>
    %cst_330 = arith.constant dense<0.000000e+00> : vector<8x128xf32>
    %360 = tpu.matmul %359, %325, %cst_330 {dimension_numbers = #tpu.dot_dimension_numbers<[1], [0], [0], [1], [0, 0, 1, 1], [], []>} : vector<8x8xbf16>, vector<8x128xbf16>, vector<8x128xf32> -> vector<8x128xf32>
    %361 = arith.truncf %360 : vector<8x128xf32> to vector<8x128xbf16>
    %362 = tpu.concatenate %329, %333, %337, %341, %345, %349, %353, %357, %361 in 1 : vector<8x128xbf16>, vector<8x128xbf16>, vector<8x128xbf16>, vector<8x128xbf16>, vector<8x128xbf16>, vector<8x128xbf16>, vector<8x128xbf16>, vector<8x128xbf16>, vector<8x128xbf16> -> vector<8x1152xbf16>
    %c0_331 = arith.constant 0 : index
    %c0_332 = arith.constant 0 : index
    %363 = vector.load %arg20[%c0_331, %c0_332] : memref<1152x128xbf16, #tpu.memory_space<vmem>>, vector<1152x128xbf16>
    %cst_333 = arith.constant dense<0.000000e+00> : vector<8x128xf32>
    %364 = tpu.matmul %362, %363, %cst_333 {dimension_numbers = #tpu.dot_dimension_numbers<[1], [0], [0], [1], [0, 0, 1, 1], [], []>} : vector<8x1152xbf16>, vector<1152x128xbf16>, vector<8x128xf32> -> vector<8x128xf32>
    %c7_334 = arith.constant 7 : index
    %c0_335 = arith.constant 0 : index
    %365 = vector.load %arg4[%c7_334, %c0_335] : memref<19x512xf32, #tpu.memory_space<vmem>>, vector<1x128xf32>
    %366 = vector.broadcast %365 : vector<1x128xf32> to vector<8x128xf32>
    %367 = arith.addf %364, %366 : vector<8x128xf32>
    %cst_336 = arith.constant 0.000000e+00 : f32
    %368 = vector.broadcast %cst_336 : f32 to vector<8x128xf32>
    %369 = arith.maximumf %367, %368 : vector<8x128xf32>
    %370 = arith.truncf %369 : vector<8x128xf32> to vector<8x128xbf16>
    %c0_337 = arith.constant 0 : index
    %c0_338 = arith.constant 0 : index
    %c0_339 = arith.constant 0 : index
    %371 = vector.load %arg21[%c0_337, %c0_338, %c0_339] : memref<9x8x8xbf16, #tpu.memory_space<vmem>>, vector<1x8x8xbf16>
    %372 = vector.shape_cast %371 : vector<1x8x8xbf16> to vector<8x8xbf16>
    %cst_340 = arith.constant dense<0.000000e+00> : vector<8x128xf32>
    %373 = tpu.matmul %372, %370, %cst_340 {dimension_numbers = #tpu.dot_dimension_numbers<[1], [0], [0], [1], [0, 0, 1, 1], [], []>} : vector<8x8xbf16>, vector<8x128xbf16>, vector<8x128xf32> -> vector<8x128xf32>
    %374 = arith.truncf %373 : vector<8x128xf32> to vector<8x128xbf16>
    %c1_341 = arith.constant 1 : index
    %c0_342 = arith.constant 0 : index
    %c0_343 = arith.constant 0 : index
    %375 = vector.load %arg21[%c1_341, %c0_342, %c0_343] : memref<9x8x8xbf16, #tpu.memory_space<vmem>>, vector<1x8x8xbf16>
    %376 = vector.shape_cast %375 : vector<1x8x8xbf16> to vector<8x8xbf16>
    %cst_344 = arith.constant dense<0.000000e+00> : vector<8x128xf32>
    %377 = tpu.matmul %376, %370, %cst_344 {dimension_numbers = #tpu.dot_dimension_numbers<[1], [0], [0], [1], [0, 0, 1, 1], [], []>} : vector<8x8xbf16>, vector<8x128xbf16>, vector<8x128xf32> -> vector<8x128xf32>
    %378 = arith.truncf %377 : vector<8x128xf32> to vector<8x128xbf16>
    %c2_345 = arith.constant 2 : index
    %c0_346 = arith.constant 0 : index
    %c0_347 = arith.constant 0 : index
    %379 = vector.load %arg21[%c2_345, %c0_346, %c0_347] : memref<9x8x8xbf16, #tpu.memory_space<vmem>>, vector<1x8x8xbf16>
    %380 = vector.shape_cast %379 : vector<1x8x8xbf16> to vector<8x8xbf16>
    %cst_348 = arith.constant dense<0.000000e+00> : vector<8x128xf32>
    %381 = tpu.matmul %380, %370, %cst_348 {dimension_numbers = #tpu.dot_dimension_numbers<[1], [0], [0], [1], [0, 0, 1, 1], [], []>} : vector<8x8xbf16>, vector<8x128xbf16>, vector<8x128xf32> -> vector<8x128xf32>
    %382 = arith.truncf %381 : vector<8x128xf32> to vector<8x128xbf16>
    %c3_349 = arith.constant 3 : index
    %c0_350 = arith.constant 0 : index
    %c0_351 = arith.constant 0 : index
    %383 = vector.load %arg21[%c3_349, %c0_350, %c0_351] : memref<9x8x8xbf16, #tpu.memory_space<vmem>>, vector<1x8x8xbf16>
    %384 = vector.shape_cast %383 : vector<1x8x8xbf16> to vector<8x8xbf16>
    %cst_352 = arith.constant dense<0.000000e+00> : vector<8x128xf32>
    %385 = tpu.matmul %384, %370, %cst_352 {dimension_numbers = #tpu.dot_dimension_numbers<[1], [0], [0], [1], [0, 0, 1, 1], [], []>} : vector<8x8xbf16>, vector<8x128xbf16>, vector<8x128xf32> -> vector<8x128xf32>
    %386 = arith.truncf %385 : vector<8x128xf32> to vector<8x128xbf16>
    %c4_353 = arith.constant 4 : index
    %c0_354 = arith.constant 0 : index
    %c0_355 = arith.constant 0 : index
    %387 = vector.load %arg21[%c4_353, %c0_354, %c0_355] : memref<9x8x8xbf16, #tpu.memory_space<vmem>>, vector<1x8x8xbf16>
    %388 = vector.shape_cast %387 : vector<1x8x8xbf16> to vector<8x8xbf16>
    %cst_356 = arith.constant dense<0.000000e+00> : vector<8x128xf32>
    %389 = tpu.matmul %388, %370, %cst_356 {dimension_numbers = #tpu.dot_dimension_numbers<[1], [0], [0], [1], [0, 0, 1, 1], [], []>} : vector<8x8xbf16>, vector<8x128xbf16>, vector<8x128xf32> -> vector<8x128xf32>
    %390 = arith.truncf %389 : vector<8x128xf32> to vector<8x128xbf16>
    %c5_357 = arith.constant 5 : index
    %c0_358 = arith.constant 0 : index
    %c0_359 = arith.constant 0 : index
    %391 = vector.load %arg21[%c5_357, %c0_358, %c0_359] : memref<9x8x8xbf16, #tpu.memory_space<vmem>>, vector<1x8x8xbf16>
    %392 = vector.shape_cast %391 : vector<1x8x8xbf16> to vector<8x8xbf16>
    %cst_360 = arith.constant dense<0.000000e+00> : vector<8x128xf32>
    %393 = tpu.matmul %392, %370, %cst_360 {dimension_numbers = #tpu.dot_dimension_numbers<[1], [0], [0], [1], [0, 0, 1, 1], [], []>} : vector<8x8xbf16>, vector<8x128xbf16>, vector<8x128xf32> -> vector<8x128xf32>
    %394 = arith.truncf %393 : vector<8x128xf32> to vector<8x128xbf16>
    %c6_361 = arith.constant 6 : index
    %c0_362 = arith.constant 0 : index
    %c0_363 = arith.constant 0 : index
    %395 = vector.load %arg21[%c6_361, %c0_362, %c0_363] : memref<9x8x8xbf16, #tpu.memory_space<vmem>>, vector<1x8x8xbf16>
    %396 = vector.shape_cast %395 : vector<1x8x8xbf16> to vector<8x8xbf16>
    %cst_364 = arith.constant dense<0.000000e+00> : vector<8x128xf32>
    %397 = tpu.matmul %396, %370, %cst_364 {dimension_numbers = #tpu.dot_dimension_numbers<[1], [0], [0], [1], [0, 0, 1, 1], [], []>} : vector<8x8xbf16>, vector<8x128xbf16>, vector<8x128xf32> -> vector<8x128xf32>
    %398 = arith.truncf %397 : vector<8x128xf32> to vector<8x128xbf16>
    %c7_365 = arith.constant 7 : index
    %c0_366 = arith.constant 0 : index
    %c0_367 = arith.constant 0 : index
    %399 = vector.load %arg21[%c7_365, %c0_366, %c0_367] : memref<9x8x8xbf16, #tpu.memory_space<vmem>>, vector<1x8x8xbf16>
    %400 = vector.shape_cast %399 : vector<1x8x8xbf16> to vector<8x8xbf16>
    %cst_368 = arith.constant dense<0.000000e+00> : vector<8x128xf32>
    %401 = tpu.matmul %400, %370, %cst_368 {dimension_numbers = #tpu.dot_dimension_numbers<[1], [0], [0], [1], [0, 0, 1, 1], [], []>} : vector<8x8xbf16>, vector<8x128xbf16>, vector<8x128xf32> -> vector<8x128xf32>
    %402 = arith.truncf %401 : vector<8x128xf32> to vector<8x128xbf16>
    %c8_369 = arith.constant 8 : index
    %c0_370 = arith.constant 0 : index
    %c0_371 = arith.constant 0 : index
    %403 = vector.load %arg21[%c8_369, %c0_370, %c0_371] : memref<9x8x8xbf16, #tpu.memory_space<vmem>>, vector<1x8x8xbf16>
    %404 = vector.shape_cast %403 : vector<1x8x8xbf16> to vector<8x8xbf16>
    %cst_372 = arith.constant dense<0.000000e+00> : vector<8x128xf32>
    %405 = tpu.matmul %404, %370, %cst_372 {dimension_numbers = #tpu.dot_dimension_numbers<[1], [0], [0], [1], [0, 0, 1, 1], [], []>} : vector<8x8xbf16>, vector<8x128xbf16>, vector<8x128xf32> -> vector<8x128xf32>
    %406 = arith.truncf %405 : vector<8x128xf32> to vector<8x128xbf16>
    %407 = tpu.concatenate %374, %378, %382, %386, %390, %394, %398, %402, %406 in 1 : vector<8x128xbf16>, vector<8x128xbf16>, vector<8x128xbf16>, vector<8x128xbf16>, vector<8x128xbf16>, vector<8x128xbf16>, vector<8x128xbf16>, vector<8x128xbf16>, vector<8x128xbf16> -> vector<8x1152xbf16>
    %c0_373 = arith.constant 0 : index
    %c0_374 = arith.constant 0 : index
    %408 = vector.load %arg22[%c0_373, %c0_374] : memref<1152x128xbf16, #tpu.memory_space<vmem>>, vector<1152x128xbf16>
    %cst_375 = arith.constant dense<0.000000e+00> : vector<8x128xf32>
    %409 = tpu.matmul %407, %408, %cst_375 {dimension_numbers = #tpu.dot_dimension_numbers<[1], [0], [0], [1], [0, 0, 1, 1], [], []>} : vector<8x1152xbf16>, vector<1152x128xbf16>, vector<8x128xf32> -> vector<8x128xf32>
    %c8_376 = arith.constant 8 : index
    %c0_377 = arith.constant 0 : index
    %410 = vector.load %arg4[%c8_376, %c0_377] : memref<19x512xf32, #tpu.memory_space<vmem>>, vector<1x128xf32>
    %411 = vector.broadcast %410 : vector<1x128xf32> to vector<8x128xf32>
    %412 = arith.addf %409, %411 : vector<8x128xf32>
    %413 = arith.addf %412, %324 : vector<8x128xf32>
    %cst_378 = arith.constant 0.000000e+00 : f32
    %414 = vector.broadcast %cst_378 : f32 to vector<8x128xf32>
    %415 = arith.maximumf %413, %414 : vector<8x128xf32>
    %416 = arith.truncf %415 : vector<8x128xf32> to vector<8x128xbf16>
    %c0_379 = arith.constant 0 : index
    %c0_380 = arith.constant 0 : index
    %c0_381 = arith.constant 0 : index
    %417 = vector.load %arg23[%c0_379, %c0_380, %c0_381] : memref<4x2x8xbf16, #tpu.memory_space<vmem>>, vector<1x2x8xbf16>
    %418 = vector.shape_cast %417 : vector<1x2x8xbf16> to vector<2x8xbf16>
    %cst_382 = arith.constant dense<0.000000e+00> : vector<2x128xf32>
    %419 = tpu.matmul %418, %416, %cst_382 {dimension_numbers = #tpu.dot_dimension_numbers<[1], [0], [0], [1], [0, 0, 1, 1], [], []>} : vector<2x8xbf16>, vector<8x128xbf16>, vector<2x128xf32> -> vector<2x128xf32>
    %420 = arith.truncf %419 : vector<2x128xf32> to vector<2x128xbf16>
    %c1_383 = arith.constant 1 : index
    %c0_384 = arith.constant 0 : index
    %c0_385 = arith.constant 0 : index
    %421 = vector.load %arg23[%c1_383, %c0_384, %c0_385] : memref<4x2x8xbf16, #tpu.memory_space<vmem>>, vector<1x2x8xbf16>
    %422 = vector.shape_cast %421 : vector<1x2x8xbf16> to vector<2x8xbf16>
    %cst_386 = arith.constant dense<0.000000e+00> : vector<2x128xf32>
    %423 = tpu.matmul %422, %416, %cst_386 {dimension_numbers = #tpu.dot_dimension_numbers<[1], [0], [0], [1], [0, 0, 1, 1], [], []>} : vector<2x8xbf16>, vector<8x128xbf16>, vector<2x128xf32> -> vector<2x128xf32>
    %424 = arith.truncf %423 : vector<2x128xf32> to vector<2x128xbf16>
    %c2_387 = arith.constant 2 : index
    %c0_388 = arith.constant 0 : index
    %c0_389 = arith.constant 0 : index
    %425 = vector.load %arg23[%c2_387, %c0_388, %c0_389] : memref<4x2x8xbf16, #tpu.memory_space<vmem>>, vector<1x2x8xbf16>
    %426 = vector.shape_cast %425 : vector<1x2x8xbf16> to vector<2x8xbf16>
    %cst_390 = arith.constant dense<0.000000e+00> : vector<2x128xf32>
    %427 = tpu.matmul %426, %416, %cst_390 {dimension_numbers = #tpu.dot_dimension_numbers<[1], [0], [0], [1], [0, 0, 1, 1], [], []>} : vector<2x8xbf16>, vector<8x128xbf16>, vector<2x128xf32> -> vector<2x128xf32>
    %428 = arith.truncf %427 : vector<2x128xf32> to vector<2x128xbf16>
    %c3_391 = arith.constant 3 : index
    %c0_392 = arith.constant 0 : index
    %c0_393 = arith.constant 0 : index
    %429 = vector.load %arg23[%c3_391, %c0_392, %c0_393] : memref<4x2x8xbf16, #tpu.memory_space<vmem>>, vector<1x2x8xbf16>
    %430 = vector.shape_cast %429 : vector<1x2x8xbf16> to vector<2x8xbf16>
    %cst_394 = arith.constant dense<0.000000e+00> : vector<2x128xf32>
    %431 = tpu.matmul %430, %416, %cst_394 {dimension_numbers = #tpu.dot_dimension_numbers<[1], [0], [0], [1], [0, 0, 1, 1], [], []>} : vector<2x8xbf16>, vector<8x128xbf16>, vector<2x128xf32> -> vector<2x128xf32>
    %432 = arith.truncf %431 : vector<2x128xf32> to vector<2x128xbf16>
    %433 = tpu.concatenate %420, %424, %428, %432 in 1 : vector<2x128xbf16>, vector<2x128xbf16>, vector<2x128xbf16>, vector<2x128xbf16> -> vector<2x512xbf16>
    %c0_395 = arith.constant 0 : index
    %c0_396 = arith.constant 0 : index
    %434 = vector.load %arg24[%c0_395, %c0_396] : memref<512x256xbf16, #tpu.memory_space<vmem>>, vector<512x256xbf16>
    %cst_397 = arith.constant dense<0.000000e+00> : vector<2x256xf32>
    %435 = tpu.matmul %433, %434, %cst_397 {dimension_numbers = #tpu.dot_dimension_numbers<[1], [0], [0], [1], [0, 0, 1, 1], [], []>} : vector<2x512xbf16>, vector<512x256xbf16>, vector<2x256xf32> -> vector<2x256xf32>
    %c9 = arith.constant 9 : index
    %c0_398 = arith.constant 0 : index
    %436 = vector.load %arg4[%c9, %c0_398] : memref<19x512xf32, #tpu.memory_space<vmem>>, vector<1x256xf32>
    %437 = vector.broadcast %436 : vector<1x256xf32> to vector<2x256xf32>
    %438 = arith.addf %435, %437 : vector<2x256xf32>
    %cst_399 = arith.constant 0.000000e+00 : f32
    %439 = vector.broadcast %cst_399 : f32 to vector<2x256xf32>
    %440 = arith.maximumf %438, %439 : vector<2x256xf32>
    %441 = arith.truncf %440 : vector<2x256xf32> to vector<2x256xbf16>
    %c0_400 = arith.constant 0 : index
    %c0_401 = arith.constant 0 : index
    %442 = vector.load %arg25[%c0_400, %c0_401] : memref<256x256xbf16, #tpu.memory_space<vmem>>, vector<256x256xbf16>
    %cst_402 = arith.constant dense<0.000000e+00> : vector<2x256xf32>
    %443 = tpu.matmul %441, %442, %cst_402 {dimension_numbers = #tpu.dot_dimension_numbers<[1], [0], [0], [1], [0, 0, 1, 1], [], []>} : vector<2x256xbf16>, vector<256x256xbf16>, vector<2x256xf32> -> vector<2x256xf32>
    %c10 = arith.constant 10 : index
    %c0_403 = arith.constant 0 : index
    %444 = vector.load %arg4[%c10, %c0_403] : memref<19x512xf32, #tpu.memory_space<vmem>>, vector<1x256xf32>
    %445 = vector.broadcast %444 : vector<1x256xf32> to vector<2x256xf32>
    %446 = arith.addf %443, %445 : vector<2x256xf32>
    %c0_404 = arith.constant 0 : index
    %c0_405 = arith.constant 0 : index
    %c0_406 = arith.constant 0 : index
    %447 = vector.load %arg26[%c0_404, %c0_405, %c0_406] : memref<1x2x8xbf16, #tpu.memory_space<vmem>>, vector<1x2x8xbf16>
    %448 = vector.shape_cast %447 : vector<1x2x8xbf16> to vector<2x8xbf16>
    %cst_407 = arith.constant dense<0.000000e+00> : vector<2x128xf32>
    %449 = tpu.matmul %448, %416, %cst_407 {dimension_numbers = #tpu.dot_dimension_numbers<[1], [0], [0], [1], [0, 0, 1, 1], [], []>} : vector<2x8xbf16>, vector<8x128xbf16>, vector<2x128xf32> -> vector<2x128xf32>
    %450 = arith.truncf %449 : vector<2x128xf32> to vector<2x128xbf16>
    %c0_408 = arith.constant 0 : index
    %c0_409 = arith.constant 0 : index
    %451 = vector.load %arg27[%c0_408, %c0_409] : memref<128x256xbf16, #tpu.memory_space<vmem>>, vector<128x256xbf16>
    %cst_410 = arith.constant dense<0.000000e+00> : vector<2x256xf32>
    %452 = tpu.matmul %450, %451, %cst_410 {dimension_numbers = #tpu.dot_dimension_numbers<[1], [0], [0], [1], [0, 0, 1, 1], [], []>} : vector<2x128xbf16>, vector<128x256xbf16>, vector<2x256xf32> -> vector<2x256xf32>
    %c11 = arith.constant 11 : index
    %c0_411 = arith.constant 0 : index
    %453 = vector.load %arg4[%c11, %c0_411] : memref<19x512xf32, #tpu.memory_space<vmem>>, vector<1x256xf32>
    %454 = vector.broadcast %453 : vector<1x256xf32> to vector<2x256xf32>
    %455 = arith.addf %452, %454 : vector<2x256xf32>
    %456 = arith.addf %446, %455 : vector<2x256xf32>
    %cst_412 = arith.constant 0.000000e+00 : f32
    %457 = vector.broadcast %cst_412 : f32 to vector<2x256xf32>
    %458 = arith.maximumf %456, %457 : vector<2x256xf32>
    %459 = arith.truncf %458 : vector<2x256xf32> to vector<2x256xbf16>
    %c0_413 = arith.constant 0 : index
    %c0_414 = arith.constant 0 : index
    %460 = vector.load %arg28[%c0_413, %c0_414] : memref<256x256xbf16, #tpu.memory_space<vmem>>, vector<256x256xbf16>
    %cst_415 = arith.constant dense<0.000000e+00> : vector<2x256xf32>
    %461 = tpu.matmul %459, %460, %cst_415 {dimension_numbers = #tpu.dot_dimension_numbers<[1], [0], [0], [1], [0, 0, 1, 1], [], []>} : vector<2x256xbf16>, vector<256x256xbf16>, vector<2x256xf32> -> vector<2x256xf32>
    %c12 = arith.constant 12 : index
    %c0_416 = arith.constant 0 : index
    %462 = vector.load %arg4[%c12, %c0_416] : memref<19x512xf32, #tpu.memory_space<vmem>>, vector<1x256xf32>
    %463 = vector.broadcast %462 : vector<1x256xf32> to vector<2x256xf32>
    %464 = arith.addf %461, %463 : vector<2x256xf32>
    %cst_417 = arith.constant 0.000000e+00 : f32
    %465 = vector.broadcast %cst_417 : f32 to vector<2x256xf32>
    %466 = arith.maximumf %464, %465 : vector<2x256xf32>
    %467 = arith.truncf %466 : vector<2x256xf32> to vector<2x256xbf16>
    %c0_418 = arith.constant 0 : index
    %c0_419 = arith.constant 0 : index
    %468 = vector.load %arg29[%c0_418, %c0_419] : memref<256x256xbf16, #tpu.memory_space<vmem>>, vector<256x256xbf16>
    %cst_420 = arith.constant dense<0.000000e+00> : vector<2x256xf32>
    %469 = tpu.matmul %467, %468, %cst_420 {dimension_numbers = #tpu.dot_dimension_numbers<[1], [0], [0], [1], [0, 0, 1, 1], [], []>} : vector<2x256xbf16>, vector<256x256xbf16>, vector<2x256xf32> -> vector<2x256xf32>
    %c13 = arith.constant 13 : index
    %c0_421 = arith.constant 0 : index
    %470 = vector.load %arg4[%c13, %c0_421] : memref<19x512xf32, #tpu.memory_space<vmem>>, vector<1x256xf32>
    %471 = vector.broadcast %470 : vector<1x256xf32> to vector<2x256xf32>
    %472 = arith.addf %469, %471 : vector<2x256xf32>
    %473 = arith.addf %472, %458 : vector<2x256xf32>
    %cst_422 = arith.constant 0.000000e+00 : f32
    %474 = vector.broadcast %cst_422 : f32 to vector<2x256xf32>
    %475 = arith.maximumf %473, %474 : vector<2x256xf32>
    %476 = arith.truncf %475 : vector<2x256xf32> to vector<2x256xbf16>
    %c0_423 = arith.constant 0 : index
    %c0_424 = arith.constant 0 : index
    %477 = vector.load %arg30[%c0_423, %c0_424] : memref<256x512xbf16, #tpu.memory_space<vmem>>, vector<256x512xbf16>
    %cst_425 = arith.constant dense<0.000000e+00> : vector<2x512xf32>
    %478 = tpu.matmul %476, %477, %cst_425 {dimension_numbers = #tpu.dot_dimension_numbers<[1], [0], [0], [1], [0, 0, 1, 1], [], []>} : vector<2x256xbf16>, vector<256x512xbf16>, vector<2x512xf32> -> vector<2x512xf32>
    %c14 = arith.constant 14 : index
    %c0_426 = arith.constant 0 : index
    %479 = vector.load %arg4[%c14, %c0_426] : memref<19x512xf32, #tpu.memory_space<vmem>>, vector<1x512xf32>
    %480 = vector.broadcast %479 : vector<1x512xf32> to vector<2x512xf32>
    %481 = arith.addf %478, %480 : vector<2x512xf32>
    %cst_427 = arith.constant 0.000000e+00 : f32
    %482 = vector.broadcast %cst_427 : f32 to vector<2x512xf32>
    %483 = arith.maximumf %481, %482 : vector<2x512xf32>
    %484 = arith.truncf %483 : vector<2x512xf32> to vector<2x512xbf16>
    %c0_428 = arith.constant 0 : index
    %c0_429 = arith.constant 0 : index
    %485 = vector.load %arg31[%c0_428, %c0_429] : memref<512x512xbf16, #tpu.memory_space<vmem>>, vector<512x512xbf16>
    %cst_430 = arith.constant dense<0.000000e+00> : vector<2x512xf32>
    %486 = tpu.matmul %484, %485, %cst_430 {dimension_numbers = #tpu.dot_dimension_numbers<[1], [0], [0], [1], [0, 0, 1, 1], [], []>} : vector<2x512xbf16>, vector<512x512xbf16>, vector<2x512xf32> -> vector<2x512xf32>
    %c15 = arith.constant 15 : index
    %c0_431 = arith.constant 0 : index
    %487 = vector.load %arg4[%c15, %c0_431] : memref<19x512xf32, #tpu.memory_space<vmem>>, vector<1x512xf32>
    %488 = vector.broadcast %487 : vector<1x512xf32> to vector<2x512xf32>
    %489 = arith.addf %486, %488 : vector<2x512xf32>
    %c0_432 = arith.constant 0 : index
    %c0_433 = arith.constant 0 : index
    %490 = vector.load %arg32[%c0_432, %c0_433] : memref<256x512xbf16, #tpu.memory_space<vmem>>, vector<256x512xbf16>
    %cst_434 = arith.constant dense<0.000000e+00> : vector<2x512xf32>
    %491 = tpu.matmul %476, %490, %cst_434 {dimension_numbers = #tpu.dot_dimension_numbers<[1], [0], [0], [1], [0, 0, 1, 1], [], []>} : vector<2x256xbf16>, vector<256x512xbf16>, vector<2x512xf32> -> vector<2x512xf32>
    %c16 = arith.constant 16 : index
    %c0_435 = arith.constant 0 : index
    %492 = vector.load %arg4[%c16, %c0_435] : memref<19x512xf32, #tpu.memory_space<vmem>>, vector<1x512xf32>
    %493 = vector.broadcast %492 : vector<1x512xf32> to vector<2x512xf32>
    %494 = arith.addf %491, %493 : vector<2x512xf32>
    %495 = arith.addf %489, %494 : vector<2x512xf32>
    %cst_436 = arith.constant 0.000000e+00 : f32
    %496 = vector.broadcast %cst_436 : f32 to vector<2x512xf32>
    %497 = arith.maximumf %495, %496 : vector<2x512xf32>
    %498 = arith.truncf %497 : vector<2x512xf32> to vector<2x512xbf16>
    %c0_437 = arith.constant 0 : index
    %c0_438 = arith.constant 0 : index
    %499 = vector.load %arg33[%c0_437, %c0_438] : memref<512x512xbf16, #tpu.memory_space<vmem>>, vector<512x512xbf16>
    %cst_439 = arith.constant dense<0.000000e+00> : vector<2x512xf32>
    %500 = tpu.matmul %498, %499, %cst_439 {dimension_numbers = #tpu.dot_dimension_numbers<[1], [0], [0], [1], [0, 0, 1, 1], [], []>} : vector<2x512xbf16>, vector<512x512xbf16>, vector<2x512xf32> -> vector<2x512xf32>
    %c17 = arith.constant 17 : index
    %c0_440 = arith.constant 0 : index
    %501 = vector.load %arg4[%c17, %c0_440] : memref<19x512xf32, #tpu.memory_space<vmem>>, vector<1x512xf32>
    %502 = vector.broadcast %501 : vector<1x512xf32> to vector<2x512xf32>
    %503 = arith.addf %500, %502 : vector<2x512xf32>
    %cst_441 = arith.constant 0.000000e+00 : f32
    %504 = vector.broadcast %cst_441 : f32 to vector<2x512xf32>
    %505 = arith.maximumf %503, %504 : vector<2x512xf32>
    %506 = arith.truncf %505 : vector<2x512xf32> to vector<2x512xbf16>
    %c0_442 = arith.constant 0 : index
    %c0_443 = arith.constant 0 : index
    %507 = vector.load %arg34[%c0_442, %c0_443] : memref<512x512xbf16, #tpu.memory_space<vmem>>, vector<512x512xbf16>
    %cst_444 = arith.constant dense<0.000000e+00> : vector<2x512xf32>
    %508 = tpu.matmul %506, %507, %cst_444 {dimension_numbers = #tpu.dot_dimension_numbers<[1], [0], [0], [1], [0, 0, 1, 1], [], []>} : vector<2x512xbf16>, vector<512x512xbf16>, vector<2x512xf32> -> vector<2x512xf32>
    %c18 = arith.constant 18 : index
    %c0_445 = arith.constant 0 : index
    %509 = vector.load %arg4[%c18, %c0_445] : memref<19x512xf32, #tpu.memory_space<vmem>>, vector<1x512xf32>
    %510 = vector.broadcast %509 : vector<1x512xf32> to vector<2x512xf32>
    %511 = arith.addf %508, %510 : vector<2x512xf32>
    %512 = arith.addf %511, %497 : vector<2x512xf32>
    %cst_446 = arith.constant 0.000000e+00 : f32
    %513 = vector.broadcast %cst_446 : f32 to vector<2x512xf32>
    %514 = arith.maximumf %512, %513 : vector<2x512xf32>
    %515 = arith.truncf %514 : vector<2x512xf32> to vector<2x512xbf16>
    %c0_447 = arith.constant 0 : index
    %c0_448 = arith.constant 0 : index
    %516 = vector.load %arg35[%c0_447, %c0_448] : memref<512x10xbf16, #tpu.memory_space<vmem>>, vector<512x10xbf16>
    %cst_449 = arith.constant dense<0.000000e+00> : vector<2x10xf32>
    %517 = tpu.matmul %515, %516, %cst_449 {dimension_numbers = #tpu.dot_dimension_numbers<[1], [0], [0], [1], [0, 0, 1, 1], [], []>} : vector<2x512xbf16>, vector<512x10xbf16>, vector<2x10xf32> -> vector<2x10xf32>
    %c0_450 = arith.constant 0 : index
    %c0_451 = arith.constant 0 : index
    %518 = vector.load %arg36[%c0_450, %c0_451] : memref<1x10xf32, #tpu.memory_space<vmem>>, vector<1x10xf32>
    %519 = vector.broadcast %518 : vector<1x10xf32> to vector<2x10xf32>
    %520 = arith.addf %517, %519 : vector<2x10xf32>
    %cst_452 = arith.constant dense<0xFF800000> : vector<2xf32>
    %521 = vector.multi_reduction <maximumf>, %520, %cst_452 [1] : vector<2x10xf32> to vector<2xf32>
    %522 = vector.shape_cast %521 : vector<2xf32> to vector<2x1xf32>
    %523 = vector.broadcast %522 : vector<2x1xf32> to vector<2x10xf32>
    %524 = arith.subf %520, %523 : vector<2x10xf32>
    %525 = math.exp %524 : vector<2x10xf32>
    %cst_453 = arith.constant dense<0.000000e+00> : vector<2xf32>
    %526 = vector.multi_reduction <add>, %525, %cst_453 [1] : vector<2x10xf32> to vector<2xf32>
    %527 = vector.shape_cast %526 : vector<2xf32> to vector<2x1xf32>
    %528 = vector.broadcast %527 : vector<2x1xf32> to vector<2x10xf32>
    %529 = arith.divf %525, %528 : vector<2x10xf32>
    %c0_454 = arith.constant 0 : index
    %c0_455 = arith.constant 0 : index
    %530 = vector.load %arg37[%c0_454, %c0_455] : memref<2x10xf32, #tpu.memory_space<vmem>>, vector<2x10xf32>
    tpu.vector_store %arg37[%c0_454, %c0_455], %529 {strides = array<i32>} : memref<2x10xf32, #tpu.memory_space<vmem>>, vector<2x10xf32>,
    return
  }
}

</mosaic_0001>

<bundles_post_ra>
// kernel: imgnet_forward.1
= control target key start
LH: loop header
LB: loop body
LE: loop exit
PB: predicated region body
PF: predicated region fallthrough
CT: control target
= control target key end

     0   :  { %s23603_s6 = smov 1   ;;  %s23604_s10 = smov 2   ;;  %s26299_s0 = inlined_call_operand.smem [shape: u32[38], index: -1, kind: input, shape index: {}] }
   0x1   :  { %s23652_s5 = sld [smem:[%s26299_s0]]   ;;  %s23605_s14 = smov 3  }
   0x2   :  { %s23657_s9 = sld [smem:[%s26299_s0 + %s23603_s6]]   ;;  %s23606_s18 = smov 4  }
   0x3   :  { %s23662_s13 = sld [smem:[%s26299_s0 + %s23604_s10]]   ;;  %s23607_s22 = smov 5  }
   0x4   :  { %s23667_s17 = sld [smem:[%s26299_s0 + %s23605_s14]]   ;;  %s23608_s26 = smov 6  }
   0x5   :  { %s23672_s21 = sld [smem:[%s26299_s0 + %s23606_s18]]   ;;  %s23609_s30 = smov 7  }
   0x6   :  { %s23677_s25 = sld [smem:[%s26299_s0 + %s23607_s22]]   ;;  %s23610_s4 = smov 8  }
   0x7   :  { %s23682_s29 = sld [smem:[%s26299_s0 + %s23608_s26]]   ;;  %s23611_s10 = smov 9  }
   0x8   :  { %s23687_s3 = sld [smem:[%s26299_s0 + %s23609_s30]]   ;;  %s23612_s15 = smov 10  }
   0x9   :  { %s23692_s8 = sld [smem:[%s26299_s0 + %s23610_s4]]   ;;  %s23613_s20 = smov 11  }
   0xa   :  { %s23697_s14 = sld [smem:[%s26299_s0 + %s23611_s10]]   ;;  %s23614_s26 = smov 12  }
   0xb   :  { %s23702_s19 = sld [smem:[%s26299_s0 + %s23612_s15]]   ;;  %s23615_s1 = smov 13  }
   0xc   :  { %s23707_s24 = sld [smem:[%s26299_s0 + %s23613_s20]]   ;;  %s23616_s7 = smov 14  }
   0xd   :  { %s23712_s30 = sld [smem:[%s26299_s0 + %s23614_s26]]   ;;  %s23617_s15 = smov 15  }
   0xe   :  { %s23717_s6 = sld [smem:[%s26299_s0 + %s23615_s1]]   ;;  %s23618_s22 = smov 16  }
   0xf   :  { %s23722_s12 = sld [smem:[%s26299_s0 + %s23616_s7]]   ;;  %s23619_s28 = smov 17  }
  0x10   :  { %s23727_s20 = sld [smem:[%s26299_s0 + %s23617_s15]]   ;;  %s23620_s7 = smov 18  }
  0x11   :  { %s23732_s27 = sld [smem:[%s26299_s0 + %s23618_s22]]   ;;  %s23621_s15 = smov 19  }
  0x12   :  { %s23737_s4 = sld [smem:[%s26299_s0 + %s23619_s28]]   ;;  %s23622_s22 = smov 20  }
  0x13   :  { %s23623_s28 = smov 21  }
  0x15   :  { %26318 = sst [smem:[#allocation5_spill]] %s23722_s12 }
  0x16   :  { %26319 = sst [smem:[#allocation6_spill]] %s23727_s20 }
  0x17   :  { %26320 = sst [smem:[#allocation7_spill]] %s23732_s27 }
  0x18   :  { %26321 = sst [smem:[#allocation8_spill]] %s23737_s4 }
  0x19   :  { %s23742_s12 = sld [smem:[%s26299_s0 + %s23620_s7]]   ;;  %s23624_s7 = smov 22  }
  0x1a   :  { %s23747_s20 = sld [smem:[%s26299_s0 + %s23621_s15]]   ;;  %s23625_s15 = smov 23  }
  0x1b   :  { %s23752_s27 = sld [smem:[%s26299_s0 + %s23622_s22]]   ;;  %s23626_s22 = smov 24  }
  0x1c   :  { %s23757_s4 = sld [smem:[%s26299_s0 + %s23623_s28]]   ;;  %s23627_s28 = smov 25  }
  0x1f   :  { %26322 = sst [smem:[#allocation9_spill]] %s23742_s12 }
  0x20   :  { %26323 = sst [smem:[#allocation10_spill]] %s23747_s20 }
  0x21   :  { %26324 = sst [smem:[#allocation11_spill]] %s23752_s27 }
  0x22   :  { %26325 = sst [smem:[#allocation12_spill]] %s23757_s4 }
  0x23   :  { %s23762_s12 = sld [smem:[%s26299_s0 + %s23624_s7]]   ;;  %s23628_s7 = smov 26  }
  0x24   :  { %s23767_s20 = sld [smem:[%s26299_s0 + %s23625_s15]]   ;;  %s23629_s15 = smov 27  }
  0x25   :  { %s23772_s27 = sld [smem:[%s26299_s0 + %s23626_s22]]   ;;  %s23630_s22 = smov 28  }
  0x26   :  { %s23777_s4 = sld [smem:[%s26299_s0 + %s23627_s28]]   ;;  %s23631_s28 = smov 29  }
  0x29   :  { %26326 = sst [smem:[#allocation13_spill]] %s23762_s12 }
  0x2a   :  { %26327 = sst [smem:[#allocation14_spill]] %s23767_s20 }
  0x2b   :  { %26328 = sst [smem:[#allocation15_spill]] %s23772_s27 }
  0x2c   :  { %26329 = sst [smem:[#allocation16_spill]] %s23777_s4 }
  0x2d   :  { %s23782_s12 = sld [smem:[%s26299_s0 + %s23628_s7]]   ;;  %s23632_s7 = smov 30  }
  0x2e   :  { %s23787_s20 = sld [smem:[%s26299_s0 + %s23629_s15]]   ;;  %s23633_s15 = smov 31  }
  0x2f   :  { %s23792_s27 = sld [smem:[%s26299_s0 + %s23630_s22]]   ;;  %s23634_s22 = smov 32  }
  0x30   :  { %s23797_s4 = sld [smem:[%s26299_s0 + %s23631_s28]]   ;;  %s23635_s28 = smov 33  }
  0x33   :  { %26330 = sst [smem:[#allocation17_spill]] %s23782_s12 }
  0x34   :  { %26331 = sst [smem:[#allocation18_spill]] %s23787_s20 }
  0x35   :  { %26332 = sst [smem:[#allocation19_spill]] %s23792_s27 }
  0x36   :  { %26333 = sst [smem:[#allocation20_spill]] %s23797_s4 }
  0x37   :  { %s23802_s12 = sld [smem:[%s26299_s0 + %s23632_s7]]   ;;  %s23636_s7 = smov 34  }
  0x38   :  { %s23807_s20 = sld [smem:[%s26299_s0 + %s23633_s15]]   ;;  %s23637_s15 = smov 35  }
  0x39   :  { %s23812_s27 = sld [smem:[%s26299_s0 + %s23634_s22]]   ;;  %s23638_s22 = smov 36  }
  0x3a   :  { %s23817_s4 = sld [smem:[%s26299_s0 + %s23635_s28]]   ;;  %s23639_s28 = smov 37  }
  0x3d   :  { %26334 = sst [smem:[#allocation21_spill]] %s23802_s12 }
  0x3e   :  { %26335 = sst [smem:[#allocation22_spill]] %s23807_s20 }
  0x3f   :  { %26336 = sst [smem:[#allocation23_spill]] %s23812_s27 }
  0x40   :  { %26337 = sst [smem:[#allocation24_spill]] %s23817_s4 }
  0x41   :  { %s23822_s12 = sld [smem:[%s26299_s0 + %s23636_s7]]  }
  0x42   :  { %s23827_s20 = sld [smem:[%s26299_s0 + %s23637_s15]]  }
  0x43   :  { %s23832_s27 = sld [smem:[%s26299_s0 + %s23638_s22]]  }
  0x44   :  { %s23837_s4 = sld [smem:[%s26299_s0 + %s23639_s28]]  }
  0x45   :  { %v21825_v0 = vld [vmem:[%s23657_s9] sm:$0xff]   ;;  %v21826_v1 = vld [vmem:[%s23657_s9 + $0x8] sm:$0xff]   ;;  %v21827_v2 = vld [vmem:[%s23657_s9 + $0x10] sm:$0xff]   ;;  %vm260_vm0 = vcmask 523264   ;;  %vm1047_vm1 = vcmask 261120  }
  0x46   :  { %20784 = vmatprep.subr.bf16.mxu0 %v21825_v0  ;;  %v21829_v3 = vld [vmem:[%s23652_s5] sm:$0xff]   ;;  %v21828_v4 = vld [vmem:[%s23657_s9 + $0x18] sm:$0xff]   ;;  %v21830_v5 = vld [vmem:[%s23652_s5 + $0x8] sm:$0xff]  }
  0x47   :  { %20785 = vmatpush3.bf16.msra.mxu0 %v21825_v0  ;;  %20792 = vmatprep.mubr.msk.bf16.mxu0 %vm260_vm0, %v21829_v3  ;;  %v21831_v6 = vld [vmem:[%s23652_s5 + $0x10] sm:$0xff]   ;;  %v21832_v7 = vld [vmem:[%s23652_s5 + $0x18] sm:$0xff]   ;;  %v21833_v8 = vld [vmem:[%s23652_s5 + $0x20] sm:$0xff]  }
  0x48   :  { %20786 = vmatprep.subr.bf16.mxu0 %v21826_v1  ;;  %v21834_v9 = vld [vmem:[%s23652_s5 + $0x28] sm:$0xff]   ;;  %v21835_v10 = vld [vmem:[%s23652_s5 + $0x30] sm:$0xff]   ;;  %v21836_v11 = vld [vmem:[%s23652_s5 + $0x38] sm:$0xff]  }
  0x49   :  { %v21837_v12 = vld [vmem:[%s23667_s17] sm:$0xff]   ;;  %v21838_v13 = vld [vmem:[%s23667_s17 + $0x10] sm:$0xff]   ;;  %v183_v16 = vld [vmem:[%s23662_s13 + $0x18] sm:$0xff] }
  0x4a   :  { %20824 = vmatprep.mubr.bf16.mxu1 %v21837_v12  ;;  %v182_v14 = vld [vmem:[%s23662_s13 + $0x10] sm:$0xff]  ;;  %v180_v15 = vld [vmem:[%s23662_s13] sm:$0xff]  ;;  %v181_v17 = vld [vmem:[%s23662_s13 + $0x8] sm:$0xff] }
  0x4b   :  { %20787 = vmatpush3.bf16.msra.mxu0 %v21826_v1  ;;  %v186_v28 = vld [vmem:[%s23662_s13 + $0x30] sm:$0xff]  ;;  %v184_v32 = vld [vmem:[%s23662_s13 + $0x20] sm:$0xff]  ;;  %v187_v35 = vld [vmem:[%s23662_s13 + $0x38] sm:$0xff] }
  0x4c   :  { %20788 = vmatprep.subr.bf16.mxu0 %v21827_v2  ;;  %v185_v38 = vld [vmem:[%s23662_s13 + $0x28] sm:$0xff]  ;;  %v190_v46 = vld [vmem:[%s23662_s13 + $0x50] sm:$0xff]  ;;  %v188_v48 = vld [vmem:[%s23662_s13 + $0x40] sm:$0xff] }
  0x4d   :  { %v191_v50 = vld [vmem:[%s23662_s13 + $0x58] sm:$0xff]  ;;  %v189_v52 = vld [vmem:[%s23662_s13 + $0x48] sm:$0xff]  ;;  %v194_v0 = vld [vmem:[%s23662_s13 + $0x70] sm:$0xff] }
  0x4f   :  { %20789 = vmatpush3.bf16.msra.mxu0 %v21827_v2  ;;  %v192_v2 = vld [vmem:[%s23662_s13 + $0x60] sm:$0xff] }
  0x50   :  { %20790 = vmatprep.subr.bf16.mxu0 %v21828_v4 }
  0x53   :  { %20791 = vmatpush3.bf16.msra.mxu0 %v21828_v4  ;;  %v195_v4 = vld [vmem:[%s23662_s13 + $0x78] sm:$0xff] }
  0x56   :  { %20793 = vmatmul.mubr.msk.bf16.vlgmr.msra.gmra.mrb[0].mxu0 %vm260_vm0, %v21830_v5 }
  0x57   :  { %20796 = vmatprep.mubr.msk.bf16.mxu0 %vm260_vm0, %v21831_v6  ;;  %v193_v6 = vld [vmem:[%s23662_s13 + $0x68] sm:$0xff] }
  0x5e   :  { %20797 = vmatmul.mubr.msk.bf16.gmra.mrb[4].mxu0 %vm260_vm0, %v21832_v7 }
  0x5f   :  { %20800 = vmatprep.mubr.msk.bf16.mxu0 %vm260_vm0, %v21833_v8 }
  0x66   :  { %20801 = vmatmul.mubr.msk.bf16.gmra.mrb[8].mxu0 %vm260_vm0, %v21834_v9 }
  0x67   :  { %20804 = vmatprep.mubr.msk.bf16.mxu0 %vm260_vm0, %v21835_v10 }
  0x6e   :  { %20805 = vmatmul.mubr.msk.bf16.gmra.mrb[12].mxu0 %vm260_vm0, %v21836_v11 }
  0x6f   :  { %20844 = vmatprep.mubr.bf16.mxu0 %v21838_v13 }
 0x129   :  { %v20794_v18 = vpop.f32.mrb[0].mxu0 }
 0x12a   :  { %v328_v19 = vadd.f32 %v20794_v18, %v182_v14  ;;  %v319_v20 = vpop.f32.mrb[1].mxu0 }
 0x12b   :  { %v320_v21 = vadd.f32 %v319_v20, %v180_v15  ;;  %v20795_v22 = vpop.f32.mrb[2].mxu0 }
 0x12c   :  { %v384_v23 = vmax.f32 %v328_v19, 0.0  ;;  %v331_v24 = vadd.f32 %v20795_v22, %v183_v16  ;;  %v322_v25 = vpop.f32.mrb[3].mxu0  ;;  %v21839_v22 = vld [vmem:[%s23667_s17 + $0x8] sm:$0xff]  }
 0x12d   :  { %v382_v26 = vmax.f32 %v320_v21, 0.0  ;;  %v323_v27 = vadd.f32 %v322_v25, %v181_v17  ;;  %v21843_v25 = vld [vmem:[%s23667_s17 + $0x30] sm:$0xff]  }
 0x12e   :  { %v385_v29 = vmax.f32 %v331_v24, 0.0  ;;  %v21841_v24 = vld [vmem:[%s23667_s17 + $0x20] sm:$0xff]  }
 0x12f   :  { %v383_v30 = vmax.f32 %v323_v27, 0.0  ;;  %v21844_v27 = vld [vmem:[%s23667_s17 + $0x38] sm:$0xff]  }
 0x130   :  { %v23866_v31 = vpack.c.bf16 %v385_v29, %v384_v23  ;;  %v21840_v23 = vld [vmem:[%s23667_s17 + $0x18] sm:$0xff]   ;;  %v21847_v29 = vld [vmem:[%s23667_s17 + $0x50] sm:$0xff]  }
 0x131   :  { %v23869_v33 = vpack.c.bf16 %v383_v30, %v382_v26  ;;  %v20798_v34 = vpop.f32.mrb[4].mxu0  ;;  %v21842_v26 = vld [vmem:[%s23667_s17 + $0x28] sm:$0xff]  }
 0x132   :  { %v344_v36 = vadd.f32 %v20798_v34, %v186_v28  ;;  %v335_v37 = vpop.f32.mrb[5].mxu0  ;;  %v21845_v28 = vld [vmem:[%s23667_s17 + $0x40] sm:$0xff]   ;;  %v21846_v30 = vld [vmem:[%s23667_s17 + $0x48] sm:$0xff]  }
 0x133   :  { %v336_v39 = vadd.f32 %v335_v37, %v184_v32  ;;  %v20799_v40 = vpop.f32.mrb[6].mxu0  ;;  %20808 = vmatprep.subr.bf16.mxu1 %v23869_v33  ;;  %20828 = vmatprep.subr.bf16.mxu0 %v23869_v33  ;;  %v21848_v32 = vld [vmem:[%s23667_s17 + $0x58] sm:$0xff]   ;;  %v21849_v34 = vld [vmem:[%s23667_s17 + $0x60] sm:$0xff]  }
 0x134   :  { %v388_v41 = vmax.f32 %v344_v36, 0.0  ;;  %v347_v42 = vadd.f32 %v20799_v40, %v187_v35  ;;  %v338_v43 = vpop.f32.mrb[7].mxu0  ;;  %20809 = vmatpush3.bf16.msra.mxu1 %v23869_v33  ;;  %20829 = vmatpush3.bf16.msra.mxu0 %v23869_v33  ;;  %v21851_v35 = vld [vmem:[%s23667_s17 + $0x70] sm:$0xff]   ;;  %v21850_v36 = vld [vmem:[%s23667_s17 + $0x68] sm:$0xff]   ;;  %v21852_v37 = vld [vmem:[%s23667_s17 + $0x78] sm:$0xff]  }
 0x135   :  { %v386_v44 = vmax.f32 %v336_v39, 0.0  ;;  %v339_v45 = vadd.f32 %v338_v43, %v185_v38  ;;  %20810 = vmatprep.subr.bf16.mxu1 %v23866_v31  ;;  %20830 = vmatprep.subr.bf16.mxu0 %v23866_v31  ;;  %v21853_v38 = vld [vmem:[%s23667_s17 + $0x80] sm:$0xff]  }
 0x136   :  { %v389_v47 = vmax.f32 %v347_v42, 0.0 }
 0x137   :  { %v387_v49 = vmax.f32 %v339_v45, 0.0 }
 0x138   :  { %v23882_v51 = vpack.c.bf16 %v389_v47, %v388_v41  ;;  %20811 = vmatpush3.bf16.msra.mxu1 %v23866_v31  ;;  %20831 = vmatpush3.bf16.msra.mxu0 %v23866_v31 }
 0x139   :  { %v23887_v53 = vpack.c.bf16 %v387_v49, %v386_v44  ;;  %v20802_v54 = vpop.f32.mrb[8].mxu0 }
 0x13a   :  { %v360_v55 = vadd.f32 %v20802_v54, %v190_v46  ;;  %v351_v56 = vpop.f32.mrb[9].mxu0 }
 0x13b   :  { %v352_v57 = vadd.f32 %v351_v56, %v188_v48  ;;  %v20803_v58 = vpop.f32.mrb[10].mxu0  ;;  %20812 = vmatprep.subr.bf16.mxu1 %v23887_v53  ;;  %20832 = vmatprep.subr.bf16.mxu0 %v23887_v53 }
 0x13c   :  { %v392_v59 = vmax.f32 %v360_v55, 0.0  ;;  %v363_v60 = vadd.f32 %v20803_v58, %v191_v50  ;;  %v354_v61 = vpop.f32.mrb[11].mxu0  ;;  %20813 = vmatpush3.bf16.msra.mxu1 %v23887_v53  ;;  %20833 = vmatpush3.bf16.msra.mxu0 %v23887_v53  ;;  %v21855_v50 = vld [vmem:[%s23677_s25] sm:$0xff]  }
 0x13d   :  { %v390_v62 = vmax.f32 %v352_v57, 0.0  ;;  %v355_v63 = vadd.f32 %v354_v61, %v189_v52  ;;  %20814 = vmatprep.subr.bf16.mxu1 %v23882_v51  ;;  %20834 = vmatprep.subr.bf16.mxu0 %v23882_v51 }
 0x13e   :  { %v393_v1 = vmax.f32 %v363_v60, 0.0 }
 0x13f   :  { %v391_v3 = vmax.f32 %v355_v63, 0.0 }
 0x140   :  { %v23898_v5 = vpack.c.bf16 %v393_v1, %v392_v59  ;;  %20815 = vmatpush3.bf16.msra.mxu1 %v23882_v51  ;;  %20835 = vmatpush3.bf16.msra.mxu0 %v23882_v51 }
 0x141   :  { %v23903_v7 = vpack.c.bf16 %v391_v3, %v390_v62  ;;  %v20806_v8 = vpop.f32.mrb[12].mxu0 }
 0x142   :  { %v376_v9 = vadd.f32 %v20806_v8, %v194_v0  ;;  %v367_v10 = vpop.f32.mrb[13].mxu0 }
 0x143   :  { %v368_v11 = vadd.f32 %v367_v10, %v192_v2  ;;  %v20807_v12 = vpop.f32.mrb[14].mxu0  ;;  %20816 = vmatprep.subr.bf16.mxu1 %v23903_v7  ;;  %20836 = vmatprep.subr.bf16.mxu0 %v23903_v7 }
 0x144   :  { %v396_v13 = vmax.f32 %v376_v9, 0.0  ;;  %v379_v14 = vadd.f32 %v20807_v12, %v195_v4  ;;  %v370_v15 = vpop.f32.mrb[15].mxu0  ;;  %20817 = vmatpush3.bf16.msra.mxu1 %v23903_v7  ;;  %20837 = vmatpush3.bf16.msra.mxu0 %v23903_v7 }
 0x145   :  { %v394_v16 = vmax.f32 %v368_v11, 0.0  ;;  %v371_v17 = vadd.f32 %v370_v15, %v193_v6  ;;  %20818 = vmatprep.subr.bf16.mxu1 %v23898_v5  ;;  %20838 = vmatprep.subr.bf16.mxu0 %v23898_v5 }
 0x146   :  { %v397_v18 = vmax.f32 %v379_v14, 0.0 }
 0x147   :  { %v395_v19 = vmax.f32 %v371_v17, 0.0 }
 0x148   :  { %v23911_v20 = vpack.c.bf16 %v397_v18, %v396_v13  ;;  %20819 = vmatpush3.bf16.msra.mxu1 %v23898_v5  ;;  %20839 = vmatpush3.bf16.msra.mxu0 %v23898_v5 }
 0x149   :  { %v23915_v21 = vpack.c.bf16 %v395_v19, %v394_v16 }
 0x14b   :  { %20820 = vmatprep.subr.bf16.mxu1 %v23915_v21  ;;  %20840 = vmatprep.subr.bf16.mxu0 %v23915_v21 }
 0x14c   :  { %20821 = vmatpush3.bf16.msra.mxu1 %v23915_v21  ;;  %20841 = vmatpush3.bf16.msra.mxu0 %v23915_v21 }
 0x14d   :  { %20822 = vmatprep.subr.bf16.mxu1 %v23911_v20  ;;  %20842 = vmatprep.subr.bf16.mxu0 %v23911_v20 }
 0x150   :  { %20823 = vmatpush3.bf16.msra.mxu1 %v23911_v20  ;;  %20843 = vmatpush3.bf16.msra.mxu0 %v23911_v20 }
 0x151   :  { %20848 = vmatprep.subr.bf16.mxu1 %v23869_v33  ;;  %20868 = vmatprep.subr.bf16.mxu0 %v23869_v33 }
 0x153   :  { %20825 = vmatmul.mubr.bf16.vlgmr.msra.gmra.mrb[0].mxu1 %v21839_v22  ;;  %20845 = vmatmul.mubr.bf16.vlgmr.msra.gmra.mrb[16].mxu0 %v21840_v23 }
 0x154   :  { %20849 = vmatpush3.bf16.msra.mxu1 %v23869_v33  ;;  %20869 = vmatpush3.bf16.msra.mxu0 %v23869_v33 }
 0x155   :  { %20850 = vmatprep.subr.bf16.mxu1 %v23866_v31  ;;  %20870 = vmatprep.subr.bf16.mxu0 %v23866_v31 }
 0x156   :  { %20864 = vmatprep.mubr.bf16.mxu1 %v21841_v24  ;;  %20884 = vmatprep.mubr.bf16.mxu0 %v21843_v25 }
 0x158   :  { %20851 = vmatpush3.bf16.msra.mxu1 %v23866_v31  ;;  %20871 = vmatpush3.bf16.msra.mxu0 %v23866_v31 }
 0x159   :  { %20852 = vmatprep.subr.bf16.mxu1 %v23887_v53  ;;  %20872 = vmatprep.subr.bf16.mxu0 %v23887_v53 }
 0x15c   :  { %20853 = vmatpush3.bf16.msra.mxu1 %v23887_v53  ;;  %20873 = vmatpush3.bf16.msra.mxu0 %v23887_v53 }
 0x15d   :  { %20854 = vmatprep.subr.bf16.mxu1 %v23882_v51  ;;  %20874 = vmatprep.subr.bf16.mxu0 %v23882_v51 }
 0x160   :  { %20855 = vmatpush3.bf16.msra.mxu1 %v23882_v51  ;;  %20875 = vmatpush3.bf16.msra.mxu0 %v23882_v51 }
 0x161   :  { %20856 = vmatprep.subr.bf16.mxu1 %v23903_v7  ;;  %20876 = vmatprep.subr.bf16.mxu0 %v23903_v7 }
 0x164   :  { %20857 = vmatpush3.bf16.msra.mxu1 %v23903_v7  ;;  %20877 = vmatpush3.bf16.msra.mxu0 %v23903_v7 }
 0x165   :  { %20858 = vmatprep.subr.bf16.mxu1 %v23898_v5  ;;  %20878 = vmatprep.subr.bf16.mxu0 %v23898_v5 }
 0x168   :  { %20859 = vmatpush3.bf16.msra.mxu1 %v23898_v5  ;;  %20879 = vmatpush3.bf16.msra.mxu0 %v23898_v5 }
 0x169   :  { %20860 = vmatprep.subr.bf16.mxu1 %v23915_v21  ;;  %20880 = vmatprep.subr.bf16.mxu0 %v23915_v21 }
 0x16c   :  { %20861 = vmatpush3.bf16.msra.mxu1 %v23915_v21  ;;  %20881 = vmatpush3.bf16.msra.mxu0 %v23915_v21 }
 0x16d   :  { %20862 = vmatprep.subr.bf16.mxu1 %v23911_v20  ;;  %20882 = vmatprep.subr.bf16.mxu0 %v23911_v20 }
 0x170   :  { %20863 = vmatpush3.bf16.msra.mxu1 %v23911_v20  ;;  %20883 = vmatpush3.bf16.msra.mxu0 %v23911_v20 }
 0x171   :  { %20888 = vmatprep.subr.bf16.mxu1 %v23869_v33  ;;  %20908 = vmatprep.subr.bf16.mxu0 %v23869_v33 }
 0x173   :  { %20865 = vmatmul.mubr.bf16.vlgmr.msra.gmra.mrb[4].mxu1 %v21842_v26  ;;  %20885 = vmatmul.mubr.bf16.vlgmr.msra.gmra.mrb[20].mxu0 %v21844_v27 }
 0x174   :  { %20889 = vmatpush3.bf16.msra.mxu1 %v23869_v33  ;;  %20909 = vmatpush3.bf16.msra.mxu0 %v23869_v33 }
 0x175   :  { %20890 = vmatprep.subr.bf16.mxu1 %v23866_v31  ;;  %20910 = vmatprep.subr.bf16.mxu0 %v23866_v31 }
 0x176   :  { %20904 = vmatprep.mubr.bf16.mxu1 %v21845_v28  ;;  %20924 = vmatprep.mubr.bf16.mxu0 %v21847_v29 }
 0x178   :  { %20891 = vmatpush3.bf16.msra.mxu1 %v23866_v31  ;;  %20911 = vmatpush3.bf16.msra.mxu0 %v23866_v31 }
 0x179   :  { %20892 = vmatprep.subr.bf16.mxu1 %v23887_v53  ;;  %20912 = vmatprep.subr.bf16.mxu0 %v23887_v53 }
 0x17c   :  { %20893 = vmatpush3.bf16.msra.mxu1 %v23887_v53  ;;  %20913 = vmatpush3.bf16.msra.mxu0 %v23887_v53 }
 0x17d   :  { %20894 = vmatprep.subr.bf16.mxu1 %v23882_v51  ;;  %20914 = vmatprep.subr.bf16.mxu0 %v23882_v51 }
 0x180   :  { %20895 = vmatpush3.bf16.msra.mxu1 %v23882_v51  ;;  %20915 = vmatpush3.bf16.msra.mxu0 %v23882_v51 }
 0x181   :  { %20896 = vmatprep.subr.bf16.mxu1 %v23903_v7  ;;  %20916 = vmatprep.subr.bf16.mxu0 %v23903_v7 }
 0x184   :  { %20897 = vmatpush3.bf16.msra.mxu1 %v23903_v7  ;;  %20917 = vmatpush3.bf16.msra.mxu0 %v23903_v7 }
 0x185   :  { %20898 = vmatprep.subr.bf16.mxu1 %v23898_v5  ;;  %20918 = vmatprep.subr.bf16.mxu0 %v23898_v5 }
 0x188   :  { %20899 = vmatpush3.bf16.msra.mxu1 %v23898_v5  ;;  %20919 = vmatpush3.bf16.msra.mxu0 %v23898_v5 }
 0x189   :  { %20900 = vmatprep.subr.bf16.mxu1 %v23915_v21  ;;  %20920 = vmatprep.subr.bf16.mxu0 %v23915_v21 }
 0x18c   :  { %20901 = vmatpush3.bf16.msra.mxu1 %v23915_v21  ;;  %20921 = vmatpush3.bf16.msra.mxu0 %v23915_v21 }
 0x18d   :  { %20902 = vmatprep.subr.bf16.mxu1 %v23911_v20  ;;  %20922 = vmatprep.subr.bf16.mxu0 %v23911_v20 }
 0x190   :  { %20903 = vmatpush3.bf16.msra.mxu1 %v23911_v20  ;;  %20923 = vmatpush3.bf16.msra.mxu0 %v23911_v20 }
 0x191   :  { %20928 = vmatprep.subr.bf16.mxu1 %v23869_v33  ;;  %20948 = vmatprep.subr.bf16.mxu0 %v23869_v33 }
 0x193   :  { %20905 = vmatmul.mubr.bf16.vlgmr.msra.gmra.mrb[8].mxu1 %v21846_v30  ;;  %20925 = vmatmul.mubr.bf16.vlgmr.msra.gmra.mrb[24].mxu0 %v21848_v32 }
 0x194   :  { %20929 = vmatpush3.bf16.msra.mxu1 %v23869_v33  ;;  %20949 = vmatpush3.bf16.msra.mxu0 %v23869_v33 }
 0x195   :  { %20930 = vmatprep.subr.bf16.mxu1 %v23866_v31  ;;  %20950 = vmatprep.subr.bf16.mxu0 %v23866_v31 }
 0x196   :  { %20944 = vmatprep.mubr.bf16.mxu1 %v21849_v34  ;;  %20964 = vmatprep.mubr.bf16.mxu0 %v21851_v35 }
 0x198   :  { %20931 = vmatpush3.bf16.msra.mxu1 %v23866_v31  ;;  %20951 = vmatpush3.bf16.msra.mxu0 %v23866_v31 }
 0x199   :  { %20932 = vmatprep.subr.bf16.mxu1 %v23887_v53  ;;  %20952 = vmatprep.subr.bf16.mxu0 %v23887_v53 }
 0x19c   :  { %20933 = vmatpush3.bf16.msra.mxu1 %v23887_v53  ;;  %20953 = vmatpush3.bf16.msra.mxu0 %v23887_v53 }
 0x19d   :  { %20934 = vmatprep.subr.bf16.mxu1 %v23882_v51  ;;  %20954 = vmatprep.subr.bf16.mxu0 %v23882_v51 }
 0x1a0   :  { %20935 = vmatpush3.bf16.msra.mxu1 %v23882_v51  ;;  %20955 = vmatpush3.bf16.msra.mxu0 %v23882_v51 }
 0x1a1   :  { %20936 = vmatprep.subr.bf16.mxu1 %v23903_v7  ;;  %20956 = vmatprep.subr.bf16.mxu0 %v23903_v7 }
 0x1a4   :  { %20937 = vmatpush3.bf16.msra.mxu1 %v23903_v7  ;;  %20957 = vmatpush3.bf16.msra.mxu0 %v23903_v7 }
 0x1a5   :  { %20938 = vmatprep.subr.bf16.mxu1 %v23898_v5  ;;  %20958 = vmatprep.subr.bf16.mxu0 %v23898_v5 }
 0x1a8   :  { %20939 = vmatpush3.bf16.msra.mxu1 %v23898_v5  ;;  %20959 = vmatpush3.bf16.msra.mxu0 %v23898_v5 }
 0x1a9   :  { %20940 = vmatprep.subr.bf16.mxu1 %v23915_v21  ;;  %20960 = vmatprep.subr.bf16.mxu0 %v23915_v21 }
 0x1ac   :  { %20941 = vmatpush3.bf16.msra.mxu1 %v23915_v21  ;;  %20961 = vmatpush3.bf16.msra.mxu0 %v23915_v21 }
 0x1ad   :  { %20942 = vmatprep.subr.bf16.mxu1 %v23911_v20  ;;  %20962 = vmatprep.subr.bf16.mxu0 %v23911_v20 }
 0x1b0   :  { %20943 = vmatpush3.bf16.msra.mxu1 %v23911_v20  ;;  %20963 = vmatpush3.bf16.msra.mxu0 %v23911_v20 }
 0x1b1   :  { %20968 = vmatprep.subr.bf16.mxu1 %v23869_v33 }
 0x1b3   :  { %20945 = vmatmul.mubr.bf16.vlgmr.msra.gmra.mrb[12].mxu1 %v21850_v36  ;;  %20965 = vmatmul.mubr.bf16.vlgmr.msra.gmra.mrb[28].mxu0 %v21852_v37 }
 0x1b4   :  { %20969 = vmatpush3.bf16.msra.mxu1 %v23869_v33  ;;  %20984 = vmatprep.mubr.bf16.mxu1 %v21853_v38 }
 0x1b5   :  { %20970 = vmatprep.subr.bf16.mxu1 %v23866_v31  ;;  %20992 = vmatprep.mubr.msk.bf16.mxu0 %vm1047_vm1, %v21855_v50  ;;  %v21873_v50 = vld [vmem:[%s23682_s29 + $0x40] sm:$0xff]  }
 0x1b8   :  { %20971 = vmatpush3.bf16.msra.mxu1 %v23866_v31  ;;  %v21854_v31 = vld [vmem:[%s23667_s17 + $0x88] sm:$0xff]  }
 0x1b9   :  { %20972 = vmatprep.subr.bf16.mxu1 %v23887_v53 }
 0x1bc   :  { %20973 = vmatpush3.bf16.msra.mxu1 %v23887_v53 }
 0x1bd   :  { %20974 = vmatprep.subr.bf16.mxu1 %v23882_v51 }
 0x1c0   :  { %20975 = vmatpush3.bf16.msra.mxu1 %v23882_v51  ;;  %v21857_v51 = vld [vmem:[%s23677_s25 + $0x50] sm:$0xff]  }
 0x1c1   :  { %20976 = vmatprep.subr.bf16.mxu1 %v23903_v7 }
 0x1c4   :  { %20977 = vmatpush3.bf16.msra.mxu1 %v23903_v7 }
 0x1c5   :  { %20978 = vmatprep.subr.bf16.mxu1 %v23898_v5 }
 0x1c8   :  { %20979 = vmatpush3.bf16.msra.mxu1 %v23898_v5 }
 0x1c9   :  { %20980 = vmatprep.subr.bf16.mxu1 %v23915_v21 }
 0x1cc   :  { %20981 = vmatpush3.bf16.msra.mxu1 %v23915_v21 }
 0x1cd   :  { %20982 = vmatprep.subr.bf16.mxu1 %v23911_v20 }
 0x1d0   :  { %20983 = vmatpush3.bf16.msra.mxu1 %v23911_v20 }
 0x1d3   :  { %20985 = vmatmul.mubr.bf16.vlgmr.msra.gmra.mrb[16].mxu1 %v21854_v31 }
 0x1d4   :  { %21032 = vmatprep.mubr.msk.bf16.mxu1 %vm1047_vm1, %v21857_v51  ;;  %v21860_v51 = vld [vmem:[%s23677_s25 + $0x18] sm:$0xff]  }
 0x226   :  { %v20826_v33 = vpop.f32.mrb[0].mxu1  ;;  %v20846_v39 = vpop.f32.mrb[16].mxu0 }
 0x227   :  { %v539_v40 = vmax.f32 %v20826_v33, %v20846_v39  ;;  %v456_v41 = vpop.f32.mrb[1].mxu1  ;;  %v522_v42 = vpop.f32.mrb[17].mxu0 }
 0x228   :  { %v537_v43 = vmax.f32 %v456_v41, %v522_v42  ;;  %v20827_v44 = vpop.f32.mrb[2].mxu1  ;;  %v20847_v45 = vpop.f32.mrb[18].mxu0 }
 0x229   :  { %v540_v46 = vmax.f32 %v20827_v44, %v20847_v45  ;;  %v459_v47 = vpop.f32.mrb[3].mxu1  ;;  %v525_v48 = vpop.f32.mrb[19].mxu0 }
 0x22a   :  { %v538_v49 = vmax.f32 %v459_v47, %v525_v48  ;;  %v21858_v47 = vld [vmem:[%s23677_s25 + $0x58] sm:$0xff]   ;;  %v21859_v48 = vld [vmem:[%s23677_s25 + $0x10] sm:$0xff]  }
 0x246   :  { %v20866_v52 = vpop.f32.mrb[4].mxu1  ;;  %v20886_v53 = vpop.f32.mrb[20].mxu0 }
 0x247   :  { %v609_v54 = vmax.f32 %v539_v40, %v20866_v52  ;;  %v592_v55 = vpop.f32.mrb[5].mxu1  ;;  %v662_v56 = vpop.f32.mrb[21].mxu0  ;;  %v21870_v52 = vld [vmem:[%s23677_s25 + $0x78] sm:$0xff]  }
 0x248   :  { %v607_v57 = vmax.f32 %v537_v43, %v592_v55  ;;  %v20867_v58 = vpop.f32.mrb[6].mxu1  ;;  %v20887_v59 = vpop.f32.mrb[22].mxu0  ;;  %v21875_v55 = vld [vmem:[%s23682_s29 + $0x48] sm:$0xff]  }
 0x249   :  { %v610_v60 = vmax.f32 %v540_v46, %v20867_v58  ;;  %v679_v61 = vmax.f32 %v609_v54, %v20886_v53  ;;  %v595_v62 = vpop.f32.mrb[7].mxu1  ;;  %v665_v63 = vpop.f32.mrb[23].mxu0  ;;  %v21856_v46 = vld [vmem:[%s23677_s25 + $0x8] sm:$0xff]   ;;  %v21861_v53 = vld [vmem:[%s23677_s25 + $0x20] sm:$0xff]  }
 0x24a   :  { %v608_v0 = vmax.f32 %v538_v49, %v595_v62  ;;  %v677_v1 = vmax.f32 %v607_v57, %v662_v56  ;;  %v21869_v49 = vld [vmem:[%s23677_s25 + $0x70] sm:$0xff]   ;;  %v21874_v54 = vld [vmem:[%s23682_s29] sm:$0xff]   ;;  %v21876_v56 = vld [vmem:[%s23682_s29 + $0x8] sm:$0xff]  }
 0x24b   :  { %v680_v2 = vmax.f32 %v610_v60, %v20887_v59  ;;  %v21877_v57 = vld [vmem:[%s23682_s29 + $0x50] sm:$0xff]   ;;  %v21862_v58 = vld [vmem:[%s23677_s25 + $0x28] sm:$0xff]   ;;  %v21880_v62 = vld [vmem:[%s23682_s29 + $0x18] sm:$0xff]  }
 0x24c   :  { %v678_v3 = vmax.f32 %v608_v0, %v665_v63  ;;  %v21863_v59 = vld [vmem:[%s23677_s25 + $0x30] sm:$0xff]   ;;  %v21881_v63 = vld [vmem:[%s23682_s29 + $0x60] sm:$0xff]   ;;  %v21864_v0 = vld [vmem:[%s23677_s25 + $0x38] sm:$0xff]  }
 0x24d   :  { %v21878_v60 = vld [vmem:[%s23682_s29 + $0x10] sm:$0xff]  }
 0x266   :  { %v20906_v4 = vpop.f32.mrb[8].mxu1  ;;  %v20926_v5 = vpop.f32.mrb[24].mxu0 }
 0x267   :  { %v749_v6 = vmax.f32 %v679_v61, %v20906_v4  ;;  %v732_v7 = vpop.f32.mrb[9].mxu1  ;;  %v802_v8 = vpop.f32.mrb[25].mxu0  ;;  %v21879_v61 = vld [vmem:[%s23682_s29 + $0x58] sm:$0xff]   ;;  %v21867_v4 = vld [vmem:[%s23677_s25 + $0x60] sm:$0xff]  }
 0x268   :  { %v747_v9 = vmax.f32 %v677_v1, %v732_v7  ;;  %v20907_v10 = vpop.f32.mrb[10].mxu1  ;;  %v20927_v11 = vpop.f32.mrb[26].mxu0  ;;  %v21865_v1 = vld [vmem:[%s23677_s25 + $0x40] sm:$0xff]  }
 0x269   :  { %v750_v12 = vmax.f32 %v680_v2, %v20907_v10  ;;  %v819_v13 = vmax.f32 %v749_v6, %v20926_v5  ;;  %v735_v14 = vpop.f32.mrb[11].mxu1  ;;  %v805_v15 = vpop.f32.mrb[27].mxu0  ;;  %v21883_v2 = vld [vmem:[%s23682_s29 + $0x20] sm:$0xff]   ;;  %v21868_v5 = vld [vmem:[%s23677_s25 + $0x68] sm:$0xff]  }
 0x26a   :  { %v748_v16 = vmax.f32 %v678_v3, %v735_v14  ;;  %v817_v17 = vmax.f32 %v747_v9, %v802_v8  ;;  %v21866_v3 = vld [vmem:[%s23677_s25 + $0x48] sm:$0xff]   ;;  %v21871_v6 = vld [vmem:[%s23677_s25 + $0x80] sm:$0xff]   ;;  %v21889_v14 = vld [vmem:[%s23682_s29 + $0x70] sm:$0xff]  }
 0x26b   :  { %v820_v18 = vmax.f32 %v750_v12, %v20927_v11  ;;  %v21882_v7 = vld [vmem:[%s23682_s29 + $0xc0] sm:$0xff]   ;;  %v21872_v8 = vld [vmem:[%s23677_s25 + $0x88] sm:$0xff]  }
 0x26c   :  { %v818_v19 = vmax.f32 %v748_v16, %v805_v15  ;;  %v21884_v9 = vld [vmem:[%s23682_s29 + $0x80] sm:$0xff]   ;;  %v21885_v10 = vld [vmem:[%s23682_s29 + $0x68] sm:$0xff]   ;;  %v21890_v15 = vld [vmem:[%s23682_s29 + $0xd0] sm:$0xff]  }
 0x26d   :  { %v21886_v11 = vld [vmem:[%s23682_s29 + $0xc8] sm:$0xff]   ;;  %v21891_v16 = vld [vmem:[%s23682_s29 + $0x30] sm:$0xff]  }
 0x26e   :  { %v21887_v12 = vld [vmem:[%s23682_s29 + $0x28] sm:$0xff]  }
 0x286   :  { %v20946_v20 = vpop.f32.mrb[12].mxu1  ;;  %v20966_v21 = vpop.f32.mrb[28].mxu0 }
 0x287   :  { %v872_v22 = vpop.f32.mrb[13].mxu1  ;;  %v889_v23 = vmax.f32 %v819_v13, %v20946_v20  ;;  %v942_v24 = vpop.f32.mrb[29].mxu0  ;;  %v21888_v13 = vld [vmem:[%s23682_s29 + $0x88] sm:$0xff]   ;;  %v21895_v20 = vld [vmem:[%s23682_s29 + $0x38] sm:$0xff]  }
 0x288   :  { %v20947_v25 = vpop.f32.mrb[14].mxu1  ;;  %v887_v26 = vmax.f32 %v817_v17, %v872_v22  ;;  %v20967_v27 = vpop.f32.mrb[30].mxu0  ;;  %v21892_v17 = vld [vmem:[%s23682_s29 + $0x90] sm:$0xff]   ;;  %v21897_v22 = vld [vmem:[%s23682_s29 + $0xe0] sm:$0xff]  }
 0x289   :  { %v959_v28 = vmax.f32 %v889_v23, %v20966_v21  ;;  %v875_v29 = vpop.f32.mrb[15].mxu1  ;;  %v890_v30 = vmax.f32 %v820_v18, %v20947_v25  ;;  %v945_v32 = vpop.f32.mrb[31].mxu0  ;;  %v21893_v18 = vld [vmem:[%s23682_s29 + $0x78] sm:$0xff]   ;;  %v21898_v23 = vld [vmem:[%s23682_s29 + $0x140] sm:$0xff]   ;;  %v21901_v25 = vld [vmem:[%s23682_s29 + $0xe8] sm:$0xff]  }
 0x28a   :  { %v957_v34 = vmax.f32 %v887_v26, %v942_v24  ;;  %v888_v35 = vmax.f32 %v818_v19, %v875_v29  ;;  %v21894_v19 = vld [vmem:[%s23682_s29 + $0xd8] sm:$0xff]   ;;  %v21899_v24 = vld [vmem:[%s23682_s29 + $0xa0] sm:$0xff]   ;;  %v21903_v26 = vld [vmem:[%s23682_s29 + $0xa8] sm:$0xff]  }
 0x28b   :  { %v960_v36 = vmax.f32 %v890_v30, %v20967_v27  ;;  %v21896_v21 = vld [vmem:[%s23682_s29 + $0x98] sm:$0xff]   ;;  %v21905_v27 = vld [vmem:[%s23682_s29 + $0xf0] sm:$0xff]  }
 0x28c   :  { %v958_v37 = vmax.f32 %v888_v35, %v945_v32  ;;  %v21909_v29 = vld [vmem:[%s23682_s29 + $0xf8] sm:$0xff]   ;;  %v21914_v32 = vld [vmem:[%s23682_s29 + $0x1c0] sm:$0xff]  }
 0x28d   :  { %v21911_v30 = vld [vmem:[%s23682_s29 + $0xb8] sm:$0xff]  }
 0x2a6   :  { %v20986_v38 = vpop.f32.mrb[16].mxu1 }
 0x2a7   :  { %v24057_v31 = vmax.f32 %v959_v28, %v20986_v38  ;;  %v1012_v33 = vpop.f32.mrb[17].mxu1  ;;  %v21907_v28 = vld [vmem:[%s23682_s29 + $0xb0] sm:$0xff]  }
 0x2a8   :  { %v24059_v39 = vmax.f32 %v957_v34, %v1012_v33  ;;  %v20987_v40 = vpop.f32.mrb[18].mxu1 }
 0x2a9   :  { %v24061_v41 = vmax.f32 %v960_v36, %v20987_v40  ;;  %v1015_v42 = vpop.f32.mrb[19].mxu1 }
 0x2aa   :  { %v24063_v43 = vmax.f32 %v958_v37, %v1015_v42 }
 0x2ab   :  { %v24071_v45 = vpack.c.bf16 %v24061_v41, %v24057_v31 }
 0x2ac   :  { %v24067_v44 = vpack.c.bf16 %v24063_v43, %v24059_v39 }
 0x2ae   :  { %20988 = vmatprep.subr.bf16.mxu0 %v24067_v44  ;;  %21028 = vmatprep.subr.bf16.mxu1 %v24067_v44 }
 0x2af   :  { %20989 = vmatpush3.bf16.msra.mxu0 %v24067_v44  ;;  %21029 = vmatpush3.bf16.msra.mxu1 %v24067_v44 }
 0x2b0   :  { %20990 = vmatprep.subr.bf16.mxu0 %v24071_v45  ;;  %21030 = vmatprep.subr.bf16.mxu1 %v24071_v45 }
 0x2b3   :  { %20991 = vmatpush3.bf16.msra.mxu0 %v24071_v45  ;;  %21031 = vmatpush3.bf16.msra.mxu1 %v24071_v45 }
 0x2b4   :  { %20996 = vmatprep.subr.bf16.mxu0 %v24067_v44  ;;  %21044 = vmatprep.subr.bf16.mxu1 %v24067_v44 }
 0x2b6   :  { %20993 = vmatmul.mubr.msk.bf16.vlgmr.msra.gmra.mrb[32].mxu0 %vm1047_vm1, %v21856_v46  ;;  %21033 = vmatmul.mubr.msk.bf16.vlgmr.msra.gmra.mrb[20].mxu1 %vm1047_vm1, %v21858_v47 }
 0x2b7   :  { %20997 = vmatpush3.bf16.msra.mxu0 %v24067_v44  ;;  %21045 = vmatpush3.bf16.msra.mxu1 %v24067_v44 }
 0x2b8   :  { %20998 = vmatprep.subr.bf16.mxu0 %v24071_v45  ;;  %21046 = vmatprep.subr.bf16.mxu1 %v24071_v45 }
 0x2b9   :  { %21000 = vmatprep.mubr.msk.bf16.mxu0 %vm1047_vm1, %v21859_v48  ;;  %21048 = vmatprep.mubr.msk.bf16.mxu1 %vm1047_vm1, %v21869_v49 }
 0x2bb   :  { %20999 = vmatpush3.bf16.msra.mxu0 %v24071_v45  ;;  %21047 = vmatpush3.bf16.msra.mxu1 %v24071_v45 }
 0x2bc   :  { %21004 = vmatprep.subr.bf16.mxu0 %v24067_v44  ;;  %19653 = vmatprep.subr.bf16.mxu1 %v21873_v50 }
 0x2be   :  { %21001 = vmatmul.mubr.msk.bf16.vlgmr.msra.gmra.mrb[36].mxu0 %vm1047_vm1, %v21860_v51  ;;  %21049 = vmatmul.mubr.msk.bf16.vlgmr.msra.gmra.mrb[24].mxu1 %vm1047_vm1, %v21870_v52 }
 0x2bf   :  { %21005 = vmatpush3.bf16.msra.mxu0 %v24067_v44  ;;  %21008 = vmatprep.mubr.msk.bf16.mxu0 %vm1047_vm1, %v21861_v53 }
 0x2c0   :  { %21006 = vmatprep.subr.bf16.mxu0 %v24071_v45  ;;  %19654 = vmatpush3.bf16.msra.mxu1 %v21874_v54 }
 0x2c1   :  { %19655 = vmatprep.subr.bf16.mxu1 %v21875_v55 }
 0x2c3   :  { %21007 = vmatpush3.bf16.msra.mxu0 %v24071_v45 }
 0x2c4   :  { %21012 = vmatprep.subr.bf16.mxu0 %v24067_v44  ;;  %19656 = vmatpush3.bf16.msra.mxu1 %v21876_v56 }
 0x2c5   :  { %19657 = vmatprep.subr.bf16.mxu1 %v21877_v57 }
 0x2c6   :  { %21009 = vmatmul.mubr.msk.bf16.vlgmr.msra.gmra.mrb[40].mxu0 %vm1047_vm1, %v21862_v58 }
 0x2c7   :  { %21013 = vmatpush3.bf16.msra.mxu0 %v24067_v44  ;;  %21016 = vmatprep.mubr.msk.bf16.mxu0 %vm1047_vm1, %v21863_v59 }
 0x2c8   :  { %21014 = vmatprep.subr.bf16.mxu0 %v24071_v45  ;;  %19658 = vmatpush3.bf16.msra.mxu1 %v21878_v60 }
 0x2c9   :  { %19659 = vmatprep.subr.bf16.mxu1 %v21879_v61 }
 0x2cb   :  { %21015 = vmatpush3.bf16.msra.mxu0 %v24071_v45 }
 0x2cc   :  { %21020 = vmatprep.subr.bf16.mxu0 %v24067_v44  ;;  %19660 = vmatpush3.bf16.msra.mxu1 %v21880_v62 }
 0x2cd   :  { %19661 = vmatprep.subr.bf16.mxu1 %v21881_v63 }
 0x2ce   :  { %21017 = vmatmul.mubr.msk.bf16.vlgmr.msra.gmra.mrb[44].mxu0 %vm1047_vm1, %v21864_v0 }
 0x2cf   :  { %21021 = vmatpush3.bf16.msra.mxu0 %v24067_v44  ;;  %21024 = vmatprep.mubr.msk.bf16.mxu0 %vm1047_vm1, %v21865_v1 }
 0x2d0   :  { %21022 = vmatprep.subr.bf16.mxu0 %v24071_v45  ;;  %19662 = vmatpush3.bf16.msra.mxu1 %v21883_v2 }
 0x2d1   :  { %19663 = vmatprep.subr.bf16.mxu1 %v21885_v10 }
 0x2d3   :  { %21023 = vmatpush3.bf16.msra.mxu0 %v24071_v45 }
 0x2d4   :  { %21036 = vmatprep.subr.bf16.mxu0 %v24067_v44  ;;  %19664 = vmatpush3.bf16.msra.mxu1 %v21887_v12 }
 0x2d5   :  { %19665 = vmatprep.subr.bf16.mxu1 %v21889_v14 }
 0x2d6   :  { %21025 = vmatmul.mubr.msk.bf16.vlgmr.msra.gmra.mrb[48].mxu0 %vm1047_vm1, %v21866_v3 }
 0x2d7   :  { %21037 = vmatpush3.bf16.msra.mxu0 %v24067_v44  ;;  %21040 = vmatprep.mubr.msk.bf16.mxu0 %vm1047_vm1, %v21867_v4 }
 0x2d8   :  { %21038 = vmatprep.subr.bf16.mxu0 %v24071_v45  ;;  %19666 = vmatpush3.bf16.msra.mxu1 %v21891_v16 }
 0x2d9   :  { %19667 = vmatprep.subr.bf16.mxu1 %v21893_v18 }
 0x2db   :  { %21039 = vmatpush3.bf16.msra.mxu0 %v24071_v45 }
 0x2dc   :  { %21052 = vmatprep.subr.bf16.mxu0 %v24067_v44  ;;  %19668 = vmatpush3.bf16.msra.mxu1 %v21895_v20 }
 0x2dd   :  { %19709 = vmatprep.subr.bf16.mxu1 %v21898_v23 }
 0x2de   :  { %21041 = vmatmul.mubr.msk.bf16.vlgmr.msra.gmra.mrb[52].mxu0 %vm1047_vm1, %v21868_v5 }
 0x2df   :  { %21053 = vmatpush3.bf16.msra.mxu0 %v24067_v44  ;;  %21056 = vmatprep.mubr.msk.bf16.mxu0 %vm1047_vm1, %v21871_v6 }
 0x2e0   :  { %21054 = vmatprep.subr.bf16.mxu0 %v24071_v45 }
 0x2e3   :  { %21055 = vmatpush3.bf16.msra.mxu0 %v24071_v45 }
 0x2e4   :  { %19681 = vmatprep.subr.bf16.mxu0 %v21882_v7 }
 0x2e6   :  { %21057 = vmatmul.mubr.msk.bf16.vlgmr.msra.gmra.mrb[56].mxu0 %vm1047_vm1, %v21872_v8 }
 0x2e7   :  { %19682 = vmatpush3.bf16.msra.mxu0 %v21884_v9 }
 0x2e8   :  { %19683 = vmatprep.subr.bf16.mxu0 %v21886_v11 }
 0x2eb   :  { %19684 = vmatpush3.bf16.msra.mxu0 %v21888_v13 }
 0x2ec   :  { %19685 = vmatprep.subr.bf16.mxu0 %v21890_v15 }
 0x2ef   :  { %19686 = vmatpush3.bf16.msra.mxu0 %v21892_v17 }
 0x2f0   :  { %19687 = vmatprep.subr.bf16.mxu0 %v21894_v19 }
 0x2f3   :  { %19688 = vmatpush3.bf16.msra.mxu0 %v21896_v21 }
 0x2f4   :  { %19689 = vmatprep.subr.bf16.mxu0 %v21897_v22 }
 0x2f7   :  { %19690 = vmatpush3.bf16.msra.mxu0 %v21899_v24 }
 0x2f8   :  { %19691 = vmatprep.subr.bf16.mxu0 %v21901_v25 }
 0x2fb   :  { %19692 = vmatpush3.bf16.msra.mxu0 %v21903_v26 }
 0x2fc   :  { %19693 = vmatprep.subr.bf16.mxu0 %v21905_v27 }
 0x2ff   :  { %19694 = vmatpush3.bf16.msra.mxu0 %v21907_v28 }
 0x300   :  { %19695 = vmatprep.subr.bf16.mxu0 %v21909_v29 }
 0x303   :  { %19696 = vmatpush3.bf16.msra.mxu0 %v21911_v30 }
 0x304   :  { %19737 = vmatprep.subr.bf16.mxu0 %v21914_v32 }
 0x305   :  { %80 = vsyncpa [#allocation3], 0  ;;  %v21900_v59 = vld [vmem:[%s23682_s29 + $0x100] sm:$0xff]   ;;  %v21902_v61 = vld [vmem:[%s23682_s29 + $0x148] sm:$0xff]   ;;  %vm23641_vm2 = vmmov 0   ;;  %s26338_s0 = sld [smem:[#allocation5_spill]] }
 0x306   :  { %v21904_v62 = vld [vmem:[%s23682_s29 + $0x108] sm:$0xff]   ;;  %v21906_v1 = vld [vmem:[%s23682_s29 + $0x150] sm:$0xff]   ;;  %v21910_v7 = vld [vmem:[%s23682_s29 + $0x158] sm:$0xff]   ;;  %s26339_s5 = sld [smem:[#allocation6_spill]]  ;;  %vm8139_vm3 = vcmask 1043456   ;;  %s26340_s9 = sld [smem:[#allocation7_spill]] }
 0x307   :  { %v21908_v6 = vld [vmem:[%s23682_s29 + $0x110] sm:$0xff]   ;;  %v21912_v9 = vld [vmem:[%s23682_s29 + $0x118] sm:$0xff]   ;;  %v21913_v11 = vld [vmem:[%s23682_s29 + $0x160] sm:$0xff]   ;;  %vm8135_vm4 = vcmask 64512   ;;  %s26341_s13 = sld [smem:[#allocation8_spill]]  ;;  %s26342_s17 = sld [smem:[#allocation9_spill]] }
 0x308   :  { %v21915_v16 = vld [vmem:[%s23682_s29 + $0x120] sm:$0xff]   ;;  %v21917_v18 = vld [vmem:[%s23682_s29 + $0x168] sm:$0xff]   ;;  %v21921_v23 = vld [vmem:[%s23682_s29 + $0x170] sm:$0xff]   ;;  %s26343_s25 = sld [smem:[#allocation11_spill]]  ;;  %s26353_s10 = sld [smem:[#allocation20_spill]]  ;;  %vm17717_vm5 = vcmask 74752  }
 0x309   :  { %v21916_v17 = vld [vmem:[%s23682_s29 + $0x180] sm:$0xff]   ;;  %v21918_v19 = vld [vmem:[%s23682_s29 + $0x1c8] sm:$0xff]   ;;  %v21922_v24 = vld [vmem:[%s23682_s29 + $0x1d0] sm:$0xff]   ;;  %s26352_s7 = sld [smem:[#allocation19_spill]]  ;;  %s26354_s11 = sld [smem:[#allocation21_spill]] }
 0x30a   :  { %v21919_v20 = vld [vmem:[%s23682_s29 + $0x128] sm:$0xff]   ;;  %v21923_v29 = vld [vmem:[%s23682_s29 + $0x130] sm:$0xff]   ;;  %s26355_s15 = sld [smem:[#allocation22_spill]]  ;;  %s26356_s16 = sld [smem:[#allocation23_spill]] }
 0x30b   :  { %v21920_v21 = vld [vmem:[%s23682_s29 + $0x188] sm:$0xff]   ;;  %v21924_v30 = vld [vmem:[%s23682_s29 + $0x190] sm:$0xff]   ;;  %s26357_s18 = sld [smem:[#allocation24_spill]] }
 0x389   :  { %v20994_v34 = vpop.f32.mrb[32].mxu0  ;;  %v24175_v35 = vpop.f32.mrb[20].mxu1 }
 0x38a   :  { %v1088_v36 = vpop.f32.mrb[33].mxu0  ;;  %v1448_v37 = vpop.f32.mrb[21].mxu1 }
 0x38b   :  { %v20995_v38 = vpop.f32.mrb[34].mxu0  ;;  %v24177_v33 = vpop.f32.mrb[22].mxu1 }
 0x38c   :  { %v1104_v40 = vpack.c.bf16 %v20995_v38, %v20994_v34  ;;  %v1091_v42 = vpop.f32.mrb[35].mxu0  ;;  %v1464_v44 = vpack.c.bf16 %v24177_v33, %v24175_v35  ;;  %v1451_v45 = vpop.f32.mrb[23].mxu1  ;;  %v21925_v34 = vld [vmem:[%s23682_s29 + $0x178] sm:$0xff]  }
 0x38d   :  { %v1103_v46 = vpack.c.bf16 %v1091_v42, %v1088_v36  ;;  %v1463_v47 = vpack.c.bf16 %v1451_v45, %v1448_v37  ;;  %v21926_v36 = vld [vmem:[%s23682_s29 + $0x1d8] sm:$0xff]   ;;  %v21929_v42 = vld [vmem:[%s23682_s29 + $0x1e0] sm:$0xff]  }
 0x38e   :  { %v21927_v37 = vld [vmem:[%s23682_s29 + $0x138] sm:$0xff]   ;;  %v21930_v45 = vld [vmem:[%s23682_s29 + $0x200] sm:$0xff]  }
 0x38f   :  { %v21928_v38 = vld [vmem:[%s23682_s29 + $0x198] sm:$0xff]  }
 0x390   :  { %v21938_v33 = vld [vmem:[%s23682_s29 + $0x1f8] sm:$0xff]  }
 0x391   :  { %v21002_v48 = vpop.f32.mrb[36].mxu0  ;;  %v24181_v49 = vpop.f32.mrb[24].mxu1 }
 0x392   :  { %v1160_v50 = vpop.f32.mrb[37].mxu0  ;;  %v24183_v51 = vpop.f32.mrb[25].mxu1 }
 0x393   :  { %v21003_v52 = vpop.f32.mrb[38].mxu0  ;;  %v24185_v53 = vpop.f32.mrb[26].mxu1 }
 0x394   :  { %v1176_v54 = vpack.c.bf16 %v21003_v52, %v21002_v48  ;;  %v1163_v55 = vpop.f32.mrb[39].mxu0  ;;  %v24187_v56 = vpop.f32.mrb[27].mxu1  ;;  %v1608_v57 = vpack.c.bf16 %v24185_v53, %v24181_v49  ;;  %v21931_v52 = vld [vmem:[%s23682_s29 + $0x1a0] sm:$0xff]  }
 0x395   :  { %v1175_v58 = vpack.c.bf16 %v1163_v55, %v1160_v50  ;;  %v1607_v60 = vpack.c.bf16 %v24187_v56, %v24183_v51  ;;  %v21932_v55 = vld [vmem:[%s23682_s29 + $0x1e8] sm:$0xff]  }
 0x396   :  { %v21934_v51 = vld [vmem:[%s23682_s29 + $0x1a8] sm:$0xff]  }
 0x397   :  { %2290 = vmatprep.mubr.bf16.mxu1 %v1175_v58  ;;  %v21933_v58 = vld [vmem:[%s23682_s29 + $0x208] sm:$0xff]  }
 0x398   :  { %2291 = vmatmul.mubr.bf16.vlgmr.msra.gmra.mrb[28].mxu1 %v1103_v46 }
 0x399   :  { %19710 = vmatpush3.bf16.msra.mxu1 %v21900_v59  ;;  %2298 = vmatprep.mubr.bf16.mxu1 %v1176_v54  ;;  %v21010_v63 = vpop.f32.mrb[40].mxu0  ;;  %v21935_v59 = vld [vmem:[%s23682_s29 + $0x1f0] sm:$0xff]  }
 0x39a   :  { %19711 = vmatprep.subr.bf16.mxu1 %v21902_v61  ;;  %v1232_v0 = vpop.f32.mrb[41].mxu0  ;;  %v21936_v61 = vld [vmem:[%s23682_s29 + $0x210] sm:$0xff]  }
 0x39b   :  { %v21011_v2 = vpop.f32.mrb[42].mxu0 }
 0x39c   :  { %v1248_v3 = vpack.c.bf16 %v21011_v2, %v21010_v63  ;;  %v1235_v4 = vpop.f32.mrb[43].mxu0  ;;  %v21940_v2 = vld [vmem:[%s23682_s29 + $0x1b8] sm:$0xff]  }
 0x39d   :  { %19712 = vmatpush3.bf16.msra.mxu1 %v21904_v62  ;;  %v1247_v5 = vpack.c.bf16 %v1235_v4, %v1232_v0  ;;  %v21942_v4 = vld [vmem:[%s23682_s29 + $0x228] sm:$0xff]  }
 0x39e   :  { %19713 = vmatprep.subr.bf16.mxu1 %v21906_v1  ;;  %v21937_v1 = vld [vmem:[%s23682_s29 + $0x1b0] sm:$0xff]  }
 0x3a0   :  { %2299 = vmatmul.mubr.bf16.gmra.mrb[32].mxu1 %v1104_v40 }
 0x3a1   :  { %19714 = vmatpush3.bf16.msra.mxu1 %v21908_v6  ;;  %v21018_v8 = vpop.f32.mrb[44].mxu0  ;;  %2388 = vmatprep.mubr.bf16.mxu1 %v1463_v47  ;;  %v21944_v6 = vld [vmem:[%s23682_s29 + $0x238] sm:$0xff]  }
 0x3a2   :  { %v1304_v10 = vpop.f32.mrb[45].mxu0  ;;  %19715 = vmatprep.subr.bf16.mxu1 %v21910_v7  ;;  %v21945_v7 = vld [vmem:[%s23687_s3] sm:$0xff]  }
 0x3a3   :  { %v21019_v12 = vpop.f32.mrb[46].mxu0 }
 0x3a4   :  { %v1320_v13 = vpack.c.bf16 %v21019_v12, %v21018_v8  ;;  %v1307_v14 = vpop.f32.mrb[47].mxu0  ;;  %v21947_v8 = vld [vmem:[%s23687_s3 + $0x30] sm:$0xff]  }
 0x3a5   :  { %v1319_v15 = vpack.c.bf16 %v1307_v14, %v1304_v10  ;;  %19716 = vmatpush3.bf16.msra.mxu1 %v21912_v9 }
 0x3a6   :  { %19717 = vmatprep.subr.bf16.mxu1 %v21913_v11 }
 0x3a7   :  { %2339 = vmatprep.mubr.bf16.mxu0 %v1319_v15 }
 0x3a8   :  { %2340 = vmatmul.mubr.bf16.vlgmr.msra.gmra.mrb[60].mxu0 %v1247_v5  ;;  %v21943_v5 = vld [vmem:[%s23682_s29 + $0x230] sm:$0xff]  }
 0x3a9   :  { %19718 = vmatpush3.bf16.msra.mxu1 %v21915_v16  ;;  %19738 = vmatpush3.bf16.msra.mxu0 %v21916_v17  ;;  %v24207_v22 = vpop.f32.mrb[48].mxu0 }
 0x3aa   :  { %19719 = vmatprep.subr.bf16.mxu1 %v21917_v18  ;;  %19739 = vmatprep.subr.bf16.mxu0 %v21918_v19  ;;  %v1376_v25 = vpop.f32.mrb[49].mxu0  ;;  %v1825_v18 = vld [vmem:[%s23672_s21] ss:$0 sm:$0xff] }
 0x3ab   :  { %2347 = vmatprep.mubr.bf16.mxu0 %v1320_v13  ;;  %v21027_v26 = vpop.f32.mrb[50].mxu0 }
 0x3ac   :  { %v1392_v27 = vpack.c.bf16 %v21027_v26, %v24207_v22  ;;  %v1379_v28 = vpop.f32.mrb[51].mxu0 }
 0x3ad   :  { %19720 = vmatpush3.bf16.msra.mxu1 %v21919_v20  ;;  %19740 = vmatpush3.bf16.msra.mxu0 %v21920_v21  ;;  %v1391_v32 = vpack.c.bf16 %v1379_v28, %v1376_v25 }
 0x3ae   :  { %19721 = vmatprep.subr.bf16.mxu1 %v21921_v23  ;;  %19741 = vmatprep.subr.bf16.mxu0 %v21922_v24 }
 0x3b0   :  { %2348 = vmatmul.mubr.bf16.gmra.mrb[64].mxu0 %v1248_v3  ;;  %v21941_v3 = vld [vmem:[%s23682_s29 + $0x220] sm:$0xff]  }
 0x3b1   :  { %19722 = vmatpush3.bf16.msra.mxu1 %v21923_v29  ;;  %19742 = vmatpush3.bf16.msra.mxu0 %v21924_v30  ;;  %v21042_v40 = vpop.f32.mrb[52].mxu0 }
 0x3b2   :  { %19723 = vmatprep.subr.bf16.mxu1 %v21925_v34  ;;  %19743 = vmatprep.subr.bf16.mxu0 %v21926_v36  ;;  %v1520_v46 = vpop.f32.mrb[53].mxu0 }
 0x3b3   :  { %v21043_v47 = vpop.f32.mrb[54].mxu0  ;;  %2437 = vmatprep.mubr.bf16.mxu0 %v1607_v60 }
 0x3b4   :  { %v1536_v48 = vpack.c.bf16 %v21043_v47, %v21042_v40  ;;  %v1523_v50 = vpop.f32.mrb[55].mxu0 }
 0x3b5   :  { %19724 = vmatpush3.bf16.msra.mxu1 %v21927_v37  ;;  %19744 = vmatpush3.bf16.msra.mxu0 %v21928_v38  ;;  %v1535_v54 = vpack.c.bf16 %v1523_v50, %v1520_v46 }
 0x3b6   :  { %19745 = vmatprep.subr.bf16.mxu0 %v21929_v42  ;;  %21060 = vmatprep.subr.bf16.mxu1 %v21930_v45 }
 0x3b8   :  { %2389 = vmatmul.mubr.bf16.vlgmr.msra.gmra.mrb[36].mxu1 %v1391_v32 }
 0x3b9   :  { %2396 = vmatprep.mubr.bf16.mxu1 %v1464_v44  ;;  %19746 = vmatpush3.bf16.msra.mxu0 %v21931_v52  ;;  %v21058_v56 = vpop.f32.mrb[56].mxu0  ;;  %v21939_v44 = vld [vmem:[%s23682_s29 + $0x218] sm:$0xff]   ;;  %s26344_s29 = sld [smem:[#allocation10_spill]] }
 0x3ba   :  { %21061 = vmatpush3.bf16.msra.mxu1 %v21930_v45  ;;  %19747 = vmatprep.subr.bf16.mxu0 %v21932_v55  ;;  %v1664_v60 = vpop.f32.mrb[57].mxu0 }
 0x3bb   :  { %21062 = vmatprep.subr.bf16.mxu1 %v21933_v58  ;;  %v21059_v62 = vpop.f32.mrb[58].mxu0 }
 0x3bc   :  { %v1680_v63 = vpack.c.bf16 %v21059_v62, %v21058_v56  ;;  %v1667_v0 = vpop.f32.mrb[59].mxu0 }
 0x3bd   :  { %19748 = vmatpush3.bf16.msra.mxu0 %v21934_v51  ;;  %v1679_v35 = vpack.c.bf16 %v1667_v0, %v1664_v60 }
 0x3be   :  { %21063 = vmatpush3.bf16.msra.mxu1 %v21933_v58  ;;  %19749 = vmatprep.subr.bf16.mxu0 %v21935_v59 }
 0x3bf   :  { %21064 = vmatprep.subr.bf16.mxu1 %v21936_v61 }
 0x3c0   :  { %2397 = vmatmul.mubr.bf16.gmra.mrb[40].mxu1 %v1392_v27 }
 0x3c1   :  { %19750 = vmatpush3.bf16.msra.mxu0 %v21937_v1  ;;  %21076 = vmatprep.mubr.bf16.mxu1 %v1679_v35 }
 0x3c2   :  { %21065 = vmatpush3.bf16.msra.mxu1 %v21936_v61  ;;  %19751 = vmatprep.subr.bf16.mxu0 %v21938_v33 }
 0x3c3   :  { %21066 = vmatprep.subr.bf16.mxu1 %v21939_v44 }
 0x3c5   :  { %19752 = vmatpush3.bf16.msra.mxu0 %v21940_v2 }
 0x3c6   :  { %21067 = vmatpush3.bf16.msra.mxu1 %v21939_v44 }
 0x3c7   :  { %21068 = vmatprep.subr.bf16.mxu1 %v21941_v3 }
 0x3c8   :  { %2438 = vmatmul.mubr.bf16.vlgmr.msra.gmra.mrb[68].mxu0 %v1535_v54 }
 0x3c9   :  { %2445 = vmatprep.mubr.bf16.mxu0 %v1608_v57 }
 0x3ca   :  { %21069 = vmatpush3.bf16.msra.mxu1 %v21941_v3 }
 0x3cb   :  { %21070 = vmatprep.subr.bf16.mxu1 %v21942_v4 }
 0x3ce   :  { %21071 = vmatpush3.bf16.msra.mxu1 %v21942_v4 }
 0x3cf   :  { %21072 = vmatprep.subr.bf16.mxu1 %v21943_v5 }
 0x3d0   :  { %2446 = vmatmul.mubr.bf16.gmra.mrb[72].mxu0 %v1536_v48 }
 0x3d1   :  { %21084 = vmatprep.mubr.msk.bf16.mxu0 %vm1047_vm1, %v21945_v7 }
 0x3d2   :  { %21073 = vmatpush3.bf16.msra.mxu1 %v21943_v5 }
 0x3d3   :  { %21074 = vmatprep.subr.bf16.mxu1 %v21944_v6 }
 0x3d6   :  { %21075 = vmatpush3.bf16.msra.mxu1 %v21944_v6 }
 0x3d9   :  { %21077 = vmatmul.mubr.bf16.vlgmr.msra.gmra.mrb[44].mxu1 %v1680_v63 }
 0x3da   :  { %21108 = vmatprep.mubr.msk.bf16.mxu1 %vm1047_vm1, %v21947_v8 }
 0x46b   :  { %v19669_v49 = vpop.f32.mrb[28].mxu1 }
 0x46c   :  { %v19670_v53 = vpop.f32.mrb[29].mxu1 }
 0x46d   :  { %v19671_v57 = vadd.f32 %v19670_v53, %v19669_v49  ;;  %v19672_v9 = vpop.f32.mrb[30].mxu1 }
 0x46e   :  { %v19673_v10 = vpop.f32.mrb[31].mxu1 }
 0x46f   :  { %v19674_v11 = vadd.f32 %v19673_v10, %v19672_v9  ;;  %v2293_v21 = vadd.f32 %v19671_v57, %v1825_v18 }
 0x471   :  { %v2296_v25 = vadd.f32 %v19674_v11, %v1825_v18 }
 0x473   :  { %v19675_v12 = vpop.f32.mrb[32].mxu1 }
 0x474   :  { %v19676_v13 = vpop.f32.mrb[33].mxu1 }
 0x475   :  { %v19677_v14 = vadd.f32 %v19676_v13, %v19675_v12  ;;  %v19678_v15 = vpop.f32.mrb[34].mxu1 }
 0x476   :  { %v19679_v16 = vpop.f32.mrb[35].mxu1 }
 0x477   :  { %v19680_v17 = vadd.f32 %v19679_v16, %v19678_v15  ;;  %v2301_v32 = vadd.f32 %v19677_v14, %v1825_v18 }
 0x479   :  { %v2304_v38 = vadd.f32 %v19680_v17, %v1825_v18 }
 0x47b   :  { %v19697_v19 = vpop.f32.mrb[60].mxu0 }
 0x47c   :  { %v19698_v20 = vpop.f32.mrb[61].mxu0 }
 0x47d   :  { %v19699_v22 = vadd.f32 %v19698_v20, %v19697_v19  ;;  %v19700_v23 = vpop.f32.mrb[62].mxu0 }
 0x47e   :  { %v19701_v24 = vpop.f32.mrb[63].mxu0 }
 0x47f   :  { %v19702_v26 = vadd.f32 %v19701_v24, %v19700_v23  ;;  %v2342_v27 = vadd.f32 %v19699_v22, %v2293_v21 }
 0x481   :  { %v2345_v28 = vadd.f32 %v19702_v26, %v2296_v25  ;;  %v21946_v25 = vld [vmem:[%s23687_s3 + $0x8] sm:$0xff]   ;;  %v21948_v26 = vld [vmem:[%s23687_s3 + $0x38] sm:$0xff]  }
 0x483   :  { %v19703_v29 = vpop.f32.mrb[64].mxu0 }
 0x484   :  { %v19704_v30 = vpop.f32.mrb[65].mxu0 }
 0x485   :  { %v19705_v34 = vadd.f32 %v19704_v30, %v19703_v29  ;;  %v19706_v36 = vpop.f32.mrb[66].mxu0  ;;  %v21950_v29 = vld [vmem:[%s23687_s3 + $0x18] sm:$0xff]  }
 0x486   :  { %v19707_v37 = vpop.f32.mrb[67].mxu0  ;;  %v21952_v30 = vld [vmem:[%s23687_s3 + $0x58] sm:$0xff]  }
 0x487   :  { %v2350_v40 = vadd.f32 %v19705_v34, %v2301_v32  ;;  %v19708_v42 = vadd.f32 %v19707_v37, %v19706_v36  ;;  %v21953_v32 = vld [vmem:[%s23687_s3 + $0x20] sm:$0xff]   ;;  %v21959_v34 = vld [vmem:[%s23687_s3 + $0x70] sm:$0xff]   ;;  %v21954_v37 = vld [vmem:[%s23687_s3 + $0x28] sm:$0xff]  }
 0x488   :  { %v21963_v36 = vld [vmem:[%s23692_s8 + $0x40] sm:$0xff]  }
 0x489   :  { %v2353_v45 = vadd.f32 %v19708_v42, %v2304_v38  ;;  %v21960_v38 = vld [vmem:[%s23687_s3 + $0x78] sm:$0xff]   ;;  %v21964_v42 = vld [vmem:[%s23692_s8] sm:$0xff]  }
 0x48b   :  { %v19725_v46 = vpop.f32.mrb[36].mxu1 }
 0x48c   :  { %v19726_v47 = vpop.f32.mrb[37].mxu1 }
 0x48d   :  { %v19727_v48 = vadd.f32 %v19726_v47, %v19725_v46  ;;  %v19728_v50 = vpop.f32.mrb[38].mxu1  ;;  %v21966_v46 = vld [vmem:[%s23692_s8 + $0x8] sm:$0xff]   ;;  %v21968_v47 = vld [vmem:[%s23692_s8 + $0x50] sm:$0xff]  }
 0x48e   :  { %v19729_v52 = vpop.f32.mrb[39].mxu1 }
 0x48f   :  { %v19730_v54 = vadd.f32 %v19729_v52, %v19728_v50  ;;  %v2391_v55 = vadd.f32 %v19727_v48, %v2342_v27  ;;  %v21949_v27 = vld [vmem:[%s23687_s3 + $0x10] sm:$0xff]   ;;  %v21956_v48 = vld [vmem:[%s23687_s3 + $0x48] sm:$0xff]   ;;  %v21957_v50 = vld [vmem:[%s23687_s3 + $0x60] sm:$0xff]  }
 0x490   :  { %v21970_v52 = vld [vmem:[%s23692_s8 + $0x10] sm:$0xff]  }
 0x491   :  { %v2394_v58 = vadd.f32 %v19730_v54, %v2345_v28  ;;  %v21951_v28 = vld [vmem:[%s23687_s3 + $0x50] sm:$0xff]   ;;  %v21972_v54 = vld [vmem:[%s23692_s8 + $0x58] sm:$0xff]  }
 0x493   :  { %v19731_v51 = vpop.f32.mrb[40].mxu1 }
 0x494   :  { %v19732_v56 = vpop.f32.mrb[41].mxu1 }
 0x495   :  { %v19733_v59 = vadd.f32 %v19732_v56, %v19731_v51  ;;  %v19734_v60 = vpop.f32.mrb[42].mxu1  ;;  %v21958_v51 = vld [vmem:[%s23687_s3 + $0x68] sm:$0xff]   ;;  %v21961_v56 = vld [vmem:[%s23687_s3 + $0x80] sm:$0xff]  }
 0x496   :  { %v19735_v61 = vpop.f32.mrb[43].mxu1 }
 0x497   :  { %v19736_v62 = vadd.f32 %v19735_v61, %v19734_v60  ;;  %v2399_v63 = vadd.f32 %v19733_v59, %v2350_v40  ;;  %v21955_v40 = vld [vmem:[%s23687_s3 + $0x40] sm:$0xff]   ;;  %v21962_v61 = vld [vmem:[%s23687_s3 + $0x88] sm:$0xff]   ;;  %s26345_s3 = sld [smem:[#allocation12_spill]] }
 0x498   :  { %v21978_v59 = vld [vmem:[%s23692_s8 + $0x20] sm:$0xff]  }
 0x499   :  { %v2402_v0 = vadd.f32 %v19736_v62, %v2353_v45  ;;  %v21965_v45 = vld [vmem:[%s23692_s8 + $0x48] sm:$0xff]   ;;  %v21967_v60 = vld [vmem:[%s23692_s8 + $0xc0] sm:$0xff]  }
 0x49a   :  { %v21969_v62 = vld [vmem:[%s23692_s8 + $0x80] sm:$0xff]  }
 0x49b   :  { %v19753_v1 = vpop.f32.mrb[68].mxu0 }
 0x49c   :  { %v19754_v35 = vpop.f32.mrb[69].mxu0 }
 0x49d   :  { %v19755_v33 = vadd.f32 %v19754_v35, %v19753_v1  ;;  %v19756_v44 = vpop.f32.mrb[70].mxu0  ;;  %v21975_v1 = vld [vmem:[%s23692_s8 + $0xd0] sm:$0xff]  }
 0x49e   :  { %v19757_v2 = vpop.f32.mrb[71].mxu0  ;;  %v21977_v35 = vld [vmem:[%s23692_s8 + $0x90] sm:$0xff]  }
 0x49f   :  { %v19758_v3 = vadd.f32 %v19757_v2, %v19756_v44  ;;  %v2440_v4 = vadd.f32 %v19755_v33, %v2391_v55  ;;  %v21974_v55 = vld [vmem:[%s23692_s8 + $0x18] sm:$0xff]   ;;  %v21980_v44 = vld [vmem:[%s23692_s8 + $0x68] sm:$0xff]  }
 0x4a0   :  { %v21979_v33 = vld [vmem:[%s23692_s8 + $0xd8] sm:$0xff]  }
 0x4a1   :  { %v2443_v5 = vadd.f32 %v19758_v3, %v2394_v58  ;;  %v21976_v58 = vld [vmem:[%s23692_s8 + $0x60] sm:$0xff]   ;;  %v21981_v2 = vld [vmem:[%s23692_s8 + $0x98] sm:$0xff]   ;;  %v21982_v3 = vld [vmem:[%s23692_s8 + $0x28] sm:$0xff]  }
 0x4a3   :  { %v19759_v6 = vpop.f32.mrb[72].mxu0 }
 0x4a4   :  { %v19760_v7 = vpop.f32.mrb[73].mxu0 }
 0x4a5   :  { %v19761_v8 = vadd.f32 %v19760_v7, %v19759_v6  ;;  %v19762_v49 = vpop.f32.mrb[74].mxu0  ;;  %v21985_v6 = vld [vmem:[%s23692_s8 + $0xa0] sm:$0xff]   ;;  %v21986_v7 = vld [vmem:[%s23692_s8 + $0x30] sm:$0xff]  }
 0x4a6   :  { %v19763_v53 = vpop.f32.mrb[75].mxu0 }
 0x4a7   :  { %v19764_v57 = vadd.f32 %v19763_v53, %v19762_v49  ;;  %v2448_v9 = vadd.f32 %v19761_v8, %v2399_v63  ;;  %v21971_v63 = vld [vmem:[%s23692_s8 + $0xc8] sm:$0xff]   ;;  %v21988_v49 = vld [vmem:[%s23692_s8 + $0x78] sm:$0xff]  }
 0x4a8   :  { %v21987_v8 = vld [vmem:[%s23692_s8 + $0xe8] sm:$0xff]  }
 0x4a9   :  { %v2451_v10 = vadd.f32 %v19764_v57, %v2402_v0  ;;  %v21973_v0 = vld [vmem:[%s23692_s8 + $0x88] sm:$0xff]   ;;  %v21990_v57 = vld [vmem:[%s23692_s8 + $0x38] sm:$0xff]  }
 0x4aa   :  { %v21989_v53 = vld [vmem:[%s23692_s8 + $0xa8] sm:$0xff]  }
 0x4ac   :  { %v21078_v11 = vpop.f32.mrb[44].mxu1 }
 0x4ad   :  { %v2497_v12 = vadd.f32 %v21078_v11, %v2448_v9  ;;  %v2488_v13 = vpop.f32.mrb[45].mxu1  ;;  %v21991_v9 = vld [vmem:[%s23692_s8 + $0xf0] sm:$0xff]   ;;  %v21993_v11 = vld [vmem:[%s23692_s8 + $0x140] sm:$0xff]  }
 0x4ae   :  { %v2489_v14 = vadd.f32 %v2488_v13, %v2440_v4  ;;  %v21079_v15 = vpop.f32.mrb[46].mxu1  ;;  %v21983_v4 = vld [vmem:[%s23692_s8 + $0xe0] sm:$0xff]   ;;  %v21996_v13 = vld [vmem:[%s23692_s8 + $0xb8] sm:$0xff]  }
 0x4af   :  { %v2500_v16 = vadd.f32 %v21079_v15, %v2451_v10  ;;  %v2491_v17 = vpop.f32.mrb[47].mxu1  ;;  %v2505_v19 = vmax.f32 %v2497_v12, 0.0  ;;  %v21992_v10 = vld [vmem:[%s23692_s8 + $0xb0] sm:$0xff]   ;;  %v21995_v12 = vld [vmem:[%s23692_s8 + $0xf8] sm:$0xff]  }
 0x4b0   :  { %v2492_v18 = vadd.f32 %v2491_v17, %v2443_v5  ;;  %v2503_v21 = vmax.f32 %v2489_v14, 0.0  ;;  %v21984_v5 = vld [vmem:[%s23692_s8 + $0x70] sm:$0xff]   ;;  %v21999_v14 = vld [vmem:[%s23692_s8 + $0x1c0] sm:$0xff]  }
 0x4b1   :  { %v2506_v20 = vmax.f32 %v2500_v16, 0.0 }
 0x4b2   :  { %v2504_v22 = vmax.f32 %v2492_v18, 0.0 }
 0x4b3   :  { %v24248_v23 = vpack.c.bf16 %v2506_v20, %v2505_v19 }
 0x4b4   :  { %v24250_v24 = vpack.c.bf16 %v2504_v22, %v2503_v21 }
 0x4b6   :  { %21080 = vmatprep.subr.bf16.mxu0 %v24250_v24  ;;  %21104 = vmatprep.subr.bf16.mxu1 %v24250_v24 }
 0x4b7   :  { %21081 = vmatpush3.bf16.msra.mxu0 %v24250_v24  ;;  %21105 = vmatpush3.bf16.msra.mxu1 %v24250_v24 }
 0x4b8   :  { %21082 = vmatprep.subr.bf16.mxu0 %v24248_v23  ;;  %21106 = vmatprep.subr.bf16.mxu1 %v24248_v23 }
 0x4bb   :  { %21083 = vmatpush3.bf16.msra.mxu0 %v24248_v23  ;;  %21107 = vmatpush3.bf16.msra.mxu1 %v24248_v23 }
 0x4bc   :  { %21088 = vmatprep.subr.bf16.mxu0 %v24250_v24  ;;  %21120 = vmatprep.subr.bf16.mxu1 %v24250_v24 }
 0x4be   :  { %21085 = vmatmul.mubr.msk.bf16.vlgmr.msra.gmra.mrb[76].mxu0 %vm1047_vm1, %v21946_v25  ;;  %21109 = vmatmul.mubr.msk.bf16.vlgmr.msra.gmra.mrb[48].mxu1 %vm1047_vm1, %v21948_v26 }
 0x4bf   :  { %21089 = vmatpush3.bf16.msra.mxu0 %v24250_v24  ;;  %21121 = vmatpush3.bf16.msra.mxu1 %v24250_v24 }
 0x4c0   :  { %21090 = vmatprep.subr.bf16.mxu0 %v24248_v23  ;;  %21122 = vmatprep.subr.bf16.mxu1 %v24248_v23 }
 0x4c1   :  { %21092 = vmatprep.mubr.msk.bf16.mxu0 %vm1047_vm1, %v21949_v27  ;;  %21124 = vmatprep.mubr.msk.bf16.mxu1 %vm1047_vm1, %v21951_v28 }
 0x4c3   :  { %21091 = vmatpush3.bf16.msra.mxu0 %v24248_v23  ;;  %21123 = vmatpush3.bf16.msra.mxu1 %v24248_v23 }
 0x4c4   :  { %21096 = vmatprep.subr.bf16.mxu0 %v24250_v24  ;;  %21136 = vmatprep.subr.bf16.mxu1 %v24250_v24 }
 0x4c6   :  { %21093 = vmatmul.mubr.msk.bf16.vlgmr.msra.gmra.mrb[80].mxu0 %vm1047_vm1, %v21950_v29  ;;  %21125 = vmatmul.mubr.msk.bf16.vlgmr.msra.gmra.mrb[52].mxu1 %vm1047_vm1, %v21952_v30 }
 0x4c7   :  { %21097 = vmatpush3.bf16.msra.mxu0 %v24250_v24  ;;  %21137 = vmatpush3.bf16.msra.mxu1 %v24250_v24 }
 0x4c8   :  { %21098 = vmatprep.subr.bf16.mxu0 %v24248_v23  ;;  %21138 = vmatprep.subr.bf16.mxu1 %v24248_v23 }
 0x4c9   :  { %21100 = vmatprep.mubr.msk.bf16.mxu0 %vm1047_vm1, %v21953_v32  ;;  %21140 = vmatprep.mubr.msk.bf16.mxu1 %vm1047_vm1, %v21959_v34 }
 0x4cb   :  { %21099 = vmatpush3.bf16.msra.mxu0 %v24248_v23  ;;  %21139 = vmatpush3.bf16.msra.mxu1 %v24248_v23 }
 0x4cc   :  { %21112 = vmatprep.subr.bf16.mxu0 %v24250_v24  ;;  %19811 = vmatprep.subr.bf16.mxu1 %v21963_v36 }
 0x4ce   :  { %21101 = vmatmul.mubr.msk.bf16.vlgmr.msra.gmra.mrb[84].mxu0 %vm1047_vm1, %v21954_v37  ;;  %21141 = vmatmul.mubr.msk.bf16.vlgmr.msra.gmra.mrb[56].mxu1 %vm1047_vm1, %v21960_v38 }
 0x4cf   :  { %21113 = vmatpush3.bf16.msra.mxu0 %v24250_v24  ;;  %21116 = vmatprep.mubr.msk.bf16.mxu0 %vm1047_vm1, %v21955_v40 }
 0x4d0   :  { %21114 = vmatprep.subr.bf16.mxu0 %v24248_v23  ;;  %19812 = vmatpush3.bf16.msra.mxu1 %v21964_v42 }
 0x4d1   :  { %19813 = vmatprep.subr.bf16.mxu1 %v21965_v45  ;;  %v21994_v45 = vld [vmem:[%s23692_s8 + $0x100] sm:$0xff]  }
 0x4d3   :  { %21115 = vmatpush3.bf16.msra.mxu0 %v24248_v23 }
 0x4d4   :  { %21128 = vmatprep.subr.bf16.mxu0 %v24250_v24  ;;  %19814 = vmatpush3.bf16.msra.mxu1 %v21966_v46 }
 0x4d5   :  { %19815 = vmatprep.subr.bf16.mxu1 %v21968_v47  ;;  %v21997_v47 = vld [vmem:[%s23692_s8 + $0x148] sm:$0xff]  }
 0x4d6   :  { %21117 = vmatmul.mubr.msk.bf16.vlgmr.msra.gmra.mrb[88].mxu0 %vm1047_vm1, %v21956_v48 }
 0x4d7   :  { %21129 = vmatpush3.bf16.msra.mxu0 %v24250_v24  ;;  %21132 = vmatprep.mubr.msk.bf16.mxu0 %vm1047_vm1, %v21957_v50  ;;  %v21998_v50 = vld [vmem:[%s23692_s8 + $0x108] sm:$0xff]  }
 0x4d8   :  { %21130 = vmatprep.subr.bf16.mxu0 %v24248_v23  ;;  %19816 = vmatpush3.bf16.msra.mxu1 %v21970_v52 }
 0x4d9   :  { %19817 = vmatprep.subr.bf16.mxu1 %v21972_v54 }
 0x4db   :  { %21131 = vmatpush3.bf16.msra.mxu0 %v24248_v23 }
 0x4dc   :  { %21144 = vmatprep.subr.bf16.mxu0 %v24250_v24  ;;  %19818 = vmatpush3.bf16.msra.mxu1 %v21974_v55  ;;  %v22000_v55 = vld [vmem:[%s23692_s8 + $0x150] sm:$0xff]  }
 0x4dd   :  { %19819 = vmatprep.subr.bf16.mxu1 %v21976_v58 }
 0x4de   :  { %21133 = vmatmul.mubr.msk.bf16.vlgmr.msra.gmra.mrb[92].mxu0 %vm1047_vm1, %v21958_v51 }
 0x4df   :  { %21145 = vmatpush3.bf16.msra.mxu0 %v24250_v24  ;;  %21148 = vmatprep.mubr.msk.bf16.mxu0 %vm1047_vm1, %v21961_v56 }
 0x4e0   :  { %21146 = vmatprep.subr.bf16.mxu0 %v24248_v23  ;;  %19820 = vmatpush3.bf16.msra.mxu1 %v21978_v59 }
 0x4e1   :  { %19821 = vmatprep.subr.bf16.mxu1 %v21980_v44  ;;  %v22004_v44 = vld [vmem:[%s23692_s8 + $0x158] sm:$0xff]  }
 0x4e3   :  { %21147 = vmatpush3.bf16.msra.mxu0 %v24248_v23 }
 0x4e4   :  { %19839 = vmatprep.subr.bf16.mxu0 %v21967_v60  ;;  %19822 = vmatpush3.bf16.msra.mxu1 %v21982_v3  ;;  %v22006_v3 = vld [vmem:[%s23692_s8 + $0x118] sm:$0xff]  }
 0x4e5   :  { %19823 = vmatprep.subr.bf16.mxu1 %v21984_v5 }
 0x4e6   :  { %21149 = vmatmul.mubr.msk.bf16.vlgmr.msra.gmra.mrb[96].mxu0 %vm1047_vm1, %v21962_v61  ;;  %v22001_v61 = vld [vmem:[%s23692_s8 + $0x180] sm:$0xff]  }
 0x4e7   :  { %19840 = vmatpush3.bf16.msra.mxu0 %v21969_v62 }
 0x4e8   :  { %19841 = vmatprep.subr.bf16.mxu0 %v21971_v63  ;;  %19824 = vmatpush3.bf16.msra.mxu1 %v21986_v7 }
 0x4e9   :  { %19825 = vmatprep.subr.bf16.mxu1 %v21988_v49  ;;  %v22009_v49 = vld [vmem:[%s23692_s8 + $0x190] sm:$0xff]  }
 0x4eb   :  { %19842 = vmatpush3.bf16.msra.mxu0 %v21973_v0 }
 0x4ec   :  { %19843 = vmatprep.subr.bf16.mxu0 %v21975_v1  ;;  %19826 = vmatpush3.bf16.msra.mxu1 %v21990_v57  ;;  %v22002_v1 = vld [vmem:[%s23692_s8 + $0x110] sm:$0xff]  }
 0x4ed   :  { %19867 = vmatprep.subr.bf16.mxu1 %v21993_v11 }
 0x4ef   :  { %19844 = vmatpush3.bf16.msra.mxu0 %v21977_v35  ;;  %v22003_v35 = vld [vmem:[%s23692_s8 + $0x1c8] sm:$0xff]  }
 0x4f0   :  { %19845 = vmatprep.subr.bf16.mxu0 %v21979_v33 }
 0x4f3   :  { %19846 = vmatpush3.bf16.msra.mxu0 %v21981_v2  ;;  %v22005_v2 = vld [vmem:[%s23692_s8 + $0x188] sm:$0xff]  }
 0x4f4   :  { %19847 = vmatprep.subr.bf16.mxu0 %v21983_v4  ;;  %v22007_v4 = vld [vmem:[%s23692_s8 + $0x1d0] sm:$0xff]  }
 0x4f7   :  { %19848 = vmatpush3.bf16.msra.mxu0 %v21985_v6  ;;  %v22008_v6 = vld [vmem:[%s23692_s8 + $0x160] sm:$0xff]  }
 0x4f8   :  { %19849 = vmatprep.subr.bf16.mxu0 %v21987_v8 }
 0x4fb   :  { %19850 = vmatpush3.bf16.msra.mxu0 %v21989_v53 }
 0x4fc   :  { %19851 = vmatprep.subr.bf16.mxu0 %v21991_v9  ;;  %v22010_v9 = vld [vmem:[%s23692_s8 + $0x120] sm:$0xff]  }
 0x4ff   :  { %19852 = vmatpush3.bf16.msra.mxu0 %v21992_v10  ;;  %v22011_v10 = vld [vmem:[%s23692_s8 + $0x1d8] sm:$0xff]  }
 0x500   :  { %19853 = vmatprep.subr.bf16.mxu0 %v21995_v12  ;;  %v22012_v12 = vld [vmem:[%s23692_s8 + $0x168] sm:$0xff]  }
 0x503   :  { %19854 = vmatpush3.bf16.msra.mxu0 %v21996_v13  ;;  %v22013_v13 = vld [vmem:[%s23692_s8 + $0x198] sm:$0xff]  }
 0x504   :  { %19895 = vmatprep.subr.bf16.mxu0 %v21999_v14  ;;  %v22014_v14 = vld [vmem:[%s23692_s8 + $0x128] sm:$0xff]  }
 0x591   :  { %v21086_v15 = vpop.f32.mrb[76].mxu0  ;;  %v21110_v16 = vpop.f32.mrb[48].mxu1 }
 0x592   :  { %v2563_v17 = vpop.f32.mrb[77].mxu0  ;;  %v2779_v18 = vpop.f32.mrb[49].mxu1 }
 0x593   :  { %v21087_v19 = vpop.f32.mrb[78].mxu0  ;;  %v21111_v20 = vpop.f32.mrb[50].mxu1 }
 0x594   :  { %v2566_v21 = vpop.f32.mrb[79].mxu0  ;;  %v2795_v22 = vpack.c.bf16 %v21111_v20, %v21110_v16  ;;  %v2782_v23 = vpop.f32.mrb[51].mxu1  ;;  %v2579_v24 = vpack.c.bf16 %v21087_v19, %v21086_v15  ;;  %v22015_v15 = vld [vmem:[%s23692_s8 + $0x1e0] sm:$0xff]  }
 0x595   :  { %v2578_v25 = vpack.c.bf16 %v2566_v21, %v2563_v17  ;;  %v2794_v26 = vpack.c.bf16 %v2782_v23, %v2779_v18  ;;  %v22016_v17 = vld [vmem:[%s23692_s8 + $0x170] sm:$0xff]   ;;  %v22017_v20 = vld [vmem:[%s23692_s8 + $0x1a0] sm:$0xff]  }
 0x596   :  { %v22018_v23 = vld [vmem:[%s23692_s8 + $0x130] sm:$0xff]  }
 0x597   :  { %3814 = vmatprep.mubr.bf16.mxu0 %v2794_v26  ;;  %v22020_v26 = vld [vmem:[%s23692_s8 + $0x178] sm:$0xff]  }
 0x599   :  { %v21094_v27 = vpop.f32.mrb[80].mxu0  ;;  %v24354_v28 = vpop.f32.mrb[52].mxu1 }
 0x59a   :  { %v2635_v29 = vpop.f32.mrb[81].mxu0  ;;  %v2923_v30 = vpop.f32.mrb[53].mxu1 }
 0x59b   :  { %v21095_v32 = vpop.f32.mrb[82].mxu0  ;;  %v24356_v34 = vpop.f32.mrb[54].mxu1 }
 0x59c   :  { %v2638_v36 = vpop.f32.mrb[83].mxu0  ;;  %v2651_v37 = vpack.c.bf16 %v21095_v32, %v21094_v27  ;;  %v2939_v38 = vpack.c.bf16 %v24356_v34, %v24354_v28  ;;  %v2926_v40 = vpop.f32.mrb[55].mxu1  ;;  %v22021_v27 = vld [vmem:[%s23692_s8 + $0x1a8] sm:$0xff]   ;;  %v22031_v28 = vld [vmem:[%s23692_s8 + $0x220] sm:$0xff]  }
 0x59d   :  { %v2650_v42 = vpack.c.bf16 %v2638_v36, %v2635_v29  ;;  %v2938_v46 = vpack.c.bf16 %v2926_v40, %v2923_v30  ;;  %v22022_v29 = vld [vmem:[%s23692_s8 + $0x138] sm:$0xff]   ;;  %v22023_v30 = vld [vmem:[%s23692_s8 + $0x1f0] sm:$0xff]   ;;  %v22025_v36 = vld [vmem:[%s23692_s8 + $0x200] sm:$0xff]  }
 0x59e   :  { %v22032_v34 = vld [vmem:[%s23692_s8 + $0x228] sm:$0xff]  }
 0x59f   :  { %3765 = vmatprep.mubr.bf16.mxu1 %v2650_v42  ;;  %v22024_v42 = vld [vmem:[%s23692_s8 + $0x1b0] sm:$0xff]  }
 0x5a0   :  { %3766 = vmatmul.mubr.bf16.vlgmr.msra.gmra.mrb[60].mxu1 %v2578_v25 }
 0x5a1   :  { %19868 = vmatpush3.bf16.msra.mxu1 %v21994_v45  ;;  %v21102_v48 = vpop.f32.mrb[84].mxu0  ;;  %3773 = vmatprep.mubr.bf16.mxu1 %v2651_v37  ;;  %v24363_v52 = vpop.f32.mrb[56].mxu1 }
 0x5a2   :  { %v2707_v54 = vpop.f32.mrb[85].mxu0  ;;  %19869 = vmatprep.subr.bf16.mxu1 %v21997_v47  ;;  %v3067_v58 = vpop.f32.mrb[57].mxu1 }
 0x5a3   :  { %v21103_v51 = vpop.f32.mrb[86].mxu0  ;;  %v24366_v56 = vpop.f32.mrb[58].mxu1 }
 0x5a4   :  { %v2723_v59 = vpack.c.bf16 %v21103_v51, %v21102_v48  ;;  %v2710_v60 = vpop.f32.mrb[87].mxu0  ;;  %v3083_v62 = vpack.c.bf16 %v24366_v56, %v24363_v52  ;;  %v3070_v63 = vpop.f32.mrb[59].mxu1  ;;  %v22026_v48 = vld [vmem:[%s23692_s8 + $0x1f8] sm:$0xff]   ;;  %v22035_v52 = vld [vmem:[%s23697_s14] sm:$0xff]   ;;  %v22037_v56 = vld [vmem:[%s23697_s14 + $0x30] sm:$0xff]  }
 0x5a5   :  { %v2722_v0 = vpack.c.bf16 %v2710_v60, %v2707_v54  ;;  %19870 = vmatpush3.bf16.msra.mxu1 %v21998_v50  ;;  %v3082_v33 = vpack.c.bf16 %v3070_v63, %v3067_v58  ;;  %v22028_v50 = vld [vmem:[%s23692_s8 + $0x208] sm:$0xff]   ;;  %v22027_v54 = vld [vmem:[%s23692_s8 + $0x1b8] sm:$0xff]  }
 0x5a6   :  { %19871 = vmatprep.subr.bf16.mxu1 %v22000_v55  ;;  %v22029_v55 = vld [vmem:[%s23692_s8 + $0x210] sm:$0xff]   ;;  %v22030_v58 = vld [vmem:[%s23692_s8 + $0x218] sm:$0xff]  }
 0x5a7   :  { %3815 = vmatmul.mubr.bf16.vlgmr.msra.gmra.mrb[100].mxu0 %v2722_v0  ;;  %v22034_v51 = vld [vmem:[%s23692_s8 + $0x238] sm:$0xff]  }
 0x5a8   :  { %19896 = vmatpush3.bf16.msra.mxu0 %v22001_v61  ;;  %3774 = vmatmul.mubr.bf16.gmra.mrb[64].mxu1 %v2579_v24  ;;  %v22019_v24 = vld [vmem:[%s23692_s8 + $0x1e8] sm:$0xff]  }
 0x5a9   :  { %19872 = vmatpush3.bf16.msra.mxu1 %v22002_v1  ;;  %19897 = vmatprep.subr.bf16.mxu0 %v22003_v35  ;;  %v24377_v5 = vpop.f32.mrb[88].mxu0  ;;  %v3300_v1 = vld [vmem:[%s23672_s21 + $0x1] ss:$0 sm:$0xff] }
 0x5aa   :  { %19873 = vmatprep.subr.bf16.mxu1 %v22004_v44  ;;  %3822 = vmatprep.mubr.bf16.mxu0 %v2795_v22  ;;  %v2851_v7 = vpop.f32.mrb[89].mxu0 }
 0x5ab   :  { %v24380_v8 = vpop.f32.mrb[90].mxu0  ;;  %3863 = vmatprep.mubr.bf16.mxu1 %v2938_v46 }
 0x5ac   :  { %19898 = vmatpush3.bf16.msra.mxu0 %v22005_v2  ;;  %v2867_v53 = vpack.c.bf16 %v24380_v8, %v24377_v5  ;;  %v2854_v57 = vpop.f32.mrb[91].mxu0 }
 0x5ad   :  { %19874 = vmatpush3.bf16.msra.mxu1 %v22006_v3  ;;  %19899 = vmatprep.subr.bf16.mxu0 %v22007_v4  ;;  %v2866_v11 = vpack.c.bf16 %v2854_v57, %v2851_v7 }
 0x5ae   :  { %19875 = vmatprep.subr.bf16.mxu1 %v22008_v6 }
 0x5af   :  { %3823 = vmatmul.mubr.bf16.gmra.mrb[104].mxu0 %v2723_v59 }
 0x5b0   :  { %19900 = vmatpush3.bf16.msra.mxu0 %v22009_v49  ;;  %3912 = vmatprep.mubr.bf16.mxu0 %v3082_v33 }
 0x5b1   :  { %19876 = vmatpush3.bf16.msra.mxu1 %v22010_v9  ;;  %19901 = vmatprep.subr.bf16.mxu0 %v22011_v10  ;;  %v21134_v16 = vpop.f32.mrb[92].mxu0 }
 0x5b2   :  { %19877 = vmatprep.subr.bf16.mxu1 %v22012_v12  ;;  %v2995_v18 = vpop.f32.mrb[93].mxu0 }
 0x5b3   :  { %v21135_v19 = vpop.f32.mrb[94].mxu0 }
 0x5b4   :  { %19902 = vmatpush3.bf16.msra.mxu0 %v22013_v13  ;;  %v3011_v21 = vpack.c.bf16 %v21135_v19, %v21134_v16  ;;  %v2998_v22 = vpop.f32.mrb[95].mxu0 }
 0x5b5   :  { %19878 = vmatpush3.bf16.msra.mxu1 %v22014_v14  ;;  %19903 = vmatprep.subr.bf16.mxu0 %v22015_v15  ;;  %v3010_v25 = vpack.c.bf16 %v2998_v22, %v2995_v18 }
 0x5b6   :  { %19879 = vmatprep.subr.bf16.mxu1 %v22016_v17 }
 0x5b8   :  { %19904 = vmatpush3.bf16.msra.mxu0 %v22017_v20 }
 0x5b9   :  { %19880 = vmatpush3.bf16.msra.mxu1 %v22018_v23  ;;  %19905 = vmatprep.subr.bf16.mxu0 %v22019_v24  ;;  %v21150_v32 = vpop.f32.mrb[96].mxu0 }
 0x5ba   :  { %19881 = vmatprep.subr.bf16.mxu1 %v22020_v26  ;;  %v3139_v37 = vpop.f32.mrb[97].mxu0 }
 0x5bb   :  { %v21151_v40 = vpop.f32.mrb[98].mxu0 }
 0x5bc   :  { %19906 = vmatpush3.bf16.msra.mxu0 %v22021_v27  ;;  %v3155_v45 = vpack.c.bf16 %v21151_v40, %v21150_v32  ;;  %v3142_v46 = vpop.f32.mrb[99].mxu0 }
 0x5bd   :  { %19882 = vmatpush3.bf16.msra.mxu1 %v22022_v29  ;;  %19907 = vmatprep.subr.bf16.mxu0 %v22023_v30  ;;  %v3154_v47 = vpack.c.bf16 %v3142_v46, %v3139_v37 }
 0x5be   :  { %21152 = vmatprep.subr.bf16.mxu1 %v22025_v36 }
 0x5c0   :  { %3864 = vmatmul.mubr.bf16.vlgmr.msra.gmra.mrb[68].mxu1 %v2866_v11  ;;  %19908 = vmatpush3.bf16.msra.mxu0 %v22024_v42 }
 0x5c1   :  { %3871 = vmatprep.mubr.bf16.mxu1 %v2939_v38  ;;  %21153 = vmatpush3.bf16.msra.mxu1 %v22025_v36  ;;  %v22033_v38 = vld [vmem:[%s23692_s8 + $0x230] sm:$0xff]   ;;  %s26346_s8 = sld [smem:[#allocation13_spill]] }
 0x5c2   :  { %19909 = vmatprep.subr.bf16.mxu0 %v22026_v48  ;;  %21154 = vmatprep.subr.bf16.mxu1 %v22028_v50 }
 0x5c4   :  { %19910 = vmatpush3.bf16.msra.mxu0 %v22027_v54 }
 0x5c5   :  { %21155 = vmatpush3.bf16.msra.mxu1 %v22028_v50 }
 0x5c6   :  { %21156 = vmatprep.subr.bf16.mxu1 %v22029_v55 }
 0x5c7   :  { %3913 = vmatmul.mubr.bf16.vlgmr.msra.gmra.mrb[108].mxu0 %v3010_v25 }
 0x5c8   :  { %3872 = vmatmul.mubr.bf16.gmra.mrb[72].mxu1 %v2867_v53  ;;  %3920 = vmatprep.mubr.bf16.mxu0 %v3083_v62 }
 0x5c9   :  { %21157 = vmatpush3.bf16.msra.mxu1 %v22029_v55  ;;  %21168 = vmatprep.mubr.bf16.mxu1 %v3154_v47 }
 0x5ca   :  { %21158 = vmatprep.subr.bf16.mxu1 %v22030_v58 }
 0x5cd   :  { %21159 = vmatpush3.bf16.msra.mxu1 %v22030_v58 }
 0x5ce   :  { %21160 = vmatprep.subr.bf16.mxu1 %v22031_v28 }
 0x5cf   :  { %3921 = vmatmul.mubr.bf16.gmra.mrb[112].mxu0 %v3011_v21 }
 0x5d0   :  { %21176 = vmatprep.mubr.msk.bf16.mxu0 %vm1047_vm1, %v22035_v52 }
 0x5d1   :  { %21161 = vmatpush3.bf16.msra.mxu1 %v22031_v28 }
 0x5d2   :  { %21162 = vmatprep.subr.bf16.mxu1 %v22032_v34 }
 0x5d5   :  { %21163 = vmatpush3.bf16.msra.mxu1 %v22032_v34 }
 0x5d6   :  { %21164 = vmatprep.subr.bf16.mxu1 %v22033_v38 }
 0x5d9   :  { %21165 = vmatpush3.bf16.msra.mxu1 %v22033_v38 }
 0x5da   :  { %21166 = vmatprep.subr.bf16.mxu1 %v22034_v51 }
 0x5dd   :  { %21167 = vmatpush3.bf16.msra.mxu1 %v22034_v51 }
 0x5e0   :  { %21169 = vmatmul.mubr.bf16.vlgmr.msra.gmra.mrb[76].mxu1 %v3155_v45 }
 0x5e1   :  { %21200 = vmatprep.mubr.msk.bf16.mxu1 %vm1047_vm1, %v22037_v56 }
 0x673   :  { %v19827_v59 = vpop.f32.mrb[60].mxu1 }
 0x674   :  { %v19828_v60 = vpop.f32.mrb[61].mxu1 }
 0x675   :  { %v19829_v61 = vadd.f32 %v19828_v60, %v19827_v59  ;;  %v19830_v62 = vpop.f32.mrb[62].mxu1 }
 0x676   :  { %v19831_v63 = vpop.f32.mrb[63].mxu1 }
 0x677   :  { %v19832_v0 = vadd.f32 %v19831_v63, %v19830_v62  ;;  %v3768_v2 = vadd.f32 %v19829_v61, %v3300_v1 }
 0x679   :  { %v3771_v49 = vadd.f32 %v19832_v0, %v3300_v1 }
 0x67a   :  { %v19855_v35 = vpop.f32.mrb[100].mxu0 }
 0x67b   :  { %v19833_v33 = vpop.f32.mrb[64].mxu1  ;;  %v19856_v44 = vpop.f32.mrb[101].mxu0 }
 0x67c   :  { %v19857_v3 = vadd.f32 %v19856_v44, %v19855_v35  ;;  %v19834_v4 = vpop.f32.mrb[65].mxu1  ;;  %v19858_v5 = vpop.f32.mrb[102].mxu0 }
 0x67d   :  { %v19835_v6 = vadd.f32 %v19834_v4, %v19833_v33  ;;  %v19836_v7 = vpop.f32.mrb[66].mxu1  ;;  %v19859_v8 = vpop.f32.mrb[103].mxu0 }
 0x67e   :  { %v3817_v53 = vadd.f32 %v19857_v3, %v3768_v2  ;;  %v19860_v57 = vadd.f32 %v19859_v8, %v19858_v5  ;;  %v19837_v9 = vpop.f32.mrb[67].mxu1 }
 0x67f   :  { %v19838_v10 = vadd.f32 %v19837_v9, %v19836_v7  ;;  %v3776_v14 = vadd.f32 %v19835_v6, %v3300_v1  ;;  %v22038_v9 = vld [vmem:[%s23697_s14 + $0x38] sm:$0xff]  }
 0x680   :  { %v3820_v11 = vadd.f32 %v19860_v57, %v3771_v49 }
 0x681   :  { %v3779_v18 = vadd.f32 %v19838_v10, %v3300_v1  ;;  %v22039_v10 = vld [vmem:[%s23697_s14 + $0x10] sm:$0xff]  }
 0x682   :  { %v19861_v12 = vpop.f32.mrb[104].mxu0 }
 0x683   :  { %v19862_v13 = vpop.f32.mrb[105].mxu0 }
 0x684   :  { %v19863_v15 = vadd.f32 %v19862_v13, %v19861_v12  ;;  %v19864_v16 = vpop.f32.mrb[106].mxu0  ;;  %v22040_v12 = vld [vmem:[%s23697_s14 + $0x18] sm:$0xff]  }
 0x685   :  { %v19865_v17 = vpop.f32.mrb[107].mxu0  ;;  %v22042_v13 = vld [vmem:[%s23697_s14 + $0x58] sm:$0xff]  }
 0x686   :  { %v3825_v19 = vadd.f32 %v19863_v15, %v3776_v14  ;;  %v19866_v20 = vadd.f32 %v19865_v17, %v19864_v16  ;;  %v22043_v14 = vld [vmem:[%s23697_s14 + $0x20] sm:$0xff]   ;;  %v22049_v15 = vld [vmem:[%s23697_s14 + $0x70] sm:$0xff]   ;;  %v22044_v17 = vld [vmem:[%s23697_s14 + $0x28] sm:$0xff]  }
 0x687   :  { %v22053_v16 = vld [vmem:[%s23702_s19 + $0x40] sm:$0xff]  }
 0x688   :  { %v3828_v21 = vadd.f32 %v19866_v20, %v3779_v18  ;;  %v22050_v18 = vld [vmem:[%s23697_s14 + $0x78] sm:$0xff]   ;;  %v22054_v20 = vld [vmem:[%s23702_s19] sm:$0xff]  }
 0x693   :  { %v19883_v22 = vpop.f32.mrb[68].mxu1 }
 0x694   :  { %v19884_v23 = vpop.f32.mrb[69].mxu1 }
 0x695   :  { %v19885_v24 = vadd.f32 %v19884_v23, %v19883_v22  ;;  %v19886_v25 = vpop.f32.mrb[70].mxu1  ;;  %v22056_v22 = vld [vmem:[%s23702_s19 + $0x8] sm:$0xff]   ;;  %v22058_v23 = vld [vmem:[%s23702_s19 + $0x50] sm:$0xff]  }
 0x696   :  { %v19887_v26 = vpop.f32.mrb[71].mxu1 }
 0x697   :  { %v3866_v27 = vadd.f32 %v19885_v24, %v3817_v53  ;;  %v19888_v29 = vadd.f32 %v19887_v26, %v19886_v25  ;;  %v22046_v24 = vld [vmem:[%s23697_s14 + $0x48] sm:$0xff]   ;;  %v22047_v25 = vld [vmem:[%s23697_s14 + $0x60] sm:$0xff]   ;;  %v22060_v26 = vld [vmem:[%s23702_s19 + $0x10] sm:$0xff]  }
 0x699   :  { %v3869_v30 = vadd.f32 %v19888_v29, %v3820_v11  ;;  %v22041_v11 = vld [vmem:[%s23697_s14 + $0x50] sm:$0xff]   ;;  %v22064_v29 = vld [vmem:[%s23702_s19 + $0x18] sm:$0xff]  }
 0x69a   :  { %v19911_v32 = vpop.f32.mrb[108].mxu0 }
 0x69b   :  { %v19889_v36 = vpop.f32.mrb[72].mxu1  ;;  %v19912_v37 = vpop.f32.mrb[109].mxu0 }
 0x69c   :  { %v19913_v40 = vadd.f32 %v19912_v37, %v19911_v32  ;;  %v19890_v42 = vpop.f32.mrb[73].mxu1  ;;  %v19914_v45 = vpop.f32.mrb[110].mxu0  ;;  %v22048_v32 = vld [vmem:[%s23697_s14 + $0x68] sm:$0xff]   ;;  %v22068_v37 = vld [vmem:[%s23702_s19 + $0x20] sm:$0xff]  }
 0x69d   :  { %v19891_v46 = vadd.f32 %v19890_v42, %v19889_v36  ;;  %v19892_v47 = vpop.f32.mrb[74].mxu1  ;;  %v19915_v48 = vpop.f32.mrb[111].mxu0  ;;  %v22051_v36 = vld [vmem:[%s23697_s14 + $0x80] sm:$0xff]   ;;  %v22052_v42 = vld [vmem:[%s23697_s14 + $0x88] sm:$0xff]  }
 0x69e   :  { %v19916_v50 = vadd.f32 %v19915_v48, %v19914_v45  ;;  %v19893_v54 = vpop.f32.mrb[75].mxu1  ;;  %v3915_v55 = vadd.f32 %v19913_v40, %v3866_v27  ;;  %v22062_v27 = vld [vmem:[%s23702_s19 + $0x58] sm:$0xff]   ;;  %v22057_v40 = vld [vmem:[%s23702_s19 + $0xc0] sm:$0xff]   ;;  %v22065_v48 = vld [vmem:[%s23702_s19 + $0xd0] sm:$0xff]  }
 0x69f   :  { %v3874_v58 = vadd.f32 %v19891_v46, %v3825_v19  ;;  %v19894_v28 = vadd.f32 %v19893_v54, %v19892_v47  ;;  %v22045_v19 = vld [vmem:[%s23697_s14 + $0x40] sm:$0xff]   ;;  %v22061_v46 = vld [vmem:[%s23702_s19 + $0xc8] sm:$0xff]   ;;  %v22069_v54 = vld [vmem:[%s23702_s19 + $0xd8] sm:$0xff]  }
 0x6a0   :  { %v3918_v34 = vadd.f32 %v19916_v50, %v3869_v30  ;;  %v22066_v30 = vld [vmem:[%s23702_s19 + $0x60] sm:$0xff]   ;;  %v22063_v47 = vld [vmem:[%s23702_s19 + $0x88] sm:$0xff]   ;;  %v22067_v50 = vld [vmem:[%s23702_s19 + $0x90] sm:$0xff]  }
 0x6a1   :  { %v3877_v38 = vadd.f32 %v19894_v28, %v3828_v21  ;;  %v22055_v21 = vld [vmem:[%s23702_s19 + $0x48] sm:$0xff]   ;;  %v22059_v45 = vld [vmem:[%s23702_s19 + $0x80] sm:$0xff]  }
 0x6a2   :  { %v19917_v51 = vpop.f32.mrb[112].mxu0  ;;  %v22072_v28 = vld [vmem:[%s23702_s19 + $0x28] sm:$0xff]  }
 0x6a3   :  { %v19918_v52 = vpop.f32.mrb[113].mxu0 }
 0x6a4   :  { %v19919_v56 = vadd.f32 %v19918_v52, %v19917_v51  ;;  %v19920_v59 = vpop.f32.mrb[114].mxu0  ;;  %v22075_v51 = vld [vmem:[%s23702_s19 + $0xa0] sm:$0xff]   ;;  %v22076_v52 = vld [vmem:[%s23702_s19 + $0x30] sm:$0xff]  }
 0x6a5   :  { %v19921_v60 = vpop.f32.mrb[115].mxu0 }
 0x6a6   :  { %v19922_v61 = vadd.f32 %v19921_v60, %v19920_v59  ;;  %v3923_v62 = vadd.f32 %v19919_v56, %v3874_v58  ;;  %v22071_v58 = vld [vmem:[%s23702_s19 + $0x98] sm:$0xff]   ;;  %v22077_v56 = vld [vmem:[%s23702_s19 + $0xe8] sm:$0xff]  }
 0x6a7   :  { %v22078_v59 = vld [vmem:[%s23702_s19 + $0x78] sm:$0xff]   ;;  %v22079_v60 = vld [vmem:[%s23702_s19 + $0xa8] sm:$0xff]  }
 0x6a8   :  { %v3926_v63 = vadd.f32 %v19922_v61, %v3877_v38  ;;  %v22074_v38 = vld [vmem:[%s23702_s19 + $0x70] sm:$0xff]   ;;  %v22080_v61 = vld [vmem:[%s23702_s19 + $0x38] sm:$0xff]  }
 0x6b3   :  { %v21170_v0 = vpop.f32.mrb[76].mxu1 }
 0x6b4   :  { %v3972_v1 = vadd.f32 %v21170_v0, %v3923_v62  ;;  %v3963_v35 = vpop.f32.mrb[77].mxu1  ;;  %v22081_v62 = vld [vmem:[%s23702_s19 + $0xf0] sm:$0xff]   ;;  %v22083_v0 = vld [vmem:[%s23702_s19 + $0x140] sm:$0xff]  }
 0x6b5   :  { %v3964_v33 = vadd.f32 %v3963_v35, %v3915_v55  ;;  %v21171_v44 = vpop.f32.mrb[78].mxu1  ;;  %v22070_v55 = vld [vmem:[%s23702_s19 + $0x68] sm:$0xff]   ;;  %v22086_v35 = vld [vmem:[%s23702_s19 + $0xb8] sm:$0xff]  }
 0x6b6   :  { %v3975_v2 = vadd.f32 %v21171_v44, %v3926_v63  ;;  %v3966_v3 = vpop.f32.mrb[79].mxu1  ;;  %v24431_v7 = vadd.f32 %v3972_v1, %v24057_v31  ;;  %v22082_v63 = vld [vmem:[%s23702_s19 + $0xb0] sm:$0xff]   ;;  %v22085_v1 = vld [vmem:[%s23702_s19 + $0xf8] sm:$0xff]  }
 0x6b7   :  { %v24425_v4 = vadd.f32 %v3964_v33, %v24059_v39  ;;  %v3967_v5 = vadd.f32 %v3966_v3, %v3918_v34  ;;  %v22073_v34 = vld [vmem:[%s23702_s19 + $0xe0] sm:$0xff]  }
 0x6b8   :  { %v24428_v6 = vadd.f32 %v3975_v2, %v24061_v41  ;;  %v3984_v39 = vmax.f32 %v24431_v7, 0.0  ;;  %v22089_v33 = vld [vmem:[%s23702_s19 + $0x1c0] sm:$0xff]  }
 0x6b9   :  { %v24434_v8 = vadd.f32 %v3967_v5, %v24063_v43  ;;  %v3982_v49 = vmax.f32 %v24425_v4, 0.0  ;;  %v22036_v43 = vld [vmem:[%s23697_s14 + $0x8] sm:$0xff]   ;;  %v6942_v4 = vld [vmem:[%s23717_s6] sm:$0xf]  ;;  %s26347_s14 = sld [smem:[#allocation15_spill]] }
 0x6ba   :  { %v3985_v53 = vmax.f32 %v24428_v6, 0.0  ;;  %v18416_v6 = vld [vmem:[%s23717_s6 + $0xc] sm:$0xf] }
 0x6bb   :  { %v3983_v57 = vmax.f32 %v24434_v8, 0.0  ;;  %v18412_v8 = vld [vmem:[%s23717_s6 + $0x4] sm:$0xf] }
 0x6bc   :  { %v24450_v31 = vpack.c.bf16 %v3985_v53, %v3984_v39 }
 0x6bd   :  { %v24444_v41 = vpack.c.bf16 %v3983_v57, %v3982_v49 }
 0x6bf   :  { %21172 = vmatprep.subr.bf16.mxu0 %v24444_v41  ;;  %21196 = vmatprep.subr.bf16.mxu1 %v24444_v41 }
 0x6c0   :  { %21173 = vmatpush3.bf16.msra.mxu0 %v24444_v41  ;;  %21197 = vmatpush3.bf16.msra.mxu1 %v24444_v41 }
 0x6c1   :  { %21174 = vmatprep.subr.bf16.mxu0 %v24450_v31  ;;  %21198 = vmatprep.subr.bf16.mxu1 %v24450_v31 }
 0x6c4   :  { %21175 = vmatpush3.bf16.msra.mxu0 %v24450_v31  ;;  %21199 = vmatpush3.bf16.msra.mxu1 %v24450_v31 }
 0x6c5   :  { %21180 = vmatprep.subr.bf16.mxu0 %v24444_v41  ;;  %21212 = vmatprep.subr.bf16.mxu1 %v24444_v41 }
 0x6c7   :  { %21177 = vmatmul.mubr.msk.bf16.vlgmr.msra.gmra.mrb[116].mxu0 %vm1047_vm1, %v22036_v43  ;;  %21201 = vmatmul.mubr.msk.bf16.vlgmr.msra.gmra.mrb[80].mxu1 %vm1047_vm1, %v22038_v9 }
 0x6c8   :  { %21181 = vmatpush3.bf16.msra.mxu0 %v24444_v41  ;;  %21213 = vmatpush3.bf16.msra.mxu1 %v24444_v41 }
 0x6c9   :  { %21182 = vmatprep.subr.bf16.mxu0 %v24450_v31  ;;  %21214 = vmatprep.subr.bf16.mxu1 %v24450_v31 }
 0x6ca   :  { %21184 = vmatprep.mubr.msk.bf16.mxu0 %vm1047_vm1, %v22039_v10  ;;  %21216 = vmatprep.mubr.msk.bf16.mxu1 %vm1047_vm1, %v22041_v11 }
 0x6cc   :  { %21183 = vmatpush3.bf16.msra.mxu0 %v24450_v31  ;;  %21215 = vmatpush3.bf16.msra.mxu1 %v24450_v31 }
 0x6cd   :  { %21188 = vmatprep.subr.bf16.mxu0 %v24444_v41  ;;  %21228 = vmatprep.subr.bf16.mxu1 %v24444_v41 }
 0x6cf   :  { %21185 = vmatmul.mubr.msk.bf16.vlgmr.msra.gmra.mrb[120].mxu0 %vm1047_vm1, %v22040_v12  ;;  %21217 = vmatmul.mubr.msk.bf16.vlgmr.msra.gmra.mrb[84].mxu1 %vm1047_vm1, %v22042_v13 }
 0x6d0   :  { %21189 = vmatpush3.bf16.msra.mxu0 %v24444_v41  ;;  %21229 = vmatpush3.bf16.msra.mxu1 %v24444_v41 }
 0x6d1   :  { %21190 = vmatprep.subr.bf16.mxu0 %v24450_v31  ;;  %21230 = vmatprep.subr.bf16.mxu1 %v24450_v31 }
 0x6d2   :  { %21192 = vmatprep.mubr.msk.bf16.mxu0 %vm1047_vm1, %v22043_v14  ;;  %21232 = vmatprep.mubr.msk.bf16.mxu1 %vm1047_vm1, %v22049_v15 }
 0x6d4   :  { %21191 = vmatpush3.bf16.msra.mxu0 %v24450_v31  ;;  %21231 = vmatpush3.bf16.msra.mxu1 %v24450_v31 }
 0x6d5   :  { %21204 = vmatprep.subr.bf16.mxu0 %v24444_v41  ;;  %19969 = vmatprep.subr.bf16.mxu1 %v22053_v16 }
 0x6d7   :  { %21193 = vmatmul.mubr.msk.bf16.vlgmr.msra.gmra.mrb[124].mxu0 %vm1047_vm1, %v22044_v17  ;;  %21233 = vmatmul.mubr.msk.bf16.vlgmr.msra.gmra.mrb[88].mxu1 %vm1047_vm1, %v22050_v18 }
 0x6d8   :  { %21205 = vmatpush3.bf16.msra.mxu0 %v24444_v41  ;;  %21208 = vmatprep.mubr.msk.bf16.mxu0 %vm1047_vm1, %v22045_v19 }
 0x6d9   :  { %21206 = vmatprep.subr.bf16.mxu0 %v24450_v31  ;;  %19970 = vmatpush3.bf16.msra.mxu1 %v22054_v20 }
 0x6da   :  { %19971 = vmatprep.subr.bf16.mxu1 %v22055_v21 }
 0x6dc   :  { %21207 = vmatpush3.bf16.msra.mxu0 %v24450_v31 }
 0x6dd   :  { %21220 = vmatprep.subr.bf16.mxu0 %v24444_v41  ;;  %19972 = vmatpush3.bf16.msra.mxu1 %v22056_v22 }
 0x6de   :  { %19973 = vmatprep.subr.bf16.mxu1 %v22058_v23 }
 0x6df   :  { %21209 = vmatmul.mubr.msk.bf16.vlgmr.msra.gmra.mrb[128].mxu0 %vm1047_vm1, %v22046_v24 }
 0x6e0   :  { %21221 = vmatpush3.bf16.msra.mxu0 %v24444_v41  ;;  %21224 = vmatprep.mubr.msk.bf16.mxu0 %vm1047_vm1, %v22047_v25  ;;  %v22084_v25 = vld [vmem:[%s23702_s19 + $0x100] sm:$0xff]  }
 0x6e1   :  { %21222 = vmatprep.subr.bf16.mxu0 %v24450_v31  ;;  %19974 = vmatpush3.bf16.msra.mxu1 %v22060_v26 }
 0x6e2   :  { %19975 = vmatprep.subr.bf16.mxu1 %v22062_v27  ;;  %v22087_v27 = vld [vmem:[%s23702_s19 + $0x148] sm:$0xff]  }
 0x6e4   :  { %21223 = vmatpush3.bf16.msra.mxu0 %v24450_v31 }
 0x6e5   :  { %21236 = vmatprep.subr.bf16.mxu0 %v24444_v41  ;;  %19976 = vmatpush3.bf16.msra.mxu1 %v22064_v29 }
 0x6e6   :  { %19977 = vmatprep.subr.bf16.mxu1 %v22066_v30  ;;  %v22088_v30 = vld [vmem:[%s23702_s19 + $0x108] sm:$0xff]  }
 0x6e7   :  { %21225 = vmatmul.mubr.msk.bf16.vlgmr.msra.gmra.mrb[132].mxu0 %vm1047_vm1, %v22048_v32 }
 0x6e8   :  { %21237 = vmatpush3.bf16.msra.mxu0 %v24444_v41  ;;  %21240 = vmatprep.mubr.msk.bf16.mxu0 %vm1047_vm1, %v22051_v36 }
 0x6e9   :  { %21238 = vmatprep.subr.bf16.mxu0 %v24450_v31  ;;  %19978 = vmatpush3.bf16.msra.mxu1 %v22068_v37  ;;  %v22090_v37 = vld [vmem:[%s23702_s19 + $0x150] sm:$0xff]  }
 0x6ea   :  { %19979 = vmatprep.subr.bf16.mxu1 %v22070_v55 }
 0x6ec   :  { %21239 = vmatpush3.bf16.msra.mxu0 %v24450_v31 }
 0x6ed   :  { %19997 = vmatprep.subr.bf16.mxu0 %v22057_v40  ;;  %19980 = vmatpush3.bf16.msra.mxu1 %v22072_v28  ;;  %v22093_v28 = vld [vmem:[%s23702_s19 + $0x1c8] sm:$0xff]  }
 0x6ee   :  { %19981 = vmatprep.subr.bf16.mxu1 %v22074_v38  ;;  %v22094_v38 = vld [vmem:[%s23702_s19 + $0x158] sm:$0xff]  }
 0x6ef   :  { %21241 = vmatmul.mubr.msk.bf16.vlgmr.msra.gmra.mrb[136].mxu0 %vm1047_vm1, %v22052_v42 }
 0x6f0   :  { %19998 = vmatpush3.bf16.msra.mxu0 %v22059_v45 }
 0x6f1   :  { %19999 = vmatprep.subr.bf16.mxu0 %v22061_v46  ;;  %19982 = vmatpush3.bf16.msra.mxu1 %v22076_v52  ;;  %v22096_v52 = vld [vmem:[%s23702_s19 + $0x118] sm:$0xff]  }
 0x6f2   :  { %19983 = vmatprep.subr.bf16.mxu1 %v22078_v59 }
 0x6f4   :  { %20000 = vmatpush3.bf16.msra.mxu0 %v22063_v47 }
 0x6f5   :  { %20001 = vmatprep.subr.bf16.mxu0 %v22065_v48  ;;  %19984 = vmatpush3.bf16.msra.mxu1 %v22080_v61  ;;  %v22091_v48 = vld [vmem:[%s23702_s19 + $0x180] sm:$0xff]  }
 0x6f6   :  { %20025 = vmatprep.subr.bf16.mxu1 %v22083_v0 }
 0x6f8   :  { %20002 = vmatpush3.bf16.msra.mxu0 %v22067_v50 }
 0x6f9   :  { %20003 = vmatprep.subr.bf16.mxu0 %v22069_v54 }
 0x6fc   :  { %20004 = vmatpush3.bf16.msra.mxu0 %v22071_v58  ;;  %v22092_v58 = vld [vmem:[%s23702_s19 + $0x110] sm:$0xff]  }
 0x6fd   :  { %20005 = vmatprep.subr.bf16.mxu0 %v22073_v34 }
 0x700   :  { %20006 = vmatpush3.bf16.msra.mxu0 %v22075_v51  ;;  %v22095_v51 = vld [vmem:[%s23702_s19 + $0x188] sm:$0xff]  }
 0x701   :  { %20007 = vmatprep.subr.bf16.mxu0 %v22077_v56  ;;  %v22097_v56 = vld [vmem:[%s23702_s19 + $0x1d0] sm:$0xff]  }
 0x704   :  { %20008 = vmatpush3.bf16.msra.mxu0 %v22079_v60  ;;  %v22098_v60 = vld [vmem:[%s23702_s19 + $0x160] sm:$0xff]  }
 0x705   :  { %20009 = vmatprep.subr.bf16.mxu0 %v22081_v62 }
 0x708   :  { %20010 = vmatpush3.bf16.msra.mxu0 %v22082_v63  ;;  %v22099_v63 = vld [vmem:[%s23702_s19 + $0x190] sm:$0xff]  }
 0x709   :  { %20011 = vmatprep.subr.bf16.mxu0 %v22085_v1 }
 0x70c   :  { %20012 = vmatpush3.bf16.msra.mxu0 %v22086_v35  ;;  %v22100_v35 = vld [vmem:[%s23702_s19 + $0x120] sm:$0xff]  }
 0x70d   :  { %20053 = vmatprep.subr.bf16.mxu0 %v22089_v33  ;;  %v22101_v33 = vld [vmem:[%s23702_s19 + $0x1d8] sm:$0xff]  }
 0x79a   :  { %v21178_v44 = vpop.f32.mrb[116].mxu0  ;;  %v21202_v2 = vpop.f32.mrb[80].mxu1 }
 0x79b   :  { %v4042_v3 = vpop.f32.mrb[117].mxu0  ;;  %v4258_v5 = vpop.f32.mrb[81].mxu1 }
 0x79c   :  { %v21179_v41 = vpop.f32.mrb[118].mxu0  ;;  %v21203_v31 = vpop.f32.mrb[82].mxu1 }
 0x79d   :  { %v4058_v43 = vpack.c.bf16 %v21179_v41, %v21178_v44  ;;  %v4045_v9 = vpop.f32.mrb[119].mxu0  ;;  %v4274_v10 = vpack.c.bf16 %v21203_v31, %v21202_v2  ;;  %v4261_v11 = vpop.f32.mrb[83].mxu1  ;;  %v22102_v2 = vld [vmem:[%s23702_s19 + $0x168] sm:$0xff]   ;;  %v22105_v41 = vld [vmem:[%s23702_s19 + $0x1e0] sm:$0xff]  }
 0x79e   :  { %v4057_v12 = vpack.c.bf16 %v4045_v9, %v4042_v3  ;;  %v4273_v13 = vpack.c.bf16 %v4261_v11, %v4258_v5  ;;  %v22103_v3 = vld [vmem:[%s23702_s19 + $0x198] sm:$0xff]   ;;  %v22104_v5 = vld [vmem:[%s23702_s19 + $0x128] sm:$0xff]   ;;  %v22107_v11 = vld [vmem:[%s23702_s19 + $0x1a0] sm:$0xff]  }
 0x7a0   :  { %5293 = vmatprep.mubr.bf16.mxu0 %v4273_v13 }
 0x7a2   :  { %v21186_v14 = vpop.f32.mrb[120].mxu0  ;;  %v24554_v15 = vpop.f32.mrb[84].mxu1 }
 0x7a3   :  { %v4114_v16 = vpop.f32.mrb[121].mxu0  ;;  %v4402_v17 = vpop.f32.mrb[85].mxu1 }
 0x7a4   :  { %v21187_v18 = vpop.f32.mrb[122].mxu0  ;;  %v24556_v19 = vpop.f32.mrb[86].mxu1 }
 0x7a5   :  { %v4130_v20 = vpack.c.bf16 %v21187_v18, %v21186_v14  ;;  %v4117_v21 = vpop.f32.mrb[123].mxu0  ;;  %v4418_v22 = vpack.c.bf16 %v24556_v19, %v24554_v15  ;;  %v4405_v23 = vpop.f32.mrb[87].mxu1  ;;  %v22108_v14 = vld [vmem:[%s23702_s19 + $0x130] sm:$0xff]   ;;  %v22110_v18 = vld [vmem:[%s23702_s19 + $0x178] sm:$0xff]   ;;  %v22121_v15 = vld [vmem:[%s23702_s19 + $0x220] sm:$0xff]  }
 0x7a6   :  { %v4129_v24 = vpack.c.bf16 %v4117_v21, %v4114_v16  ;;  %v4417_v26 = vpack.c.bf16 %v4405_v23, %v4402_v17  ;;  %v22109_v16 = vld [vmem:[%s23702_s19 + $0x1e8] sm:$0xff]   ;;  %v22112_v21 = vld [vmem:[%s23702_s19 + $0x138] sm:$0xff]   ;;  %v22113_v23 = vld [vmem:[%s23702_s19 + $0x1f0] sm:$0xff]  }
 0x7a7   :  { %v22122_v19 = vld [vmem:[%s23702_s19 + $0x228] sm:$0xff]  }
 0x7a8   :  { %5244 = vmatprep.mubr.bf16.mxu1 %v4129_v24 }
 0x7a9   :  { %5245 = vmatmul.mubr.bf16.vlgmr.msra.gmra.mrb[92].mxu1 %v4057_v12 }
 0x7aa   :  { %20026 = vmatpush3.bf16.msra.mxu1 %v22084_v25  ;;  %v21194_v29 = vpop.f32.mrb[124].mxu0  ;;  %5252 = vmatprep.mubr.bf16.mxu1 %v4130_v20  ;;  %v24563_v32 = vpop.f32.mrb[88].mxu1  ;;  %v22111_v20 = vld [vmem:[%s23702_s19 + $0x1a8] sm:$0xff]   ;;  %v22115_v25 = vld [vmem:[%s23702_s19 + $0x200] sm:$0xff]  }
 0x7ab   :  { %v4186_v36 = vpop.f32.mrb[125].mxu0  ;;  %20027 = vmatprep.subr.bf16.mxu1 %v22087_v27  ;;  %v4546_v40 = vpop.f32.mrb[89].mxu1 }
 0x7ac   :  { %v21195_v42 = vpop.f32.mrb[126].mxu0  ;;  %v24566_v45 = vpop.f32.mrb[90].mxu1 }
 0x7ad   :  { %v4202_v46 = vpack.c.bf16 %v21195_v42, %v21194_v29  ;;  %v4189_v47 = vpop.f32.mrb[127].mxu0  ;;  %v4562_v50 = vpack.c.bf16 %v24566_v45, %v24563_v32  ;;  %v4549_v54 = vpop.f32.mrb[91].mxu1  ;;  %v22114_v29 = vld [vmem:[%s23702_s19 + $0x1b0] sm:$0xff]   ;;  %v22118_v42 = vld [vmem:[%s23702_s19 + $0x208] sm:$0xff]   ;;  %v22125_v32 = vld [vmem:[%s23707_s24] sm:$0xff]  }
 0x7ae   :  { %v4201_v55 = vpack.c.bf16 %v4189_v47, %v4186_v36  ;;  %20028 = vmatpush3.bf16.msra.mxu1 %v22088_v30  ;;  %v4561_v34 = vpack.c.bf16 %v4549_v54, %v4546_v40  ;;  %v22116_v40 = vld [vmem:[%s23702_s19 + $0x1f8] sm:$0xff]   ;;  %v22119_v47 = vld [vmem:[%s23702_s19 + $0x210] sm:$0xff]  }
 0x7af   :  { %20029 = vmatprep.subr.bf16.mxu1 %v22090_v37  ;;  %v22124_v54 = vld [vmem:[%s23702_s19 + $0x238] sm:$0xff]   ;;  %v22127_v45 = vld [vmem:[%s23707_s24 + $0x30] sm:$0xff]  }
 0x7b0   :  { %5294 = vmatmul.mubr.bf16.vlgmr.msra.gmra.mrb[140].mxu0 %v4201_v55 }
 0x7b1   :  { %20054 = vmatpush3.bf16.msra.mxu0 %v22091_v48  ;;  %5253 = vmatmul.mubr.bf16.gmra.mrb[96].mxu1 %v4058_v43  ;;  %v22106_v43 = vld [vmem:[%s23702_s19 + $0x170] sm:$0xff]   ;;  %v22120_v48 = vld [vmem:[%s23702_s19 + $0x218] sm:$0xff]  }
 0x7b2   :  { %20030 = vmatpush3.bf16.msra.mxu1 %v22092_v58  ;;  %20055 = vmatprep.subr.bf16.mxu0 %v22093_v28  ;;  %v24577_v59 = vpop.f32.mrb[128].mxu0 }
 0x7b3   :  { %20031 = vmatprep.subr.bf16.mxu1 %v22094_v38  ;;  %5301 = vmatprep.mubr.bf16.mxu0 %v4274_v10  ;;  %v4330_v61 = vpop.f32.mrb[129].mxu0 }
 0x7b4   :  { %v24580_v62 = vpop.f32.mrb[130].mxu0  ;;  %5342 = vmatprep.mubr.bf16.mxu1 %v4417_v26 }
 0x7b5   :  { %20056 = vmatpush3.bf16.msra.mxu0 %v22095_v51  ;;  %v4346_v0 = vpack.c.bf16 %v24580_v62, %v24577_v59  ;;  %v4333_v1 = vpop.f32.mrb[131].mxu0  ;;  %v4779_v51 = vld [vmem:[%s23672_s21 + $0x2] ss:$0 sm:$0xff] }
 0x7b6   :  { %20032 = vmatpush3.bf16.msra.mxu1 %v22096_v52  ;;  %20057 = vmatprep.subr.bf16.mxu0 %v22097_v56  ;;  %v4345_v44 = vpack.c.bf16 %v4333_v1, %v4330_v61 }
 0x7b7   :  { %20033 = vmatprep.subr.bf16.mxu1 %v22098_v60 }
 0x7b8   :  { %5302 = vmatmul.mubr.bf16.gmra.mrb[144].mxu0 %v4202_v46  ;;  %v22117_v46 = vld [vmem:[%s23702_s19 + $0x1b8] sm:$0xff]  }
 0x7b9   :  { %20058 = vmatpush3.bf16.msra.mxu0 %v22099_v63  ;;  %5391 = vmatprep.mubr.bf16.mxu0 %v4561_v34 }
 0x7ba   :  { %20034 = vmatpush3.bf16.msra.mxu1 %v22100_v35  ;;  %20059 = vmatprep.subr.bf16.mxu0 %v22101_v33  ;;  %v21226_v31 = vpop.f32.mrb[132].mxu0 }
 0x7bb   :  { %20035 = vmatprep.subr.bf16.mxu1 %v22102_v2  ;;  %v4474_v9 = vpop.f32.mrb[133].mxu0 }
 0x7bc   :  { %v21227_v10 = vpop.f32.mrb[134].mxu0 }
 0x7bd   :  { %20060 = vmatpush3.bf16.msra.mxu0 %v22103_v3  ;;  %v4490_v12 = vpack.c.bf16 %v21227_v10, %v21226_v31  ;;  %v4477_v13 = vpop.f32.mrb[135].mxu0 }
 0x7be   :  { %20036 = vmatpush3.bf16.msra.mxu1 %v22104_v5  ;;  %20061 = vmatprep.subr.bf16.mxu0 %v22105_v41  ;;  %v4489_v17 = vpack.c.bf16 %v4477_v13, %v4474_v9 }
 0x7bf   :  { %20037 = vmatprep.subr.bf16.mxu1 %v22106_v43 }
 0x7c1   :  { %20062 = vmatpush3.bf16.msra.mxu0 %v22107_v11 }
 0x7c2   :  { %20038 = vmatpush3.bf16.msra.mxu1 %v22108_v14  ;;  %20063 = vmatprep.subr.bf16.mxu0 %v22109_v16  ;;  %v21242_v24 = vpop.f32.mrb[136].mxu0 }
 0x7c3   :  { %20039 = vmatprep.subr.bf16.mxu1 %v22110_v18  ;;  %v4618_v26 = vpop.f32.mrb[137].mxu0 }
 0x7c4   :  { %v21243_v27 = vpop.f32.mrb[138].mxu0 }
 0x7c5   :  { %20064 = vmatpush3.bf16.msra.mxu0 %v22111_v20  ;;  %v4634_v30 = vpack.c.bf16 %v21243_v27, %v21242_v24  ;;  %v4621_v36 = vpop.f32.mrb[139].mxu0 }
 0x7c6   :  { %20040 = vmatpush3.bf16.msra.mxu1 %v22112_v21  ;;  %20065 = vmatprep.subr.bf16.mxu0 %v22113_v23  ;;  %v4633_v37 = vpack.c.bf16 %v4621_v36, %v4618_v26 }
 0x7c7   :  { %21244 = vmatprep.subr.bf16.mxu1 %v22115_v25 }
 0x7c9   :  { %5343 = vmatmul.mubr.bf16.vlgmr.msra.gmra.mrb[100].mxu1 %v4345_v44  ;;  %20066 = vmatpush3.bf16.msra.mxu0 %v22114_v29 }
 0x7ca   :  { %5350 = vmatprep.mubr.bf16.mxu1 %v4418_v22  ;;  %21245 = vmatpush3.bf16.msra.mxu1 %v22115_v25  ;;  %v22123_v22 = vld [vmem:[%s23702_s19 + $0x230] sm:$0xff]   ;;  %s26348_s19 = sld [smem:[#allocation14_spill]] }
 0x7cb   :  { %20067 = vmatprep.subr.bf16.mxu0 %v22116_v40  ;;  %21246 = vmatprep.subr.bf16.mxu1 %v22118_v42 }
 0x7cd   :  { %20068 = vmatpush3.bf16.msra.mxu0 %v22117_v46 }
 0x7ce   :  { %21247 = vmatpush3.bf16.msra.mxu1 %v22118_v42 }
 0x7cf   :  { %21248 = vmatprep.subr.bf16.mxu1 %v22119_v47 }
 0x7d0   :  { %5392 = vmatmul.mubr.bf16.vlgmr.msra.gmra.mrb[148].mxu0 %v4489_v17 }
 0x7d1   :  { %5351 = vmatmul.mubr.bf16.gmra.mrb[104].mxu1 %v4346_v0  ;;  %5399 = vmatprep.mubr.bf16.mxu0 %v4562_v50 }
 0x7d2   :  { %21249 = vmatpush3.bf16.msra.mxu1 %v22119_v47  ;;  %21260 = vmatprep.mubr.bf16.mxu1 %v4633_v37 }
 0x7d3   :  { %21250 = vmatprep.subr.bf16.mxu1 %v22120_v48 }
 0x7d6   :  { %21251 = vmatpush3.bf16.msra.mxu1 %v22120_v48 }
 0x7d7   :  { %21252 = vmatprep.subr.bf16.mxu1 %v22121_v15 }
 0x7d8   :  { %5400 = vmatmul.mubr.bf16.gmra.mrb[152].mxu0 %v4490_v12 }
 0x7d9   :  { %21268 = vmatprep.mubr.msk.bf16.mxu0 %vm1047_vm1, %v22125_v32 }
 0x7da   :  { %21253 = vmatpush3.bf16.msra.mxu1 %v22121_v15 }
 0x7db   :  { %21254 = vmatprep.subr.bf16.mxu1 %v22122_v19 }
 0x7de   :  { %21255 = vmatpush3.bf16.msra.mxu1 %v22122_v19 }
 0x7df   :  { %21256 = vmatprep.subr.bf16.mxu1 %v22123_v22 }
 0x7e2   :  { %21257 = vmatpush3.bf16.msra.mxu1 %v22123_v22 }
 0x7e3   :  { %21258 = vmatprep.subr.bf16.mxu1 %v22124_v54 }
 0x7e6   :  { %21259 = vmatpush3.bf16.msra.mxu1 %v22124_v54 }
 0x7e9   :  { %21261 = vmatmul.mubr.bf16.vlgmr.msra.gmra.mrb[108].mxu1 %v4634_v30 }
 0x7ea   :  { %21292 = vmatprep.mubr.msk.bf16.mxu1 %vm1047_vm1, %v22127_v45 }
 0x87c   :  { %v19985_v50 = vpop.f32.mrb[92].mxu1 }
 0x87d   :  { %v19986_v55 = vpop.f32.mrb[93].mxu1 }
 0x87e   :  { %v19987_v58 = vadd.f32 %v19986_v55, %v19985_v50  ;;  %v19988_v28 = vpop.f32.mrb[94].mxu1 }
 0x87f   :  { %v19989_v34 = vpop.f32.mrb[95].mxu1 }
 0x880   :  { %v19990_v38 = vadd.f32 %v19989_v34, %v19988_v28  ;;  %v5247_v60 = vadd.f32 %v19987_v58, %v4779_v51 }
 0x882   :  { %v5250_v33 = vadd.f32 %v19990_v38, %v4779_v51 }
 0x883   :  { %v20013_v52 = vpop.f32.mrb[140].mxu0 }
 0x884   :  { %v19991_v56 = vpop.f32.mrb[96].mxu1  ;;  %v20014_v59 = vpop.f32.mrb[141].mxu0 }
 0x885   :  { %v20015_v61 = vadd.f32 %v20014_v59, %v20013_v52  ;;  %v19992_v62 = vpop.f32.mrb[97].mxu1  ;;  %v20016_v63 = vpop.f32.mrb[142].mxu0 }
 0x886   :  { %v19993_v0 = vadd.f32 %v19992_v62, %v19991_v56  ;;  %v19994_v1 = vpop.f32.mrb[98].mxu1  ;;  %v20017_v35 = vpop.f32.mrb[143].mxu0 }
 0x887   :  { %v5296_v44 = vadd.f32 %v20015_v61, %v5247_v60  ;;  %v20018_v2 = vadd.f32 %v20017_v35, %v20016_v63  ;;  %v19995_v3 = vpop.f32.mrb[99].mxu1 }
 0x888   :  { %v19996_v5 = vadd.f32 %v19995_v3, %v19994_v1  ;;  %v5255_v9 = vadd.f32 %v19993_v0, %v4779_v51 }
 0x889   :  { %v5299_v41 = vadd.f32 %v20018_v2, %v5250_v33 }
 0x88a   :  { %v5258_v13 = vadd.f32 %v19996_v5, %v4779_v51 }
 0x88b   :  { %v20019_v31 = vpop.f32.mrb[144].mxu0 }
 0x88c   :  { %v20020_v43 = vpop.f32.mrb[145].mxu0 }
 0x88d   :  { %v20021_v10 = vadd.f32 %v20020_v43, %v20019_v31  ;;  %v20022_v11 = vpop.f32.mrb[146].mxu0  ;;  %v22126_v31 = vld [vmem:[%s23707_s24 + $0x8] sm:$0xff]   ;;  %v22128_v43 = vld [vmem:[%s23707_s24 + $0x38] sm:$0xff]  }
 0x88e   :  { %v20023_v12 = vpop.f32.mrb[147].mxu0 }
 0x88f   :  { %v5304_v14 = vadd.f32 %v20021_v10, %v5255_v9  ;;  %v20024_v16 = vadd.f32 %v20023_v12, %v20022_v11  ;;  %v22129_v9 = vld [vmem:[%s23707_s24 + $0x10] sm:$0xff]   ;;  %v22130_v11 = vld [vmem:[%s23707_s24 + $0x18] sm:$0xff]  }
 0x890   :  { %v22131_v10 = vld [vmem:[%s23707_s24 + $0x50] sm:$0xff]   ;;  %v22132_v12 = vld [vmem:[%s23707_s24 + $0x58] sm:$0xff]  }
 0x891   :  { %v5307_v17 = vadd.f32 %v20024_v16, %v5258_v13  ;;  %v22133_v13 = vld [vmem:[%s23707_s24 + $0x20] sm:$0xff]  }
 0x892   :  { %v22143_v16 = vld [vmem:[%s23712_s30 + $0x40] sm:$0xff]  }
 0x89c   :  { %v20041_v18 = vpop.f32.mrb[100].mxu1 }
 0x89d   :  { %v20042_v20 = vpop.f32.mrb[101].mxu1 }
 0x89e   :  { %v20043_v21 = vadd.f32 %v20042_v20, %v20041_v18  ;;  %v20044_v23 = vpop.f32.mrb[102].mxu1  ;;  %v22140_v18 = vld [vmem:[%s23707_s24 + $0x78] sm:$0xff]   ;;  %v22135_v20 = vld [vmem:[%s23707_s24 + $0x40] sm:$0xff]  }
 0x89f   :  { %v20045_v24 = vpop.f32.mrb[103].mxu1 }
 0x8a0   :  { %v5345_v25 = vadd.f32 %v20043_v21, %v5296_v44  ;;  %v20046_v26 = vadd.f32 %v20045_v24, %v20044_v23  ;;  %v22144_v21 = vld [vmem:[%s23712_s30] sm:$0xff]   ;;  %v22145_v23 = vld [vmem:[%s23712_s30 + $0x48] sm:$0xff]  }
 0x8a1   :  { %v22146_v24 = vld [vmem:[%s23712_s30 + $0x8] sm:$0xff]  }
 0x8a2   :  { %v5348_v27 = vadd.f32 %v20046_v26, %v5299_v41  ;;  %v22136_v26 = vld [vmem:[%s23707_s24 + $0x48] sm:$0xff]  }
 0x8a3   :  { %v20069_v29 = vpop.f32.mrb[148].mxu0 }
 0x8a4   :  { %v20047_v30 = vpop.f32.mrb[104].mxu1  ;;  %v20070_v36 = vpop.f32.mrb[149].mxu0 }
 0x8a5   :  { %v20071_v37 = vadd.f32 %v20070_v36, %v20069_v29  ;;  %v20048_v40 = vpop.f32.mrb[105].mxu1  ;;  %v20072_v42 = vpop.f32.mrb[150].mxu0  ;;  %v22150_v29 = vld [vmem:[%s23712_s30 + $0x10] sm:$0xff]   ;;  %v22154_v36 = vld [vmem:[%s23712_s30 + $0x18] sm:$0xff]  }
 0x8a6   :  { %v20049_v46 = vadd.f32 %v20048_v40, %v20047_v30  ;;  %v20050_v47 = vpop.f32.mrb[106].mxu1  ;;  %v20073_v48 = vpop.f32.mrb[151].mxu0  ;;  %v22152_v30 = vld [vmem:[%s23712_s30 + $0x58] sm:$0xff]   ;;  %v22138_v40 = vld [vmem:[%s23707_s24 + $0x68] sm:$0xff]  }
 0x8a7   :  { %v20074_v15 = vadd.f32 %v20073_v48, %v20072_v42  ;;  %v20051_v19 = vpop.f32.mrb[107].mxu1  ;;  %v5394_v22 = vadd.f32 %v20071_v37, %v5345_v25  ;;  %v22148_v25 = vld [vmem:[%s23712_s30 + $0x50] sm:$0xff]   ;;  %v22156_v37 = vld [vmem:[%s23712_s30 + $0x60] sm:$0xff]   ;;  %v22142_v48 = vld [vmem:[%s23707_s24 + $0x88] sm:$0xff]  }
 0x8a8   :  { %v5353_v54 = vadd.f32 %v20049_v46, %v5304_v14  ;;  %v20052_v32 = vadd.f32 %v20051_v19, %v20050_v47  ;;  %v22139_v14 = vld [vmem:[%s23707_s24 + $0x70] sm:$0xff]   ;;  %v22141_v42 = vld [vmem:[%s23707_s24 + $0x80] sm:$0xff]   ;;  %v22151_v19 = vld [vmem:[%s23712_s30 + $0xc8] sm:$0xff]  }
 0x8a9   :  { %v5397_v45 = vadd.f32 %v20074_v15, %v5348_v27  ;;  %v22137_v27 = vld [vmem:[%s23707_s24 + $0x60] sm:$0xff]  }
 0x8aa   :  { %v5356_v50 = vadd.f32 %v20052_v32, %v5307_v17  ;;  %v22134_v17 = vld [vmem:[%s23707_s24 + $0x28] sm:$0xff]   ;;  %v22158_v46 = vld [vmem:[%s23712_s30 + $0x20] sm:$0xff]   ;;  %v22157_v32 = vld [vmem:[%s23712_s30 + $0x90] sm:$0xff]   ;;  %s26349_s24 = sld [smem:[#allocation16_spill]] }
 0x8ab   :  { %v20075_v55 = vpop.f32.mrb[152].mxu0  ;;  %v22147_v47 = vld [vmem:[%s23712_s30 + $0xc0] sm:$0xff]  }
 0x8ac   :  { %v20076_v58 = vpop.f32.mrb[153].mxu0  ;;  %v22149_v15 = vld [vmem:[%s23712_s30 + $0x80] sm:$0xff]  }
 0x8ad   :  { %v20077_v28 = vadd.f32 %v20076_v58, %v20075_v55  ;;  %v20078_v34 = vpop.f32.mrb[154].mxu0  ;;  %v22161_v55 = vld [vmem:[%s23712_s30 + $0x98] sm:$0xff]   ;;  %v22162_v58 = vld [vmem:[%s23712_s30 + $0x28] sm:$0xff]  }
 0x8ae   :  { %v20079_v38 = vpop.f32.mrb[155].mxu0 }
 0x8af   :  { %v20080_v51 = vadd.f32 %v20079_v38, %v20078_v34  ;;  %v5402_v52 = vadd.f32 %v20077_v28, %v5353_v54  ;;  %v22155_v54 = vld [vmem:[%s23712_s30 + $0xd0] sm:$0xff]   ;;  %v22163_v28 = vld [vmem:[%s23712_s30 + $0xe0] sm:$0xff]  }
 0x8b0   :  { %v22164_v34 = vld [vmem:[%s23712_s30 + $0x70] sm:$0xff]   ;;  %v22165_v38 = vld [vmem:[%s23712_s30 + $0xa0] sm:$0xff]  }
 0x8b1   :  { %v5405_v56 = vadd.f32 %v20080_v51, %v5356_v50  ;;  %v22160_v50 = vld [vmem:[%s23712_s30 + $0x68] sm:$0xff]   ;;  %v22166_v51 = vld [vmem:[%s23712_s30 + $0x30] sm:$0xff]  }
 0x8bc   :  { %v21262_v59 = vpop.f32.mrb[108].mxu1 }
 0x8bd   :  { %v5451_v60 = vadd.f32 %v21262_v59, %v5402_v52  ;;  %v5442_v61 = vpop.f32.mrb[109].mxu1  ;;  %v22167_v52 = vld [vmem:[%s23712_s30 + $0xe8] sm:$0xff]  }
 0x8be   :  { %v5443_v62 = vadd.f32 %v5442_v61, %v5394_v22  ;;  %v21263_v63 = vpop.f32.mrb[110].mxu1  ;;  %v22153_v22 = vld [vmem:[%s23712_s30 + $0x88] sm:$0xff]   ;;  %v22171_v61 = vld [vmem:[%s23712_s30 + $0xf0] sm:$0xff]  }
 0x8bf   :  { %v5454_v0 = vadd.f32 %v21263_v63, %v5405_v56  ;;  %v5445_v1 = vpop.f32.mrb[111].mxu1  ;;  %v5459_v33 = vmax.f32 %v5451_v60, 0.0  ;;  %v22168_v56 = vld [vmem:[%s23712_s30 + $0x78] sm:$0xff]   ;;  %v22169_v59 = vld [vmem:[%s23712_s30 + $0xa8] sm:$0xff]   ;;  %v22173_v63 = vld [vmem:[%s23712_s30 + $0x140] sm:$0xff]  }
 0x8c0   :  { %v5446_v35 = vadd.f32 %v5445_v1, %v5397_v45  ;;  %v5457_v2 = vmax.f32 %v5443_v62, 0.0  ;;  %v22159_v45 = vld [vmem:[%s23712_s30 + $0xd8] sm:$0xff]   ;;  %v22172_v62 = vld [vmem:[%s23712_s30 + $0xb0] sm:$0xff]  }
 0x8c1   :  { %v5460_v44 = vmax.f32 %v5454_v0, 0.0  ;;  %v22170_v60 = vld [vmem:[%s23712_s30 + $0x38] sm:$0xff]  }
 0x8c2   :  { %v5458_v3 = vmax.f32 %v5446_v35, 0.0  ;;  %v22175_v0 = vld [vmem:[%s23712_s30 + $0xf8] sm:$0xff]   ;;  %v22179_v35 = vld [vmem:[%s23712_s30 + $0x1c0] sm:$0xff]  }
 0x8c3   :  { %v24624_v5 = vpack.c.bf16 %v5460_v44, %v5459_v33  ;;  %v22176_v1 = vld [vmem:[%s23712_s30 + $0xb8] sm:$0xff]  }
 0x8c4   :  { %v24626_v41 = vpack.c.bf16 %v5458_v3, %v5457_v2 }
 0x8c6   :  { %21264 = vmatprep.subr.bf16.mxu0 %v24626_v41  ;;  %21288 = vmatprep.subr.bf16.mxu1 %v24626_v41 }
 0x8c7   :  { %21265 = vmatpush3.bf16.msra.mxu0 %v24626_v41  ;;  %21289 = vmatpush3.bf16.msra.mxu1 %v24626_v41 }
 0x8c8   :  { %21266 = vmatprep.subr.bf16.mxu0 %v24624_v5  ;;  %21290 = vmatprep.subr.bf16.mxu1 %v24624_v5 }
 0x8cb   :  { %21267 = vmatpush3.bf16.msra.mxu0 %v24624_v5  ;;  %21291 = vmatpush3.bf16.msra.mxu1 %v24624_v5 }
 0x8cc   :  { %21272 = vmatprep.subr.bf16.mxu0 %v24626_v41  ;;  %21304 = vmatprep.subr.bf16.mxu1 %v24626_v41 }
 0x8ce   :  { %21269 = vmatmul.mubr.msk.bf16.vlgmr.msra.gmra.mrb[156].mxu0 %vm1047_vm1, %v22126_v31  ;;  %21293 = vmatmul.mubr.msk.bf16.vlgmr.msra.gmra.mrb[112].mxu1 %vm1047_vm1, %v22128_v43 }
 0x8cf   :  { %21273 = vmatpush3.bf16.msra.mxu0 %v24626_v41  ;;  %21305 = vmatpush3.bf16.msra.mxu1 %v24626_v41 }
 0x8d0   :  { %21274 = vmatprep.subr.bf16.mxu0 %v24624_v5  ;;  %21306 = vmatprep.subr.bf16.mxu1 %v24624_v5 }
 0x8d1   :  { %21276 = vmatprep.mubr.msk.bf16.mxu0 %vm1047_vm1, %v22129_v9  ;;  %21308 = vmatprep.mubr.msk.bf16.mxu1 %vm1047_vm1, %v22131_v10 }
 0x8d3   :  { %21275 = vmatpush3.bf16.msra.mxu0 %v24624_v5  ;;  %21307 = vmatpush3.bf16.msra.mxu1 %v24624_v5 }
 0x8d4   :  { %21280 = vmatprep.subr.bf16.mxu0 %v24626_v41  ;;  %21320 = vmatprep.subr.bf16.mxu1 %v24626_v41 }
 0x8d6   :  { %21277 = vmatmul.mubr.msk.bf16.vlgmr.msra.gmra.mrb[160].mxu0 %vm1047_vm1, %v22130_v11  ;;  %21309 = vmatmul.mubr.msk.bf16.vlgmr.msra.gmra.mrb[116].mxu1 %vm1047_vm1, %v22132_v12 }
 0x8d7   :  { %21281 = vmatpush3.bf16.msra.mxu0 %v24626_v41  ;;  %21321 = vmatpush3.bf16.msra.mxu1 %v24626_v41 }
 0x8d8   :  { %21282 = vmatprep.subr.bf16.mxu0 %v24624_v5  ;;  %21322 = vmatprep.subr.bf16.mxu1 %v24624_v5 }
 0x8d9   :  { %21284 = vmatprep.mubr.msk.bf16.mxu0 %vm1047_vm1, %v22133_v13  ;;  %21324 = vmatprep.mubr.msk.bf16.mxu1 %vm1047_vm1, %v22139_v14 }
 0x8db   :  { %21283 = vmatpush3.bf16.msra.mxu0 %v24624_v5  ;;  %21323 = vmatpush3.bf16.msra.mxu1 %v24624_v5 }
 0x8dc   :  { %21296 = vmatprep.subr.bf16.mxu0 %v24626_v41  ;;  %20127 = vmatprep.subr.bf16.mxu1 %v22143_v16 }
 0x8de   :  { %21285 = vmatmul.mubr.msk.bf16.vlgmr.msra.gmra.mrb[164].mxu0 %vm1047_vm1, %v22134_v17  ;;  %21325 = vmatmul.mubr.msk.bf16.vlgmr.msra.gmra.mrb[120].mxu1 %vm1047_vm1, %v22140_v18 }
 0x8df   :  { %21297 = vmatpush3.bf16.msra.mxu0 %v24626_v41  ;;  %21300 = vmatprep.mubr.msk.bf16.mxu0 %vm1047_vm1, %v22135_v20 }
 0x8e0   :  { %21298 = vmatprep.subr.bf16.mxu0 %v24624_v5  ;;  %20128 = vmatpush3.bf16.msra.mxu1 %v22144_v21 }
 0x8e1   :  { %20129 = vmatprep.subr.bf16.mxu1 %v22145_v23 }
 0x8e3   :  { %21299 = vmatpush3.bf16.msra.mxu0 %v24624_v5 }
 0x8e4   :  { %21312 = vmatprep.subr.bf16.mxu0 %v24626_v41  ;;  %20130 = vmatpush3.bf16.msra.mxu1 %v22146_v24 }
 0x8e5   :  { %20131 = vmatprep.subr.bf16.mxu1 %v22148_v25 }
 0x8e6   :  { %21301 = vmatmul.mubr.msk.bf16.vlgmr.msra.gmra.mrb[168].mxu0 %vm1047_vm1, %v22136_v26 }
 0x8e7   :  { %21313 = vmatpush3.bf16.msra.mxu0 %v24626_v41  ;;  %21316 = vmatprep.mubr.msk.bf16.mxu0 %vm1047_vm1, %v22137_v27  ;;  %v22174_v27 = vld [vmem:[%s23712_s30 + $0x100] sm:$0xff]  }
 0x8e8   :  { %21314 = vmatprep.subr.bf16.mxu0 %v24624_v5  ;;  %20132 = vmatpush3.bf16.msra.mxu1 %v22150_v29 }
 0x8e9   :  { %20133 = vmatprep.subr.bf16.mxu1 %v22152_v30  ;;  %v22177_v30 = vld [vmem:[%s23712_s30 + $0x148] sm:$0xff]  }
 0x8eb   :  { %21315 = vmatpush3.bf16.msra.mxu0 %v24624_v5 }
 0x8ec   :  { %21328 = vmatprep.subr.bf16.mxu0 %v24626_v41  ;;  %20134 = vmatpush3.bf16.msra.mxu1 %v22154_v36 }
 0x8ed   :  { %20135 = vmatprep.subr.bf16.mxu1 %v22156_v37  ;;  %v22178_v37 = vld [vmem:[%s23712_s30 + $0x108] sm:$0xff]  }
 0x8ee   :  { %21317 = vmatmul.mubr.msk.bf16.vlgmr.msra.gmra.mrb[172].mxu0 %vm1047_vm1, %v22138_v40 }
 0x8ef   :  { %21329 = vmatpush3.bf16.msra.mxu0 %v24626_v41  ;;  %21332 = vmatprep.mubr.msk.bf16.mxu0 %vm1047_vm1, %v22141_v42 }
 0x8f0   :  { %21330 = vmatprep.subr.bf16.mxu0 %v24624_v5  ;;  %20136 = vmatpush3.bf16.msra.mxu1 %v22158_v46  ;;  %v22180_v46 = vld [vmem:[%s23712_s30 + $0x150] sm:$0xff]  }
 0x8f1   :  { %20137 = vmatprep.subr.bf16.mxu1 %v22160_v50 }
 0x8f3   :  { %21331 = vmatpush3.bf16.msra.mxu0 %v24624_v5 }
 0x8f4   :  { %20155 = vmatprep.subr.bf16.mxu0 %v22147_v47  ;;  %20138 = vmatpush3.bf16.msra.mxu1 %v22162_v58  ;;  %v22183_v58 = vld [vmem:[%s23712_s30 + $0x1c8] sm:$0xff]  }
 0x8f5   :  { %20139 = vmatprep.subr.bf16.mxu1 %v22164_v34  ;;  %v22184_v34 = vld [vmem:[%s23712_s30 + $0x158] sm:$0xff]  }
 0x8f6   :  { %21333 = vmatmul.mubr.msk.bf16.vlgmr.msra.gmra.mrb[176].mxu0 %vm1047_vm1, %v22142_v48 }
 0x8f7   :  { %20156 = vmatpush3.bf16.msra.mxu0 %v22149_v15 }
 0x8f8   :  { %20157 = vmatprep.subr.bf16.mxu0 %v22151_v19  ;;  %20140 = vmatpush3.bf16.msra.mxu1 %v22166_v51  ;;  %v22186_v51 = vld [vmem:[%s23712_s30 + $0x118] sm:$0xff]  }
 0x8f9   :  { %20141 = vmatprep.subr.bf16.mxu1 %v22168_v56 }
 0x8fb   :  { %20158 = vmatpush3.bf16.msra.mxu0 %v22153_v22 }
 0x8fc   :  { %20159 = vmatprep.subr.bf16.mxu0 %v22155_v54  ;;  %20142 = vmatpush3.bf16.msra.mxu1 %v22170_v60  ;;  %v22181_v54 = vld [vmem:[%s23712_s30 + $0x180] sm:$0xff]  }
 0x8fd   :  { %20183 = vmatprep.subr.bf16.mxu1 %v22173_v63 }
 0x8ff   :  { %20160 = vmatpush3.bf16.msra.mxu0 %v22157_v32 }
 0x900   :  { %20161 = vmatprep.subr.bf16.mxu0 %v22159_v45 }
 0x903   :  { %20162 = vmatpush3.bf16.msra.mxu0 %v22161_v55  ;;  %v22182_v55 = vld [vmem:[%s23712_s30 + $0x110] sm:$0xff]  }
 0x904   :  { %20163 = vmatprep.subr.bf16.mxu0 %v22163_v28 }
 0x907   :  { %20164 = vmatpush3.bf16.msra.mxu0 %v22165_v38  ;;  %v22185_v38 = vld [vmem:[%s23712_s30 + $0x188] sm:$0xff]  }
 0x908   :  { %20165 = vmatprep.subr.bf16.mxu0 %v22167_v52  ;;  %v22187_v52 = vld [vmem:[%s23712_s30 + $0x1d0] sm:$0xff]  }
 0x90b   :  { %20166 = vmatpush3.bf16.msra.mxu0 %v22169_v59  ;;  %v22188_v59 = vld [vmem:[%s23712_s30 + $0x160] sm:$0xff]  }
 0x90c   :  { %20167 = vmatprep.subr.bf16.mxu0 %v22171_v61 }
 0x90f   :  { %20168 = vmatpush3.bf16.msra.mxu0 %v22172_v62  ;;  %v22189_v62 = vld [vmem:[%s23712_s30 + $0x190] sm:$0xff]  }
 0x910   :  { %20169 = vmatprep.subr.bf16.mxu0 %v22175_v0 }
 0x913   :  { %20170 = vmatpush3.bf16.msra.mxu0 %v22176_v1  ;;  %v22190_v1 = vld [vmem:[%s23712_s30 + $0x120] sm:$0xff]  }
 0x914   :  { %20211 = vmatprep.subr.bf16.mxu0 %v22179_v35  ;;  %v22191_v35 = vld [vmem:[%s23712_s30 + $0x1d8] sm:$0xff]  }
 0x9a1   :  { %v21270_v33 = vpop.f32.mrb[156].mxu0  ;;  %v21294_v44 = vpop.f32.mrb[112].mxu1 }
 0x9a2   :  { %v5517_v2 = vpop.f32.mrb[157].mxu0  ;;  %v5733_v3 = vpop.f32.mrb[113].mxu1 }
 0x9a3   :  { %v21271_v5 = vpop.f32.mrb[158].mxu0  ;;  %v21295_v41 = vpop.f32.mrb[114].mxu1 }
 0x9a4   :  { %v5533_v31 = vpack.c.bf16 %v21271_v5, %v21270_v33  ;;  %v5520_v43 = vpop.f32.mrb[159].mxu0  ;;  %v5749_v9 = vpack.c.bf16 %v21295_v41, %v21294_v44  ;;  %v5736_v10 = vpop.f32.mrb[115].mxu1  ;;  %v22192_v44 = vld [vmem:[%s23712_s30 + $0x168] sm:$0xff]   ;;  %v22195_v5 = vld [vmem:[%s23712_s30 + $0x1e0] sm:$0xff]  }
 0x9a5   :  { %v5532_v11 = vpack.c.bf16 %v5520_v43, %v5517_v2  ;;  %v5748_v12 = vpack.c.bf16 %v5736_v10, %v5733_v3  ;;  %v22193_v2 = vld [vmem:[%s23712_s30 + $0x198] sm:$0xff]   ;;  %v22194_v3 = vld [vmem:[%s23712_s30 + $0x128] sm:$0xff]   ;;  %v22197_v10 = vld [vmem:[%s23712_s30 + $0x1a0] sm:$0xff]  }
 0x9a7   :  { %6768 = vmatprep.mubr.bf16.mxu0 %v5748_v12 }
 0x9a9   :  { %v21278_v13 = vpop.f32.mrb[160].mxu0  ;;  %v24730_v14 = vpop.f32.mrb[116].mxu1 }
 0x9aa   :  { %v5589_v16 = vpop.f32.mrb[161].mxu0  ;;  %v5877_v17 = vpop.f32.mrb[117].mxu1 }
 0x9ab   :  { %v21279_v18 = vpop.f32.mrb[162].mxu0  ;;  %v24732_v20 = vpop.f32.mrb[118].mxu1 }
 0x9ac   :  { %v5605_v21 = vpack.c.bf16 %v21279_v18, %v21278_v13  ;;  %v5592_v23 = vpop.f32.mrb[163].mxu0  ;;  %v5893_v24 = vpack.c.bf16 %v24732_v20, %v24730_v14  ;;  %v5880_v25 = vpop.f32.mrb[119].mxu1  ;;  %v22198_v13 = vld [vmem:[%s23712_s30 + $0x130] sm:$0xff]   ;;  %v22200_v18 = vld [vmem:[%s23712_s30 + $0x178] sm:$0xff]   ;;  %v22211_v14 = vld [vmem:[%s23712_s30 + $0x220] sm:$0xff]  }
 0x9ad   :  { %v5604_v26 = vpack.c.bf16 %v5592_v23, %v5589_v16  ;;  %v5892_v29 = vpack.c.bf16 %v5880_v25, %v5877_v17  ;;  %v22199_v16 = vld [vmem:[%s23712_s30 + $0x1e8] sm:$0xff]   ;;  %v22202_v23 = vld [vmem:[%s23712_s30 + $0x138] sm:$0xff]   ;;  %v22203_v25 = vld [vmem:[%s23712_s30 + $0x1f0] sm:$0xff]  }
 0x9ae   :  { %v22212_v20 = vld [vmem:[%s23712_s30 + $0x228] sm:$0xff]  }
 0x9af   :  { %6719 = vmatprep.mubr.bf16.mxu1 %v5604_v26 }
 0x9b0   :  { %6720 = vmatmul.mubr.bf16.vlgmr.msra.gmra.mrb[124].mxu1 %v5532_v11 }
 0x9b1   :  { %20184 = vmatpush3.bf16.msra.mxu1 %v22174_v27  ;;  %v21286_v36 = vpop.f32.mrb[164].mxu0  ;;  %6727 = vmatprep.mubr.bf16.mxu1 %v5605_v21  ;;  %v24739_v40 = vpop.f32.mrb[120].mxu1  ;;  %v22201_v21 = vld [vmem:[%s23712_s30 + $0x1a8] sm:$0xff]   ;;  %v22205_v27 = vld [vmem:[%s23712_s30 + $0x200] sm:$0xff]  }
 0x9b2   :  { %v5661_v42 = vpop.f32.mrb[165].mxu0  ;;  %20185 = vmatprep.subr.bf16.mxu1 %v22177_v30  ;;  %v6021_v47 = vpop.f32.mrb[121].mxu1 }
 0x9b3   :  { %v21287_v48 = vpop.f32.mrb[166].mxu0  ;;  %v24742_v15 = vpop.f32.mrb[122].mxu1 }
 0x9b4   :  { %v5677_v19 = vpack.c.bf16 %v21287_v48, %v21286_v36  ;;  %v5664_v22 = vpop.f32.mrb[167].mxu0  ;;  %v6037_v32 = vpack.c.bf16 %v24742_v15, %v24739_v40  ;;  %v6024_v45 = vpop.f32.mrb[123].mxu1  ;;  %v22204_v36 = vld [vmem:[%s23712_s30 + $0x1b0] sm:$0xff]   ;;  %v22208_v48 = vld [vmem:[%s23712_s30 + $0x208] sm:$0xff]   ;;  %v23640_v40 = vmov 0.0  }
 0x9b5   :  { %v5676_v50 = vpack.c.bf16 %v5664_v22, %v5661_v42  ;;  %20186 = vmatpush3.bf16.msra.mxu1 %v22178_v37  ;;  %v6036_v28 = vpack.c.bf16 %v6024_v45, %v6021_v47  ;;  %v22206_v47 = vld [vmem:[%s23712_s30 + $0x1f8] sm:$0xff]   ;;  %v22209_v22 = vld [vmem:[%s23712_s30 + $0x210] sm:$0xff]  }
 0x9b6   :  { %20187 = vmatprep.subr.bf16.mxu1 %v22180_v46  ;;  %v22214_v45 = vld [vmem:[%s23712_s30 + $0x238] sm:$0xff]  }
 0x9b7   :  { %6769 = vmatmul.mubr.bf16.vlgmr.msra.gmra.mrb[180].mxu0 %v5676_v50 }
 0x9b8   :  { %20212 = vmatpush3.bf16.msra.mxu0 %v22181_v54  ;;  %6728 = vmatmul.mubr.bf16.gmra.mrb[128].mxu1 %v5533_v31  ;;  %v22196_v31 = vld [vmem:[%s23712_s30 + $0x170] sm:$0xff]   ;;  %v22210_v54 = vld [vmem:[%s23712_s30 + $0x218] sm:$0xff]  }
 0x9b9   :  { %20188 = vmatpush3.bf16.msra.mxu1 %v22182_v55  ;;  %20213 = vmatprep.subr.bf16.mxu0 %v22183_v58  ;;  %v24753_v56 = vpop.f32.mrb[168].mxu0 }
 0x9ba   :  { %20189 = vmatprep.subr.bf16.mxu1 %v22184_v34  ;;  %6776 = vmatprep.mubr.bf16.mxu0 %v5749_v9  ;;  %v5805_v60 = vpop.f32.mrb[169].mxu0  ;;  %v6254_v34 = vld [vmem:[%s23672_s21 + $0x3] ss:$0 sm:$0xff] }
 0x9bb   :  { %v24756_v61 = vpop.f32.mrb[170].mxu0  ;;  %6817 = vmatprep.mubr.bf16.mxu1 %v5892_v29 }
 0x9bc   :  { %20214 = vmatpush3.bf16.msra.mxu0 %v22185_v38  ;;  %v5821_v63 = vpack.c.bf16 %v24756_v61, %v24753_v56  ;;  %v5808_v0 = vpop.f32.mrb[171].mxu0 }
 0x9bd   :  { %20190 = vmatpush3.bf16.msra.mxu1 %v22186_v51  ;;  %20215 = vmatprep.subr.bf16.mxu0 %v22187_v52  ;;  %v5820_v33 = vpack.c.bf16 %v5808_v0, %v5805_v60 }
 0x9be   :  { %20191 = vmatprep.subr.bf16.mxu1 %v22188_v59 }
 0x9bf   :  { %6777 = vmatmul.mubr.bf16.gmra.mrb[184].mxu0 %v5677_v19  ;;  %v22207_v19 = vld [vmem:[%s23712_s30 + $0x1b8] sm:$0xff]  }
 0x9c0   :  { %20216 = vmatpush3.bf16.msra.mxu0 %v22189_v62  ;;  %6866 = vmatprep.mubr.bf16.mxu0 %v6036_v28 }
 0x9c1   :  { %20192 = vmatpush3.bf16.msra.mxu1 %v22190_v1  ;;  %20217 = vmatprep.subr.bf16.mxu0 %v22191_v35  ;;  %v21318_v41 = vpop.f32.mrb[172].mxu0 }
 0x9c2   :  { %20193 = vmatprep.subr.bf16.mxu1 %v22192_v44  ;;  %v5949_v43 = vpop.f32.mrb[173].mxu0 }
 0x9c3   :  { %v21319_v9 = vpop.f32.mrb[174].mxu0 }
 0x9c4   :  { %20218 = vmatpush3.bf16.msra.mxu0 %v22193_v2  ;;  %v5965_v11 = vpack.c.bf16 %v21319_v9, %v21318_v41  ;;  %v5952_v12 = vpop.f32.mrb[175].mxu0 }
 0x9c5   :  { %20194 = vmatpush3.bf16.msra.mxu1 %v22194_v3  ;;  %20219 = vmatprep.subr.bf16.mxu0 %v22195_v5  ;;  %v5964_v17 = vpack.c.bf16 %v5952_v12, %v5949_v43 }
 0x9c6   :  { %20195 = vmatprep.subr.bf16.mxu1 %v22196_v31 }
 0x9c8   :  { %20220 = vmatpush3.bf16.msra.mxu0 %v22197_v10 }
 0x9c9   :  { %20196 = vmatpush3.bf16.msra.mxu1 %v22198_v13  ;;  %20221 = vmatprep.subr.bf16.mxu0 %v22199_v16  ;;  %v21334_v26 = vpop.f32.mrb[176].mxu0 }
 0x9ca   :  { %20197 = vmatprep.subr.bf16.mxu1 %v22200_v18  ;;  %v6093_v29 = vpop.f32.mrb[177].mxu0 }
 0x9cb   :  { %v21335_v30 = vpop.f32.mrb[178].mxu0 }
 0x9cc   :  { %20222 = vmatpush3.bf16.msra.mxu0 %v22201_v21  ;;  %v6109_v37 = vpack.c.bf16 %v21335_v30, %v21334_v26  ;;  %v6096_v42 = vpop.f32.mrb[179].mxu0 }
 0x9cd   :  { %20198 = vmatpush3.bf16.msra.mxu1 %v22202_v23  ;;  %20223 = vmatprep.subr.bf16.mxu0 %v22203_v25  ;;  %v6108_v46 = vpack.c.bf16 %v6096_v42, %v6093_v29 }
 0x9ce   :  { %21336 = vmatprep.subr.bf16.mxu1 %v22205_v27 }
 0x9d0   :  { %6818 = vmatmul.mubr.bf16.vlgmr.msra.gmra.mrb[132].mxu1 %v5820_v33  ;;  %20224 = vmatpush3.bf16.msra.mxu0 %v22204_v36 }
 0x9d1   :  { %6825 = vmatprep.mubr.bf16.mxu1 %v5893_v24  ;;  %21337 = vmatpush3.bf16.msra.mxu1 %v22205_v27  ;;  %v22213_v24 = vld [vmem:[%s23712_s30 + $0x230] sm:$0xff]   ;;  %s26350_s30 = sld [smem:[#allocation18_spill]] }
 0x9d2   :  { %20225 = vmatprep.subr.bf16.mxu0 %v22206_v47  ;;  %21338 = vmatprep.subr.bf16.mxu1 %v22208_v48 }
 0x9d4   :  { %20226 = vmatpush3.bf16.msra.mxu0 %v22207_v19 }
 0x9d5   :  { %21339 = vmatpush3.bf16.msra.mxu1 %v22208_v48  ;;  %21356 = vmatprep.subr.bf16.mxu0 %v23640_v40 }
 0x9d6   :  { %21340 = vmatprep.subr.bf16.mxu1 %v22209_v22 }
 0x9d7   :  { %6867 = vmatmul.mubr.bf16.vlgmr.msra.gmra.mrb[188].mxu0 %v5964_v17 }
 0x9d8   :  { %6826 = vmatmul.mubr.bf16.gmra.mrb[136].mxu1 %v5821_v63  ;;  %6874 = vmatprep.mubr.bf16.mxu0 %v6037_v32 }
 0x9d9   :  { %21341 = vmatpush3.bf16.msra.mxu1 %v22209_v22  ;;  %21352 = vmatprep.mubr.bf16.mxu1 %v6108_v46 }
 0x9da   :  { %21342 = vmatprep.subr.bf16.mxu1 %v22210_v54 }
 0x9dd   :  { %21343 = vmatpush3.bf16.msra.mxu1 %v22210_v54 }
 0x9de   :  { %21344 = vmatprep.subr.bf16.mxu1 %v22211_v14 }
 0x9df   :  { %6875 = vmatmul.mubr.bf16.gmra.mrb[192].mxu0 %v5965_v11 }
 0x9e0   :  { %21360 = vmatprep.mubr.msk.bf16.mxu0 %vm23641_vm2, %v23640_v40 }
 0x9e1   :  { %21345 = vmatpush3.bf16.msra.mxu1 %v22211_v14 }
 0x9e2   :  { %21346 = vmatprep.subr.bf16.mxu1 %v22212_v20 }
 0x9e5   :  { %21347 = vmatpush3.bf16.msra.mxu1 %v22212_v20 }
 0x9e6   :  { %21348 = vmatprep.subr.bf16.mxu1 %v22213_v24 }
 0x9e9   :  { %21349 = vmatpush3.bf16.msra.mxu1 %v22213_v24 }
 0x9ea   :  { %21350 = vmatprep.subr.bf16.mxu1 %v22214_v45 }
 0x9ed   :  { %21351 = vmatpush3.bf16.msra.mxu1 %v22214_v45 }
 0x9ee   :  { %21380 = vmatprep.subr.bf16.mxu1 %v23640_v40 }
 0x9f0   :  { %21353 = vmatmul.mubr.bf16.vlgmr.msra.gmra.mrb[140].mxu1 %v6109_v37 }
 0x9f1   :  { %21384 = vmatprep.mubr.msk.bf16.mxu1 %vm23641_vm2, %v23640_v40 }
 0xa83   :  { %v20143_v15 = vpop.f32.mrb[124].mxu1 }
 0xa84   :  { %v20144_v32 = vpop.f32.mrb[125].mxu1 }
 0xa85   :  { %v20145_v50 = vadd.f32 %v20144_v32, %v20143_v15  ;;  %v20146_v55 = vpop.f32.mrb[126].mxu1 }
 0xa86   :  { %v20147_v58 = vpop.f32.mrb[127].mxu1 }
 0xa87   :  { %v20148_v28 = vadd.f32 %v20147_v58, %v20146_v55  ;;  %v6722_v56 = vadd.f32 %v20145_v50, %v6254_v34 }
 0xa89   :  { %v6725_v1 = vadd.f32 %v20148_v28, %v6254_v34 }
 0xa8a   :  { %v20171_v38 = vpop.f32.mrb[180].mxu0 }
 0xa8b   :  { %v20149_v51 = vpop.f32.mrb[128].mxu1  ;;  %v20172_v52 = vpop.f32.mrb[181].mxu0 }
 0xa8c   :  { %v20173_v59 = vadd.f32 %v20172_v52, %v20171_v38  ;;  %v20150_v60 = vpop.f32.mrb[129].mxu1  ;;  %v20174_v61 = vpop.f32.mrb[182].mxu0 }
 0xa8d   :  { %v20151_v62 = vadd.f32 %v20150_v60, %v20149_v51  ;;  %v20152_v63 = vpop.f32.mrb[130].mxu1  ;;  %v20175_v0 = vpop.f32.mrb[183].mxu0 }
 0xa8e   :  { %v6771_v35 = vadd.f32 %v20173_v59, %v6722_v56  ;;  %v20176_v33 = vadd.f32 %v20175_v0, %v20174_v61  ;;  %v20153_v44 = vpop.f32.mrb[131].mxu1 }
 0xa8f   :  { %v20154_v2 = vadd.f32 %v20153_v44, %v20152_v63  ;;  %v6730_v31 = vadd.f32 %v20151_v62, %v6254_v34 }
 0xa90   :  { %v6774_v3 = vadd.f32 %v20176_v33, %v6725_v1 }
 0xa91   :  { %v6733_v11 = vadd.f32 %v20154_v2, %v6254_v34 }
 0xa92   :  { %v20177_v5 = vpop.f32.mrb[184].mxu0 }
 0xa93   :  { %v20178_v41 = vpop.f32.mrb[185].mxu0 }
 0xa94   :  { %v20179_v43 = vadd.f32 %v20178_v41, %v20177_v5  ;;  %v20180_v9 = vpop.f32.mrb[186].mxu0 }
 0xa95   :  { %v20181_v10 = vpop.f32.mrb[187].mxu0 }
 0xa96   :  { %v6779_v12 = vadd.f32 %v20179_v43, %v6730_v31  ;;  %v20182_v13 = vadd.f32 %v20181_v10, %v20180_v9  ;;  %v18424_v43 = vld [vmem:[%s23717_s6 + $0x1c] sm:$0xf]  ;;  %v22216_v9 = vld [vmem:[%s26338_s0] sm:$0xff]   ;;  %v22217_v10 = vld [vmem:[%s26338_s0 + $0x48] sm:$0xff]  }
 0xa98   :  { %v6782_v16 = vadd.f32 %v20182_v13, %v6733_v11  ;;  %v22218_v11 = vld [vmem:[%s26338_s0 + $0x8] sm:$0xff]   ;;  %v18418_v13 = vld [vmem:[%s23717_s6 + $0x10] sm:$0xf] }
 0xaa3   :  { %v20199_v17 = vpop.f32.mrb[132].mxu1 }
 0xaa4   :  { %v20200_v18 = vpop.f32.mrb[133].mxu1 }
 0xaa5   :  { %v20201_v21 = vadd.f32 %v20200_v18, %v20199_v17  ;;  %v20202_v23 = vpop.f32.mrb[134].mxu1  ;;  %v22224_v17 = vld [vmem:[%s26338_s0 + $0x58] sm:$0xff]  }
 0xaa6   :  { %v20203_v25 = vpop.f32.mrb[135].mxu1  ;;  %v22226_v18 = vld [vmem:[%s26338_s0 + $0x18] sm:$0xff]  }
 0xaa7   :  { %v6820_v26 = vadd.f32 %v20201_v21, %v6771_v35  ;;  %v20204_v27 = vadd.f32 %v20203_v25, %v20202_v23  ;;  %v22228_v21 = vld [vmem:[%s26338_s0 + $0x60] sm:$0xff]   ;;  %v18422_v23 = vld [vmem:[%s23717_s6 + $0x18] sm:$0xf] }
 0xaa8   :  { %v22230_v25 = vld [vmem:[%s26338_s0 + $0x20] sm:$0xff]  }
 0xaa9   :  { %v6823_v29 = vadd.f32 %v20204_v27, %v6774_v3  ;;  %v22219_v27 = vld [vmem:[%s26338_s0 + $0xc0] sm:$0xff]  }
 0xaaa   :  { %v20227_v30 = vpop.f32.mrb[188].mxu0 }
 0xaab   :  { %v20205_v36 = vpop.f32.mrb[136].mxu1  ;;  %v20228_v37 = vpop.f32.mrb[189].mxu0 }
 0xaac   :  { %v20229_v42 = vadd.f32 %v20228_v37, %v20227_v30  ;;  %v20206_v46 = vpop.f32.mrb[137].mxu1  ;;  %v20230_v47 = vpop.f32.mrb[190].mxu0  ;;  %v18426_v30 = vld [vmem:[%s23717_s6 + $0x20] sm:$0xf]  ;;  %v22223_v37 = vld [vmem:[%s26338_s0 + $0xc8] sm:$0xff]  }
 0xaad   :  { %v20207_v48 = vadd.f32 %v20206_v46, %v20205_v36  ;;  %v20208_v19 = vpop.f32.mrb[138].mxu1  ;;  %v20231_v22 = vpop.f32.mrb[191].mxu0  ;;  %v22221_v36 = vld [vmem:[%s26338_s0 + $0x80] sm:$0xff]   ;;  %v22227_v46 = vld [vmem:[%s26338_s0 + $0xd0] sm:$0xff]  }
 0xaae   :  { %v20232_v54 = vadd.f32 %v20231_v22, %v20230_v47  ;;  %v20209_v14 = vpop.f32.mrb[139].mxu1  ;;  %v6869_v20 = vadd.f32 %v20229_v42, %v6820_v26  ;;  %v22232_v26 = vld [vmem:[%s26338_s0 + $0x68] sm:$0xff]   ;;  %v22229_v47 = vld [vmem:[%s26338_s0 + $0x90] sm:$0xff]   ;;  %v22235_v22 = vld [vmem:[%s26338_s0 + $0xe0] sm:$0xff]  }
 0xaaf   :  { %v6828_v24 = vadd.f32 %v20207_v48, %v6779_v12  ;;  %v20210_v45 = vadd.f32 %v20209_v14, %v20208_v19  ;;  %v22220_v12 = vld [vmem:[%s26338_s0 + $0x50] sm:$0xff]   ;;  %v22225_v42 = vld [vmem:[%s26338_s0 + $0x88] sm:$0xff]   ;;  %v22231_v48 = vld [vmem:[%s26338_s0 + $0xd8] sm:$0xff]  }
 0xab0   :  { %v6872_v15 = vadd.f32 %v20232_v54, %v6823_v29  ;;  %v22234_v29 = vld [vmem:[%s26338_s0 + $0x28] sm:$0xff]   ;;  %v22233_v19 = vld [vmem:[%s26338_s0 + $0x98] sm:$0xff]   ;;  %v22236_v54 = vld [vmem:[%s26338_s0 + $0x70] sm:$0xff]  }
 0xab1   :  { %v6831_v32 = vadd.f32 %v20210_v45, %v6782_v16  ;;  %v22222_v16 = vld [vmem:[%s26338_s0 + $0x10] sm:$0xff]   ;;  %v22237_v14 = vld [vmem:[%s26338_s0 + $0xa0] sm:$0xff]   ;;  %v22240_v45 = vld [vmem:[%s26338_s0 + $0x78] sm:$0xff]  }
 0xab2   :  { %v20233_v50 = vpop.f32.mrb[192].mxu0 }
 0xab3   :  { %v20234_v55 = vpop.f32.mrb[193].mxu0 }
 0xab4   :  { %v20235_v58 = vadd.f32 %v20234_v55, %v20233_v50  ;;  %v20236_v28 = vpop.f32.mrb[194].mxu0  ;;  %v22243_v50 = vld [vmem:[%s26338_s0 + $0xf0] sm:$0xff]  }
 0xab5   :  { %v20237_v34 = vpop.f32.mrb[195].mxu0  ;;  %v22244_v55 = vld [vmem:[%s26338_s0 + $0xb0] sm:$0xff]  }
 0xab6   :  { %v20238_v38 = vadd.f32 %v20237_v34, %v20236_v28  ;;  %v6877_v51 = vadd.f32 %v20235_v58, %v6828_v24  ;;  %v22239_v24 = vld [vmem:[%s26338_s0 + $0xe8] sm:$0xff]   ;;  %v22245_v58 = vld [vmem:[%s26338_s0 + $0x140] sm:$0xff]   ;;  %v22247_v28 = vld [vmem:[%s26338_s0 + $0xf8] sm:$0xff]  }
 0xab7   :  { %v22248_v34 = vld [vmem:[%s26338_s0 + $0xb8] sm:$0xff]  }
 0xab8   :  { %v6880_v52 = vadd.f32 %v20238_v38, %v6831_v32  ;;  %v22242_v32 = vld [vmem:[%s26338_s0 + $0x38] sm:$0xff]   ;;  %v22251_v38 = vld [vmem:[%s26338_s0 + $0x1c0] sm:$0xff]  }
 0xac3   :  { %v21354_v56 = vpop.f32.mrb[140].mxu1 }
 0xac4   :  { %v6926_v59 = vadd.f32 %v21354_v56, %v6877_v51  ;;  %v6917_v60 = vpop.f32.mrb[141].mxu1 }
 0xac5   :  { %v6918_v61 = vadd.f32 %v6917_v60, %v6869_v20  ;;  %v21355_v62 = vpop.f32.mrb[142].mxu1  ;;  %v22238_v20 = vld [vmem:[%s26338_s0 + $0x30] sm:$0xff]  }
 0xac6   :  { %v6934_v63 = vadd.f32 %v6926_v59, %v3984_v39  ;;  %v6929_v0 = vadd.f32 %v21355_v62, %v6880_v52  ;;  %v6920_v1 = vpop.f32.mrb[143].mxu1 }
 0xac7   :  { %v6932_v35 = vadd.f32 %v6918_v61, %v3982_v49  ;;  %v6921_v33 = vadd.f32 %v6920_v1, %v6872_v15  ;;  %v18420_v49 = vld [vmem:[%s23717_s6 + $0x14] sm:$0xf]  ;;  %v22241_v15 = vld [vmem:[%s26338_s0 + $0xa8] sm:$0xff]  }
 0xac8   :  { %v6935_v44 = vadd.f32 %v6929_v0, %v3985_v53  ;;  %v6938_v3 = vmax.f32 %v6934_v63, 0.0  ;;  %v22215_v53 = vld [vmem:[%s26338_s0 + $0x40] sm:$0xff]  }
 0xac9   :  { %v6933_v2 = vadd.f32 %v6921_v33, %v3983_v57  ;;  %v6936_v41 = vmax.f32 %v6932_v35, 0.0  ;;  %v18414_v57 = vld [vmem:[%s23717_s6 + $0x8] sm:$0xf]  ;;  %s26351_s6 = sld [smem:[#allocation17_spill]] }
 0xaca   :  { %v6939_v5 = vmax.f32 %v6935_v44, 0.0 }
 0xacb   :  { %v6937_v31 = vmax.f32 %v6933_v2, 0.0  ;;  %v22246_v2 = vld [vmem:[%s26338_s0 + $0x100] sm:$0xff]  }
 0xacc   :  { %v24810_v7 = vpack.c.bf16 %v6939_v5, %v6938_v3 }
 0xacd   :  { %v24812_v39 = vpack.c.bf16 %v6937_v31, %v6936_v41 }
 0xacf   :  { %21357 = vmatpush3.bf16.msra.mxu0 %v24812_v39  ;;  %21381 = vmatpush3.bf16.msra.mxu1 %v24812_v39 }
 0xad0   :  { %21358 = vmatprep.subr.bf16.mxu0 %v23640_v40  ;;  %21382 = vmatprep.subr.bf16.mxu1 %v23640_v40 }
 0xad3   :  { %21359 = vmatpush3.bf16.msra.mxu0 %v24810_v7  ;;  %21383 = vmatpush3.bf16.msra.mxu1 %v24810_v7 }
 0xad4   :  { %21364 = vmatprep.subr.bf16.mxu0 %v23640_v40  ;;  %21396 = vmatprep.subr.bf16.mxu1 %v23640_v40 }
 0xad6   :  { %21361 = vmatmul.mubr.msk.bf16.vlgmr.msra.gmra.mrb[196].mxu0 %vm1047_vm1, %v6942_v4  ;;  %21385 = vmatmul.mubr.msk.bf16.vlgmr.msra.gmra.mrb[144].mxu1 %vm1047_vm1, %v18416_v6  ;;  %v22249_v4 = vld [vmem:[%s26338_s0 + $0x148] sm:$0xff]  }
 0xad7   :  { %21365 = vmatpush3.bf16.msra.mxu0 %v24812_v39  ;;  %21397 = vmatpush3.bf16.msra.mxu1 %v24812_v39 }
 0xad8   :  { %21366 = vmatprep.subr.bf16.mxu0 %v23640_v40  ;;  %21398 = vmatprep.subr.bf16.mxu1 %v23640_v40 }
 0xad9   :  { %21368 = vmatprep.mubr.msk.bf16.mxu0 %vm23641_vm2, %v23640_v40  ;;  %21400 = vmatprep.mubr.msk.bf16.mxu1 %vm23641_vm2, %v23640_v40 }
 0xadb   :  { %21367 = vmatpush3.bf16.msra.mxu0 %v24810_v7  ;;  %21399 = vmatpush3.bf16.msra.mxu1 %v24810_v7 }
 0xadc   :  { %21372 = vmatprep.subr.bf16.mxu0 %v23640_v40  ;;  %21412 = vmatprep.subr.bf16.mxu1 %v23640_v40 }
 0xade   :  { %21369 = vmatmul.mubr.msk.bf16.vlgmr.msra.gmra.mrb[200].mxu0 %vm1047_vm1, %v18412_v8  ;;  %21401 = vmatmul.mubr.msk.bf16.vlgmr.msra.gmra.mrb[148].mxu1 %vm1047_vm1, %v18420_v49 }
 0xadf   :  { %21373 = vmatpush3.bf16.msra.mxu0 %v24812_v39  ;;  %21413 = vmatpush3.bf16.msra.mxu1 %v24812_v39 }
 0xae0   :  { %21374 = vmatprep.subr.bf16.mxu0 %v23640_v40  ;;  %21414 = vmatprep.subr.bf16.mxu1 %v23640_v40 }
 0xae1   :  { %21376 = vmatprep.mubr.msk.bf16.mxu0 %vm23641_vm2, %v23640_v40  ;;  %21416 = vmatprep.mubr.msk.bf16.mxu1 %vm23641_vm2, %v23640_v40 }
 0xae3   :  { %21375 = vmatpush3.bf16.msra.mxu0 %v24810_v7  ;;  %21415 = vmatpush3.bf16.msra.mxu1 %v24810_v7 }
 0xae4   :  { %21388 = vmatprep.subr.bf16.mxu0 %v23640_v40  ;;  %20276 = vmatprep.subr.bf16.mxu1 %v22215_v53  ;;  %v22250_v53 = vld [vmem:[%s26338_s0 + $0x108] sm:$0xff]  }
 0xae6   :  { %21377 = vmatmul.mubr.msk.bf16.vlgmr.msra.gmra.mrb[204].mxu0 %vm1047_vm1, %v18414_v57  ;;  %21417 = vmatmul.mubr.msk.bf16.vlgmr.msra.gmra.mrb[152].mxu1 %vm1047_vm1, %v18424_v43  ;;  %v22252_v57 = vld [vmem:[%s26338_s0 + $0x150] sm:$0xff]  }
 0xae7   :  { %21389 = vmatpush3.bf16.msra.mxu0 %v24812_v39  ;;  %21392 = vmatprep.mubr.msk.bf16.mxu0 %vm23641_vm2, %v23640_v40 }
 0xae8   :  { %21390 = vmatprep.subr.bf16.mxu0 %v23640_v40  ;;  %20277 = vmatpush3.bf16.msra.mxu1 %v22216_v9  ;;  %v22253_v9 = vld [vmem:[%s26338_s0 + $0x180] sm:$0xff]  }
 0xae9   :  { %20278 = vmatprep.subr.bf16.mxu1 %v22217_v10 }
 0xaeb   :  { %21391 = vmatpush3.bf16.msra.mxu0 %v24810_v7 }
 0xaec   :  { %21404 = vmatprep.subr.bf16.mxu0 %v23640_v40  ;;  %20279 = vmatpush3.bf16.msra.mxu1 %v22218_v11 }
 0xaed   :  { %20280 = vmatprep.subr.bf16.mxu1 %v22220_v12  ;;  %v22254_v12 = vld [vmem:[%s26338_s0 + $0x110] sm:$0xff]  }
 0xaee   :  { %21393 = vmatmul.mubr.msk.bf16.vlgmr.msra.gmra.mrb[208].mxu0 %vm1047_vm1, %v18418_v13  ;;  %v22255_v13 = vld [vmem:[%s26338_s0 + $0x1c8] sm:$0xff]  }
 0xaef   :  { %21405 = vmatpush3.bf16.msra.mxu0 %v24812_v39  ;;  %21408 = vmatprep.mubr.msk.bf16.mxu0 %vm23641_vm2, %v23640_v40 }
 0xaf0   :  { %21406 = vmatprep.subr.bf16.mxu0 %v23640_v40  ;;  %20281 = vmatpush3.bf16.msra.mxu1 %v22222_v16 }
 0xaf1   :  { %20282 = vmatprep.subr.bf16.mxu1 %v22224_v17 }
 0xaf3   :  { %21407 = vmatpush3.bf16.msra.mxu0 %v24810_v7 }
 0xaf4   :  { %21420 = vmatprep.subr.bf16.mxu0 %v23640_v40  ;;  %20283 = vmatpush3.bf16.msra.mxu1 %v22226_v18 }
 0xaf5   :  { %20284 = vmatprep.subr.bf16.mxu1 %v22228_v21  ;;  %v22256_v21 = vld [vmem:[%s26338_s0 + $0x158] sm:$0xff]  }
 0xaf6   :  { %21409 = vmatmul.mubr.msk.bf16.vlgmr.msra.gmra.mrb[212].mxu0 %vm1047_vm1, %v18422_v23 }
 0xaf7   :  { %21421 = vmatpush3.bf16.msra.mxu0 %v24812_v39  ;;  %21424 = vmatprep.mubr.msk.bf16.mxu0 %vm23641_vm2, %v23640_v40 }
 0xaf8   :  { %21422 = vmatprep.subr.bf16.mxu0 %v23640_v40  ;;  %20285 = vmatpush3.bf16.msra.mxu1 %v22230_v25 }
 0xaf9   :  { %20286 = vmatprep.subr.bf16.mxu1 %v22232_v26 }
 0xafb   :  { %21423 = vmatpush3.bf16.msra.mxu0 %v24810_v7 }
 0xafc   :  { %20298 = vmatprep.subr.bf16.mxu0 %v22219_v27  ;;  %20287 = vmatpush3.bf16.msra.mxu1 %v22234_v29  ;;  %v22257_v29 = vld [vmem:[%s26338_s0 + $0x188] sm:$0xff]  }
 0xafd   :  { %20288 = vmatprep.subr.bf16.mxu1 %v22236_v54 }
 0xafe   :  { %21425 = vmatmul.mubr.msk.bf16.vlgmr.msra.gmra.mrb[216].mxu0 %vm1047_vm1, %v18426_v30  ;;  %v22258_v30 = vld [vmem:[%s26338_s0 + $0x118] sm:$0xff]  }
 0xaff   :  { %20299 = vmatpush3.bf16.msra.mxu0 %v22221_v36  ;;  %v22259_v36 = vld [vmem:[%s26338_s0 + $0x1d0] sm:$0xff]  }
 0xb00   :  { %20300 = vmatprep.subr.bf16.mxu0 %v22223_v37  ;;  %20289 = vmatpush3.bf16.msra.mxu1 %v22238_v20  ;;  %v22260_v37 = vld [vmem:[%s26338_s0 + $0x160] sm:$0xff]   ;;  %v22265_v20 = vld [vmem:[%s26338_s0 + $0x198] sm:$0xff]  }
 0xb01   :  { %20290 = vmatprep.subr.bf16.mxu1 %v22240_v45  ;;  %v22267_v45 = vld [vmem:[%s26338_s0 + $0x1e0] sm:$0xff]  }
 0xb03   :  { %20301 = vmatpush3.bf16.msra.mxu0 %v22225_v42  ;;  %v22261_v42 = vld [vmem:[%s26338_s0 + $0x190] sm:$0xff]  }
 0xb04   :  { %20302 = vmatprep.subr.bf16.mxu0 %v22227_v46  ;;  %20291 = vmatpush3.bf16.msra.mxu1 %v22242_v32  ;;  %v22269_v32 = vld [vmem:[%s26338_s0 + $0x1a0] sm:$0xff]  }
 0xb05   :  { %20320 = vmatprep.subr.bf16.mxu1 %v22245_v58  ;;  %v22271_v58 = vld [vmem:[%s26338_s0 + $0x1e8] sm:$0xff]  }
 0xb07   :  { %20303 = vmatpush3.bf16.msra.mxu0 %v22229_v47  ;;  %v22262_v47 = vld [vmem:[%s26338_s0 + $0x120] sm:$0xff]  }
 0xb08   :  { %20304 = vmatprep.subr.bf16.mxu0 %v22231_v48  ;;  %v22263_v48 = vld [vmem:[%s26338_s0 + $0x1d8] sm:$0xff]  }
 0xb0b   :  { %20305 = vmatpush3.bf16.msra.mxu0 %v22233_v19 }
 0xb0c   :  { %20306 = vmatprep.subr.bf16.mxu0 %v22235_v22  ;;  %v22264_v22 = vld [vmem:[%s26338_s0 + $0x168] sm:$0xff]  }
 0xb0f   :  { %20307 = vmatpush3.bf16.msra.mxu0 %v22237_v14 }
 0xb10   :  { %20308 = vmatprep.subr.bf16.mxu0 %v22239_v24  ;;  %v22266_v24 = vld [vmem:[%s26338_s0 + $0x128] sm:$0xff]  }
 0xb13   :  { %20309 = vmatpush3.bf16.msra.mxu0 %v22241_v15  ;;  %v22268_v15 = vld [vmem:[%s26338_s0 + $0x170] sm:$0xff]  }
 0xb14   :  { %20310 = vmatprep.subr.bf16.mxu0 %v22243_v50 }
 0xb17   :  { %20311 = vmatpush3.bf16.msra.mxu0 %v22244_v55  ;;  %v22270_v55 = vld [vmem:[%s26338_s0 + $0x130] sm:$0xff]  }
 0xb18   :  { %20312 = vmatprep.subr.bf16.mxu0 %v22247_v28 }
 0xb1b   :  { %20313 = vmatpush3.bf16.msra.mxu0 %v22248_v34  ;;  %v22272_v34 = vld [vmem:[%s26338_s0 + $0x178] sm:$0xff]  }
 0xb1c   :  { %20342 = vmatprep.subr.bf16.mxu0 %v22251_v38 }
 0xba9   :  { %v6980_v51 = vpop.f32.mrb[196].mxu0  ;;  %v7118_v52 = vpop.f32.mrb[144].mxu1 }
 0xbaa   :  { %v21362_v56 = vpop.f32.mrb[197].mxu0  ;;  %v7124_v59 = vpack.c.bf16 %v7118_v52, %v7118_v52  ;;  %v21386_v60 = vpop.f32.mrb[145].mxu1  ;;  %v6986_v41 = vpack.c.bf16 %v6980_v51, %v6980_v51  ;;  %v22273_v52 = vld [vmem:[%s26338_s0 + $0x1a8] sm:$0xff]  }
 0xbab   :  { %v6983_v61 = vpop.f32.mrb[198].mxu0  ;;  %v7121_v62 = vpop.f32.mrb[146].mxu1  ;;  %v22274_v56 = vld [vmem:[%s26338_s0 + $0x138] sm:$0xff]  }
 0xbac   :  { %v21363_v63 = vpop.f32.mrb[199].mxu0  ;;  %8004 = vmatprep.mubr.bf16.mxu0 %v7124_v59  ;;  %v21387_v0 = vpop.f32.mrb[147].mxu1  ;;  %v22275_v59 = vld [vmem:[%s26338_s0 + $0x1f0] sm:$0xff]  }
 0xbad   :  { %v22276_v61 = vld [vmem:[%s26338_s0 + $0x1b0] sm:$0xff]   ;;  %v22277_v63 = vld [vmem:[%s26338_s0 + $0x200] sm:$0xff]   ;;  %v22278_v0 = vld [vmem:[%s26338_s0 + $0x1f8] sm:$0xff]  }
 0xbb1   :  { %v7026_v1 = vpop.f32.mrb[200].mxu0  ;;  %v7210_v35 = vpop.f32.mrb[148].mxu1 }
 0xbb2   :  { %v7032_v33 = vpack.c.bf16 %v7026_v1, %v7026_v1  ;;  %v21370_v44 = vpop.f32.mrb[201].mxu0  ;;  %v7216_v3 = vpack.c.bf16 %v7210_v35, %v7210_v35  ;;  %v21402_v5 = vpop.f32.mrb[149].mxu1 }
 0xbb3   :  { %v7029_v31 = vpop.f32.mrb[202].mxu0  ;;  %v7213_v6 = vpop.f32.mrb[150].mxu1  ;;  %v22279_v44 = vld [vmem:[%s26338_s0 + $0x1b8] sm:$0xff]   ;;  %v22281_v5 = vld [vmem:[%s26338_s0 + $0x210] sm:$0xff]  }
 0xbb4   :  { %7964 = vmatprep.mubr.bf16.mxu1 %v7032_v33  ;;  %v21371_v8 = vpop.f32.mrb[203].mxu0  ;;  %v21403_v49 = vpop.f32.mrb[151].mxu1  ;;  %v22283_v31 = vld [vmem:[%s26338_s0 + $0x220] sm:$0xff]   ;;  %v22285_v6 = vld [vmem:[%s26338_s0 + $0x230] sm:$0xff]  }
 0xbb5   :  { %7965 = vmatmul.mubr.bf16.vlgmr.msra.gmra.mrb[156].mxu1 %v6986_v41  ;;  %v22282_v41 = vld [vmem:[%s26338_s0 + $0x218] sm:$0xff]  }
 0xbb6   :  { %20321 = vmatpush3.bf16.msra.mxu1 %v22246_v2  ;;  %8044 = vmatprep.mubr.bf16.mxu1 %v7216_v3  ;;  %v22280_v2 = vld [vmem:[%s26338_s0 + $0x208] sm:$0xff]   ;;  %v22286_v8 = vld [vmem:[%s26338_s0 + $0x238] sm:$0xff]  }
 0xbb7   :  { %20322 = vmatprep.subr.bf16.mxu1 %v22249_v4  ;;  %v22284_v4 = vld [vmem:[%s26338_s0 + $0x228] sm:$0xff]  }
 0xbb9   :  { %v7072_v43 = vpop.f32.mrb[204].mxu0  ;;  %v7302_v10 = vpop.f32.mrb[152].mxu1 }
 0xbba   :  { %v7078_v11 = vpack.c.bf16 %v7072_v43, %v7072_v43  ;;  %20323 = vmatpush3.bf16.msra.mxu1 %v22250_v53  ;;  %v21378_v16 = vpop.f32.mrb[205].mxu0  ;;  %v7308_v17 = vpack.c.bf16 %v7302_v10, %v7302_v10  ;;  %v21418_v18 = vpop.f32.mrb[153].mxu1 }
 0xbbb   :  { %20324 = vmatprep.subr.bf16.mxu1 %v22252_v57  ;;  %v7075_v23 = vpop.f32.mrb[206].mxu0  ;;  %v7305_v25 = vpop.f32.mrb[154].mxu1 }
 0xbbc   :  { %8005 = vmatmul.mubr.bf16.vlgmr.msra.gmra.mrb[220].mxu0 %v7078_v11  ;;  %v21379_v26 = vpop.f32.mrb[207].mxu0  ;;  %v21419_v27 = vpop.f32.mrb[155].mxu1  ;;  %v7499_v11 = vld [vmem:[%s23672_s21 + $0x4] ss:$0 sm:$0xff] }
 0xbbd   :  { %20343 = vmatpush3.bf16.msra.mxu0 %v22253_v9  ;;  %8084 = vmatprep.mubr.bf16.mxu0 %v7308_v17 }
 0xbbe   :  { %20325 = vmatpush3.bf16.msra.mxu1 %v22254_v12  ;;  %20344 = vmatprep.subr.bf16.mxu0 %v22255_v13 }
 0xbbf   :  { %20326 = vmatprep.subr.bf16.mxu1 %v22256_v21 }
 0xbc1   :  { %20345 = vmatpush3.bf16.msra.mxu0 %v22257_v29  ;;  %v7164_v46 = vpop.f32.mrb[208].mxu0 }
 0xbc2   :  { %20327 = vmatpush3.bf16.msra.mxu1 %v22258_v30  ;;  %20346 = vmatprep.subr.bf16.mxu0 %v22259_v36  ;;  %v21394_v19 = vpop.f32.mrb[209].mxu0  ;;  %v7170_v60 = vpack.c.bf16 %v7164_v46, %v7164_v46 }
 0xbc3   :  { %20328 = vmatprep.subr.bf16.mxu1 %v22260_v37  ;;  %v7167_v54 = vpop.f32.mrb[210].mxu0 }
 0xbc4   :  { %v21395_v14 = vpop.f32.mrb[211].mxu0 }
 0xbc5   :  { %20347 = vmatpush3.bf16.msra.mxu0 %v22261_v42 }
 0xbc6   :  { %20329 = vmatpush3.bf16.msra.mxu1 %v22262_v47  ;;  %20348 = vmatprep.subr.bf16.mxu0 %v22263_v48 }
 0xbc7   :  { %20330 = vmatprep.subr.bf16.mxu1 %v22264_v22 }
 0xbc9   :  { %20349 = vmatpush3.bf16.msra.mxu0 %v22265_v20  ;;  %v7256_v50 = vpop.f32.mrb[212].mxu0 }
 0xbca   :  { %20331 = vmatpush3.bf16.msra.mxu1 %v22266_v24  ;;  %20350 = vmatprep.subr.bf16.mxu0 %v22267_v45  ;;  %v21410_v28 = vpop.f32.mrb[213].mxu0  ;;  %v7262_v3 = vpack.c.bf16 %v7256_v50, %v7256_v50  ;;  %v8134_v50 = vld [vmem:[%s26339_s5] sm:$0xf] }
 0xbcb   :  { %20332 = vmatprep.subr.bf16.mxu1 %v22268_v15  ;;  %v7259_v38 = vpop.f32.mrb[214].mxu0  ;;  %v18511_v28 = vld [vmem:[%s26339_s5 + $0x18] sm:$0xf] }
 0xbcc   :  { %v21411_v51 = vpop.f32.mrb[215].mxu0  ;;  %v18503_v38 = vld [vmem:[%s26339_s5 + $0x8] sm:$0xf] }
 0xbcd   :  { %20351 = vmatpush3.bf16.msra.mxu0 %v22269_v32  ;;  %v18515_v51 = vld [vmem:[%s26339_s5 + $0x20] sm:$0xf] }
 0xbce   :  { %20333 = vmatpush3.bf16.msra.mxu1 %v22270_v55  ;;  %20352 = vmatprep.subr.bf16.mxu0 %v22271_v58  ;;  %v18507_v55 = vld [vmem:[%s26339_s5 + $0x10] sm:$0xf]  ;;  %v18501_v58 = vld [vmem:[%s26339_s5 + $0x4] sm:$0xf] }
 0xbcf   :  { %20334 = vmatprep.subr.bf16.mxu1 %v22272_v34  ;;  %v22296_v34 = vld [vmem:[%s26340_s9 + $0xc0] sm:$0xff]  }
 0xbd1   :  { %20353 = vmatpush3.bf16.msra.mxu0 %v22273_v52  ;;  %v7348_v62 = vpop.f32.mrb[216].mxu0  ;;  %v22298_v52 = vld [vmem:[%s26340_s9 + $0x80] sm:$0xff]  }
 0xbd2   :  { %20335 = vmatpush3.bf16.msra.mxu1 %v22274_v56  ;;  %20354 = vmatprep.subr.bf16.mxu0 %v22275_v59  ;;  %v21426_v1 = vpop.f32.mrb[217].mxu0  ;;  %v7354_v49 = vpack.c.bf16 %v7348_v62, %v7348_v62  ;;  %v22300_v56 = vld [vmem:[%s26340_s9 + $0xc8] sm:$0xff]   ;;  %v22287_v62 = vld [vmem:[%s26340_s9 + $0x40] sm:$0xff]  }
 0xbd3   :  { %21428 = vmatprep.subr.bf16.mxu1 %v23640_v40  ;;  %v7351_v35 = vpop.f32.mrb[218].mxu0  ;;  %v22302_v59 = vld [vmem:[%s26340_s9 + $0x88] sm:$0xff]  }
 0xbd4   :  { %v21427_v33 = vpop.f32.mrb[219].mxu0  ;;  %v22289_v1 = vld [vmem:[%s26340_s9 + $0x48] sm:$0xff]  }
 0xbd5   :  { %8045 = vmatmul.mubr.bf16.vlgmr.msra.gmra.mrb[160].mxu1 %v7170_v60  ;;  %20355 = vmatpush3.bf16.msra.mxu0 %v22276_v61  ;;  %v18505_v60 = vld [vmem:[%s26339_s5 + $0xc] sm:$0xf]  ;;  %v18509_v61 = vld [vmem:[%s26339_s5 + $0x14] sm:$0xf] }
 0xbd6   :  { %21429 = vmatpush3.bf16.msra.mxu1 %v22277_v63  ;;  %20356 = vmatprep.subr.bf16.mxu0 %v22278_v0  ;;  %v18513_v63 = vld [vmem:[%s26339_s5 + $0x1c] sm:$0xf]  ;;  %v22288_v0 = vld [vmem:[%s26340_s9] sm:$0xff]   ;;  %v22290_v35 = vld [vmem:[%s26340_s9 + $0x8] sm:$0xff]  }
 0xbd7   :  { %21430 = vmatprep.subr.bf16.mxu1 %v23640_v40  ;;  %21444 = vmatprep.mubr.msk.bf16.mxu1 %vm23641_vm2, %v23640_v40  ;;  %v22291_v33 = vld [vmem:[%s26340_s9 + $0x50] sm:$0xff]  }
 0xbd9   :  { %20357 = vmatpush3.bf16.msra.mxu0 %v22279_v44  ;;  %v22292_v44 = vld [vmem:[%s26340_s9 + $0x10] sm:$0xff]  }
 0xbda   :  { %21431 = vmatpush3.bf16.msra.mxu1 %v22280_v2  ;;  %21448 = vmatprep.subr.bf16.mxu0 %v23640_v40  ;;  %v22293_v2 = vld [vmem:[%s26340_s9 + $0x58] sm:$0xff]  }
 0xbdb   :  { %21432 = vmatprep.subr.bf16.mxu1 %v23640_v40 }
 0xbdc   :  { %8085 = vmatmul.mubr.bf16.vlgmr.msra.gmra.mrb[224].mxu0 %v7262_v3  ;;  %v22294_v3 = vld [vmem:[%s26340_s9 + $0x18] sm:$0xff]  }
 0xbdd   :  { %21450 = vmatprep.mubr.msk.bf16.mxu0 %vm23641_vm2, %v23640_v40 }
 0xbde   :  { %21433 = vmatpush3.bf16.msra.mxu1 %v22281_v5  ;;  %v22295_v5 = vld [vmem:[%s26340_s9 + $0x60] sm:$0xff]  }
 0xbdf   :  { %21434 = vmatprep.subr.bf16.mxu1 %v23640_v40 }
 0xbe2   :  { %21435 = vmatpush3.bf16.msra.mxu1 %v22282_v41  ;;  %v22297_v41 = vld [vmem:[%s26340_s9 + $0x20] sm:$0xff]  }
 0xbe3   :  { %21436 = vmatprep.subr.bf16.mxu1 %v23640_v40 }
 0xbe6   :  { %21437 = vmatpush3.bf16.msra.mxu1 %v22283_v31  ;;  %v22299_v31 = vld [vmem:[%s26340_s9 + $0x68] sm:$0xff]  }
 0xbe7   :  { %21438 = vmatprep.subr.bf16.mxu1 %v23640_v40 }
 0xbea   :  { %21439 = vmatpush3.bf16.msra.mxu1 %v22284_v4  ;;  %v22301_v4 = vld [vmem:[%s26340_s9 + $0x28] sm:$0xff]  }
 0xbeb   :  { %21440 = vmatprep.subr.bf16.mxu1 %v23640_v40 }
 0xbee   :  { %21441 = vmatpush3.bf16.msra.mxu1 %v22285_v6  ;;  %v22303_v6 = vld [vmem:[%s26340_s9 + $0x70] sm:$0xff]  }
 0xbef   :  { %21442 = vmatprep.subr.bf16.mxu1 %v23640_v40 }
 0xbf2   :  { %21443 = vmatpush3.bf16.msra.mxu1 %v22286_v8  ;;  %v22304_v8 = vld [vmem:[%s26340_s9 + $0xd0] sm:$0xff]  }
 0xbf3   :  { %21472 = vmatprep.subr.bf16.mxu1 %v23640_v40 }
 0xbf5   :  { %21445 = vmatmul.mubr.bf16.vlgmr.msra.gmra.mrb[164].mxu1 %v7354_v49  ;;  %v22305_v49 = vld [vmem:[%s26340_s9 + $0x30] sm:$0xff]  }
 0xbf6   :  { %21474 = vmatprep.mubr.msk.bf16.mxu1 %vm23641_vm2, %v23640_v40 }
 0xc88   :  { %v20292_v53 = vpop.f32.mrb[156].mxu1 }
 0xc89   :  { %v20293_v57 = vpop.f32.mrb[157].mxu1 }
 0xc8a   :  { %v20294_v43 = vadd.f32 %v20293_v57, %v20292_v53  ;;  %v20295_v9 = vpop.f32.mrb[158].mxu1  ;;  %v22306_v53 = vld [vmem:[%s26340_s9 + $0x90] sm:$0xff]   ;;  %v22307_v57 = vld [vmem:[%s26340_s9 + $0x78] sm:$0xff]  }
 0xc8b   :  { %v20296_v10 = vpop.f32.mrb[159].mxu1  ;;  %v22309_v9 = vld [vmem:[%s26340_s9 + $0x38] sm:$0xff]  }
 0xc8c   :  { %v7967_v16 = vadd.f32 %v20294_v43, %v7499_v11  ;;  %v22308_v43 = vld [vmem:[%s26340_s9 + $0xd8] sm:$0xff]   ;;  %v22311_v11 = vld [vmem:[%s26340_s9 + $0xe0] sm:$0xff]  }
 0xc8d   :  { %v22310_v10 = vld [vmem:[%s26340_s9 + $0x98] sm:$0xff]  }
 0xc8f   :  { %v20314_v12 = vpop.f32.mrb[220].mxu0 }
 0xc90   :  { %v20315_v13 = vpop.f32.mrb[221].mxu0 }
 0xc91   :  { %v20316_v17 = vadd.f32 %v20315_v13, %v20314_v12  ;;  %v20317_v18 = vpop.f32.mrb[222].mxu0  ;;  %v22312_v12 = vld [vmem:[%s26340_s9 + $0x140] sm:$0xff]  }
 0xc92   :  { %v20318_v21 = vpop.f32.mrb[223].mxu0  ;;  %v22313_v13 = vld [vmem:[%s26340_s9 + $0xa0] sm:$0xff]   ;;  %v22319_v18 = vld [vmem:[%s26340_s9 + $0xf0] sm:$0xff]  }
 0xc93   :  { %v8007_v23 = vadd.f32 %v20316_v17, %v7967_v16  ;;  %v22315_v16 = vld [vmem:[%s26340_s9 + $0xe8] sm:$0xff]   ;;  %v22321_v21 = vld [vmem:[%s26340_s9 + $0xb0] sm:$0xff]  }
 0xc94   :  { %v22317_v17 = vld [vmem:[%s26340_s9 + $0xa8] sm:$0xff]  }
 0xca8   :  { %v20336_v25 = vpop.f32.mrb[160].mxu1 }
 0xca9   :  { %v20337_v26 = vpop.f32.mrb[161].mxu1 }
 0xcaa   :  { %v20338_v27 = vadd.f32 %v20337_v26, %v20336_v25  ;;  %v20339_v29 = vpop.f32.mrb[162].mxu1  ;;  %v22325_v25 = vld [vmem:[%s26340_s9 + $0xb8] sm:$0xff]   ;;  %v22328_v26 = vld [vmem:[%s26340_s9 + $0x1c0] sm:$0xff]  }
 0xcab   :  { %v20340_v30 = vpop.f32.mrb[163].mxu1 }
 0xcac   :  { %v8047_v36 = vadd.f32 %v20338_v27, %v8007_v23  ;;  %v22323_v23 = vld [vmem:[%s26340_s9 + $0xf8] sm:$0xff]  }
 0xcaf   :  { %v20358_v37 = vpop.f32.mrb[224].mxu0 }
 0xcb0   :  { %v20359_v42 = vpop.f32.mrb[225].mxu0 }
 0xcb1   :  { %v20360_v46 = vadd.f32 %v20359_v42, %v20358_v37  ;;  %v20361_v47 = vpop.f32.mrb[226].mxu0 }
 0xcb2   :  { %v20362_v48 = vpop.f32.mrb[227].mxu0 }
 0xcb3   :  { %v8087_v19 = vadd.f32 %v20360_v46, %v8047_v36 }
 0xcc8   :  { %v8126_v22 = vpop.f32.mrb[164].mxu1 }
 0xcc9   :  { %v8127_v54 = vadd.f32 %v8126_v22, %v8087_v19  ;;  %v21446_v14 = vpop.f32.mrb[165].mxu1 }
 0xcca   :  { %v8129_v20 = vpop.f32.mrb[166].mxu1  ;;  %v22314_v14 = vld [vmem:[%s26340_s9 + $0x100] sm:$0xff]  }
 0xccb   :  { %v8132_v24 = vmax.f32 %v8127_v54, 0.0  ;;  %v21447_v45 = vpop.f32.mrb[167].mxu1 }
 0xccd   :  { %v8133_v15 = vpack.c.bf16 %v8132_v24, %v8132_v24 }
 0xccf   :  { %v8141_v32 = vsel %vm8139_vm3, %v8133_v15, 0  ;;  %v22316_v15 = vld [vmem:[%s26340_s9 + $0x148] sm:$0xff]  }
 0xcd0   :  { %21449 = vmatpush3.bf16.msra.mxu0 %v8141_v32  ;;  %21473 = vmatpush3.bf16.msra.mxu1 %v8141_v32 }
 0xcd1   :  { %21454 = vmatprep.subr.bf16.mxu0 %v23640_v40  ;;  %21484 = vmatprep.subr.bf16.mxu1 %v23640_v40 }
 0xcd3   :  { %21451 = vmatmul.mubr.msk.bf16.vlgmr.msra.gmra.mrb[228].mxu0 %vm8135_vm4, %v8134_v50  ;;  %21475 = vmatmul.mubr.msk.bf16.vlgmr.msra.gmra.mrb[168].mxu1 %vm8135_vm4, %v18507_v55 }
 0xcd4   :  { %21455 = vmatpush3.bf16.msra.mxu0 %v8141_v32  ;;  %21485 = vmatpush3.bf16.msra.mxu1 %v8141_v32 }
 0xcd5   :  { %21456 = vmatprep.mubr.msk.bf16.mxu0 %vm23641_vm2, %v23640_v40  ;;  %21460 = vmatprep.subr.bf16.mxu0 %v23640_v40 }
 0xcd6   :  { %21486 = vmatprep.mubr.msk.bf16.mxu1 %vm23641_vm2, %v23640_v40  ;;  %21496 = vmatprep.subr.bf16.mxu1 %v23640_v40 }
 0xcdb   :  { %21457 = vmatmul.mubr.msk.bf16.vlgmr.msra.gmra.mrb[232].mxu0 %vm8135_vm4, %v18501_v58  ;;  %21487 = vmatmul.mubr.msk.bf16.vlgmr.msra.gmra.mrb[172].mxu1 %vm8135_vm4, %v18511_v28  ;;  %v22318_v58 = vld [vmem:[%s26340_s9 + $0x108] sm:$0xff]   ;;  %v22320_v28 = vld [vmem:[%s26340_s9 + $0x150] sm:$0xff]  }
 0xcdc   :  { %21461 = vmatpush3.bf16.msra.mxu0 %v8141_v32  ;;  %21497 = vmatpush3.bf16.msra.mxu1 %v8141_v32 }
 0xcdd   :  { %21462 = vmatprep.mubr.msk.bf16.mxu0 %vm23641_vm2, %v23640_v40  ;;  %21466 = vmatprep.subr.bf16.mxu0 %v23640_v40 }
 0xcde   :  { %21498 = vmatprep.mubr.msk.bf16.mxu1 %vm23641_vm2, %v23640_v40  ;;  %20413 = vmatprep.subr.bf16.mxu1 %v22296_v34 }
 0xce3   :  { %21463 = vmatmul.mubr.msk.bf16.vlgmr.msra.gmra.mrb[236].mxu0 %vm8135_vm4, %v18503_v38  ;;  %21499 = vmatmul.mubr.msk.bf16.vlgmr.msra.gmra.mrb[176].mxu1 %vm8135_vm4, %v18515_v51 }
 0xce4   :  { %21467 = vmatpush3.bf16.msra.mxu0 %v8141_v32  ;;  %21468 = vmatprep.mubr.msk.bf16.mxu0 %vm23641_vm2, %v23640_v40 }
 0xce5   :  { %21478 = vmatprep.subr.bf16.mxu0 %v23640_v40  ;;  %20414 = vmatpush3.bf16.msra.mxu1 %v22298_v52  ;;  %v22322_v52 = vld [vmem:[%s26340_s9 + $0x110] sm:$0xff]  }
 0xce6   :  { %20415 = vmatprep.subr.bf16.mxu1 %v22300_v56 }
 0xce9   :  { %20416 = vmatpush3.bf16.msra.mxu1 %v22302_v59 }
 0xcea   :  { %20417 = vmatprep.subr.bf16.mxu1 %v22304_v8  ;;  %v22333_v8 = vld [vmem:[%s26340_s9 + $0x128] sm:$0xff]  }
 0xceb   :  { %21469 = vmatmul.mubr.msk.bf16.vlgmr.msra.gmra.mrb[240].mxu0 %vm8135_vm4, %v18505_v60  ;;  %v22324_v60 = vld [vmem:[%s26340_s9 + $0x158] sm:$0xff]  }
 0xcec   :  { %21479 = vmatpush3.bf16.msra.mxu0 %v8141_v32  ;;  %21480 = vmatprep.mubr.msk.bf16.mxu0 %vm23641_vm2, %v23640_v40 }
 0xced   :  { %21490 = vmatprep.subr.bf16.mxu0 %v23640_v40  ;;  %20418 = vmatpush3.bf16.msra.mxu1 %v22306_v53  ;;  %v22335_v53 = vld [vmem:[%s26340_s9 + $0x170] sm:$0xff]  }
 0xcee   :  { %20419 = vmatprep.subr.bf16.mxu1 %v22308_v43 }
 0xcf1   :  { %20420 = vmatpush3.bf16.msra.mxu1 %v22310_v10  ;;  %v22338_v10 = vld [vmem:[%s26340_s9 + $0x190] sm:$0xff]  }
 0xcf2   :  { %20421 = vmatprep.subr.bf16.mxu1 %v22311_v11 }
 0xcf3   :  { %21481 = vmatmul.mubr.msk.bf16.vlgmr.msra.gmra.mrb[244].mxu0 %vm8135_vm4, %v18509_v61 }
 0xcf4   :  { %21491 = vmatpush3.bf16.msra.mxu0 %v8141_v32  ;;  %21492 = vmatprep.mubr.msk.bf16.mxu0 %vm23641_vm2, %v23640_v40 }
 0xcf5   :  { %20391 = vmatprep.subr.bf16.mxu0 %v22287_v62  ;;  %20422 = vmatpush3.bf16.msra.mxu1 %v22313_v13  ;;  %v22339_v13 = vld [vmem:[%s26340_s9 + $0x178] sm:$0xff]  }
 0xcf6   :  { %20423 = vmatprep.subr.bf16.mxu1 %v22315_v16  ;;  %v22340_v16 = vld [vmem:[%s26340_s9 + $0x1d8] sm:$0xff]  }
 0xcf9   :  { %20424 = vmatpush3.bf16.msra.mxu1 %v22317_v17 }
 0xcfa   :  { %20425 = vmatprep.subr.bf16.mxu1 %v22319_v18 }
 0xcfb   :  { %21493 = vmatmul.mubr.msk.bf16.vlgmr.msra.gmra.mrb[248].mxu0 %vm8135_vm4, %v18513_v63 }
 0xcfc   :  { %20392 = vmatpush3.bf16.msra.mxu0 %v22288_v0  ;;  %v22326_v0 = vld [vmem:[%s26340_s9 + $0x118] sm:$0xff]  }
 0xcfd   :  { %20393 = vmatprep.subr.bf16.mxu0 %v22289_v1  ;;  %20426 = vmatpush3.bf16.msra.mxu1 %v22321_v21  ;;  %v22327_v1 = vld [vmem:[%s26340_s9 + $0x160] sm:$0xff]   ;;  %v22341_v21 = vld [vmem:[%s26340_s9 + $0x138] sm:$0xff]  }
 0xcfe   :  { %20427 = vmatprep.subr.bf16.mxu1 %v22323_v23  ;;  %v22342_v23 = vld [vmem:[%s26340_s9 + $0x198] sm:$0xff]  }
 0xd00   :  { %20394 = vmatpush3.bf16.msra.mxu0 %v22290_v35 }
 0xd01   :  { %20395 = vmatprep.subr.bf16.mxu0 %v22291_v33  ;;  %20428 = vmatpush3.bf16.msra.mxu1 %v22325_v25  ;;  %v22343_v25 = vld [vmem:[%s26340_s9 + $0x1e0] sm:$0xff]  }
 0xd02   :  { %20457 = vmatprep.subr.bf16.mxu1 %v22328_v26 }
 0xd04   :  { %20396 = vmatpush3.bf16.msra.mxu0 %v22292_v44 }
 0xd05   :  { %20397 = vmatprep.subr.bf16.mxu0 %v22293_v2  ;;  %v22329_v2 = vld [vmem:[%s26340_s9 + $0x120] sm:$0xff]  }
 0xd08   :  { %20398 = vmatpush3.bf16.msra.mxu0 %v22294_v3  ;;  %v22330_v3 = vld [vmem:[%s26340_s9 + $0x180] sm:$0xff]  }
 0xd09   :  { %20399 = vmatprep.subr.bf16.mxu0 %v22295_v5 }
 0xd0c   :  { %20400 = vmatpush3.bf16.msra.mxu0 %v22297_v41 }
 0xd0d   :  { %20401 = vmatprep.subr.bf16.mxu0 %v22299_v31  ;;  %v22331_v31 = vld [vmem:[%s26340_s9 + $0x168] sm:$0xff]  }
 0xd10   :  { %20402 = vmatpush3.bf16.msra.mxu0 %v22301_v4  ;;  %v22332_v4 = vld [vmem:[%s26340_s9 + $0x1c8] sm:$0xff]  }
 0xd11   :  { %20403 = vmatprep.subr.bf16.mxu0 %v22303_v6 }
 0xd14   :  { %20404 = vmatpush3.bf16.msra.mxu0 %v22305_v49  ;;  %v22334_v49 = vld [vmem:[%s26340_s9 + $0x188] sm:$0xff]  }
 0xd15   :  { %20405 = vmatprep.subr.bf16.mxu0 %v22307_v57  ;;  %v22336_v57 = vld [vmem:[%s26340_s9 + $0x1d0] sm:$0xff]  }
 0xd18   :  { %20406 = vmatpush3.bf16.msra.mxu0 %v22309_v9  ;;  %v22337_v9 = vld [vmem:[%s26340_s9 + $0x130] sm:$0xff]  }
 0xd19   :  { %20435 = vmatprep.subr.bf16.mxu0 %v22312_v12 }
 0xda6   :  { %v8177_v27 = vpop.f32.mrb[228].mxu0  ;;  %v25043_v29 = vpop.f32.mrb[168].mxu1 }
 0xda7   :  { %v21452_v30 = vpop.f32.mrb[229].mxu0  ;;  %v21476_v36 = vpop.f32.mrb[169].mxu1  ;;  %v8183_v24 = vpack.c.bf16 %v8177_v27, %v8177_v27  ;;  %v8367_v26 = vpack.c.bf16 %v25043_v29, %v25043_v29 }
 0xda8   :  { %v8180_v37 = vpop.f32.mrb[230].mxu0  ;;  %v8364_v42 = vpop.f32.mrb[170].mxu1  ;;  %v22344_v30 = vld [vmem:[%s26340_s9 + $0x1a0] sm:$0xff]  }
 0xda9   :  { %v21453_v46 = vpop.f32.mrb[231].mxu0  ;;  %v21477_v47 = vpop.f32.mrb[171].mxu1  ;;  %v22351_v42 = vld [vmem:[%s26340_s9 + $0x200] sm:$0xff]  }
 0xdaa   :  { %v22345_v46 = vld [vmem:[%s26340_s9 + $0x1e8] sm:$0xff]  }
 0xdae   :  { %v8223_v48 = vpop.f32.mrb[232].mxu0  ;;  %v25045_v19 = vpop.f32.mrb[172].mxu1 }
 0xdaf   :  { %v8229_v22 = vpack.c.bf16 %v8223_v48, %v8223_v48  ;;  %v21458_v54 = vpop.f32.mrb[233].mxu0  ;;  %v21488_v20 = vpop.f32.mrb[173].mxu1  ;;  %v22346_v48 = vld [vmem:[%s26340_s9 + $0x1a8] sm:$0xff]  }
 0xdb0   :  { %v8226_v45 = vpop.f32.mrb[234].mxu0  ;;  %v8456_v32 = vpop.f32.mrb[174].mxu1  ;;  %v22347_v54 = vld [vmem:[%s26340_s9 + $0x1f0] sm:$0xff]  }
 0xdb1   :  { %9161 = vmatprep.mubr.bf16.mxu0 %v8229_v22  ;;  %v21459_v50 = vpop.f32.mrb[235].mxu0  ;;  %v21489_v55 = vpop.f32.mrb[175].mxu1  ;;  %v22352_v22 = vld [vmem:[%s26340_s9 + $0x208] sm:$0xff]   ;;  %v22353_v20 = vld [vmem:[%s26340_s9 + $0x210] sm:$0xff]   ;;  %v22350_v45 = vld [vmem:[%s26340_s9 + $0x1b8] sm:$0xff]   ;;  %v8459_v32 = vpack.c.bf16 %v25045_v19, %v25045_v19 }
 0xdb2   :  { %9162 = vmatmul.mubr.bf16.vlgmr.msra.gmra.mrb[252].mxu0 %v8183_v24  ;;  %v22349_v24 = vld [vmem:[%s26340_s9 + $0x1f8] sm:$0xff]   ;;  %v22355_v50 = vld [vmem:[%s26340_s9 + $0x220] sm:$0xff]   ;;  %v22356_v55 = vld [vmem:[%s26340_s9 + $0x228] sm:$0xff]  }
 0xdb3   :  { %20436 = vmatpush3.bf16.msra.mxu0 %v22314_v14  ;;  %v22348_v14 = vld [vmem:[%s26340_s9 + $0x1b0] sm:$0xff]   ;;  %v9329_v19 = vld [vmem:[%s26341_s13] sm:$0xf] }
 0xdb4   :  { %20437 = vmatprep.subr.bf16.mxu0 %v22316_v15  ;;  %v22354_v15 = vld [vmem:[%s26340_s9 + $0x218] sm:$0xff]  }
 0xdb6   :  { %v8269_v34 = vpop.f32.mrb[236].mxu0  ;;  %v25051_v38 = vpop.f32.mrb[176].mxu1 }
 0xdb7   :  { %20438 = vmatpush3.bf16.msra.mxu0 %v22318_v58  ;;  %v21464_v51 = vpop.f32.mrb[237].mxu0  ;;  %v21500_v56 = vpop.f32.mrb[177].mxu1  ;;  %v8275_v5 = vpack.c.bf16 %v8269_v34, %v8269_v34  ;;  %v22357_v58 = vld [vmem:[%s26340_s9 + $0x230] sm:$0xff]   ;;  %v22360_v34 = vld [vmem:[%s26342_s17 + $0x8] sm:$0xff]  }
 0xdb8   :  { %v8272_v59 = vpop.f32.mrb[238].mxu0  ;;  %20439 = vmatprep.subr.bf16.mxu0 %v22320_v28  ;;  %v8548_v61 = vpop.f32.mrb[178].mxu1  ;;  %v22359_v28 = vld [vmem:[%s26342_s17] sm:$0xff]   ;;  %v22362_v51 = vld [vmem:[%s26342_s17 + $0x18] sm:$0xff]   ;;  %v22364_v56 = vld [vmem:[%s26342_s17 + $0x28] sm:$0xff]  }
 0xdb9   :  { %v21465_v62 = vpop.f32.mrb[239].mxu0  ;;  %v21501_v63 = vpop.f32.mrb[179].mxu1  ;;  %v22365_v59 = vld [vmem:[%s26342_s17 + $0x30] sm:$0xff]  }
 0xdbb   :  { %20440 = vmatpush3.bf16.msra.mxu0 %v22322_v52  ;;  %v22363_v52 = vld [vmem:[%s26342_s17 + $0x20] sm:$0xff]  }
 0xdbc   :  { %20441 = vmatprep.subr.bf16.mxu0 %v22324_v60  ;;  %v22366_v60 = vld [vmem:[%s26342_s17 + $0x38] sm:$0xff]  }
 0xdbe   :  { %v8315_v35 = vpop.f32.mrb[240].mxu0 }
 0xdbf   :  { %v8321_v33 = vpack.c.bf16 %v8315_v35, %v8315_v35  ;;  %20442 = vmatpush3.bf16.msra.mxu0 %v22326_v0  ;;  %v21470_v44 = vpop.f32.mrb[241].mxu0  ;;  %v8696_v35 = vld [vmem:[%s23672_s21 + $0x5] ss:$0 sm:$0xff] }
 0xdc0   :  { %v8318_v41 = vpop.f32.mrb[242].mxu0  ;;  %20443 = vmatprep.subr.bf16.mxu0 %v22327_v1 }
 0xdc1   :  { %9201 = vmatprep.mubr.bf16.mxu1 %v8321_v33  ;;  %v21471_v6 = vpop.f32.mrb[243].mxu0 }
 0xdc2   :  { %9202 = vmatmul.mubr.bf16.vlgmr.msra.gmra.mrb[180].mxu1 %v8275_v5 }
 0xdc3   :  { %20444 = vmatpush3.bf16.msra.mxu0 %v22329_v2  ;;  %20458 = vmatpush3.bf16.msra.mxu1 %v22330_v3 }
 0xdc4   :  { %20445 = vmatprep.subr.bf16.mxu0 %v22331_v31  ;;  %20459 = vmatprep.subr.bf16.mxu1 %v22332_v4 }
 0xdc6   :  { %v8407_v43 = vpop.f32.mrb[244].mxu0 }
 0xdc7   :  { %20446 = vmatpush3.bf16.msra.mxu0 %v22333_v8  ;;  %20460 = vmatpush3.bf16.msra.mxu1 %v22334_v49  ;;  %v8413_v11 = vpack.c.bf16 %v8407_v43, %v8407_v43  ;;  %v21482_v12 = vpop.f32.mrb[245].mxu0 }
 0xdc8   :  { %20447 = vmatprep.subr.bf16.mxu0 %v22335_v53  ;;  %20461 = vmatprep.subr.bf16.mxu1 %v22336_v57  ;;  %v8410_v17 = vpop.f32.mrb[246].mxu0 }
 0xdc9   :  { %9241 = vmatprep.mubr.bf16.mxu0 %v8413_v11  ;;  %v21483_v18 = vpop.f32.mrb[247].mxu0 }
 0xdcb   :  { %20448 = vmatpush3.bf16.msra.mxu0 %v22337_v9  ;;  %20462 = vmatpush3.bf16.msra.mxu1 %v22338_v10 }
 0xdcc   :  { %20449 = vmatprep.subr.bf16.mxu0 %v22339_v13  ;;  %20463 = vmatprep.subr.bf16.mxu1 %v22340_v16 }
 0xdce   :  { %v8499_v27 = vpop.f32.mrb[248].mxu0 }
 0xdcf   :  { %20450 = vmatpush3.bf16.msra.mxu0 %v22341_v21  ;;  %20464 = vmatpush3.bf16.msra.mxu1 %v22342_v23  ;;  %v8505_v36 = vpack.c.bf16 %v8499_v27, %v8499_v27  ;;  %v21494_v37 = vpop.f32.mrb[249].mxu0 }
 0xdd0   :  { %20465 = vmatprep.subr.bf16.mxu1 %v22343_v25  ;;  %v8502_v47 = vpop.f32.mrb[250].mxu0  ;;  %21502 = vmatprep.subr.bf16.mxu0 %v23640_v40  ;;  %v9390_v25 = vld [vmem:[%s23672_s21 + $0x6] ss:$0 sm:$0xff] }
 0xdd1   :  { %9281 = vmatprep.mubr.bf16.mxu1 %v8505_v36  ;;  %v21495_v29 = vpop.f32.mrb[251].mxu0 }
 0xdd2   :  { %9242 = vmatmul.mubr.bf16.vlgmr.msra.gmra.mrb[0].mxu0 %v8367_v26  ;;  %v22367_v29 = vld [vmem:[%s26343_s25 + $0x40] sm:$0xff]  }
 0xdd3   :  { %20466 = vmatpush3.bf16.msra.mxu1 %v22344_v30  ;;  %21503 = vmatpush3.bf16.msra.mxu0 %v22351_v42 }
 0xdd4   :  { %20467 = vmatprep.subr.bf16.mxu1 %v22345_v46  ;;  %21504 = vmatprep.subr.bf16.mxu0 %v23640_v40 }
 0xdd5   :  { %21518 = vmatprep.mubr.msk.bf16.mxu0 %vm23641_vm2, %v23640_v40 }
 0xdd7   :  { %20468 = vmatpush3.bf16.msra.mxu1 %v22346_v48  ;;  %21505 = vmatpush3.bf16.msra.mxu0 %v22352_v22  ;;  %v9482_v22 = vld [vmem:[%s26344_s29] sm:$0xf] }
 0xdd8   :  { %20469 = vmatprep.subr.bf16.mxu1 %v22347_v54  ;;  %21506 = vmatprep.subr.bf16.mxu0 %v23640_v40  ;;  %v18611_v54 = vld [vmem:[%s26344_s29 + $0x1c] sm:$0xf] }
 0xddb   :  { %20470 = vmatpush3.bf16.msra.mxu1 %v22348_v14  ;;  %21507 = vmatpush3.bf16.msra.mxu0 %v22353_v20  ;;  %v22368_v14 = vld [vmem:[%s26343_s25] sm:$0xff]   ;;  %v22369_v20 = vld [vmem:[%s26343_s25 + $0x48] sm:$0xff]  }
 0xddc   :  { %20471 = vmatprep.subr.bf16.mxu1 %v22349_v24  ;;  %21508 = vmatprep.subr.bf16.mxu0 %v23640_v40  ;;  %v22370_v24 = vld [vmem:[%s26343_s25 + $0x8] sm:$0xff]  }
 0xddf   :  { %20472 = vmatpush3.bf16.msra.mxu1 %v22350_v45  ;;  %21509 = vmatpush3.bf16.msra.mxu0 %v22354_v15  ;;  %v22371_v45 = vld [vmem:[%s26343_s25 + $0x50] sm:$0xff]   ;;  %v18599_v15 = vld [vmem:[%s26344_s29 + $0x4] sm:$0xf] }
 0xde0   :  { %21522 = vmatprep.subr.bf16.mxu1 %v23640_v40  ;;  %21510 = vmatprep.subr.bf16.mxu0 %v23640_v40 }
 0xde2   :  { %9282 = vmatmul.mubr.bf16.vlgmr.msra.gmra.mrb[184].mxu1 %v8459_v32  ;;  %v22372_v32 = vld [vmem:[%s26343_s25 + $0x10] sm:$0xff]  }
 0xde3   :  { %21523 = vmatpush3.bf16.msra.mxu1 %v24812_v39  ;;  %21526 = vmatprep.mubr.msk.bf16.mxu1 %vm23641_vm2, %v23640_v40  ;;  %v22358_v39 = vld [vmem:[%s26340_s9 + $0x238] sm:$0xff]  }
 0xde4   :  { %21524 = vmatprep.subr.bf16.mxu1 %v23640_v40  ;;  %21511 = vmatpush3.bf16.msra.mxu0 %v22355_v50  ;;  %v22373_v50 = vld [vmem:[%s26343_s25 + $0x58] sm:$0xff]  }
 0xde5   :  { %21512 = vmatprep.subr.bf16.mxu0 %v23640_v40 }
 0xde7   :  { %21525 = vmatpush3.bf16.msra.mxu1 %v24810_v7  ;;  %v8551_v7 = vpack.c.bf16 %v25051_v38, %v25051_v38  ;;  %v22361_v38 = vld [vmem:[%s26342_s17 + $0x10] sm:$0xff]  }
 0xde8   :  { %21513 = vmatpush3.bf16.msra.mxu0 %v22356_v55  ;;  %21550 = vmatprep.subr.bf16.mxu1 %v23640_v40  ;;  %v22374_v55 = vld [vmem:[%s26343_s25 + $0x18] sm:$0xff]  }
 0xde9   :  { %21514 = vmatprep.subr.bf16.mxu0 %v23640_v40 }
 0xdea   :  { %21527 = vmatmul.mubr.msk.bf16.vlgmr.msra.gmra.mrb[188].mxu1 %vm1047_vm1, %v9329_v19  ;;  %v22375_v19 = vld [vmem:[%s26343_s25 + $0x60] sm:$0xff]  }
 0xdeb   :  { %21552 = vmatprep.mubr.msk.bf16.mxu1 %vm23641_vm2, %v23640_v40 }
 0xdec   :  { %21515 = vmatpush3.bf16.msra.mxu0 %v22357_v58  ;;  %v18601_v58 = vld [vmem:[%s26344_s29 + $0x8] sm:$0xf] }
 0xded   :  { %21516 = vmatprep.subr.bf16.mxu0 %v23640_v40 }
 0xdf0   :  { %21517 = vmatpush3.bf16.msra.mxu0 %v22358_v39  ;;  %v22377_v39 = vld [vmem:[%s26343_s25 + $0x20] sm:$0xff]  }
 0xdf1   :  { %21530 = vmatprep.subr.bf16.mxu0 %v23640_v40 }
 0xdf3   :  { %21519 = vmatmul.mubr.bf16.vlgmr.msra.gmra.mrb[4].mxu0 %v8551_v7  ;;  %v22379_v7 = vld [vmem:[%s26343_s25 + $0x68] sm:$0xff]  }
 0xdf4   :  { %21546 = vmatprep.mubr.msk.bf16.mxu0 %vm23641_vm2, %v23640_v40  ;;  %21531 = vmatpush3.bf16.msra.mxu0 %v22359_v28  ;;  %v22381_v28 = vld [vmem:[%s26343_s25 + $0x28] sm:$0xff]  }
 0xdf5   :  { %21532 = vmatprep.subr.bf16.mxu0 %v23640_v40 }
 0xdf8   :  { %21533 = vmatpush3.bf16.msra.mxu0 %v22360_v34  ;;  %v18603_v34 = vld [vmem:[%s26344_s29 + $0xc] sm:$0xf] }
 0xdf9   :  { %21534 = vmatprep.subr.bf16.mxu0 %v23640_v40 }
 0xdfc   :  { %21535 = vmatpush3.bf16.msra.mxu0 %v22361_v38  ;;  %v18605_v38 = vld [vmem:[%s26344_s29 + $0x10] sm:$0xf] }
 0xdfd   :  { %21536 = vmatprep.subr.bf16.mxu0 %v23640_v40 }
 0xe00   :  { %21537 = vmatpush3.bf16.msra.mxu0 %v22362_v51  ;;  %v18607_v51 = vld [vmem:[%s26344_s29 + $0x14] sm:$0xf] }
 0xe01   :  { %21538 = vmatprep.subr.bf16.mxu0 %v23640_v40 }
 0xe04   :  { %21539 = vmatpush3.bf16.msra.mxu0 %v22363_v52  ;;  %v18609_v52 = vld [vmem:[%s26344_s29 + $0x18] sm:$0xf] }
 0xe05   :  { %21540 = vmatprep.subr.bf16.mxu0 %v23640_v40 }
 0xe08   :  { %21541 = vmatpush3.bf16.msra.mxu0 %v22364_v56  ;;  %v22376_v56 = vld [vmem:[%s26343_s25 + $0xc0] sm:$0xff]  }
 0xe09   :  { %21542 = vmatprep.subr.bf16.mxu0 %v23640_v40 }
 0xe0c   :  { %21543 = vmatpush3.bf16.msra.mxu0 %v22365_v59  ;;  %v18613_v59 = vld [vmem:[%s26344_s29 + $0x20] sm:$0xf] }
 0xe0d   :  { %21544 = vmatprep.subr.bf16.mxu0 %v23640_v40 }
 0xe10   :  { %21545 = vmatpush3.bf16.msra.mxu0 %v22366_v60  ;;  %v22378_v60 = vld [vmem:[%s26343_s25 + $0x80] sm:$0xff]  }
 0xe11   :  { %21592 = vmatprep.subr.bf16.mxu0 %v23640_v40 }
 0xe85   :  { %v20407_v61 = vpop.f32.mrb[252].mxu0 }
 0xe86   :  { %v20408_v62 = vpop.f32.mrb[253].mxu0 }
 0xe87   :  { %v20409_v63 = vadd.f32 %v20408_v62, %v20407_v61  ;;  %v20410_v0 = vpop.f32.mrb[254].mxu0  ;;  %v22380_v61 = vld [vmem:[%s26343_s25 + $0xc8] sm:$0xff]  }
 0xe88   :  { %v20411_v1 = vpop.f32.mrb[255].mxu0  ;;  %v22382_v62 = vld [vmem:[%s26343_s25 + $0x88] sm:$0xff]   ;;  %v22384_v0 = vld [vmem:[%s26343_s25 + $0xd0] sm:$0xff]  }
 0xe89   :  { %v9164_v2 = vadd.f32 %v20409_v63, %v8696_v35  ;;  %v22383_v63 = vld [vmem:[%s26343_s25 + $0x70] sm:$0xff]  }
 0xe8a   :  { %v22385_v1 = vld [vmem:[%s26343_s25 + $0x30] sm:$0xff]  }
 0xe8b   :  { %v22386_v35 = vld [vmem:[%s26343_s25 + $0x90] sm:$0xff]  }
 0xe95   :  { %v20429_v33 = vpop.f32.mrb[180].mxu1 }
 0xe96   :  { %v20430_v44 = vpop.f32.mrb[181].mxu1 }
 0xe97   :  { %v20431_v3 = vadd.f32 %v20430_v44, %v20429_v33  ;;  %v20432_v5 = vpop.f32.mrb[182].mxu1  ;;  %v22387_v33 = vld [vmem:[%s26343_s25 + $0x78] sm:$0xff]  }
 0xe98   :  { %v20433_v41 = vpop.f32.mrb[183].mxu1  ;;  %v22388_v44 = vld [vmem:[%s26343_s25 + $0xd8] sm:$0xff]   ;;  %v22391_v5 = vld [vmem:[%s26343_s25 + $0xe0] sm:$0xff]  }
 0xe99   :  { %v9204_v31 = vadd.f32 %v20431_v3, %v9164_v2  ;;  %v22389_v2 = vld [vmem:[%s26343_s25 + $0x38] sm:$0xff]   ;;  %v22392_v41 = vld [vmem:[%s26343_s25 + $0x140] sm:$0xff]  }
 0xe9a   :  { %v22390_v3 = vld [vmem:[%s26343_s25 + $0x98] sm:$0xff]  }
 0xea5   :  { %v20451_v4 = vpop.f32.mrb[0].mxu0 }
 0xea6   :  { %v20452_v6 = vpop.f32.mrb[1].mxu0 }
 0xea7   :  { %v20453_v8 = vadd.f32 %v20452_v6, %v20451_v4  ;;  %v20454_v49 = vpop.f32.mrb[2].mxu0  ;;  %v22395_v4 = vld [vmem:[%s26343_s25 + $0xe8] sm:$0xff]  }
 0xea8   :  { %v20455_v53 = vpop.f32.mrb[3].mxu0  ;;  %v22397_v6 = vld [vmem:[%s26343_s25 + $0xa8] sm:$0xff]   ;;  %v22401_v49 = vld [vmem:[%s26343_s25 + $0xb0] sm:$0xff]  }
 0xea9   :  { %v9244_v57 = vadd.f32 %v20453_v8, %v9204_v31  ;;  %v22393_v31 = vld [vmem:[%s26343_s25 + $0xa0] sm:$0xff]   ;;  %v22399_v8 = vld [vmem:[%s26343_s25 + $0xf0] sm:$0xff]   ;;  %v22403_v53 = vld [vmem:[%s26343_s25 + $0xf8] sm:$0xff]  }
 0xeb5   :  { %v20473_v43 = vpop.f32.mrb[184].mxu1 }
 0xeb6   :  { %v20474_v9 = vpop.f32.mrb[185].mxu1 }
 0xeb7   :  { %v20475_v10 = vadd.f32 %v20474_v9, %v20473_v43  ;;  %v20476_v11 = vpop.f32.mrb[186].mxu1  ;;  %v22408_v43 = vld [vmem:[%s26343_s25 + $0x1c0] sm:$0xff]  }
 0xeb8   :  { %v20477_v12 = vpop.f32.mrb[187].mxu1 }
 0xeb9   :  { %v9284_v13 = vadd.f32 %v20475_v10, %v9244_v57  ;;  %v22405_v57 = vld [vmem:[%s26343_s25 + $0xb8] sm:$0xff]  }
 0xebb   :  { %v21728_v26 = vadd.f32 %v9390_v25, %v9284_v13 }
 0xebd   :  { %v9367_v16 = vpop.f32.mrb[188].mxu1 }
 0xebe   :  { %v9373_v17 = vpack.c.bf16 %v9367_v16, %v9367_v16  ;;  %v21528_v18 = vpop.f32.mrb[189].mxu1 }
 0xebf   :  { %v9370_v21 = vpop.f32.mrb[190].mxu1 }
 0xec0   :  { %21547 = vmatmul.mubr.bf16.vlgmr.msra.gmra.mrb[4].mxu0 %v9373_v17  ;;  %v21529_v23 = vpop.f32.mrb[191].mxu1 }
 0xec1   :  { %21594 = vmatprep.mubr.msk.bf16.mxu0 %vm23641_vm2, %v23640_v40 }
 0xf93   :  { %v9473_v27 = vpop.f32.mrb[4].mxu0 }
 0xf94   :  { %v21729_v30 = vadd.f32 %v21728_v26, %v9473_v27  ;;  %v21548_v36 = vpop.f32.mrb[5].mxu0  ;;  %v22394_v26 = vld [vmem:[%s26343_s25 + $0x100] sm:$0xff]  }
 0xf95   :  { %v9476_v37 = vpop.f32.mrb[6].mxu0  ;;  %v22396_v36 = vld [vmem:[%s26343_s25 + $0x148] sm:$0xff]  }
 0xf96   :  { %v25137_v42 = vmax.f32 %v21729_v30, 0.0  ;;  %v21549_v46 = vpop.f32.mrb[7].mxu0 }
 0xf97   :  { %v22398_v46 = vld [vmem:[%s26343_s25 + $0x108] sm:$0xff]  }
 0xf98   :  { %v9481_v47 = vpack.c.bf16 %v25137_v42, %v25137_v42 }
 0xf9a   :  { %v9487_v48 = vsel %vm8139_vm3, %v9481_v47, 0  ;;  %v22400_v47 = vld [vmem:[%s26343_s25 + $0x150] sm:$0xff]  }
 0xf9b   :  { %21551 = vmatpush3.bf16.msra.mxu1 %v9487_v48  ;;  %21593 = vmatpush3.bf16.msra.mxu0 %v9487_v48 }
 0xf9c   :  { %21556 = vmatprep.subr.bf16.mxu1 %v23640_v40  ;;  %20518 = vmatprep.subr.bf16.mxu0 %v22367_v29 }
 0xf9e   :  { %21553 = vmatmul.mubr.msk.bf16.vlgmr.msra.gmra.mrb[192].mxu1 %vm8135_vm4, %v9482_v22  ;;  %21595 = vmatmul.mubr.msk.bf16.vlgmr.msra.gmra.mrb[8].mxu0 %vm8135_vm4, %v18611_v54  ;;  %v22402_v22 = vld [vmem:[%s26343_s25 + $0x110] sm:$0xff]  }
 0xf9f   :  { %21557 = vmatpush3.bf16.msra.mxu1 %v9487_v48  ;;  %21558 = vmatprep.mubr.msk.bf16.mxu1 %vm23641_vm2, %v23640_v40 }
 0xfa0   :  { %21562 = vmatprep.subr.bf16.mxu1 %v23640_v40  ;;  %20519 = vmatpush3.bf16.msra.mxu0 %v22368_v14  ;;  %v22404_v14 = vld [vmem:[%s26343_s25 + $0x158] sm:$0xff]  }
 0xfa1   :  { %20520 = vmatprep.subr.bf16.mxu0 %v22369_v20 }
 0xfa4   :  { %20521 = vmatpush3.bf16.msra.mxu0 %v22370_v24  ;;  %v22406_v24 = vld [vmem:[%s26343_s25 + $0x118] sm:$0xff]  }
 0xfa5   :  { %20522 = vmatprep.subr.bf16.mxu0 %v22371_v45  ;;  %v22407_v45 = vld [vmem:[%s26343_s25 + $0x160] sm:$0xff]  }
 0xfa6   :  { %21559 = vmatmul.mubr.msk.bf16.vlgmr.msra.gmra.mrb[196].mxu1 %vm8135_vm4, %v18599_v15 }
 0xfa7   :  { %21563 = vmatpush3.bf16.msra.mxu1 %v9487_v48  ;;  %21564 = vmatprep.mubr.msk.bf16.mxu1 %vm23641_vm2, %v23640_v40 }
 0xfa8   :  { %21568 = vmatprep.subr.bf16.mxu1 %v23640_v40  ;;  %20523 = vmatpush3.bf16.msra.mxu0 %v22372_v32 }
 0xfa9   :  { %20524 = vmatprep.subr.bf16.mxu0 %v22373_v50 }
 0xfac   :  { %20525 = vmatpush3.bf16.msra.mxu0 %v22374_v55  ;;  %v22409_v55 = vld [vmem:[%s26343_s25 + $0x120] sm:$0xff]  }
 0xfad   :  { %20526 = vmatprep.subr.bf16.mxu0 %v22375_v19  ;;  %v22410_v19 = vld [vmem:[%s26343_s25 + $0x180] sm:$0xff]  }
 0xfae   :  { %21565 = vmatmul.mubr.msk.bf16.vlgmr.msra.gmra.mrb[200].mxu1 %vm8135_vm4, %v18601_v58 }
 0xfaf   :  { %21569 = vmatpush3.bf16.msra.mxu1 %v9487_v48  ;;  %21570 = vmatprep.mubr.msk.bf16.mxu1 %vm23641_vm2, %v23640_v40 }
 0xfb0   :  { %21574 = vmatprep.subr.bf16.mxu1 %v23640_v40  ;;  %20527 = vmatpush3.bf16.msra.mxu0 %v22377_v39 }
 0xfb1   :  { %20528 = vmatprep.subr.bf16.mxu0 %v22379_v7  ;;  %v22411_v7 = vld [vmem:[%s26343_s25 + $0x168] sm:$0xff]  }
 0xfb4   :  { %20529 = vmatpush3.bf16.msra.mxu0 %v22381_v28  ;;  %v22412_v28 = vld [vmem:[%s26343_s25 + $0x1c8] sm:$0xff]  }
 0xfb5   :  { %20530 = vmatprep.subr.bf16.mxu0 %v22383_v63  ;;  %v22418_v63 = vld [vmem:[%s26343_s25 + $0x190] sm:$0xff]  }
 0xfb6   :  { %21571 = vmatmul.mubr.msk.bf16.vlgmr.msra.gmra.mrb[204].mxu1 %vm8135_vm4, %v18603_v34 }
 0xfb7   :  { %21575 = vmatpush3.bf16.msra.mxu1 %v9487_v48  ;;  %21576 = vmatprep.mubr.msk.bf16.mxu1 %vm23641_vm2, %v23640_v40 }
 0xfb8   :  { %21580 = vmatprep.subr.bf16.mxu1 %v23640_v40  ;;  %20531 = vmatpush3.bf16.msra.mxu0 %v22385_v1  ;;  %v22419_v1 = vld [vmem:[%s26343_s25 + $0x178] sm:$0xff]  }
 0xfb9   :  { %20532 = vmatprep.subr.bf16.mxu0 %v22387_v33 }
 0xfbc   :  { %20533 = vmatpush3.bf16.msra.mxu0 %v22389_v2  ;;  %v22422_v2 = vld [vmem:[%s26343_s25 + $0x198] sm:$0xff]  }
 0xfbd   :  { %20562 = vmatprep.subr.bf16.mxu0 %v22392_v41 }
 0xfbe   :  { %21577 = vmatmul.mubr.msk.bf16.vlgmr.msra.gmra.mrb[208].mxu1 %vm8135_vm4, %v18605_v38 }
 0xfbf   :  { %21581 = vmatpush3.bf16.msra.mxu1 %v9487_v48  ;;  %21582 = vmatprep.mubr.msk.bf16.mxu1 %vm23641_vm2, %v23640_v40 }
 0xfc0   :  { %21586 = vmatprep.subr.bf16.mxu1 %v23640_v40 }
 0xfc6   :  { %21583 = vmatmul.mubr.msk.bf16.vlgmr.msra.gmra.mrb[212].mxu1 %vm8135_vm4, %v18607_v51  ;;  %v22413_v51 = vld [vmem:[%s26343_s25 + $0x128] sm:$0xff]  }
 0xfc7   :  { %21587 = vmatpush3.bf16.msra.mxu1 %v9487_v48  ;;  %21588 = vmatprep.mubr.msk.bf16.mxu1 %vm23641_vm2, %v23640_v40 }
 0xfc8   :  { %21598 = vmatprep.subr.bf16.mxu1 %v23640_v40 }
 0xfce   :  { %21589 = vmatmul.mubr.msk.bf16.vlgmr.msra.gmra.mrb[216].mxu1 %vm8135_vm4, %v18609_v52  ;;  %v22414_v52 = vld [vmem:[%s26343_s25 + $0x188] sm:$0xff]  }
 0xfcf   :  { %21599 = vmatpush3.bf16.msra.mxu1 %v9487_v48  ;;  %21600 = vmatprep.mubr.msk.bf16.mxu1 %vm23641_vm2, %v23640_v40 }
 0xfd0   :  { %20540 = vmatprep.subr.bf16.mxu1 %v22376_v56  ;;  %v22415_v56 = vld [vmem:[%s26343_s25 + $0x170] sm:$0xff]  }
 0xfd6   :  { %21601 = vmatmul.mubr.msk.bf16.vlgmr.msra.gmra.mrb[220].mxu1 %vm8135_vm4, %v18613_v59  ;;  %v22416_v59 = vld [vmem:[%s26343_s25 + $0x1d0] sm:$0xff]  }
 0xfd7   :  { %20541 = vmatpush3.bf16.msra.mxu1 %v22378_v60 }
 0xfd8   :  { %20542 = vmatprep.subr.bf16.mxu1 %v22380_v61 }
 0xfdb   :  { %20543 = vmatpush3.bf16.msra.mxu1 %v22382_v62  ;;  %v22417_v62 = vld [vmem:[%s26343_s25 + $0x130] sm:$0xff]  }
 0xfdc   :  { %20544 = vmatprep.subr.bf16.mxu1 %v22384_v0 }
 0xfdf   :  { %20545 = vmatpush3.bf16.msra.mxu1 %v22386_v35  ;;  %v22420_v35 = vld [vmem:[%s26343_s25 + $0x1d8] sm:$0xff]  }
 0xfe0   :  { %20546 = vmatprep.subr.bf16.mxu1 %v22388_v44  ;;  %v22421_v44 = vld [vmem:[%s26343_s25 + $0x138] sm:$0xff]  }
 0xfe3   :  { %20547 = vmatpush3.bf16.msra.mxu1 %v22390_v3  ;;  %v22423_v3 = vld [vmem:[%s26343_s25 + $0x1e0] sm:$0xff]  }
 0xfe4   :  { %20548 = vmatprep.subr.bf16.mxu1 %v22391_v5 }
 0xfe7   :  { %20549 = vmatpush3.bf16.msra.mxu1 %v22393_v31 }
 0xfe8   :  { %20550 = vmatprep.subr.bf16.mxu1 %v22395_v4  ;;  %v22424_v4 = vld [vmem:[%s26343_s25 + $0x1a0] sm:$0xff]  }
 0xfeb   :  { %20551 = vmatpush3.bf16.msra.mxu1 %v22397_v6  ;;  %v22425_v6 = vld [vmem:[%s26343_s25 + $0x200] sm:$0xff]  }
 0xfec   :  { %20552 = vmatprep.subr.bf16.mxu1 %v22399_v8 }
 0xfef   :  { %20553 = vmatpush3.bf16.msra.mxu1 %v22401_v49 }
 0xff0   :  { %20554 = vmatprep.subr.bf16.mxu1 %v22403_v53  ;;  %v22426_v53 = vld [vmem:[%s26343_s25 + $0x1e8] sm:$0xff]  }
 0xff3   :  { %20555 = vmatpush3.bf16.msra.mxu1 %v22405_v57 }
 0xff4   :  { %20584 = vmatprep.subr.bf16.mxu1 %v22408_v43  ;;  %v22427_v43 = vld [vmem:[%s26343_s25 + $0x1a8] sm:$0xff]  }
0x1071   :  { %v9523_v9 = vpop.f32.mrb[192].mxu1  ;;  %v9845_v10 = vpop.f32.mrb[8].mxu0 }
0x1072   :  { %v21554_v11 = vpop.f32.mrb[193].mxu1  ;;  %v21596_v12 = vpop.f32.mrb[9].mxu0  ;;  %v9529_v27 = vpack.c.bf16 %v9523_v9, %v9523_v9  ;;  %v9851_v38 = vpack.c.bf16 %v9845_v10, %v9845_v10  ;;  %v22428_v9 = vld [vmem:[%s26343_s25 + $0x208] sm:$0xff]   ;;  %v22429_v10 = vld [vmem:[%s26343_s25 + $0x1f0] sm:$0xff]  }
0x1073   :  { %v9526_v13 = vpop.f32.mrb[194].mxu1  ;;  %v9848_v16 = vpop.f32.mrb[10].mxu0  ;;  %v22430_v12 = vld [vmem:[%s26343_s25 + $0x1b0] sm:$0xff]  }
0x1074   :  { %v21555_v17 = vpop.f32.mrb[195].mxu1  ;;  %v21597_v18 = vpop.f32.mrb[11].mxu0  ;;  %v22431_v13 = vld [vmem:[%s26343_s25 + $0x210] sm:$0xff]  }
0x1075   :  { %v22432_v17 = vld [vmem:[%s26343_s25 + $0x1f8] sm:$0xff]  }
0x1079   :  { %v9569_v21 = vpop.f32.mrb[196].mxu1 }
0x107a   :  { %v9575_v23 = vpack.c.bf16 %v9569_v21, %v9569_v21  ;;  %v21560_v25 = vpop.f32.mrb[197].mxu1 }
0x107b   :  { %v9572_v30 = vpop.f32.mrb[198].mxu1  ;;  %v22434_v25 = vld [vmem:[%s26343_s25 + $0x218] sm:$0xff]  }
0x107c   :  { %10507 = vmatprep.mubr.bf16.mxu0 %v9575_v23  ;;  %v21561_v37 = vpop.f32.mrb[199].mxu1  ;;  %v22433_v23 = vld [vmem:[%s26343_s25 + $0x1b8] sm:$0xff]   ;;  %v22435_v30 = vld [vmem:[%s26343_s25 + $0x220] sm:$0xff]  }
0x107d   :  { %10508 = vmatmul.mubr.bf16.vlgmr.msra.gmra.mrb[12].mxu0 %v9529_v27 }
0x107e   :  { %20563 = vmatpush3.bf16.msra.mxu0 %v22394_v26 }
0x107f   :  { %20564 = vmatprep.subr.bf16.mxu0 %v22396_v36 }
0x1081   :  { %v9615_v29 = vpop.f32.mrb[200].mxu1 }
0x1082   :  { %20565 = vmatpush3.bf16.msra.mxu0 %v22398_v46  ;;  %v21566_v48 = vpop.f32.mrb[201].mxu1  ;;  %v9621_v58 = vpack.c.bf16 %v9615_v29, %v9615_v29  ;;  %v22437_v29 = vld [vmem:[%s26343_s25 + $0x230] sm:$0xff]  }
0x1083   :  { %v9618_v54 = vpop.f32.mrb[202].mxu1  ;;  %20566 = vmatprep.subr.bf16.mxu0 %v22400_v47  ;;  %v22436_v47 = vld [vmem:[%s26343_s25 + $0x228] sm:$0xff]   ;;  %v22438_v48 = vld [vmem:[%s26343_s25 + $0x238] sm:$0xff]  }
0x1084   :  { %v21567_v20 = vpop.f32.mrb[203].mxu1 }
0x1086   :  { %20567 = vmatpush3.bf16.msra.mxu0 %v22402_v22 }
0x1087   :  { %20568 = vmatprep.subr.bf16.mxu0 %v22404_v14 }
0x1089   :  { %v9661_v15 = vpop.f32.mrb[204].mxu1 }
0x108a   :  { %v9667_v32 = vpack.c.bf16 %v9661_v15, %v9661_v15  ;;  %20569 = vmatpush3.bf16.msra.mxu0 %v22406_v24  ;;  %v21572_v50 = vpop.f32.mrb[205].mxu1  ;;  %v10042_v15 = vld [vmem:[%s23672_s21 + $0x7] ss:$0 sm:$0xff] }
0x108b   :  { %v9664_v39 = vpop.f32.mrb[206].mxu1  ;;  %20570 = vmatprep.subr.bf16.mxu0 %v22407_v45 }
0x108c   :  { %10547 = vmatprep.mubr.bf16.mxu1 %v9667_v32  ;;  %v21573_v34 = vpop.f32.mrb[207].mxu1 }
0x108d   :  { %10548 = vmatmul.mubr.bf16.vlgmr.msra.gmra.mrb[224].mxu1 %v9621_v58 }
0x108e   :  { %20571 = vmatpush3.bf16.msra.mxu0 %v22409_v55  ;;  %20585 = vmatpush3.bf16.msra.mxu1 %v22410_v19 }
0x108f   :  { %20572 = vmatprep.subr.bf16.mxu0 %v22411_v7  ;;  %20586 = vmatprep.subr.bf16.mxu1 %v22412_v28 }
0x1090   :  { %10627 = vmatprep.mubr.bf16.mxu1 %v9851_v38 }
0x1091   :  { %v9707_v60 = vpop.f32.mrb[208].mxu1 }
0x1092   :  { %20573 = vmatpush3.bf16.msra.mxu0 %v22413_v51  ;;  %20587 = vmatpush3.bf16.msra.mxu1 %v22414_v52  ;;  %v21578_v61 = vpop.f32.mrb[209].mxu1  ;;  %v9713_v8 = vpack.c.bf16 %v9707_v60, %v9707_v60 }
0x1093   :  { %v9710_v0 = vpop.f32.mrb[210].mxu1  ;;  %20574 = vmatprep.subr.bf16.mxu0 %v22415_v56  ;;  %20588 = vmatprep.subr.bf16.mxu1 %v22416_v59 }
0x1094   :  { %v21579_v33 = vpop.f32.mrb[211].mxu1 }
0x1096   :  { %20575 = vmatpush3.bf16.msra.mxu0 %v22417_v62  ;;  %20589 = vmatpush3.bf16.msra.mxu1 %v22418_v63 }
0x1097   :  { %20576 = vmatprep.subr.bf16.mxu0 %v22419_v1  ;;  %20590 = vmatprep.subr.bf16.mxu1 %v22420_v35 }
0x1099   :  { %v9753_v5 = vpop.f32.mrb[212].mxu1 }
0x109a   :  { %v9759_v41 = vpack.c.bf16 %v9753_v5, %v9753_v5  ;;  %20577 = vmatpush3.bf16.msra.mxu0 %v22421_v44  ;;  %20591 = vmatpush3.bf16.msra.mxu1 %v22422_v2  ;;  %v21584_v31 = vpop.f32.mrb[213].mxu1 }
0x109b   :  { %v9756_v49 = vpop.f32.mrb[214].mxu1  ;;  %20592 = vmatprep.subr.bf16.mxu1 %v22423_v3  ;;  %21604 = vmatprep.subr.bf16.mxu0 %v23640_v40  ;;  %v10677_v31 = vld [vmem:[%s26345_s3] sm:$0xf] }
0x109c   :  { %10587 = vmatprep.mubr.bf16.mxu0 %v9759_v41  ;;  %v21585_v57 = vpop.f32.mrb[215].mxu1  ;;  %v22448_v49 = vld [vmem:[%s26346_s8 + $0xc0] sm:$0xff]  }
0x109d   :  { %10588 = vmatmul.mubr.bf16.vlgmr.msra.gmra.mrb[16].mxu0 %v9713_v8  ;;  %v18698_v8 = vld [vmem:[%s26345_s3 + $0x18] sm:$0xf]  ;;  %v18702_v57 = vld [vmem:[%s26345_s3 + $0x20] sm:$0xf] }
0x109e   :  { %20593 = vmatpush3.bf16.msra.mxu1 %v22424_v4  ;;  %21605 = vmatpush3.bf16.msra.mxu0 %v22425_v6  ;;  %v18694_v4 = vld [vmem:[%s26345_s3 + $0x10] sm:$0xf]  ;;  %v18688_v6 = vld [vmem:[%s26345_s3 + $0x4] sm:$0xf] }
0x109f   :  { %20594 = vmatprep.subr.bf16.mxu1 %v22426_v53  ;;  %21606 = vmatprep.subr.bf16.mxu0 %v23640_v40  ;;  %v18690_v53 = vld [vmem:[%s26345_s3 + $0x8] sm:$0xf] }
0x10a0   :  { %21620 = vmatprep.mubr.msk.bf16.mxu0 %vm23641_vm2, %v23640_v40 }
0x10a1   :  { %v9799_v11 = vpop.f32.mrb[216].mxu1 }
0x10a2   :  { %20595 = vmatpush3.bf16.msra.mxu1 %v22427_v43  ;;  %21607 = vmatpush3.bf16.msra.mxu0 %v22428_v9  ;;  %v21590_v16 = vpop.f32.mrb[217].mxu1  ;;  %v9805_v26 = vpack.c.bf16 %v9799_v11, %v9799_v11  ;;  %v22450_v43 = vld [vmem:[%s26346_s8 + $0x80] sm:$0xff]   ;;  %v22452_v9 = vld [vmem:[%s26346_s8 + $0xc8] sm:$0xff]  }
0x10a3   :  { %20596 = vmatprep.subr.bf16.mxu1 %v22429_v10  ;;  %21608 = vmatprep.subr.bf16.mxu0 %v23640_v40  ;;  %v9802_v18 = vpop.f32.mrb[218].mxu1  ;;  %v22454_v10 = vld [vmem:[%s26346_s8 + $0x88] sm:$0xff]   ;;  %v18700_v16 = vld [vmem:[%s26345_s3 + $0x1c] sm:$0xf] }
0x10a4   :  { %v21591_v21 = vpop.f32.mrb[219].mxu1  ;;  %v18692_v11 = vld [vmem:[%s26345_s3 + $0xc] sm:$0xf] }
0x10a5   :  { %v22441_v18 = vld [vmem:[%s26346_s8 + $0x48] sm:$0xff]  }
0x10a6   :  { %20597 = vmatpush3.bf16.msra.mxu1 %v22430_v12  ;;  %21609 = vmatpush3.bf16.msra.mxu0 %v22431_v13  ;;  %v18696_v12 = vld [vmem:[%s26345_s3 + $0x14] sm:$0xf]  ;;  %v22439_v13 = vld [vmem:[%s26346_s8 + $0x40] sm:$0xff]   ;;  %v22442_v21 = vld [vmem:[%s26346_s8 + $0x8] sm:$0xff]  }
0x10a7   :  { %20598 = vmatprep.subr.bf16.mxu1 %v22432_v17  ;;  %21610 = vmatprep.subr.bf16.mxu0 %v23640_v40  ;;  %v22440_v17 = vld [vmem:[%s26346_s8] sm:$0xff]  }
0x10a9   :  { %v9891_v27 = vpop.f32.mrb[220].mxu1 }
0x10aa   :  { %20599 = vmatpush3.bf16.msra.mxu1 %v22433_v23  ;;  %21611 = vmatpush3.bf16.msra.mxu0 %v22434_v25  ;;  %v21602_v36 = vpop.f32.mrb[221].mxu1  ;;  %v9897_v22 = vpack.c.bf16 %v9891_v27, %v9891_v27  ;;  %v22443_v23 = vld [vmem:[%s26346_s8 + $0x50] sm:$0xff]   ;;  %v22446_v27 = vld [vmem:[%s26346_s8 + $0x18] sm:$0xff]  }
0x10ab   :  { %21612 = vmatprep.subr.bf16.mxu0 %v23640_v40  ;;  %v9894_v37 = vpop.f32.mrb[222].mxu1  ;;  %21624 = vmatprep.subr.bf16.mxu1 %v23640_v40  ;;  %v22444_v25 = vld [vmem:[%s26346_s8 + $0x10] sm:$0xff]   ;;  %v22449_v36 = vld [vmem:[%s26346_s8 + $0x20] sm:$0xff]  }
0x10ac   :  { %v21603_v46 = vpop.f32.mrb[223].mxu1  ;;  %v22451_v37 = vld [vmem:[%s26346_s8 + $0x68] sm:$0xff]  }
0x10ad   :  { %10628 = vmatmul.mubr.bf16.vlgmr.msra.gmra.mrb[228].mxu1 %v9805_v26  ;;  %v22445_v26 = vld [vmem:[%s26346_s8 + $0x58] sm:$0xff]   ;;  %v22453_v46 = vld [vmem:[%s26346_s8 + $0x28] sm:$0xff]  }
0x10ae   :  { %21613 = vmatpush3.bf16.msra.mxu0 %v22435_v30  ;;  %21626 = vmatprep.mubr.msk.bf16.mxu1 %vm23641_vm2, %v23640_v40  ;;  %v22447_v30 = vld [vmem:[%s26346_s8 + $0x60] sm:$0xff]  }
0x10af   :  { %21614 = vmatprep.subr.bf16.mxu0 %v23640_v40 }
0x10b2   :  { %21615 = vmatpush3.bf16.msra.mxu0 %v22436_v47  ;;  %v22455_v47 = vld [vmem:[%s26346_s8 + $0x70] sm:$0xff]  }
0x10b3   :  { %21616 = vmatprep.subr.bf16.mxu0 %v23640_v40 }
0x10b6   :  { %21617 = vmatpush3.bf16.msra.mxu0 %v22437_v29  ;;  %v22456_v29 = vld [vmem:[%s26346_s8 + $0xd0] sm:$0xff]  }
0x10b7   :  { %21618 = vmatprep.subr.bf16.mxu0 %v23640_v40 }
0x10ba   :  { %21619 = vmatpush3.bf16.msra.mxu0 %v22438_v48  ;;  %v22457_v48 = vld [vmem:[%s26346_s8 + $0x30] sm:$0xff]  }
0x10bb   :  { %21648 = vmatprep.subr.bf16.mxu0 %v23640_v40 }
0x10bd   :  { %21621 = vmatmul.mubr.bf16.vlgmr.msra.gmra.mrb[20].mxu0 %v9897_v22  ;;  %v22458_v22 = vld [vmem:[%s26346_s8 + $0x90] sm:$0xff]  }
0x10be   :  { %21650 = vmatprep.mubr.msk.bf16.mxu0 %vm23641_vm2, %v23640_v40 }
0x1150   :  { %v20534_v54 = vpop.f32.mrb[12].mxu0 }
0x1151   :  { %v20535_v14 = vpop.f32.mrb[13].mxu0 }
0x1152   :  { %v20536_v20 = vadd.f32 %v20535_v14, %v20534_v54  ;;  %v20537_v24 = vpop.f32.mrb[14].mxu0  ;;  %v22459_v54 = vld [vmem:[%s26346_s8 + $0x78] sm:$0xff]  }
0x1153   :  { %v20538_v45 = vpop.f32.mrb[15].mxu0  ;;  %v22460_v14 = vld [vmem:[%s26346_s8 + $0xd8] sm:$0xff]  }
0x1154   :  { %v10510_v55 = vadd.f32 %v20536_v20, %v10042_v15  ;;  %v22461_v20 = vld [vmem:[%s26346_s8 + $0x38] sm:$0xff]   ;;  %v22463_v45 = vld [vmem:[%s26346_s8 + $0xe0] sm:$0xff]  }
0x1155   :  { %v22462_v24 = vld [vmem:[%s26346_s8 + $0x98] sm:$0xff]   ;;  %v22464_v15 = vld [vmem:[%s26346_s8 + $0x140] sm:$0xff]  }
0x1160   :  { %v20556_v32 = vpop.f32.mrb[224].mxu1 }
0x1161   :  { %v20557_v50 = vpop.f32.mrb[225].mxu1 }
0x1162   :  { %v20558_v19 = vadd.f32 %v20557_v50, %v20556_v32  ;;  %v20559_v58 = vpop.f32.mrb[226].mxu1  ;;  %v22465_v32 = vld [vmem:[%s26346_s8 + $0xa0] sm:$0xff]   ;;  %v22467_v50 = vld [vmem:[%s26346_s8 + $0xe8] sm:$0xff]  }
0x1163   :  { %v20560_v39 = vpop.f32.mrb[227].mxu1  ;;  %v22473_v58 = vld [vmem:[%s26346_s8 + $0xb0] sm:$0xff]  }
0x1164   :  { %v10550_v7 = vadd.f32 %v20558_v19, %v10510_v55  ;;  %v22469_v55 = vld [vmem:[%s26346_s8 + $0xa8] sm:$0xff]   ;;  %v22471_v19 = vld [vmem:[%s26346_s8 + $0xf0] sm:$0xff]   ;;  %v22475_v39 = vld [vmem:[%s26346_s8 + $0xf8] sm:$0xff]  }
0x1170   :  { %v20578_v28 = vpop.f32.mrb[16].mxu0 }
0x1171   :  { %v20579_v34 = vpop.f32.mrb[17].mxu0 }
0x1172   :  { %v20580_v38 = vadd.f32 %v20579_v34, %v20578_v28  ;;  %v20581_v51 = vpop.f32.mrb[18].mxu0  ;;  %v22480_v28 = vld [vmem:[%s26346_s8 + $0x1c0] sm:$0xff]  }
0x1173   :  { %v20582_v52 = vpop.f32.mrb[19].mxu0 }
0x1174   :  { %v10590_v56 = vadd.f32 %v20580_v38, %v10550_v7  ;;  %v22477_v7 = vld [vmem:[%s26346_s8 + $0xb8] sm:$0xff]  }
0x1180   :  { %v20600_v59 = vpop.f32.mrb[228].mxu1 }
0x1181   :  { %v20601_v60 = vpop.f32.mrb[229].mxu1 }
0x1182   :  { %v20602_v61 = vadd.f32 %v20601_v60, %v20600_v59  ;;  %v20603_v62 = vpop.f32.mrb[230].mxu1 }
0x1183   :  { %v20604_v63 = vpop.f32.mrb[231].mxu1 }
0x1184   :  { %v10630_v0 = vadd.f32 %v20602_v61, %v10590_v56 }
0x1190   :  { %v10669_v1 = vpop.f32.mrb[20].mxu0 }
0x1191   :  { %v10670_v35 = vadd.f32 %v10669_v1, %v10630_v0  ;;  %v21622_v33 = vpop.f32.mrb[21].mxu0 }
0x1192   :  { %v10672_v44 = vpop.f32.mrb[22].mxu0 }
0x1193   :  { %v10675_v2 = vmax.f32 %v10670_v35, 0.0  ;;  %v21623_v3 = vpop.f32.mrb[23].mxu0  ;;  %v22466_v35 = vld [vmem:[%s26346_s8 + $0x100] sm:$0xff]  }
0x1194   :  { %v22468_v3 = vld [vmem:[%s26346_s8 + $0x148] sm:$0xff]  }
0x1195   :  { %v10676_v5 = vpack.c.bf16 %v10675_v2, %v10675_v2 }
0x1197   :  { %v10682_v41 = vsel %vm8139_vm3, %v10676_v5, 0 }
0x1198   :  { %21625 = vmatpush3.bf16.msra.mxu1 %v10682_v41  ;;  %21649 = vmatpush3.bf16.msra.mxu0 %v10682_v41 }
0x1199   :  { %21630 = vmatprep.subr.bf16.mxu1 %v23640_v40  ;;  %21660 = vmatprep.subr.bf16.mxu0 %v23640_v40 }
0x119b   :  { %21627 = vmatmul.mubr.msk.bf16.vlgmr.msra.gmra.mrb[232].mxu1 %vm8135_vm4, %v10677_v31  ;;  %21651 = vmatmul.mubr.msk.bf16.vlgmr.msra.gmra.mrb[24].mxu0 %vm8135_vm4, %v18694_v4  ;;  %v22470_v4 = vld [vmem:[%s26346_s8 + $0x108] sm:$0xff]  }
0x119c   :  { %21631 = vmatpush3.bf16.msra.mxu1 %v10682_v41  ;;  %21661 = vmatpush3.bf16.msra.mxu0 %v10682_v41 }
0x119d   :  { %21632 = vmatprep.mubr.msk.bf16.mxu1 %vm23641_vm2, %v23640_v40  ;;  %21636 = vmatprep.subr.bf16.mxu1 %v23640_v40 }
0x119e   :  { %21662 = vmatprep.mubr.msk.bf16.mxu0 %vm23641_vm2, %v23640_v40  ;;  %21672 = vmatprep.subr.bf16.mxu0 %v23640_v40 }
0x11a3   :  { %21633 = vmatmul.mubr.msk.bf16.vlgmr.msra.gmra.mrb[236].mxu1 %vm8135_vm4, %v18688_v6  ;;  %21663 = vmatmul.mubr.msk.bf16.vlgmr.msra.gmra.mrb[28].mxu0 %vm8135_vm4, %v18698_v8  ;;  %v22472_v6 = vld [vmem:[%s26346_s8 + $0x150] sm:$0xff]  }
0x11a4   :  { %21637 = vmatpush3.bf16.msra.mxu1 %v10682_v41  ;;  %21673 = vmatpush3.bf16.msra.mxu0 %v10682_v41 }
0x11a5   :  { %21638 = vmatprep.mubr.msk.bf16.mxu1 %vm23641_vm2, %v23640_v40  ;;  %21642 = vmatprep.subr.bf16.mxu1 %v23640_v40 }
0x11a6   :  { %21674 = vmatprep.mubr.msk.bf16.mxu0 %vm23641_vm2, %v23640_v40  ;;  %20655 = vmatprep.subr.bf16.mxu0 %v22448_v49 }
0x11ab   :  { %21639 = vmatmul.mubr.msk.bf16.vlgmr.msra.gmra.mrb[240].mxu1 %vm8135_vm4, %v18690_v53  ;;  %21675 = vmatmul.mubr.msk.bf16.vlgmr.msra.gmra.mrb[32].mxu0 %vm8135_vm4, %v18702_v57  ;;  %v22474_v53 = vld [vmem:[%s26346_s8 + $0x110] sm:$0xff]  }
0x11ac   :  { %21643 = vmatpush3.bf16.msra.mxu1 %v10682_v41  ;;  %21644 = vmatprep.mubr.msk.bf16.mxu1 %vm23641_vm2, %v23640_v40 }
0x11ad   :  { %21654 = vmatprep.subr.bf16.mxu1 %v23640_v40  ;;  %20656 = vmatpush3.bf16.msra.mxu0 %v22450_v43 }
0x11ae   :  { %20657 = vmatprep.subr.bf16.mxu0 %v22452_v9 }
0x11b1   :  { %20658 = vmatpush3.bf16.msra.mxu0 %v22454_v10  ;;  %v22476_v10 = vld [vmem:[%s26346_s8 + $0x158] sm:$0xff]  }
0x11b2   :  { %20659 = vmatprep.subr.bf16.mxu0 %v22456_v29  ;;  %v22486_v29 = vld [vmem:[%s26346_s8 + $0x188] sm:$0xff]  }
0x11b3   :  { %21645 = vmatmul.mubr.msk.bf16.vlgmr.msra.gmra.mrb[244].mxu1 %vm8135_vm4, %v18692_v11 }
0x11b4   :  { %21655 = vmatpush3.bf16.msra.mxu1 %v10682_v41  ;;  %21656 = vmatprep.mubr.msk.bf16.mxu1 %vm23641_vm2, %v23640_v40 }
0x11b5   :  { %21666 = vmatprep.subr.bf16.mxu1 %v23640_v40  ;;  %20660 = vmatpush3.bf16.msra.mxu0 %v22458_v22  ;;  %v22488_v22 = vld [vmem:[%s26346_s8 + $0x1d0] sm:$0xff]  }
0x11b6   :  { %20661 = vmatprep.subr.bf16.mxu0 %v22460_v14  ;;  %v22489_v14 = vld [vmem:[%s26346_s8 + $0x130] sm:$0xff]  }
0x11b9   :  { %20662 = vmatpush3.bf16.msra.mxu0 %v22462_v24 }
0x11ba   :  { %20663 = vmatprep.subr.bf16.mxu0 %v22463_v45 }
0x11bb   :  { %21657 = vmatmul.mubr.msk.bf16.vlgmr.msra.gmra.mrb[248].mxu1 %vm8135_vm4, %v18696_v12 }
0x11bc   :  { %21667 = vmatpush3.bf16.msra.mxu1 %v10682_v41  ;;  %21668 = vmatprep.mubr.msk.bf16.mxu1 %vm23641_vm2, %v23640_v40 }
0x11bd   :  { %20633 = vmatprep.subr.bf16.mxu1 %v22439_v13  ;;  %20664 = vmatpush3.bf16.msra.mxu0 %v22465_v32  ;;  %v22492_v32 = vld [vmem:[%s26346_s8 + $0x1d8] sm:$0xff]  }
0x11be   :  { %20665 = vmatprep.subr.bf16.mxu0 %v22467_v50 }
0x11c1   :  { %20666 = vmatpush3.bf16.msra.mxu0 %v22469_v55 }
0x11c2   :  { %20667 = vmatprep.subr.bf16.mxu0 %v22471_v19  ;;  %v22493_v19 = vld [vmem:[%s26346_s8 + $0x138] sm:$0xff]  }
0x11c3   :  { %21669 = vmatmul.mubr.msk.bf16.vlgmr.msra.gmra.mrb[252].mxu1 %vm8135_vm4, %v18700_v16  ;;  %v22478_v16 = vld [vmem:[%s26346_s8 + $0x118] sm:$0xff]  }
0x11c4   :  { %20634 = vmatpush3.bf16.msra.mxu1 %v22440_v17  ;;  %v22479_v17 = vld [vmem:[%s26346_s8 + $0x160] sm:$0xff]  }
0x11c5   :  { %20635 = vmatprep.subr.bf16.mxu1 %v22441_v18  ;;  %20668 = vmatpush3.bf16.msra.mxu0 %v22473_v58  ;;  %v22494_v58 = vld [vmem:[%s26346_s8 + $0x198] sm:$0xff]  }
0x11c6   :  { %20669 = vmatprep.subr.bf16.mxu0 %v22475_v39  ;;  %v22495_v39 = vld [vmem:[%s26346_s8 + $0x1e0] sm:$0xff]  }
0x11c8   :  { %20636 = vmatpush3.bf16.msra.mxu1 %v22442_v21 }
0x11c9   :  { %20637 = vmatprep.subr.bf16.mxu1 %v22443_v23  ;;  %20670 = vmatpush3.bf16.msra.mxu0 %v22477_v7 }
0x11ca   :  { %20699 = vmatprep.subr.bf16.mxu0 %v22480_v28 }
0x11cc   :  { %20638 = vmatpush3.bf16.msra.mxu1 %v22444_v25  ;;  %v22481_v25 = vld [vmem:[%s26346_s8 + $0x120] sm:$0xff]  }
0x11cd   :  { %20639 = vmatprep.subr.bf16.mxu1 %v22445_v26  ;;  %v22482_v26 = vld [vmem:[%s26346_s8 + $0x180] sm:$0xff]  }
0x11d0   :  { %20640 = vmatpush3.bf16.msra.mxu1 %v22446_v27 }
0x11d1   :  { %20641 = vmatprep.subr.bf16.mxu1 %v22447_v30  ;;  %v22483_v30 = vld [vmem:[%s26346_s8 + $0x168] sm:$0xff]  }
0x11d4   :  { %20642 = vmatpush3.bf16.msra.mxu1 %v22449_v36  ;;  %v22484_v36 = vld [vmem:[%s26346_s8 + $0x1c8] sm:$0xff]  }
0x11d5   :  { %20643 = vmatprep.subr.bf16.mxu1 %v22451_v37 }
0x11d8   :  { %20644 = vmatpush3.bf16.msra.mxu1 %v22453_v46 }
0x11d9   :  { %20645 = vmatprep.subr.bf16.mxu1 %v22455_v47  ;;  %v22485_v47 = vld [vmem:[%s26346_s8 + $0x128] sm:$0xff]  }
0x11dc   :  { %20646 = vmatpush3.bf16.msra.mxu1 %v22457_v48  ;;  %v22487_v48 = vld [vmem:[%s26346_s8 + $0x170] sm:$0xff]  }
0x11dd   :  { %20647 = vmatprep.subr.bf16.mxu1 %v22459_v54 }
0x11e0   :  { %20648 = vmatpush3.bf16.msra.mxu1 %v22461_v20  ;;  %v22490_v20 = vld [vmem:[%s26346_s8 + $0x190] sm:$0xff]  }
0x11e1   :  { %20677 = vmatprep.subr.bf16.mxu1 %v22464_v15  ;;  %v22491_v15 = vld [vmem:[%s26346_s8 + $0x178] sm:$0xff]  }
0x126e   :  { %v10718_v34 = vpop.f32.mrb[232].mxu1  ;;  %v25344_v38 = vpop.f32.mrb[24].mxu0 }
0x126f   :  { %v21628_v51 = vpop.f32.mrb[233].mxu1  ;;  %v21652_v52 = vpop.f32.mrb[25].mxu0  ;;  %v10724_v44 = vpack.c.bf16 %v10718_v34, %v10718_v34  ;;  %v10908_v7 = vpack.c.bf16 %v25344_v38, %v25344_v38  ;;  %v22496_v34 = vld [vmem:[%s26346_s8 + $0x1a0] sm:$0xff]   ;;  %v22499_v38 = vld [vmem:[%s26346_s8 + $0x1a8] sm:$0xff]  }
0x1270   :  { %v10721_v56 = vpop.f32.mrb[234].mxu1  ;;  %v10905_v59 = vpop.f32.mrb[26].mxu0  ;;  %v22497_v51 = vld [vmem:[%s26346_s8 + $0x200] sm:$0xff]  }
0x1271   :  { %v21629_v60 = vpop.f32.mrb[235].mxu1  ;;  %v21653_v61 = vpop.f32.mrb[27].mxu0  ;;  %v22498_v59 = vld [vmem:[%s26346_s8 + $0x1e8] sm:$0xff]  }
0x1276   :  { %v10764_v62 = vpop.f32.mrb[236].mxu1  ;;  %v25346_v63 = vpop.f32.mrb[28].mxu0 }
0x1277   :  { %v10770_v0 = vpack.c.bf16 %v10764_v62, %v10764_v62  ;;  %v21634_v1 = vpop.f32.mrb[237].mxu1  ;;  %v21664_v33 = vpop.f32.mrb[29].mxu0  ;;  %v22500_v62 = vld [vmem:[%s26346_s8 + $0x208] sm:$0xff]  }
0x1278   :  { %v10767_v2 = vpop.f32.mrb[238].mxu1  ;;  %v10997_v5 = vpop.f32.mrb[30].mxu0  ;;  %v22502_v1 = vld [vmem:[%s26346_s8 + $0x1b0] sm:$0xff]   ;;  %v22504_v33 = vld [vmem:[%s26346_s8 + $0x1f8] sm:$0xff]  }
0x1279   :  { %11702 = vmatprep.mubr.bf16.mxu1 %v10770_v0  ;;  %v21635_v41 = vpop.f32.mrb[239].mxu1  ;;  %v21665_v31 = vpop.f32.mrb[31].mxu0  ;;  %v22501_v0 = vld [vmem:[%s26346_s8 + $0x1f0] sm:$0xff]   ;;  %v22506_v2 = vld [vmem:[%s26346_s8 + $0x218] sm:$0xff]   ;;  %v22507_v5 = vld [vmem:[%s26346_s8 + $0x220] sm:$0xff]  }
0x127a   :  { %11703 = vmatmul.mubr.bf16.vlgmr.msra.gmra.mrb[0].mxu1 %v10724_v44  ;;  %v22505_v44 = vld [vmem:[%s26346_s8 + $0x1b8] sm:$0xff]   ;;  %v22508_v41 = vld [vmem:[%s26346_s8 + $0x228] sm:$0xff]  }
0x127b   :  { %20678 = vmatpush3.bf16.msra.mxu1 %v22466_v35  ;;  %v22503_v35 = vld [vmem:[%s26346_s8 + $0x210] sm:$0xff]   ;;  %v22510_v31 = vld [vmem:[%s26346_s8 + $0x238] sm:$0xff]  }
0x127c   :  { %20679 = vmatprep.subr.bf16.mxu1 %v22468_v3  ;;  %v11000_v3 = vpack.c.bf16 %v25346_v63, %v25346_v63  ;;  %v22509_v63 = vld [vmem:[%s26346_s8 + $0x230] sm:$0xff]  }
0x127e   :  { %v10810_v8 = vpop.f32.mrb[240].mxu1  ;;  %v25352_v49 = vpop.f32.mrb[32].mxu0 }
0x127f   :  { %20680 = vmatpush3.bf16.msra.mxu1 %v22470_v4  ;;  %v21640_v57 = vpop.f32.mrb[241].mxu1  ;;  %v21676_v43 = vpop.f32.mrb[33].mxu0  ;;  %v10816_v18 = vpack.c.bf16 %v10810_v8, %v10810_v8  ;;  %v11092_v4 = vpack.c.bf16 %v25352_v49, %v25352_v49  ;;  %v22513_v8 = vld [vmem:[%s26347_s14 + $0x4] ss:$8 sps:$4 sm:$0xff]   ;;  %v22522_v49 = vld [vmem:[%s26347_s14 + $0x34] ss:$8 sps:$4 sm:$0xff]  }
0x1280   :  { %20681 = vmatprep.subr.bf16.mxu1 %v22472_v6  ;;  %v10813_v9 = vpop.f32.mrb[242].mxu1  ;;  %v11089_v11 = vpop.f32.mrb[34].mxu0  ;;  %v22511_v6 = vld [vmem:[%s26347_s14] ss:$8 sps:$4 sm:$0xff]   ;;  %v22514_v57 = vld [vmem:[%s26347_s14 + $0x10] ss:$8 sps:$4 sm:$0xff]  }
0x1281   :  { %v21641_v12 = vpop.f32.mrb[243].mxu1  ;;  %v21677_v13 = vpop.f32.mrb[35].mxu0  ;;  %v22519_v43 = vld [vmem:[%s26347_s14 + $0x24] ss:$8 sps:$4 sm:$0xff]   ;;  %v22517_v9 = vld [vmem:[%s26347_s14 + $0x20] ss:$8 sps:$4 sm:$0xff]  }
0x1282   :  { %v22525_v11 = vld [vmem:[%s26347_s14 + $0x44] ss:$8 sps:$4 sm:$0xff]   ;;  %v22523_v12 = vld [vmem:[%s26347_s14 + $0x40] ss:$8 sps:$4 sm:$0xff]   ;;  %v22528_v13 = vld [vmem:[%s26347_s14 + $0x54] ss:$8 sps:$4 sm:$0xff]  }
0x1283   :  { %20682 = vmatpush3.bf16.msra.mxu1 %v22474_v53  ;;  %v22516_v53 = vld [vmem:[%s26347_s14 + $0x14] ss:$8 sps:$4 sm:$0xff]  }
0x1284   :  { %20683 = vmatprep.subr.bf16.mxu1 %v22476_v10  ;;  %v22520_v10 = vld [vmem:[%s26347_s14 + $0x30] ss:$8 sps:$4 sm:$0xff]  }
0x1286   :  { %v10856_v21 = vpop.f32.mrb[244].mxu1 }
0x1287   :  { %v10862_v23 = vpack.c.bf16 %v10856_v21, %v10856_v21  ;;  %20684 = vmatpush3.bf16.msra.mxu1 %v22478_v16  ;;  %v21646_v27 = vpop.f32.mrb[245].mxu1  ;;  %v22526_v16 = vld [vmem:[%s26347_s14 + $0x50] ss:$8 sps:$4 sm:$0xff]   ;;  %v22534_v21 = vld [vmem:[%s26347_s14 + $0x74] ss:$8 sps:$4 sm:$0xff]  }
0x1288   :  { %20685 = vmatprep.subr.bf16.mxu1 %v22479_v17  ;;  %v10859_v37 = vpop.f32.mrb[246].mxu1  ;;  %v22531_v17 = vld [vmem:[%s26347_s14 + $0x64] ss:$8 sps:$4 sm:$0xff]  }
0x1289   :  { %11742 = vmatprep.mubr.bf16.mxu0 %v10862_v23  ;;  %v21647_v46 = vpop.f32.mrb[247].mxu1  ;;  %v22537_v27 = vld [vmem:[%s26347_s14 + $0x84] ss:$8 sps:$4 sm:$0xff]  }
0x128a   :  { %11743 = vmatmul.mubr.bf16.vlgmr.msra.gmra.mrb[36].mxu0 %v10816_v18  ;;  %v22529_v18 = vld [vmem:[%s26347_s14 + $0x60] ss:$8 sps:$4 sm:$0xff]  }
0x128b   :  { %20686 = vmatpush3.bf16.msra.mxu1 %v22481_v25  ;;  %20700 = vmatpush3.bf16.msra.mxu0 %v22482_v26  ;;  %v22532_v25 = vld [vmem:[%s26347_s14 + $0x70] ss:$8 sps:$4 sm:$0xff]   ;;  %v22535_v46 = vld [vmem:[%s26347_s14 + $0x80] ss:$8 sps:$4 sm:$0xff]  }
0x128c   :  { %20687 = vmatprep.subr.bf16.mxu1 %v22483_v30  ;;  %20701 = vmatprep.subr.bf16.mxu0 %v22484_v36 }
0x128e   :  { %v10948_v54 = vpop.f32.mrb[248].mxu1 }
0x128f   :  { %20688 = vmatpush3.bf16.msra.mxu1 %v22485_v47  ;;  %20702 = vmatpush3.bf16.msra.mxu0 %v22486_v29  ;;  %v10954_v24 = vpack.c.bf16 %v10948_v54, %v10948_v54  ;;  %v21658_v45 = vpop.f32.mrb[249].mxu1  ;;  %v22540_v47 = vld [vmem:[%s26347_s14 + $0x94] ss:$8 sps:$4 sm:$0xff]   ;;  %v22538_v29 = vld [vmem:[%s26347_s14 + $0x90] ss:$8 sps:$4 sm:$0xff]  }
0x1290   :  { %20689 = vmatprep.subr.bf16.mxu1 %v22487_v48  ;;  %20703 = vmatprep.subr.bf16.mxu0 %v22488_v22  ;;  %v10951_v50 = vpop.f32.mrb[250].mxu1  ;;  %v22543_v48 = vld [vmem:[%s26347_s14 + $0xa4] ss:$8 sps:$4 sm:$0xff]   ;;  %v22541_v22 = vld [vmem:[%s26347_s14 + $0xa0] ss:$8 sps:$4 sm:$0xff]  }
0x1291   :  { %11782 = vmatprep.mubr.bf16.mxu1 %v10954_v24  ;;  %v21659_v55 = vpop.f32.mrb[251].mxu1  ;;  %v22546_v54 = vld [vmem:[%s26347_s14 + $0xb4] ss:$8 sps:$4 sm:$0xff]   ;;  %v22544_v24 = vld [vmem:[%s26347_s14 + $0xb0] ss:$8 sps:$4 sm:$0xff]  }
0x1293   :  { %20690 = vmatpush3.bf16.msra.mxu1 %v22489_v14  ;;  %20704 = vmatpush3.bf16.msra.mxu0 %v22490_v20  ;;  %v11237_v14 = vld [vmem:[%s23672_s21 + $0x20] ss:$0 sm:$0xff] }
0x1294   :  { %20691 = vmatprep.subr.bf16.mxu1 %v22491_v15  ;;  %20705 = vmatprep.subr.bf16.mxu0 %v22492_v32  ;;  %v22549_v15 = vld [vmem:[%s26347_s14 + $0xc4] ss:$8 sps:$4 sm:$0xff]  }
0x1296   :  { %v11040_v28 = vpop.f32.mrb[252].mxu1 }
0x1297   :  { %20692 = vmatpush3.bf16.msra.mxu1 %v22493_v19  ;;  %20706 = vmatpush3.bf16.msra.mxu0 %v22494_v58  ;;  %v11046_v52 = vpack.c.bf16 %v11040_v28, %v11040_v28  ;;  %v21670_v56 = vpop.f32.mrb[253].mxu1  ;;  %v22550_v28 = vld [vmem:[%s26347_s14 + $0xd0] ss:$8 sps:$4 sm:$0xff]  }
0x1298   :  { %20707 = vmatprep.subr.bf16.mxu0 %v22495_v39  ;;  %21678 = vmatprep.subr.bf16.mxu1 %v23640_v40  ;;  %v11043_v60 = vpop.f32.mrb[254].mxu1  ;;  %v22547_v39 = vld [vmem:[%s26347_s14 + $0xc0] ss:$8 sps:$4 sm:$0xff]  }
0x1299   :  { %11822 = vmatprep.mubr.bf16.mxu0 %v11046_v52  ;;  %v21671_v61 = vpop.f32.mrb[255].mxu1 }
0x129a   :  { %11783 = vmatmul.mubr.bf16.vlgmr.msra.gmra.mrb[4].mxu1 %v10908_v7  ;;  %v22552_v7 = vld [vmem:[%s26347_s14 + $0xd4] ss:$8 sps:$4 sm:$0xff]  }
0x129b   :  { %20708 = vmatpush3.bf16.msra.mxu0 %v22496_v34  ;;  %21679 = vmatpush3.bf16.msra.mxu1 %v22497_v51  ;;  %v22555_v34 = vld [vmem:[%s26347_s14 + $0xe4] ss:$8 sps:$4 sm:$0xff]   ;;  %v22553_v51 = vld [vmem:[%s26347_s14 + $0xe0] ss:$8 sps:$4 sm:$0xff]  }
0x129c   :  { %20709 = vmatprep.subr.bf16.mxu0 %v22498_v59  ;;  %21680 = vmatprep.subr.bf16.mxu1 %v23640_v40 }
0x129d   :  { %21694 = vmatprep.mubr.msk.bf16.mxu1 %vm23641_vm2, %v23640_v40 }
0x129f   :  { %20710 = vmatpush3.bf16.msra.mxu0 %v22499_v38  ;;  %21681 = vmatpush3.bf16.msra.mxu1 %v22500_v62 }
0x12a0   :  { %20711 = vmatprep.subr.bf16.mxu0 %v22501_v0  ;;  %21682 = vmatprep.subr.bf16.mxu1 %v23640_v40 }
0x12a3   :  { %20712 = vmatpush3.bf16.msra.mxu0 %v22502_v1  ;;  %21683 = vmatpush3.bf16.msra.mxu1 %v22503_v35 }
0x12a4   :  { %20713 = vmatprep.subr.bf16.mxu0 %v22504_v33  ;;  %21684 = vmatprep.subr.bf16.mxu1 %v23640_v40 }
0x12a7   :  { %20714 = vmatpush3.bf16.msra.mxu0 %v22505_v44  ;;  %21685 = vmatpush3.bf16.msra.mxu1 %v22506_v2 }
0x12a8   :  { %21686 = vmatprep.subr.bf16.mxu1 %v23640_v40  ;;  %21698 = vmatprep.subr.bf16.mxu0 %v23640_v40 }
0x12aa   :  { %11823 = vmatmul.mubr.bf16.vlgmr.msra.gmra.mrb[40].mxu0 %v11000_v3 }
0x12ab   :  { %21687 = vmatpush3.bf16.msra.mxu1 %v22507_v5  ;;  %21700 = vmatprep.mubr.msk.bf16.mxu0 %vm23641_vm2, %v23640_v40 }
0x12ac   :  { %21688 = vmatprep.subr.bf16.mxu1 %v23640_v40 }
0x12af   :  { %21689 = vmatpush3.bf16.msra.mxu1 %v22508_v41 }
0x12b0   :  { %21690 = vmatprep.subr.bf16.mxu1 %v23640_v40 }
0x12b3   :  { %21691 = vmatpush3.bf16.msra.mxu1 %v22509_v63 }
0x12b4   :  { %21692 = vmatprep.subr.bf16.mxu1 %v23640_v40 }
0x12b7   :  { %21693 = vmatpush3.bf16.msra.mxu1 %v22510_v31 }
0x12b8   :  { %12456 = vmatprep.subr.bf16.mxu1 %v22513_v8 }
0x12ba   :  { %21695 = vmatmul.mubr.bf16.vlgmr.msra.gmra.mrb[8].mxu1 %v11092_v4 }
0x12bb   :  { %12457 = vmatpush1.bf16.msra.mxu1 %v22511_v6 }
0x12bc   :  { %12458 = vmatprep.subr.bf16.mxu1 %v22516_v53  ;;  %v11873_v53 = vld [vmem:[%s26348_s19] sm:$0x1] }
0x12bf   :  { %12459 = vmatpush1.bf16.msra.mxu1 %v22514_v57  ;;  %v18779_v57 = vld [vmem:[%s26348_s19 + $0x2] sm:$0x1] }
0x12c0   :  { %12460 = vmatprep.subr.bf16.mxu1 %v22519_v43  ;;  %v18781_v43 = vld [vmem:[%s26348_s19 + $0x3] sm:$0x1] }
0x12c3   :  { %12461 = vmatpush1.bf16.msra.mxu1 %v22517_v9  ;;  %v22556_v9 = vld [vmem:[%s26347_s14 + $0xf0] ss:$8 sps:$4 sm:$0xff]  }
0x12c4   :  { %12462 = vmatprep.subr.bf16.mxu1 %v22522_v49  ;;  %v22558_v49 = vld [vmem:[%s26347_s14 + $0xf4] ss:$8 sps:$4 sm:$0xff]  }
0x12c7   :  { %12463 = vmatpush1.bf16.msra.mxu1 %v22520_v10  ;;  %v22561_v10 = vld [vmem:[%s26347_s14 + $0x104] ss:$8 sps:$4 sm:$0xff]  }
0x12c8   :  { %12464 = vmatprep.subr.bf16.mxu1 %v22525_v11  ;;  %v22607_v11 = vld [vmem:[%s26349_s24] ss:$8 sps:$4 sm:$0xff]  }
0x12cb   :  { %12465 = vmatpush1.bf16.msra.mxu1 %v22523_v12  ;;  %v22609_v12 = vld [vmem:[%s26349_s24 + $0x4] ss:$8 sps:$4 sm:$0xff]  }
0x12cc   :  { %12466 = vmatprep.subr.bf16.mxu1 %v22528_v13  ;;  %v22612_v13 = vld [vmem:[%s26349_s24 + $0x14] ss:$8 sps:$4 sm:$0xff]  }
0x12cf   :  { %12467 = vmatpush1.bf16.msra.mxu1 %v22526_v16  ;;  %v22610_v16 = vld [vmem:[%s26349_s24 + $0x10] ss:$8 sps:$4 sm:$0xff]  }
0x12d0   :  { %12468 = vmatprep.subr.bf16.mxu1 %v22531_v17  ;;  %v22615_v17 = vld [vmem:[%s26349_s24 + $0x24] ss:$8 sps:$4 sm:$0xff]  }
0x12d3   :  { %12469 = vmatpush1.bf16.msra.mxu1 %v22529_v18  ;;  %v22613_v18 = vld [vmem:[%s26349_s24 + $0x20] ss:$8 sps:$4 sm:$0xff]  }
0x12d4   :  { %12470 = vmatprep.subr.bf16.mxu1 %v22534_v21  ;;  %v22618_v21 = vld [vmem:[%s26349_s24 + $0x34] ss:$8 sps:$4 sm:$0xff]  }
0x12d7   :  { %12471 = vmatpush1.bf16.msra.mxu1 %v22532_v25  ;;  %v22621_v25 = vld [vmem:[%s26349_s24 + $0x44] ss:$8 sps:$4 sm:$0xff]  }
0x12d8   :  { %12472 = vmatprep.subr.bf16.mxu1 %v22537_v27  ;;  %v22624_v27 = vld [vmem:[%s26349_s24 + $0x54] ss:$8 sps:$4 sm:$0xff]  }
0x12db   :  { %12473 = vmatpush1.bf16.msra.mxu1 %v22535_v46  ;;  %v22630_v46 = vld [vmem:[%s26349_s24 + $0x74] ss:$8 sps:$4 sm:$0xff]  }
0x12dc   :  { %12474 = vmatprep.subr.bf16.mxu1 %v22540_v47  ;;  %v22628_v47 = vld [vmem:[%s26349_s24 + $0x70] ss:$8 sps:$4 sm:$0xff]  }
0x12df   :  { %12475 = vmatpush1.bf16.msra.mxu1 %v22538_v29  ;;  %v22633_v29 = vld [vmem:[%s26349_s24 + $0x84] ss:$8 sps:$4 sm:$0xff]  }
0x12e0   :  { %12476 = vmatprep.subr.bf16.mxu1 %v22543_v48  ;;  %v22631_v48 = vld [vmem:[%s26349_s24 + $0x80] ss:$8 sps:$4 sm:$0xff]  }
0x12e3   :  { %12477 = vmatpush1.bf16.msra.mxu1 %v22541_v22  ;;  %v22636_v22 = vld [vmem:[%s26349_s24 + $0x94] ss:$8 sps:$4 sm:$0xff]  }
0x12e4   :  { %12478 = vmatprep.subr.bf16.mxu1 %v22546_v54  ;;  %v22634_v54 = vld [vmem:[%s26349_s24 + $0x90] ss:$8 sps:$4 sm:$0xff]  }
0x12e7   :  { %12479 = vmatpush1.bf16.msra.mxu1 %v22544_v24  ;;  %v22642_v24 = vld [vmem:[%s26349_s24 + $0xb4] ss:$8 sps:$4 sm:$0xff]  }
0x12e8   :  { %12480 = vmatprep.subr.bf16.mxu1 %v22549_v15  ;;  %v22645_v15 = vld [vmem:[%s26349_s24 + $0xc4] ss:$8 sps:$4 sm:$0xff]  }
0x12eb   :  { %12481 = vmatpush1.bf16.msra.mxu1 %v22547_v39 }
0x12ec   :  { %12482 = vmatprep.subr.bf16.mxu1 %v22552_v7 }
0x12ef   :  { %12483 = vmatpush1.bf16.msra.mxu1 %v22550_v28 }
0x12f0   :  { %12484 = vmatprep.subr.bf16.mxu1 %v22555_v34 }
0x12f3   :  { %12485 = vmatpush1.bf16.msra.mxu1 %v22553_v51  ;;  %v22559_v51 = vld [vmem:[%s26347_s14 + $0x100] ss:$8 sps:$4 sm:$0xff]  }
0x12f4   :  { %12486 = vmatprep.subr.bf16.mxu1 %v22558_v49  ;;  %v22582_v49 = vld [vmem:[%s26347_s14 + $0x174] ss:$8 sps:$4 sm:$0xff]  }
0x12f7   :  { %12487 = vmatpush1.bf16.msra.mxu1 %v22556_v9  ;;  %v22577_v9 = vld [vmem:[%s26347_s14 + $0x160] ss:$8 sps:$4 sm:$0xff]  }
0x12f8   :  { %12497 = vmatprep.subr.bf16.mxu1 %v22561_v10  ;;  %v22580_v10 = vld [vmem:[%s26347_s14 + $0x170] ss:$8 sps:$4 sm:$0xff]  }
0x134d   :  { %v20649_v23 = vpop.f32.mrb[0].mxu1 }
0x134e   :  { %v20650_v26 = vpop.f32.mrb[1].mxu1 }
0x134f   :  { %v20651_v30 = vadd.f32 %v20650_v26, %v20649_v23  ;;  %v20652_v36 = vpop.f32.mrb[2].mxu1  ;;  %v22616_v23 = vld [vmem:[%s26349_s24 + $0x30] ss:$8 sps:$4 sm:$0xff]   ;;  %v22619_v26 = vld [vmem:[%s26349_s24 + $0x40] ss:$8 sps:$4 sm:$0xff]  }
0x1350   :  { %v20653_v37 = vpop.f32.mrb[3].mxu1  ;;  %v22627_v36 = vld [vmem:[%s26349_s24 + $0x64] ss:$8 sps:$4 sm:$0xff]  }
0x1351   :  { %v11705_v32 = vadd.f32 %v20651_v30, %v11237_v14  ;;  %v22622_v30 = vld [vmem:[%s26349_s24 + $0x50] ss:$8 sps:$4 sm:$0xff]   ;;  %v22625_v37 = vld [vmem:[%s26349_s24 + $0x60] ss:$8 sps:$4 sm:$0xff]   ;;  %v22639_v14 = vld [vmem:[%s26349_s24 + $0xa4] ss:$8 sps:$4 sm:$0xff]  }
0x135d   :  { %v20671_v20 = vpop.f32.mrb[36].mxu0 }
0x135e   :  { %v20672_v45 = vpop.f32.mrb[37].mxu0 }
0x135f   :  { %v20673_v50 = vadd.f32 %v20672_v45, %v20671_v20  ;;  %v20674_v55 = vpop.f32.mrb[38].mxu0  ;;  %v22637_v20 = vld [vmem:[%s26349_s24 + $0xa0] ss:$8 sps:$4 sm:$0xff]   ;;  %v22640_v45 = vld [vmem:[%s26349_s24 + $0xb0] ss:$8 sps:$4 sm:$0xff]  }
0x1360   :  { %v20675_v19 = vpop.f32.mrb[39].mxu0  ;;  %v22646_v55 = vld [vmem:[%s26349_s24 + $0xd0] ss:$8 sps:$4 sm:$0xff]  }
0x1361   :  { %v11745_v58 = vadd.f32 %v20673_v50, %v11705_v32  ;;  %v22643_v32 = vld [vmem:[%s26349_s24 + $0xc0] ss:$8 sps:$4 sm:$0xff]   ;;  %v22648_v50 = vld [vmem:[%s26349_s24 + $0xd4] ss:$8 sps:$4 sm:$0xff]  }
0x136d   :  { %v20693_v52 = vpop.f32.mrb[4].mxu1 }
0x136e   :  { %v20694_v56 = vpop.f32.mrb[5].mxu1 }
0x136f   :  { %v20695_v59 = vadd.f32 %v20694_v56, %v20693_v52  ;;  %v20696_v60 = vpop.f32.mrb[6].mxu1 }
0x1370   :  { %v20697_v61 = vpop.f32.mrb[7].mxu1 }
0x1371   :  { %v11785_v38 = vadd.f32 %v20695_v59, %v11745_v58  ;;  %v22564_v59 = vld [vmem:[%s26347_s14 + $0x114] ss:$8 sps:$4 sm:$0xff]  }
0x137d   :  { %v20715_v62 = vpop.f32.mrb[40].mxu0 }
0x137e   :  { %v20716_v0 = vpop.f32.mrb[41].mxu0 }
0x137f   :  { %v20717_v1 = vadd.f32 %v20716_v0, %v20715_v62  ;;  %v20718_v35 = vpop.f32.mrb[42].mxu0  ;;  %v22567_v62 = vld [vmem:[%s26347_s14 + $0x124] ss:$8 sps:$4 sm:$0xff]  }
0x1380   :  { %v20719_v33 = vpop.f32.mrb[43].mxu0 }
0x1381   :  { %v11825_v44 = vadd.f32 %v20717_v1, %v11785_v38  ;;  %v22562_v38 = vld [vmem:[%s26347_s14 + $0x110] ss:$8 sps:$4 sm:$0xff]   ;;  %v22565_v1 = vld [vmem:[%s26347_s14 + $0x120] ss:$8 sps:$4 sm:$0xff]   ;;  %v22570_v33 = vld [vmem:[%s26347_s14 + $0x134] ss:$8 sps:$4 sm:$0xff]  }
0x138d   :  { %v11864_v2 = vpop.f32.mrb[8].mxu1 }
0x138e   :  { %v11865_v3 = vadd.f32 %v11864_v2, %v11825_v44  ;;  %v21696_v5 = vpop.f32.mrb[9].mxu1 }
0x138f   :  { %v11867_v41 = vpop.f32.mrb[10].mxu1  ;;  %v22573_v5 = vld [vmem:[%s26347_s14 + $0x144] ss:$8 sps:$4 sm:$0xff]  }
0x1390   :  { %v11870_v63 = vadd.f32 %v11865_v3, %v25137_v42  ;;  %v21697_v31 = vpop.f32.mrb[11].mxu1  ;;  %v18777_v42 = vld [vmem:[%s26348_s19 + $0x1] sm:$0x1]  ;;  %v22568_v3 = vld [vmem:[%s26347_s14 + $0x130] ss:$8 sps:$4 sm:$0xff]  }
0x1392   :  { %v11871_v4 = vmax.f32 %v11870_v63, 0.0  ;;  %v22571_v63 = vld [vmem:[%s26347_s14 + $0x140] ss:$8 sps:$4 sm:$0xff]  }
0x1394   :  { %v11872_v6 = vpack.c.bf16 %v11871_v4, %v11871_v4 }
0x1396   :  { %v25440_v8 = vsel %vm8139_vm3, %v11872_v6, 0  ;;  %v22576_v6 = vld [vmem:[%s26347_s14 + $0x154] ss:$8 sps:$4 sm:$0xff]  }
0x1397   :  { %21699 = vmatpush3.bf16.msra.mxu0 %v25440_v8 }
0x1398   :  { %21704 = vmatprep.subr.bf16.mxu0 %v23640_v40 }
0x139a   :  { %21701 = vmatmul.mubr.msk.bf16.vlgmr.msra.gmra.mrb[44].mxu0 %vm8135_vm4, %v11873_v53 }
0x139b   :  { %21705 = vmatpush3.bf16.msra.mxu0 %v25440_v8  ;;  %21706 = vmatprep.mubr.msk.bf16.mxu0 %vm23641_vm2, %v23640_v40 }
0x139c   :  { %21710 = vmatprep.subr.bf16.mxu0 %v23640_v40 }
0x13a2   :  { %21707 = vmatmul.mubr.msk.bf16.vlgmr.msra.gmra.mrb[48].mxu0 %vm8135_vm4, %v18777_v42 }
0x13a3   :  { %21711 = vmatpush3.bf16.msra.mxu0 %v25440_v8  ;;  %21712 = vmatprep.mubr.msk.bf16.mxu0 %vm23641_vm2, %v23640_v40 }
0x13a4   :  { %21716 = vmatprep.subr.bf16.mxu0 %v23640_v40 }
0x13aa   :  { %21713 = vmatmul.mubr.msk.bf16.vlgmr.msra.gmra.mrb[52].mxu0 %vm8135_vm4, %v18779_v57  ;;  %v22574_v57 = vld [vmem:[%s26347_s14 + $0x150] ss:$8 sps:$4 sm:$0xff]  }
0x13ab   :  { %21717 = vmatpush3.bf16.msra.mxu0 %v25440_v8  ;;  %21718 = vmatprep.mubr.msk.bf16.mxu0 %vm23641_vm2, %v23640_v40 }
0x13ac   :  { %12747 = vmatprep.subr.bf16.mxu0 %v22609_v12  ;;  %v22583_v12 = vld [vmem:[%s26347_s14 + $0x180] ss:$8 sps:$4 sm:$0xff]  }
0x13b2   :  { %21719 = vmatmul.mubr.msk.bf16.vlgmr.msra.gmra.mrb[56].mxu0 %vm8135_vm4, %v18781_v43  ;;  %v22579_v43 = vld [vmem:[%s26347_s14 + $0x164] ss:$8 sps:$4 sm:$0xff]  }
0x13b3   :  { %12748 = vmatpush1.bf16.msra.mxu0 %v22607_v11  ;;  %v22585_v11 = vld [vmem:[%s26347_s14 + $0x184] ss:$8 sps:$4 sm:$0xff]  }
0x13b4   :  { %12749 = vmatprep.subr.bf16.mxu0 %v22612_v13  ;;  %v22588_v13 = vld [vmem:[%s26347_s14 + $0x194] ss:$8 sps:$4 sm:$0xff]  }
0x13b7   :  { %12750 = vmatpush1.bf16.msra.mxu0 %v22610_v16  ;;  %v22586_v16 = vld [vmem:[%s26347_s14 + $0x190] ss:$8 sps:$4 sm:$0xff]  }
0x13b8   :  { %12751 = vmatprep.subr.bf16.mxu0 %v22615_v17  ;;  %v22591_v17 = vld [vmem:[%s26347_s14 + $0x1a4] ss:$8 sps:$4 sm:$0xff]  }
0x13bb   :  { %12752 = vmatpush1.bf16.msra.mxu0 %v22613_v18  ;;  %v22589_v18 = vld [vmem:[%s26347_s14 + $0x1a0] ss:$8 sps:$4 sm:$0xff]  }
0x13bc   :  { %12753 = vmatprep.subr.bf16.mxu0 %v22618_v21  ;;  %v22594_v21 = vld [vmem:[%s26347_s14 + $0x1b4] ss:$8 sps:$4 sm:$0xff]  }
0x13bf   :  { %12754 = vmatpush1.bf16.msra.mxu0 %v22616_v23  ;;  %v22592_v23 = vld [vmem:[%s26347_s14 + $0x1b0] ss:$8 sps:$4 sm:$0xff]  }
0x13c0   :  { %12755 = vmatprep.subr.bf16.mxu0 %v22621_v25  ;;  %v22597_v25 = vld [vmem:[%s26347_s14 + $0x1c4] ss:$8 sps:$4 sm:$0xff]  }
0x13c3   :  { %12756 = vmatpush1.bf16.msra.mxu0 %v22619_v26  ;;  %v22595_v26 = vld [vmem:[%s26347_s14 + $0x1c0] ss:$8 sps:$4 sm:$0xff]  }
0x13c4   :  { %12757 = vmatprep.subr.bf16.mxu0 %v22624_v27  ;;  %v22600_v27 = vld [vmem:[%s26347_s14 + $0x1d4] ss:$8 sps:$4 sm:$0xff]  }
0x13c7   :  { %12758 = vmatpush1.bf16.msra.mxu0 %v22622_v30  ;;  %v22598_v30 = vld [vmem:[%s26347_s14 + $0x1d0] ss:$8 sps:$4 sm:$0xff]  }
0x13c8   :  { %12759 = vmatprep.subr.bf16.mxu0 %v22627_v36  ;;  %v22603_v36 = vld [vmem:[%s26347_s14 + $0x1e4] ss:$8 sps:$4 sm:$0xff]  }
0x13cb   :  { %12760 = vmatpush1.bf16.msra.mxu0 %v22625_v37  ;;  %v22601_v37 = vld [vmem:[%s26347_s14 + $0x1e0] ss:$8 sps:$4 sm:$0xff]  }
0x13cc   :  { %12761 = vmatprep.subr.bf16.mxu0 %v22630_v46  ;;  %v22606_v46 = vld [vmem:[%s26347_s14 + $0x1f4] ss:$8 sps:$4 sm:$0xff]  }
0x13cf   :  { %12762 = vmatpush1.bf16.msra.mxu0 %v22628_v47  ;;  %v22604_v47 = vld [vmem:[%s26347_s14 + $0x1f0] ss:$8 sps:$4 sm:$0xff]  }
0x13d0   :  { %12763 = vmatprep.subr.bf16.mxu0 %v22633_v29 }
0x13d3   :  { %12764 = vmatpush1.bf16.msra.mxu0 %v22631_v48  ;;  %v22651_v48 = vld [vmem:[%s26349_s24 + $0xe4] ss:$8 sps:$4 sm:$0xff]  }
0x13d4   :  { %12765 = vmatprep.subr.bf16.mxu0 %v22636_v22  ;;  %v22649_v22 = vld [vmem:[%s26349_s24 + $0xe0] ss:$8 sps:$4 sm:$0xff]  }
0x13d7   :  { %12766 = vmatpush1.bf16.msra.mxu0 %v22634_v54  ;;  %v22654_v54 = vld [vmem:[%s26349_s24 + $0xf4] ss:$8 sps:$4 sm:$0xff]  }
0x13d8   :  { %12767 = vmatprep.subr.bf16.mxu0 %v22639_v14  ;;  %v22652_v14 = vld [vmem:[%s26349_s24 + $0xf0] ss:$8 sps:$4 sm:$0xff]  }
0x13db   :  { %12768 = vmatpush1.bf16.msra.mxu0 %v22637_v20  ;;  %v12126_v20 = vlaneseq }
0x13dc   :  { %12769 = vmatprep.subr.bf16.mxu0 %v22642_v24 }
0x13dd   :  { %v25534_v24 = vshrl.u32 %v12126_v20, 7  ;;  %v22717_v20 = vld [vmem:[%s26352_s7 + $0xc4] ss:$8 sps:$4 sm:$0xff]  }
0x13df   :  { %12770 = vmatpush1.bf16.msra.mxu0 %v22640_v45  ;;  %v25537_v45 = vsub.s32 0, %v25534_v24 }
0x13e0   :  { %12771 = vmatprep.subr.bf16.mxu0 %v22645_v15  ;;  %v18783_v15 = vld [vmem:[%s23672_s21 + $0x21] ss:$8 sm:$0x3] }
0x13e3   :  { %12772 = vmatpush1.bf16.msra.mxu0 %v22643_v32  ;;  %v25541_v32 = vsub.s32 1, %v25534_v24 }
0x13e4   :  { %12773 = vmatprep.subr.bf16.mxu0 %v22648_v50  ;;  %v12129_v50 = vrot.slane %v18783_v15, %v25537_v45 }
0x13e7   :  { %12774 = vmatpush1.bf16.msra.mxu0 %v22646_v55  ;;  %v12133_v55 = vrot.slane %v18783_v15, %v25541_v32  ;;  %v22715_v15 = vld [vmem:[%s26352_s7 + $0xc0] ss:$8 sps:$4 sm:$0xff]  }
0x13e8   :  { %12775 = vmatprep.subr.bf16.mxu0 %v22651_v48  ;;  %v22711_v48 = vld [vmem:[%s26352_s7 + $0xa4] ss:$8 sps:$4 sm:$0xff]  }
0x13eb   :  { %12776 = vmatpush1.bf16.msra.mxu0 %v22649_v22  ;;  %v22709_v22 = vld [vmem:[%s26352_s7 + $0xa0] ss:$8 sps:$4 sm:$0xff]  }
0x13ec   :  { %12777 = vmatprep.subr.bf16.mxu0 %v22654_v54  ;;  %v22714_v54 = vld [vmem:[%s26352_s7 + $0xb4] ss:$8 sps:$4 sm:$0xff]  }
0x13ef   :  { %12778 = vmatpush1.bf16.msra.mxu0 %v22652_v14  ;;  %v22712_v14 = vld [vmem:[%s26352_s7 + $0xb0] ss:$8 sps:$4 sm:$0xff]  }
0x13f0   :  { %21722 = vmatprep.subr.bf16.mxu0 %v23640_v40 }
0x146d   :  { %v11914_v19 = vpop.f32.mrb[44].mxu0 }
0x146e   :  { %v21702_v58 = vpop.f32.mrb[45].mxu0  ;;  %v11920_v56 = vpack.c.bf16 %v11914_v19, %v11914_v19 }
0x146f   :  { %v11917_v39 = vpop.f32.mrb[46].mxu0 }
0x1470   :  { %v21703_v7 = vpop.f32.mrb[47].mxu0 }
0x1475   :  { %v11960_v28 = vpop.f32.mrb[48].mxu0 }
0x1476   :  { %v11966_v34 = vpack.c.bf16 %v11960_v28, %v11960_v28  ;;  %v21708_v52 = vpop.f32.mrb[49].mxu0 }
0x1477   :  { %v11963_v60 = vpop.f32.mrb[50].mxu0 }
0x1478   :  { %12488 = vmatprep.mubr.bf16.mxu1 %v11966_v34  ;;  %v21709_v61 = vpop.f32.mrb[51].mxu0  ;;  %v22657_v60 = vld [vmem:[%s26350_s30 + $0x4] ss:$8 sps:$4 sm:$0xff]  }
0x1479   :  { %12489 = vmatmul.mubr.bf16.vlgmr.msra.gmra.mrb[12].mxu1 %v11920_v56  ;;  %v12788_v61 = vld [vmem:[%s26351_s6] sm:$0x1] }
0x147a   :  { %12498 = vmatpush1.bf16.msra.mxu1 %v22559_v51 }
0x147b   :  { %12499 = vmatprep.subr.bf16.mxu1 %v22564_v59 }
0x147d   :  { %v25498_v0 = vpop.f32.mrb[52].mxu0 }
0x147e   :  { %12500 = vmatpush1.bf16.msra.mxu1 %v22562_v38  ;;  %v21714_v35 = vpop.f32.mrb[53].mxu0  ;;  %v12012_v29 = vpack.c.bf16 %v25498_v0, %v25498_v0  ;;  %v22655_v38 = vld [vmem:[%s26350_s30] ss:$8 sps:$4 sm:$0xff]   ;;  %v22658_v0 = vld [vmem:[%s26350_s30 + $0x10] ss:$8 sps:$4 sm:$0xff]  }
0x147f   :  { %12501 = vmatprep.subr.bf16.mxu1 %v22567_v62  ;;  %v12009_v44 = vpop.f32.mrb[54].mxu0  ;;  %v22660_v62 = vld [vmem:[%s26350_s30 + $0x14] ss:$8 sps:$4 sm:$0xff]   ;;  %v22664_v35 = vld [vmem:[%s26350_s30 + $0x30] ss:$8 sps:$4 sm:$0xff]  }
0x1480   :  { %v21715_v2 = vpop.f32.mrb[55].mxu0  ;;  %v22667_v44 = vld [vmem:[%s26350_s30 + $0x40] ss:$8 sps:$4 sm:$0xff]  }
0x1481   :  { %v22672_v2 = vld [vmem:[%s26350_s30 + $0x54] ss:$8 sps:$4 sm:$0xff]  }
0x1482   :  { %12502 = vmatpush1.bf16.msra.mxu1 %v22565_v1  ;;  %v22663_v1 = vld [vmem:[%s26350_s30 + $0x24] ss:$8 sps:$4 sm:$0xff]  }
0x1483   :  { %12503 = vmatprep.subr.bf16.mxu1 %v22570_v33  ;;  %v22669_v33 = vld [vmem:[%s26350_s30 + $0x44] ss:$8 sps:$4 sm:$0xff]  }
0x1485   :  { %v12052_v41 = vpop.f32.mrb[56].mxu0 }
0x1486   :  { %12504 = vmatpush1.bf16.msra.mxu1 %v22568_v3  ;;  %v12058_v31 = vpack.c.bf16 %v12052_v41, %v12052_v41  ;;  %v21720_v4 = vpop.f32.mrb[57].mxu0  ;;  %v22670_v3 = vld [vmem:[%s26350_s30 + $0x50] ss:$8 sps:$4 sm:$0xff]   ;;  %v22673_v41 = vld [vmem:[%s26350_s30 + $0x60] ss:$8 sps:$4 sm:$0xff]  }
0x1487   :  { %12505 = vmatprep.subr.bf16.mxu1 %v22573_v5  ;;  %v12055_v53 = vpop.f32.mrb[58].mxu0  ;;  %v22675_v5 = vld [vmem:[%s26350_s30 + $0x64] ss:$8 sps:$4 sm:$0xff]   ;;  %v23642_v4 = vmov 0  }
0x1488   :  { %12529 = vmatprep.mubr.bf16.mxu1 %v12058_v31  ;;  %v21721_v42 = vpop.f32.mrb[59].mxu0  ;;  %v22676_v31 = vld [vmem:[%s26350_s30 + $0x70] ss:$8 sps:$4 sm:$0xff]  }
0x1489   :  { %v22679_v42 = vld [vmem:[%s26352_s7] ss:$8 sps:$4 sm:$0xff]  }
0x148a   :  { %12506 = vmatpush1.bf16.msra.mxu1 %v22571_v63  ;;  %v22678_v63 = vld [vmem:[%s26350_s30 + $0x74] ss:$8 sps:$4 sm:$0xff]  }
0x148b   :  { %12507 = vmatprep.subr.bf16.mxu1 %v22576_v6  ;;  %v22681_v6 = vld [vmem:[%s26352_s7 + $0x4] ss:$8 sps:$4 sm:$0xff]  }
0x148e   :  { %12508 = vmatpush1.bf16.msra.mxu1 %v22574_v57 }
0x148f   :  { %12509 = vmatprep.subr.bf16.mxu1 %v22579_v43 }
0x1492   :  { %12510 = vmatpush1.bf16.msra.mxu1 %v22577_v9  ;;  %v22684_v9 = vld [vmem:[%s26352_s7 + $0x14] ss:$8 sps:$4 sm:$0xff]  }
0x1493   :  { %12511 = vmatprep.subr.bf16.mxu1 %v22582_v49 }
0x1496   :  { %12512 = vmatpush1.bf16.msra.mxu1 %v22580_v10 }
0x1497   :  { %12513 = vmatprep.subr.bf16.mxu1 %v22585_v11  ;;  %v22682_v11 = vld [vmem:[%s26352_s7 + $0x10] ss:$8 sps:$4 sm:$0xff]  }
0x149a   :  { %12514 = vmatpush1.bf16.msra.mxu1 %v22583_v12  ;;  %v22687_v12 = vld [vmem:[%s26352_s7 + $0x24] ss:$8 sps:$4 sm:$0xff]  }
0x149b   :  { %12515 = vmatprep.subr.bf16.mxu1 %v22588_v13  ;;  %v22685_v13 = vld [vmem:[%s26352_s7 + $0x20] ss:$8 sps:$4 sm:$0xff]  }
0x149e   :  { %12516 = vmatpush1.bf16.msra.mxu1 %v22586_v16  ;;  %v22690_v16 = vld [vmem:[%s26352_s7 + $0x34] ss:$8 sps:$4 sm:$0xff]  }
0x149f   :  { %12517 = vmatprep.subr.bf16.mxu1 %v22591_v17  ;;  %v22688_v17 = vld [vmem:[%s26352_s7 + $0x30] ss:$8 sps:$4 sm:$0xff]  }
0x14a2   :  { %12518 = vmatpush1.bf16.msra.mxu1 %v22589_v18  ;;  %v22693_v18 = vld [vmem:[%s26352_s7 + $0x44] ss:$8 sps:$4 sm:$0xff]  }
0x14a3   :  { %12519 = vmatprep.subr.bf16.mxu1 %v22594_v21  ;;  %v22691_v21 = vld [vmem:[%s26352_s7 + $0x40] ss:$8 sps:$4 sm:$0xff]  }
0x14a6   :  { %12520 = vmatpush1.bf16.msra.mxu1 %v22592_v23  ;;  %v22696_v23 = vld [vmem:[%s26352_s7 + $0x54] ss:$8 sps:$4 sm:$0xff]  }
0x14a7   :  { %12521 = vmatprep.subr.bf16.mxu1 %v22597_v25  ;;  %v22694_v25 = vld [vmem:[%s26352_s7 + $0x50] ss:$8 sps:$4 sm:$0xff]  }
0x14aa   :  { %12522 = vmatpush1.bf16.msra.mxu1 %v22595_v26  ;;  %v22699_v26 = vld [vmem:[%s26352_s7 + $0x64] ss:$8 sps:$4 sm:$0xff]  }
0x14ab   :  { %12523 = vmatprep.subr.bf16.mxu1 %v22600_v27  ;;  %v22697_v27 = vld [vmem:[%s26352_s7 + $0x60] ss:$8 sps:$4 sm:$0xff]  }
0x14ae   :  { %12524 = vmatpush1.bf16.msra.mxu1 %v22598_v30  ;;  %v22702_v30 = vld [vmem:[%s26352_s7 + $0x74] ss:$8 sps:$4 sm:$0xff]  }
0x14af   :  { %12525 = vmatprep.subr.bf16.mxu1 %v22603_v36  ;;  %v22700_v36 = vld [vmem:[%s26352_s7 + $0x70] ss:$8 sps:$4 sm:$0xff]  }
0x14b2   :  { %12526 = vmatpush1.bf16.msra.mxu1 %v22601_v37  ;;  %v22705_v37 = vld [vmem:[%s26352_s7 + $0x84] ss:$8 sps:$4 sm:$0xff]  }
0x14b3   :  { %12527 = vmatprep.subr.bf16.mxu1 %v22606_v46  ;;  %v22703_v46 = vld [vmem:[%s26352_s7 + $0x80] ss:$8 sps:$4 sm:$0xff]  }
0x14b6   :  { %12528 = vmatpush1.bf16.msra.mxu1 %v22604_v47  ;;  %v22708_v47 = vld [vmem:[%s26352_s7 + $0x94] ss:$8 sps:$4 sm:$0xff]  }
0x14b9   :  { %12530 = vmatmul.mubr.bf16.vlgmr.msra.gmra.mrb[12].mxu1 %v12012_v29  ;;  %v22706_v29 = vld [vmem:[%s26352_s7 + $0x90] ss:$8 sps:$4 sm:$0xff]  }
0x158c   :  { %v12531_v19 = vpop.f32.mrb[12].mxu1 }
0x158d   :  { %v21730_v58 = vadd.f32 %v12531_v19, %v12129_v50  ;;  %v12533_v39 = vpop.f32.mrb[13].mxu1  ;;  %v22720_v50 = vld [vmem:[%s26352_s7 + $0xd4] ss:$8 sps:$4 sm:$0xff]   ;;  %v22723_v19 = vld [vmem:[%s26352_s7 + $0xe4] ss:$8 sps:$4 sm:$0xff]  }
0x158e   :  { %v21731_v7 = vadd.f32 %v12533_v39, %v12133_v55  ;;  %v12535_v28 = vpop.f32.mrb[14].mxu1  ;;  %v22718_v55 = vld [vmem:[%s26352_s7 + $0xd0] ss:$8 sps:$4 sm:$0xff]   ;;  %v22726_v39 = vld [vmem:[%s26352_s7 + $0xf4] ss:$8 sps:$4 sm:$0xff]  }
0x158f   :  { %v12538_v34 = vmax.f32 %v21730_v58, 0.0  ;;  %v12536_v51 = vpop.f32.mrb[15].mxu1  ;;  %v22721_v58 = vld [vmem:[%s26352_s7 + $0xe0] ss:$8 sps:$4 sm:$0xff]  }
0x1590   :  { %v12539_v52 = vmax.f32 %v21731_v7, 0.0  ;;  %v22724_v7 = vld [vmem:[%s26352_s7 + $0xf0] ss:$8 sps:$4 sm:$0xff]   ;;  %v22727_v28 = vld [vmem:[%s26353_s10] ss:$8 sps:$4 sm:$0xff]  }
0x1591   :  { %v12540_v59 = vpack.c.bf16 %v12538_v34, %v12538_v34  ;;  %v22729_v34 = vld [vmem:[%s26353_s10 + $0x4] ss:$8 sps:$4 sm:$0xff]   ;;  %v22732_v51 = vld [vmem:[%s26353_s10 + $0x14] ss:$8 sps:$4 sm:$0xff]  }
0x1592   :  { %v12541_v56 = vpack.c.bf16 %v12539_v52, %v12539_v52  ;;  %13444 = vmatprep.subr.bf16.mxu1 %v22729_v34  ;;  %v22730_v52 = vld [vmem:[%s26353_s10 + $0x10] ss:$8 sps:$4 sm:$0xff]  }
0x1593   :  { %13445 = vmatpush1.bf16.msra.mxu1 %v22727_v28  ;;  %v22807_v28 = vld [vmem:[%s26354_s11 + $0xa4] ss:$16 sps:$4 sm:$0xff]   ;;  %v22805_v34 = vld [vmem:[%s26354_s11 + $0xa0] ss:$16 sps:$4 sm:$0xff]  }
0x1594   :  { %12779 = vmatprep.mubr.bf16.mxu0 %v12541_v56  ;;  %13446 = vmatprep.subr.bf16.mxu1 %v22732_v51  ;;  %v22735_v56 = vld [vmem:[%s26353_s10 + $0x24] ss:$8 sps:$4 sm:$0xff]  }
0x1595   :  { %12780 = vmatmul.mubr.bf16.vlgmr.msra.gmra.mrb[60].mxu0 %v12540_v59  ;;  %v22733_v59 = vld [vmem:[%s26353_s10 + $0x20] ss:$8 sps:$4 sm:$0xff]   ;;  %v22813_v51 = vld [vmem:[%s26354_s11 + $0xc4] ss:$16 sps:$4 sm:$0xff]  }
0x1596   :  { %21723 = vmatpush3.bf16.msra.mxu0 %v25440_v8  ;;  %21724 = vmatprep.mubr.msk.bf16.mxu0 %vm23641_vm2, %v23640_v40  ;;  %v22661_v8 = vld [vmem:[%s26350_s30 + $0x20] ss:$8 sps:$4 sm:$0xff]   ;;  %v22666_v40 = vld [vmem:[%s26350_s30 + $0x34] ss:$8 sps:$4 sm:$0xff]  }
0x1597   :  { %12942 = vmatprep.subr.bf16.mxu0 %v22657_v60  ;;  %13447 = vmatpush1.bf16.msra.mxu1 %v22730_v52  ;;  %v22738_v60 = vld [vmem:[%s26353_s10 + $0x34] ss:$8 sps:$4 sm:$0xff]   ;;  %v22811_v52 = vld [vmem:[%s26354_s11 + $0xc0] ss:$16 sps:$4 sm:$0xff]  }
0x1598   :  { %13448 = vmatprep.subr.bf16.mxu1 %v22735_v56  ;;  %v22819_v56 = vld [vmem:[%s26354_s11 + $0xe4] ss:$16 sps:$4 sm:$0xff]  }
0x159b   :  { %13449 = vmatpush1.bf16.msra.mxu1 %v22733_v59  ;;  %v22817_v59 = vld [vmem:[%s26354_s11 + $0xe0] ss:$16 sps:$4 sm:$0xff]  }
0x159c   :  { %13450 = vmatprep.subr.bf16.mxu1 %v22738_v60  ;;  %v22825_v60 = vld [vmem:[%s26354_s11 + $0x104] ss:$16 sps:$4 sm:$0xff]  }
0x159d   :  { %21725 = vmatmul.mubr.msk.bf16.vlgmr.msra.gmra.mrb[64].mxu0 %vm8135_vm4, %v12788_v61  ;;  %v22736_v61 = vld [vmem:[%s26353_s10 + $0x30] ss:$8 sps:$4 sm:$0xff]  }
0x159e   :  { %12943 = vmatpush1.bf16.msra.mxu0 %v22655_v38  ;;  %12974 = vmatprep.mubr.bf16.mxu0 %v23642_v4  ;;  %v22741_v38 = vld [vmem:[%s26353_s10 + $0x44] ss:$8 sps:$4 sm:$0xff]   ;;  %v22760_v4 = vld [vmem:[%s26353_s10 + $0xb0] ss:$8 sps:$4 sm:$0xff]  }
0x159f   :  { %12944 = vmatprep.subr.bf16.mxu0 %v22660_v62  ;;  %13451 = vmatpush1.bf16.msra.mxu1 %v22736_v61  ;;  %v22739_v62 = vld [vmem:[%s26353_s10 + $0x40] ss:$8 sps:$4 sm:$0xff]  }
0x15a0   :  { %13452 = vmatprep.subr.bf16.mxu1 %v22741_v38  ;;  %v22823_v61 = vld [vmem:[%s26354_s11 + $0x100] ss:$16 sps:$4 sm:$0xff]   ;;  %v22831_v38 = vld [vmem:[%s26354_s11 + $0x124] ss:$16 sps:$4 sm:$0xff]  }
0x15a2   :  { %12945 = vmatpush1.bf16.msra.mxu0 %v22658_v0  ;;  %v22744_v0 = vld [vmem:[%s26353_s10 + $0x54] ss:$8 sps:$4 sm:$0xff]  }
0x15a3   :  { %12946 = vmatprep.subr.bf16.mxu0 %v22663_v1  ;;  %13453 = vmatpush1.bf16.msra.mxu1 %v22739_v62  ;;  %v22742_v1 = vld [vmem:[%s26353_s10 + $0x50] ss:$8 sps:$4 sm:$0xff]  }
0x15a4   :  { %13454 = vmatprep.subr.bf16.mxu1 %v22744_v0  ;;  %v22829_v62 = vld [vmem:[%s26354_s11 + $0x120] ss:$16 sps:$4 sm:$0xff]   ;;  %v22837_v0 = vld [vmem:[%s26354_s11 + $0x144] ss:$16 sps:$4 sm:$0xff]  }
0x15a6   :  { %12947 = vmatpush1.bf16.msra.mxu0 %v22661_v8  ;;  %v22747_v8 = vld [vmem:[%s26353_s10 + $0x64] ss:$8 sps:$4 sm:$0xff]  }
0x15a7   :  { %12948 = vmatprep.subr.bf16.mxu0 %v22666_v40  ;;  %13455 = vmatpush1.bf16.msra.mxu1 %v22742_v1  ;;  %v22745_v40 = vld [vmem:[%s26353_s10 + $0x60] ss:$8 sps:$4 sm:$0xff]  }
0x15a8   :  { %13456 = vmatprep.subr.bf16.mxu1 %v22747_v8  ;;  %v22835_v1 = vld [vmem:[%s26354_s11 + $0x140] ss:$16 sps:$4 sm:$0xff]   ;;  %v22843_v8 = vld [vmem:[%s26354_s11 + $0x164] ss:$16 sps:$4 sm:$0xff]  }
0x15aa   :  { %12949 = vmatpush1.bf16.msra.mxu0 %v22664_v35  ;;  %v22750_v35 = vld [vmem:[%s26353_s10 + $0x74] ss:$8 sps:$4 sm:$0xff]  }
0x15ab   :  { %12950 = vmatprep.subr.bf16.mxu0 %v22669_v33  ;;  %13457 = vmatpush1.bf16.msra.mxu1 %v22745_v40  ;;  %v22748_v33 = vld [vmem:[%s26353_s10 + $0x70] ss:$8 sps:$4 sm:$0xff]  }
0x15ac   :  { %13458 = vmatprep.subr.bf16.mxu1 %v22750_v35  ;;  %v22841_v40 = vld [vmem:[%s26354_s11 + $0x160] ss:$16 sps:$4 sm:$0xff]   ;;  %v22849_v35 = vld [vmem:[%s26354_s11 + $0x184] ss:$16 sps:$4 sm:$0xff]  }
0x15ae   :  { %12951 = vmatpush1.bf16.msra.mxu0 %v22667_v44  ;;  %v22753_v44 = vld [vmem:[%s26353_s10 + $0x84] ss:$8 sps:$4 sm:$0xff]  }
0x15af   :  { %12952 = vmatprep.subr.bf16.mxu0 %v22672_v2  ;;  %13459 = vmatpush1.bf16.msra.mxu1 %v22748_v33  ;;  %v22751_v2 = vld [vmem:[%s26353_s10 + $0x80] ss:$8 sps:$4 sm:$0xff]  }
0x15b0   :  { %13460 = vmatprep.subr.bf16.mxu1 %v22753_v44  ;;  %v22847_v33 = vld [vmem:[%s26354_s11 + $0x180] ss:$16 sps:$4 sm:$0xff]   ;;  %v22855_v44 = vld [vmem:[%s26354_s11 + $0x1a4] ss:$16 sps:$4 sm:$0xff]  }
0x15b2   :  { %12953 = vmatpush1.bf16.msra.mxu0 %v22670_v3  ;;  %v22756_v3 = vld [vmem:[%s26353_s10 + $0x94] ss:$8 sps:$4 sm:$0xff]  }
0x15b3   :  { %12954 = vmatprep.subr.bf16.mxu0 %v22675_v5  ;;  %13461 = vmatpush1.bf16.msra.mxu1 %v22751_v2  ;;  %v22754_v5 = vld [vmem:[%s26353_s10 + $0x90] ss:$8 sps:$4 sm:$0xff]  }
0x15b4   :  { %13462 = vmatprep.subr.bf16.mxu1 %v22756_v3  ;;  %v22853_v2 = vld [vmem:[%s26354_s11 + $0x1a0] ss:$16 sps:$4 sm:$0xff]   ;;  %v18899_v3 = vld [vmem:[%s23672_s21 + $0x24] ss:$8 sm:$0x3] }
0x15b6   :  { %12955 = vmatpush1.bf16.msra.mxu0 %v22673_v41  ;;  %v22759_v41 = vld [vmem:[%s26353_s10 + $0xa4] ss:$8 sps:$4 sm:$0xff]  }
0x15b7   :  { %12956 = vmatprep.subr.bf16.mxu0 %v22678_v63  ;;  %13463 = vmatpush1.bf16.msra.mxu1 %v22754_v5  ;;  %v22757_v63 = vld [vmem:[%s26353_s10 + $0xa0] ss:$8 sps:$4 sm:$0xff]   ;;  %v13027_v5 = vrot.slane %v18899_v3, %v25537_v45 }
0x15b8   :  { %13464 = vmatprep.subr.bf16.mxu1 %v22759_v41  ;;  %v13031_v41 = vrot.slane %v18899_v3, %v25541_v32 }
0x15ba   :  { %12957 = vmatpush1.bf16.msra.mxu0 %v22676_v31  ;;  %v22762_v31 = vld [vmem:[%s26353_s10 + $0xb4] ss:$8 sps:$4 sm:$0xff]  }
0x15bb   :  { %13194 = vmatprep.subr.bf16.mxu0 %v22681_v6  ;;  %13465 = vmatpush1.bf16.msra.mxu1 %v22757_v63  ;;  %v22765_v6 = vld [vmem:[%s26353_s10 + $0xc4] ss:$8 sps:$4 sm:$0xff]  }
0x15bc   :  { %13466 = vmatprep.subr.bf16.mxu1 %v22762_v31 }
0x15bf   :  { %13467 = vmatpush1.bf16.msra.mxu1 %v22760_v4 }
0x15c0   :  { %13468 = vmatprep.subr.bf16.mxu1 %v22765_v6 }
0x1670   :  { %v12826_v53 = vpop.f32.mrb[64].mxu0 }
0x1671   :  { %v12832_v57 = vpack.c.bf16 %v12826_v53, %v12826_v53  ;;  %v21726_v43 = vpop.f32.mrb[65].mxu0  ;;  %v22763_v53 = vld [vmem:[%s26353_s10 + $0xc0] ss:$8 sps:$4 sm:$0xff]  }
0x1672   :  { %v12829_v49 = vpop.f32.mrb[66].mxu0  ;;  %13469 = vmatpush1.bf16.msra.mxu1 %v22763_v53  ;;  %v18848_v43 = vld [vmem:[%s23672_s21 + $0x22] ss:$8 sm:$0x3] }
0x1673   :  { %12975 = vmatmul.mubr.bf16.vlgmr.msra.gmra.mrb[60].mxu0 %v12832_v57  ;;  %v21727_v10 = vpop.f32.mrb[67].mxu0  ;;  %v22766_v57 = vld [vmem:[%s26353_s10 + $0xd0] ss:$8 sps:$4 sm:$0xff]   ;;  %v12580_v49 = vrot.slane %v18848_v43, %v25537_v45 }
0x1674   :  { %13195 = vmatpush1.bf16.msra.mxu0 %v22679_v42  ;;  %v22768_v42 = vld [vmem:[%s26353_s10 + $0xd4] ss:$8 sps:$4 sm:$0xff]  }
0x1675   :  { %13196 = vmatprep.subr.bf16.mxu0 %v22684_v9  ;;  %13470 = vmatprep.subr.bf16.mxu1 %v22768_v42  ;;  %v18882_v9 = vld [vmem:[%s23672_s21 + $0x23] ss:$8 sm:$0x3] }
0x1676   :  { %13471 = vmatpush1.bf16.msra.mxu1 %v22766_v57  ;;  %v12855_v10 = vrot.slane %v18882_v9, %v25537_v45 }
0x1678   :  { %13197 = vmatpush1.bf16.msra.mxu0 %v22682_v11  ;;  %v12584_v11 = vrot.slane %v18848_v43, %v25541_v32 }
0x1679   :  { %13198 = vmatprep.subr.bf16.mxu0 %v22687_v12  ;;  %v12859_v12 = vrot.slane %v18882_v9, %v25541_v32 }
0x167c   :  { %13199 = vmatpush1.bf16.msra.mxu0 %v22685_v13  ;;  %v21732_v13 = vadd.f32 %v12855_v10, %v12580_v49  ;;  %v22778_v49 = vld [vmem:[%s26354_s11 + $0x8] ss:$16 sps:$4 sm:$0xff]  }
0x167d   :  { %13200 = vmatprep.subr.bf16.mxu0 %v22690_v16  ;;  %v21734_v16 = vadd.f32 %v12859_v12, %v12584_v11  ;;  %v22786_v11 = vld [vmem:[%s26354_s11 + $0x2c] ss:$16 sps:$4 sm:$0xff]   ;;  %v22784_v12 = vld [vmem:[%s26354_s11 + $0x28] ss:$16 sps:$4 sm:$0xff]  }
0x1680   :  { %13201 = vmatpush1.bf16.msra.mxu0 %v22688_v17 }
0x1681   :  { %13202 = vmatprep.subr.bf16.mxu0 %v22693_v18 }
0x1684   :  { %13203 = vmatpush1.bf16.msra.mxu0 %v22691_v21 }
0x1685   :  { %13204 = vmatprep.subr.bf16.mxu0 %v22696_v23 }
0x1688   :  { %13205 = vmatpush1.bf16.msra.mxu0 %v22694_v25 }
0x1689   :  { %13206 = vmatprep.subr.bf16.mxu0 %v22699_v26 }
0x168c   :  { %13207 = vmatpush1.bf16.msra.mxu0 %v22697_v27 }
0x168d   :  { %13208 = vmatprep.subr.bf16.mxu0 %v22702_v30 }
0x1690   :  { %13209 = vmatpush1.bf16.msra.mxu0 %v22700_v36 }
0x1691   :  { %13210 = vmatprep.subr.bf16.mxu0 %v22705_v37 }
0x1694   :  { %13211 = vmatpush1.bf16.msra.mxu0 %v22703_v46  ;;  %v22771_v46 = vld [vmem:[%s26353_s10 + $0xe4] ss:$8 sps:$4 sm:$0xff]  }
0x1695   :  { %13212 = vmatprep.subr.bf16.mxu0 %v22708_v47  ;;  %v22769_v47 = vld [vmem:[%s26353_s10 + $0xe0] ss:$8 sps:$4 sm:$0xff]   ;;  %13472 = vmatprep.subr.bf16.mxu1 %v22771_v46  ;;  %v22822_v46 = vld [vmem:[%s26354_s11 + $0xec] ss:$16 sps:$4 sm:$0xff]  }
0x1696   :  { %13473 = vmatpush1.bf16.msra.mxu1 %v22769_v47  ;;  %v22820_v47 = vld [vmem:[%s26354_s11 + $0xe8] ss:$16 sps:$4 sm:$0xff]  }
0x1698   :  { %13213 = vmatpush1.bf16.msra.mxu0 %v22706_v29  ;;  %v22774_v29 = vld [vmem:[%s26353_s10 + $0xf4] ss:$8 sps:$4 sm:$0xff]  }
0x1699   :  { %13214 = vmatprep.subr.bf16.mxu0 %v22711_v48  ;;  %v22772_v48 = vld [vmem:[%s26353_s10 + $0xf0] ss:$8 sps:$4 sm:$0xff]   ;;  %13474 = vmatprep.subr.bf16.mxu1 %v22774_v29  ;;  %v22828_v29 = vld [vmem:[%s26354_s11 + $0x10c] ss:$16 sps:$4 sm:$0xff]  }
0x169a   :  { %13475 = vmatpush1.bf16.msra.mxu1 %v22772_v48  ;;  %v22826_v48 = vld [vmem:[%s26354_s11 + $0x108] ss:$16 sps:$4 sm:$0xff]  }
0x169c   :  { %13215 = vmatpush1.bf16.msra.mxu0 %v22709_v22  ;;  %v22775_v22 = vld [vmem:[%s26354_s11] ss:$16 sps:$4 sm:$0xff]  }
0x169d   :  { %13216 = vmatprep.subr.bf16.mxu0 %v22714_v54  ;;  %v22777_v54 = vld [vmem:[%s26354_s11 + $0x4] ss:$16 sps:$4 sm:$0xff]  }
0x16a0   :  { %13217 = vmatpush1.bf16.msra.mxu0 %v22712_v14  ;;  %v22780_v14 = vld [vmem:[%s26354_s11 + $0xc] ss:$16 sps:$4 sm:$0xff]  }
0x16a1   :  { %13218 = vmatprep.subr.bf16.mxu0 %v22717_v20  ;;  %v22783_v20 = vld [vmem:[%s26354_s11 + $0x24] ss:$16 sps:$4 sm:$0xff]   ;;  %13939 = vmatprep.subr.bf16.mxu1 %v22780_v14  ;;  %v22840_v14 = vld [vmem:[%s26354_s11 + $0x14c] ss:$16 sps:$4 sm:$0xff]  }
0x16a4   :  { %13219 = vmatpush1.bf16.msra.mxu0 %v22715_v15  ;;  %v22781_v15 = vld [vmem:[%s26354_s11 + $0x20] ss:$16 sps:$4 sm:$0xff]  }
0x16a5   :  { %13220 = vmatprep.subr.bf16.mxu0 %v22720_v50  ;;  %v22789_v50 = vld [vmem:[%s26354_s11 + $0x44] ss:$16 sps:$4 sm:$0xff]  }
0x16a8   :  { %13221 = vmatpush1.bf16.msra.mxu0 %v22718_v55  ;;  %v22787_v55 = vld [vmem:[%s26354_s11 + $0x40] ss:$16 sps:$4 sm:$0xff]  }
0x16a9   :  { %13222 = vmatprep.subr.bf16.mxu0 %v22723_v19  ;;  %v22795_v19 = vld [vmem:[%s26354_s11 + $0x64] ss:$16 sps:$4 sm:$0xff]  }
0x16ac   :  { %13223 = vmatpush1.bf16.msra.mxu0 %v22721_v58  ;;  %v22793_v58 = vld [vmem:[%s26354_s11 + $0x60] ss:$16 sps:$4 sm:$0xff]  }
0x16ad   :  { %13224 = vmatprep.subr.bf16.mxu0 %v22726_v39  ;;  %v22801_v39 = vld [vmem:[%s26354_s11 + $0x84] ss:$16 sps:$4 sm:$0xff]  }
0x16b0   :  { %13225 = vmatpush1.bf16.msra.mxu0 %v22724_v7  ;;  %v22799_v7 = vld [vmem:[%s26354_s11 + $0x80] ss:$16 sps:$4 sm:$0xff]  }
0x16b1   :  { %13898 = vmatprep.subr.bf16.mxu0 %v22777_v54  ;;  %v22832_v54 = vld [vmem:[%s26354_s11 + $0x128] ss:$16 sps:$4 sm:$0xff]  }
0x1746   :  { %v12976_v17 = vpop.f32.mrb[60].mxu0 }
0x1747   :  { %v21733_v18 = vadd.f32 %v21732_v13, %v12976_v17  ;;  %v12978_v21 = vpop.f32.mrb[61].mxu0  ;;  %v22792_v13 = vld [vmem:[%s26354_s11 + $0x4c] ss:$16 sps:$4 sm:$0xff]  }
0x1748   :  { %v21735_v23 = vadd.f32 %v21734_v16, %v12978_v21  ;;  %v12980_v25 = vpop.f32.mrb[62].mxu0  ;;  %v22790_v16 = vld [vmem:[%s26354_s11 + $0x48] ss:$16 sps:$4 sm:$0xff]   ;;  %v22798_v17 = vld [vmem:[%s26354_s11 + $0x6c] ss:$16 sps:$4 sm:$0xff]  }
0x1749   :  { %v25632_v26 = vmax.f32 %v21733_v18, 0.0  ;;  %v12981_v27 = vpop.f32.mrb[63].mxu0  ;;  %v22796_v18 = vld [vmem:[%s26354_s11 + $0x68] ss:$16 sps:$4 sm:$0xff]   ;;  %v22804_v21 = vld [vmem:[%s26354_s11 + $0x8c] ss:$16 sps:$4 sm:$0xff]  }
0x174a   :  { %v25634_v30 = vmax.f32 %v21735_v23, 0.0  ;;  %v22802_v23 = vld [vmem:[%s26354_s11 + $0x88] ss:$16 sps:$4 sm:$0xff]   ;;  %v22810_v25 = vld [vmem:[%s26354_s11 + $0xac] ss:$16 sps:$4 sm:$0xff]  }
0x174b   :  { %v12987_v37 = vpack.c.bf16 %v25632_v26, %v25632_v26  ;;  %v22808_v27 = vld [vmem:[%s26354_s11 + $0xa8] ss:$16 sps:$4 sm:$0xff]  }
0x174c   :  { %v12988_v36 = vpack.c.bf16 %v25634_v30, %v25634_v30 }
0x174e   :  { %13226 = vmatprep.mubr.bf16.mxu0 %v12988_v36  ;;  %v22816_v36 = vld [vmem:[%s26354_s11 + $0xcc] ss:$16 sps:$4 sm:$0xff]  }
0x174f   :  { %13227 = vmatmul.mubr.bf16.vlgmr.msra.gmra.mrb[68].mxu0 %v12987_v37  ;;  %v22814_v37 = vld [vmem:[%s26354_s11 + $0xc8] ss:$16 sps:$4 sm:$0xff]  }
0x1750   :  { %13899 = vmatpush1.bf16.msra.mxu0 %v22775_v22  ;;  %v22834_v22 = vld [vmem:[%s26354_s11 + $0x12c] ss:$16 sps:$4 sm:$0xff]  }
0x1751   :  { %13900 = vmatprep.subr.bf16.mxu0 %v22783_v20  ;;  %v22838_v20 = vld [vmem:[%s26354_s11 + $0x148] ss:$16 sps:$4 sm:$0xff]  }
0x1754   :  { %13901 = vmatpush1.bf16.msra.mxu0 %v22781_v15  ;;  %v22846_v15 = vld [vmem:[%s26354_s11 + $0x16c] ss:$16 sps:$4 sm:$0xff]  }
0x1755   :  { %13902 = vmatprep.subr.bf16.mxu0 %v22789_v50  ;;  %v22844_v50 = vld [vmem:[%s26354_s11 + $0x168] ss:$16 sps:$4 sm:$0xff]  }
0x1758   :  { %13903 = vmatpush1.bf16.msra.mxu0 %v22787_v55  ;;  %v22852_v55 = vld [vmem:[%s26354_s11 + $0x18c] ss:$16 sps:$4 sm:$0xff]  }
0x1759   :  { %13904 = vmatprep.subr.bf16.mxu0 %v22795_v19  ;;  %v22850_v19 = vld [vmem:[%s26354_s11 + $0x188] ss:$16 sps:$4 sm:$0xff]  }
0x175c   :  { %13905 = vmatpush1.bf16.msra.mxu0 %v22793_v58  ;;  %v22858_v58 = vld [vmem:[%s26354_s11 + $0x1ac] ss:$16 sps:$4 sm:$0xff]  }
0x175d   :  { %13906 = vmatprep.subr.bf16.mxu0 %v22801_v39  ;;  %v22856_v39 = vld [vmem:[%s26354_s11 + $0x1a8] ss:$16 sps:$4 sm:$0xff]  }
0x1760   :  { %13907 = vmatpush1.bf16.msra.mxu0 %v22799_v7  ;;  %v22861_v7 = vld [vmem:[%s26354_s11 + $0x1c4] ss:$16 sps:$4 sm:$0xff]  }
0x1761   :  { %13908 = vmatprep.subr.bf16.mxu0 %v22807_v28  ;;  %v22864_v28 = vld [vmem:[%s26354_s11 + $0x1cc] ss:$16 sps:$4 sm:$0xff]  }
0x1764   :  { %13909 = vmatpush1.bf16.msra.mxu0 %v22805_v34  ;;  %v22859_v34 = vld [vmem:[%s26354_s11 + $0x1c0] ss:$16 sps:$4 sm:$0xff]  }
0x1765   :  { %13910 = vmatprep.subr.bf16.mxu0 %v22813_v51  ;;  %v22862_v51 = vld [vmem:[%s26354_s11 + $0x1c8] ss:$16 sps:$4 sm:$0xff]  }
0x1768   :  { %13911 = vmatpush1.bf16.msra.mxu0 %v22811_v52  ;;  %v22867_v52 = vld [vmem:[%s26354_s11 + $0x1e4] ss:$16 sps:$4 sm:$0xff]  }
0x1769   :  { %13912 = vmatprep.subr.bf16.mxu0 %v22819_v56  ;;  %v22870_v56 = vld [vmem:[%s26354_s11 + $0x1ec] ss:$16 sps:$4 sm:$0xff]  }
0x176c   :  { %13913 = vmatpush1.bf16.msra.mxu0 %v22817_v59  ;;  %v22865_v59 = vld [vmem:[%s26354_s11 + $0x1e0] ss:$16 sps:$4 sm:$0xff]  }
0x176d   :  { %13914 = vmatprep.subr.bf16.mxu0 %v22825_v60  ;;  %v22868_v60 = vld [vmem:[%s26354_s11 + $0x1e8] ss:$16 sps:$4 sm:$0xff]  }
0x1770   :  { %13915 = vmatpush1.bf16.msra.mxu0 %v22823_v61  ;;  %v22873_v61 = vld [vmem:[%s26355_s15 + $0x4] ss:$16 sps:$4 sm:$0xff]  }
0x1771   :  { %13916 = vmatprep.subr.bf16.mxu0 %v22831_v38  ;;  %v22876_v38 = vld [vmem:[%s26355_s15 + $0xc] ss:$16 sps:$4 sm:$0xff]  }
0x1774   :  { %13917 = vmatpush1.bf16.msra.mxu0 %v22829_v62  ;;  %v18932_v62 = vld [vmem:[%s23672_s21 + $0x25] ss:$8 sm:$0x3] }
0x1775   :  { %13918 = vmatprep.subr.bf16.mxu0 %v22837_v0  ;;  %v13277_v0 = vrot.slane %v18932_v62, %v25537_v45 }
0x1778   :  { %13919 = vmatpush1.bf16.msra.mxu0 %v22835_v1  ;;  %v13281_v1 = vrot.slane %v18932_v62, %v25541_v32  ;;  %v22945_v62 = vld [vmem:[%s26355_s15 + $0x184] ss:$16 sps:$4 sm:$0xff]  }
0x1779   :  { %13920 = vmatprep.subr.bf16.mxu0 %v22843_v8 }
0x177c   :  { %13921 = vmatpush1.bf16.msra.mxu0 %v22841_v40 }
0x177d   :  { %13922 = vmatprep.subr.bf16.mxu0 %v22849_v35 }
0x1780   :  { %13923 = vmatpush1.bf16.msra.mxu0 %v22847_v33 }
0x1781   :  { %13924 = vmatprep.subr.bf16.mxu0 %v22855_v44 }
0x1784   :  { %13925 = vmatpush1.bf16.msra.mxu0 %v22853_v2 }
0x1785   :  { %13926 = vmatprep.subr.bf16.mxu0 %v22861_v7  ;;  %v22925_v7 = vld [vmem:[%s26355_s15 + $0x120] ss:$16 sps:$4 sm:$0xff]  }
0x1788   :  { %13927 = vmatpush1.bf16.msra.mxu0 %v22859_v34  ;;  %v22933_v34 = vld [vmem:[%s26355_s15 + $0x144] ss:$16 sps:$4 sm:$0xff]  }
0x1789   :  { %13928 = vmatprep.subr.bf16.mxu0 %v22867_v52  ;;  %v22931_v52 = vld [vmem:[%s26355_s15 + $0x140] ss:$16 sps:$4 sm:$0xff]  }
0x178c   :  { %13929 = vmatpush1.bf16.msra.mxu0 %v22865_v59  ;;  %v22939_v59 = vld [vmem:[%s26355_s15 + $0x164] ss:$16 sps:$4 sm:$0xff]  }
0x178d   :  { %14779 = vmatprep.subr.bf16.mxu0 %v22873_v61  ;;  %v22937_v61 = vld [vmem:[%s26355_s15 + $0x160] ss:$16 sps:$4 sm:$0xff]  }
0x1822   :  { %v13228_v63 = vpop.f32.mrb[68].mxu0 }
0x1823   :  { %v13229_v31 = vadd.f32 %v13228_v63, %v13027_v5  ;;  %v13230_v4 = vpop.f32.mrb[69].mxu0 }
0x1824   :  { %v13231_v6 = vadd.f32 %v13230_v4, %v13031_v41  ;;  %v13232_v53 = vpop.f32.mrb[70].mxu0  ;;  %v22871_v4 = vld [vmem:[%s26355_s15] ss:$16 sps:$4 sm:$0xff]  }
0x1825   :  { %v13235_v42 = vmax.f32 %v13229_v31, 0.0  ;;  %v13233_v57 = vpop.f32.mrb[71].mxu0 }
0x1826   :  { %v13236_v43 = vmax.f32 %v13231_v6, 0.0  ;;  %v22874_v6 = vld [vmem:[%s26355_s15 + $0x8] ss:$16 sps:$4 sm:$0xff]   ;;  %v22882_v57 = vld [vmem:[%s26355_s15 + $0x2c] ss:$16 sps:$4 sm:$0xff]  }
0x1827   :  { %v13237_v10 = vpack.c.bf16 %v13235_v42, %v13235_v42  ;;  %v22879_v42 = vld [vmem:[%s26355_s15 + $0x24] ss:$16 sps:$4 sm:$0xff]  }
0x1828   :  { %v13238_v9 = vpack.c.bf16 %v13236_v43, %v13236_v43  ;;  %v22885_v43 = vld [vmem:[%s26355_s15 + $0x44] ss:$16 sps:$4 sm:$0xff]  }
0x182a   :  { %13476 = vmatprep.mubr.bf16.mxu1 %v13238_v9  ;;  %v22888_v9 = vld [vmem:[%s26355_s15 + $0x4c] ss:$16 sps:$4 sm:$0xff]  }
0x182b   :  { %13477 = vmatmul.mubr.bf16.vlgmr.msra.gmra.mrb[16].mxu1 %v13237_v10  ;;  %v22886_v10 = vld [vmem:[%s26355_s15 + $0x48] ss:$16 sps:$4 sm:$0xff]  }
0x182c   :  { %13940 = vmatpush1.bf16.msra.mxu1 %v22778_v49  ;;  %v22883_v49 = vld [vmem:[%s26355_s15 + $0x40] ss:$16 sps:$4 sm:$0xff]  }
0x182d   :  { %13941 = vmatprep.subr.bf16.mxu1 %v22786_v11  ;;  %v22891_v11 = vld [vmem:[%s26355_s15 + $0x64] ss:$16 sps:$4 sm:$0xff]  }
0x1830   :  { %13942 = vmatpush1.bf16.msra.mxu1 %v22784_v12  ;;  %v22894_v12 = vld [vmem:[%s26355_s15 + $0x6c] ss:$16 sps:$4 sm:$0xff]  }
0x1831   :  { %13943 = vmatprep.subr.bf16.mxu1 %v22792_v13  ;;  %v22889_v13 = vld [vmem:[%s26355_s15 + $0x60] ss:$16 sps:$4 sm:$0xff]  }
0x1834   :  { %13944 = vmatpush1.bf16.msra.mxu1 %v22790_v16  ;;  %v22892_v16 = vld [vmem:[%s26355_s15 + $0x68] ss:$16 sps:$4 sm:$0xff]  }
0x1835   :  { %13945 = vmatprep.subr.bf16.mxu1 %v22798_v17  ;;  %v22897_v17 = vld [vmem:[%s26355_s15 + $0x84] ss:$16 sps:$4 sm:$0xff]  }
0x1838   :  { %13946 = vmatpush1.bf16.msra.mxu1 %v22796_v18  ;;  %v22900_v18 = vld [vmem:[%s26355_s15 + $0x8c] ss:$16 sps:$4 sm:$0xff]  }
0x1839   :  { %13947 = vmatprep.subr.bf16.mxu1 %v22804_v21  ;;  %v22895_v21 = vld [vmem:[%s26355_s15 + $0x80] ss:$16 sps:$4 sm:$0xff]  }
0x183c   :  { %13948 = vmatpush1.bf16.msra.mxu1 %v22802_v23  ;;  %v22898_v23 = vld [vmem:[%s26355_s15 + $0x88] ss:$16 sps:$4 sm:$0xff]  }
0x183d   :  { %13949 = vmatprep.subr.bf16.mxu1 %v22810_v25  ;;  %v22903_v25 = vld [vmem:[%s26355_s15 + $0xa4] ss:$16 sps:$4 sm:$0xff]  }
0x1840   :  { %13950 = vmatpush1.bf16.msra.mxu1 %v22808_v27  ;;  %v22906_v27 = vld [vmem:[%s26355_s15 + $0xac] ss:$16 sps:$4 sm:$0xff]  }
0x1841   :  { %13951 = vmatprep.subr.bf16.mxu1 %v22816_v36  ;;  %v22901_v36 = vld [vmem:[%s26355_s15 + $0xa0] ss:$16 sps:$4 sm:$0xff]  }
0x1844   :  { %13952 = vmatpush1.bf16.msra.mxu1 %v22814_v37  ;;  %v22904_v37 = vld [vmem:[%s26355_s15 + $0xa8] ss:$16 sps:$4 sm:$0xff]  }
0x1845   :  { %13953 = vmatprep.subr.bf16.mxu1 %v22822_v46  ;;  %v22909_v46 = vld [vmem:[%s26355_s15 + $0xc4] ss:$16 sps:$4 sm:$0xff]  }
0x1848   :  { %13954 = vmatpush1.bf16.msra.mxu1 %v22820_v47  ;;  %v22912_v47 = vld [vmem:[%s26355_s15 + $0xcc] ss:$16 sps:$4 sm:$0xff]  }
0x1849   :  { %13955 = vmatprep.subr.bf16.mxu1 %v22828_v29  ;;  %v22907_v29 = vld [vmem:[%s26355_s15 + $0xc0] ss:$16 sps:$4 sm:$0xff]  }
0x184c   :  { %13956 = vmatpush1.bf16.msra.mxu1 %v22826_v48  ;;  %v22910_v48 = vld [vmem:[%s26355_s15 + $0xc8] ss:$16 sps:$4 sm:$0xff]  }
0x184d   :  { %13957 = vmatprep.subr.bf16.mxu1 %v22834_v22  ;;  %v22915_v22 = vld [vmem:[%s26355_s15 + $0xe4] ss:$16 sps:$4 sm:$0xff]  }
0x1850   :  { %13958 = vmatpush1.bf16.msra.mxu1 %v22832_v54  ;;  %v22918_v54 = vld [vmem:[%s26355_s15 + $0xec] ss:$16 sps:$4 sm:$0xff]  }
0x1851   :  { %13959 = vmatprep.subr.bf16.mxu1 %v22840_v14  ;;  %v22913_v14 = vld [vmem:[%s26355_s15 + $0xe0] ss:$16 sps:$4 sm:$0xff]  }
0x1854   :  { %13960 = vmatpush1.bf16.msra.mxu1 %v22838_v20  ;;  %v22916_v20 = vld [vmem:[%s26355_s15 + $0xe8] ss:$16 sps:$4 sm:$0xff]  }
0x1855   :  { %13961 = vmatprep.subr.bf16.mxu1 %v22846_v15  ;;  %v22921_v15 = vld [vmem:[%s26355_s15 + $0x104] ss:$16 sps:$4 sm:$0xff]  }
0x1858   :  { %13962 = vmatpush1.bf16.msra.mxu1 %v22844_v50  ;;  %v22924_v50 = vld [vmem:[%s26355_s15 + $0x10c] ss:$16 sps:$4 sm:$0xff]  }
0x1859   :  { %13963 = vmatprep.subr.bf16.mxu1 %v22852_v55  ;;  %v22919_v55 = vld [vmem:[%s26355_s15 + $0x100] ss:$16 sps:$4 sm:$0xff]  }
0x185c   :  { %13964 = vmatpush1.bf16.msra.mxu1 %v22850_v19  ;;  %v22922_v19 = vld [vmem:[%s26355_s15 + $0x108] ss:$16 sps:$4 sm:$0xff]  }
0x185d   :  { %13965 = vmatprep.subr.bf16.mxu1 %v22858_v58  ;;  %v22927_v58 = vld [vmem:[%s26355_s15 + $0x124] ss:$16 sps:$4 sm:$0xff]  }
0x1860   :  { %13966 = vmatpush1.bf16.msra.mxu1 %v22856_v39  ;;  %v22930_v39 = vld [vmem:[%s26355_s15 + $0x12c] ss:$16 sps:$4 sm:$0xff]  }
0x1861   :  { %13967 = vmatprep.subr.bf16.mxu1 %v22864_v28  ;;  %v22928_v28 = vld [vmem:[%s26355_s15 + $0x128] ss:$16 sps:$4 sm:$0xff]  }
0x1864   :  { %13968 = vmatpush1.bf16.msra.mxu1 %v22862_v51  ;;  %v22936_v51 = vld [vmem:[%s26355_s15 + $0x14c] ss:$16 sps:$4 sm:$0xff]  }
0x1865   :  { %13969 = vmatprep.subr.bf16.mxu1 %v22870_v56  ;;  %v22934_v56 = vld [vmem:[%s26355_s15 + $0x148] ss:$16 sps:$4 sm:$0xff]  }
0x1868   :  { %13970 = vmatpush1.bf16.msra.mxu1 %v22868_v60  ;;  %v22942_v60 = vld [vmem:[%s26355_s15 + $0x16c] ss:$16 sps:$4 sm:$0xff]  }
0x1869   :  { %14861 = vmatprep.subr.bf16.mxu1 %v22876_v38  ;;  %v22940_v38 = vld [vmem:[%s26355_s15 + $0x168] ss:$16 sps:$4 sm:$0xff]  }
0x18fe   :  { %v13478_v8 = vpop.f32.mrb[16].mxu1 }
0x18ff   :  { %v13479_v40 = vadd.f32 %v13478_v8, %v13277_v0  ;;  %v13480_v35 = vpop.f32.mrb[17].mxu1  ;;  %v22948_v0 = vld [vmem:[%s26355_s15 + $0x18c] ss:$16 sps:$4 sm:$0xff]   ;;  %v22946_v8 = vld [vmem:[%s26355_s15 + $0x188] ss:$16 sps:$4 sm:$0xff]  }
0x1900   :  { %v13481_v33 = vadd.f32 %v13480_v35, %v13281_v1  ;;  %v13482_v44 = vpop.f32.mrb[18].mxu1  ;;  %v22943_v1 = vld [vmem:[%s26355_s15 + $0x180] ss:$16 sps:$4 sm:$0xff]   ;;  %v22954_v35 = vld [vmem:[%s26355_s15 + $0x1ac] ss:$16 sps:$4 sm:$0xff]  }
0x1901   :  { %v13485_v2 = vadd.f32 %v13479_v40, %v25632_v26  ;;  %v13483_v3 = vpop.f32.mrb[19].mxu1  ;;  %v22877_v26 = vld [vmem:[%s26355_s15 + $0x20] ss:$16 sps:$4 sm:$0xff]   ;;  %v22951_v40 = vld [vmem:[%s26355_s15 + $0x1a4] ss:$16 sps:$4 sm:$0xff]  }
0x1902   :  { %v13486_v5 = vadd.f32 %v13481_v33, %v25634_v30  ;;  %v22880_v30 = vld [vmem:[%s26355_s15 + $0x28] ss:$16 sps:$4 sm:$0xff]   ;;  %v22949_v33 = vld [vmem:[%s26355_s15 + $0x1a0] ss:$16 sps:$4 sm:$0xff]   ;;  %v22960_v3 = vld [vmem:[%s26355_s15 + $0x1cc] ss:$16 sps:$4 sm:$0xff]  }
0x1903   :  { %v13487_v41 = vmax.f32 %v13485_v2, 0.0  ;;  %v22952_v44 = vld [vmem:[%s26355_s15 + $0x1a8] ss:$16 sps:$4 sm:$0xff]   ;;  %v22957_v2 = vld [vmem:[%s26355_s15 + $0x1c4] ss:$16 sps:$4 sm:$0xff]  }
0x1904   :  { %v13488_v63 = vmax.f32 %v13486_v5, 0.0  ;;  %v22955_v5 = vld [vmem:[%s26355_s15 + $0x1c0] ss:$16 sps:$4 sm:$0xff]  }
0x1905   :  { %v25722_v53 = vpack.c.bf16 %v13487_v41, %v13487_v41  ;;  %v22958_v41 = vld [vmem:[%s26355_s15 + $0x1c8] ss:$16 sps:$4 sm:$0xff]  }
0x1906   :  { %v25718_v31 = vpack.c.bf16 %v13488_v63, %v13488_v63  ;;  %v22963_v63 = vld [vmem:[%s26355_s15 + $0x1e4] ss:$16 sps:$4 sm:$0xff]  }
0x1908   :  { %13930 = vmatprep.mubr.bf16.mxu0 %v25718_v31  ;;  %13971 = vmatprep.mubr.bf16.mxu1 %v25718_v31 }
0x1909   :  { %13931 = vmatmul.mubr.bf16.vlgmr.msra.gmra.mrb[72].mxu0 %v25722_v53  ;;  %13972 = vmatmul.mubr.bf16.vlgmr.msra.gmra.mrb[20].mxu1 %v25722_v53 }
0x190a   :  { %14780 = vmatpush1.bf16.msra.mxu0 %v22871_v4  ;;  %14862 = vmatpush1.bf16.msra.mxu1 %v22874_v6  ;;  %v22966_v4 = vld [vmem:[%s26355_s15 + $0x1ec] ss:$16 sps:$4 sm:$0xff]   ;;  %v22961_v6 = vld [vmem:[%s26355_s15 + $0x1e0] ss:$16 sps:$4 sm:$0xff]  }
0x190b   :  { %14781 = vmatprep.subr.bf16.mxu0 %v22879_v42  ;;  %14863 = vmatprep.subr.bf16.mxu1 %v22882_v57  ;;  %v22964_v42 = vld [vmem:[%s26355_s15 + $0x1e8] ss:$16 sps:$4 sm:$0xff]   ;;  %v22969_v57 = vld [vmem:[%s26355_s15 + $0x204] ss:$16 sps:$4 sm:$0xff]  }
0x190e   :  { %14782 = vmatpush1.bf16.msra.mxu0 %v22877_v26  ;;  %14864 = vmatpush1.bf16.msra.mxu1 %v22880_v30  ;;  %v22972_v26 = vld [vmem:[%s26355_s15 + $0x20c] ss:$16 sps:$4 sm:$0xff]  }
0x190f   :  { %14783 = vmatprep.subr.bf16.mxu0 %v22885_v43  ;;  %14865 = vmatprep.subr.bf16.mxu1 %v22888_v9  ;;  %v25791_v30 = vld [vmem:[%s23672_s21 + $0x26] ss:$8 sm:$0xf]  ;;  %v25794_v43 = vsub.s32 3, %v25534_v24 }
0x1910   :  { %v13561_v9 = vrot.slane %v25791_v30, %v25537_v45 }
0x1912   :  { %14784 = vmatpush1.bf16.msra.mxu0 %v22883_v49  ;;  %14866 = vmatpush1.bf16.msra.mxu1 %v22886_v10  ;;  %v13565_v49 = vrot.slane %v25791_v30, %v25541_v32  ;;  %v13573_v10 = vrot.slane %v25791_v30, %v25794_v43 }
0x1913   :  { %14785 = vmatprep.subr.bf16.mxu0 %v22891_v11  ;;  %14867 = vmatprep.subr.bf16.mxu1 %v22894_v12 }
0x1916   :  { %14786 = vmatpush1.bf16.msra.mxu0 %v22889_v13  ;;  %14868 = vmatpush1.bf16.msra.mxu1 %v22892_v16 }
0x1917   :  { %14787 = vmatprep.subr.bf16.mxu0 %v22897_v17  ;;  %14869 = vmatprep.subr.bf16.mxu1 %v22900_v18 }
0x191a   :  { %14788 = vmatpush1.bf16.msra.mxu0 %v22895_v21  ;;  %14870 = vmatpush1.bf16.msra.mxu1 %v22898_v23 }
0x191b   :  { %14789 = vmatprep.subr.bf16.mxu0 %v22903_v25  ;;  %14871 = vmatprep.subr.bf16.mxu1 %v22906_v27 }
0x191e   :  { %14790 = vmatpush1.bf16.msra.mxu0 %v22901_v36  ;;  %14872 = vmatpush1.bf16.msra.mxu1 %v22904_v37 }
0x191f   :  { %14791 = vmatprep.subr.bf16.mxu0 %v22909_v46  ;;  %14873 = vmatprep.subr.bf16.mxu1 %v22912_v47 }
0x1922   :  { %14792 = vmatpush1.bf16.msra.mxu0 %v22907_v29  ;;  %14874 = vmatpush1.bf16.msra.mxu1 %v22910_v48  ;;  %v22967_v48 = vld [vmem:[%s26355_s15 + $0x200] ss:$16 sps:$4 sm:$0xff]  }
0x1923   :  { %14793 = vmatprep.subr.bf16.mxu0 %v22915_v22  ;;  %14875 = vmatprep.subr.bf16.mxu1 %v22918_v54  ;;  %v22970_v22 = vld [vmem:[%s26355_s15 + $0x208] ss:$16 sps:$4 sm:$0xff]  }
0x1926   :  { %14794 = vmatpush1.bf16.msra.mxu0 %v22913_v14  ;;  %14876 = vmatpush1.bf16.msra.mxu1 %v22916_v20  ;;  %v22975_v14 = vld [vmem:[%s26355_s15 + $0x224] ss:$16 sps:$4 sm:$0xff]   ;;  %v22978_v20 = vld [vmem:[%s26355_s15 + $0x22c] ss:$16 sps:$4 sm:$0xff]  }
0x1927   :  { %14795 = vmatprep.subr.bf16.mxu0 %v22921_v15  ;;  %14877 = vmatprep.subr.bf16.mxu1 %v22924_v50  ;;  %v22973_v50 = vld [vmem:[%s26355_s15 + $0x220] ss:$16 sps:$4 sm:$0xff]  }
0x192a   :  { %14796 = vmatpush1.bf16.msra.mxu0 %v22919_v55  ;;  %14878 = vmatpush1.bf16.msra.mxu1 %v22922_v19  ;;  %v22976_v55 = vld [vmem:[%s26355_s15 + $0x228] ss:$16 sps:$4 sm:$0xff]   ;;  %v22981_v19 = vld [vmem:[%s26355_s15 + $0x244] ss:$16 sps:$4 sm:$0xff]  }
0x192b   :  { %14797 = vmatprep.subr.bf16.mxu0 %v22927_v58  ;;  %14879 = vmatprep.subr.bf16.mxu1 %v22930_v39  ;;  %v22984_v58 = vld [vmem:[%s26355_s15 + $0x24c] ss:$16 sps:$4 sm:$0xff]   ;;  %v22979_v39 = vld [vmem:[%s26355_s15 + $0x240] ss:$16 sps:$4 sm:$0xff]  }
0x192e   :  { %14798 = vmatpush1.bf16.msra.mxu0 %v22925_v7  ;;  %14880 = vmatpush1.bf16.msra.mxu1 %v22928_v28  ;;  %v22982_v7 = vld [vmem:[%s26355_s15 + $0x248] ss:$16 sps:$4 sm:$0xff]   ;;  %v22987_v28 = vld [vmem:[%s26355_s15 + $0x264] ss:$16 sps:$4 sm:$0xff]  }
0x192f   :  { %14799 = vmatprep.subr.bf16.mxu0 %v22933_v34  ;;  %14881 = vmatprep.subr.bf16.mxu1 %v22936_v51  ;;  %v22990_v34 = vld [vmem:[%s26355_s15 + $0x26c] ss:$16 sps:$4 sm:$0xff]   ;;  %v22985_v51 = vld [vmem:[%s26355_s15 + $0x260] ss:$16 sps:$4 sm:$0xff]  }
0x1932   :  { %14800 = vmatpush1.bf16.msra.mxu0 %v22931_v52  ;;  %14882 = vmatpush1.bf16.msra.mxu1 %v22934_v56  ;;  %v22988_v52 = vld [vmem:[%s26355_s15 + $0x268] ss:$16 sps:$4 sm:$0xff]   ;;  %v22993_v56 = vld [vmem:[%s26355_s15 + $0x284] ss:$16 sps:$4 sm:$0xff]  }
0x1933   :  { %14801 = vmatprep.subr.bf16.mxu0 %v22939_v59  ;;  %14883 = vmatprep.subr.bf16.mxu1 %v22942_v60  ;;  %v22996_v59 = vld [vmem:[%s26355_s15 + $0x28c] ss:$16 sps:$4 sm:$0xff]   ;;  %v22991_v60 = vld [vmem:[%s26355_s15 + $0x280] ss:$16 sps:$4 sm:$0xff]  }
0x1936   :  { %14802 = vmatpush1.bf16.msra.mxu0 %v22937_v61  ;;  %14884 = vmatpush1.bf16.msra.mxu1 %v22940_v38  ;;  %v22994_v61 = vld [vmem:[%s26355_s15 + $0x288] ss:$16 sps:$4 sm:$0xff]   ;;  %v22999_v38 = vld [vmem:[%s26355_s15 + $0x2a4] ss:$16 sps:$4 sm:$0xff]  }
0x1937   :  { %14803 = vmatprep.subr.bf16.mxu0 %v22945_v62  ;;  %14885 = vmatprep.subr.bf16.mxu1 %v22948_v0  ;;  %v23002_v62 = vld [vmem:[%s26355_s15 + $0x2ac] ss:$16 sps:$4 sm:$0xff]   ;;  %v22997_v0 = vld [vmem:[%s26355_s15 + $0x2a0] ss:$16 sps:$4 sm:$0xff]  }
0x193a   :  { %14804 = vmatpush1.bf16.msra.mxu0 %v22943_v1  ;;  %14886 = vmatpush1.bf16.msra.mxu1 %v22946_v8  ;;  %v23000_v1 = vld [vmem:[%s26355_s15 + $0x2a8] ss:$16 sps:$4 sm:$0xff]   ;;  %v23005_v8 = vld [vmem:[%s26355_s15 + $0x2c4] ss:$16 sps:$4 sm:$0xff]  }
0x193b   :  { %14805 = vmatprep.subr.bf16.mxu0 %v22951_v40  ;;  %14887 = vmatprep.subr.bf16.mxu1 %v22954_v35  ;;  %v23008_v40 = vld [vmem:[%s26355_s15 + $0x2cc] ss:$16 sps:$4 sm:$0xff]   ;;  %v23003_v35 = vld [vmem:[%s26355_s15 + $0x2c0] ss:$16 sps:$4 sm:$0xff]  }
0x193e   :  { %14806 = vmatpush1.bf16.msra.mxu0 %v22949_v33  ;;  %14888 = vmatpush1.bf16.msra.mxu1 %v22952_v44  ;;  %v23006_v33 = vld [vmem:[%s26355_s15 + $0x2c8] ss:$16 sps:$4 sm:$0xff]   ;;  %v23011_v44 = vld [vmem:[%s26355_s15 + $0x2e4] ss:$16 sps:$4 sm:$0xff]  }
0x193f   :  { %14807 = vmatprep.subr.bf16.mxu0 %v22957_v2  ;;  %14889 = vmatprep.subr.bf16.mxu1 %v22960_v3  ;;  %v23014_v2 = vld [vmem:[%s26355_s15 + $0x2ec] ss:$16 sps:$4 sm:$0xff]   ;;  %v23009_v3 = vld [vmem:[%s26355_s15 + $0x2e0] ss:$16 sps:$4 sm:$0xff]  }
0x1942   :  { %14808 = vmatpush1.bf16.msra.mxu0 %v22955_v5  ;;  %14890 = vmatpush1.bf16.msra.mxu1 %v22958_v41  ;;  %v23012_v5 = vld [vmem:[%s26355_s15 + $0x2e8] ss:$16 sps:$4 sm:$0xff]   ;;  %v23017_v41 = vld [vmem:[%s26355_s15 + $0x304] ss:$16 sps:$4 sm:$0xff]  }
0x1943   :  { %14809 = vmatprep.subr.bf16.mxu0 %v22963_v63  ;;  %14891 = vmatprep.subr.bf16.mxu1 %v22966_v4  ;;  %v23020_v63 = vld [vmem:[%s26355_s15 + $0x30c] ss:$16 sps:$4 sm:$0xff]   ;;  %v23015_v4 = vld [vmem:[%s26355_s15 + $0x300] ss:$16 sps:$4 sm:$0xff]  }
0x1946   :  { %14810 = vmatpush1.bf16.msra.mxu0 %v22961_v6  ;;  %14892 = vmatpush1.bf16.msra.mxu1 %v22964_v42  ;;  %v23018_v6 = vld [vmem:[%s26355_s15 + $0x308] ss:$16 sps:$4 sm:$0xff]   ;;  %v23023_v42 = vld [vmem:[%s26355_s15 + $0x324] ss:$16 sps:$4 sm:$0xff]  }
0x1947   :  { %14820 = vmatprep.subr.bf16.mxu0 %v22969_v57  ;;  %14902 = vmatprep.subr.bf16.mxu1 %v22972_v26  ;;  %v23026_v57 = vld [vmem:[%s26355_s15 + $0x32c] ss:$16 sps:$4 sm:$0xff]   ;;  %v23021_v26 = vld [vmem:[%s26355_s15 + $0x320] ss:$16 sps:$4 sm:$0xff]  }
0x19dc   :  { %v13932_v11 = vpop.f32.mrb[72].mxu0  ;;  %v25802_v12 = vpop.f32.mrb[20].mxu1 }
0x19dd   :  { %v13933_v13 = vadd.f32 %v13932_v11, %v13561_v9  ;;  %v13934_v16 = vpop.f32.mrb[73].mxu0  ;;  %v13975_v17 = vpop.f32.mrb[21].mxu1  ;;  %v23024_v9 = vld [vmem:[%s26355_s15 + $0x328] ss:$16 sps:$4 sm:$0xff]   ;;  %v23027_v11 = vld [vmem:[%s26355_s15 + $0x340] ss:$16 sps:$4 sm:$0xff]  }
0x19de   :  { %v13935_v18 = vadd.f32 %v13934_v16, %v13565_v49  ;;  %v13976_v21 = vadd.f32 %v13975_v17, %v13573_v10  ;;  %v13936_v23 = vpop.f32.mrb[74].mxu0  ;;  %v13977_v25 = vpop.f32.mrb[22].mxu1  ;;  %v23029_v49 = vld [vmem:[%s26355_s15 + $0x344] ss:$16 sps:$4 sm:$0xff]   ;;  %v23032_v10 = vld [vmem:[%s26355_s15 + $0x34c] ss:$16 sps:$4 sm:$0xff]  }
0x19df   :  { %v13980_v27 = vmax.f32 %v13933_v13, 0.0  ;;  %v13937_v36 = vpop.f32.mrb[75].mxu0  ;;  %v13978_v37 = vpop.f32.mrb[23].mxu1  ;;  %v23030_v13 = vld [vmem:[%s26355_s15 + $0x348] ss:$16 sps:$4 sm:$0xff]  }
0x19e0   :  { %v13981_v46 = vmax.f32 %v13935_v18, 0.0  ;;  %v13983_v47 = vmax.f32 %v13976_v21, 0.0  ;;  %v23035_v16 = vld [vmem:[%s26355_s15 + $0x364] ss:$16 sps:$4 sm:$0xff]   ;;  %v23038_v17 = vld [vmem:[%s26355_s15 + $0x36c] ss:$16 sps:$4 sm:$0xff]  }
0x19e1   :  { %v13984_v54 = vpack.c.bf16 %v13980_v27, %v13980_v27  ;;  %v23033_v18 = vld [vmem:[%s26355_s15 + $0x360] ss:$16 sps:$4 sm:$0xff]   ;;  %v23036_v21 = vld [vmem:[%s26355_s15 + $0x368] ss:$16 sps:$4 sm:$0xff]   ;;  %v23041_v23 = vld [vmem:[%s26355_s15 + $0x384] ss:$16 sps:$4 sm:$0xff]  }
0x19e2   :  { %v13985_v29 = vpack.c.bf16 %v13981_v46, %v13981_v46  ;;  %v13987_v15 = vpack.c.bf16 %v13983_v47, %v13983_v47  ;;  %v23044_v25 = vld [vmem:[%s26355_s15 + $0x38c] ss:$16 sps:$4 sm:$0xff]   ;;  %v23039_v27 = vld [vmem:[%s26355_s15 + $0x380] ss:$16 sps:$4 sm:$0xff]   ;;  %v23042_v36 = vld [vmem:[%s26355_s15 + $0x388] ss:$16 sps:$4 sm:$0xff]  }
0x19e3   :  { %v25855_v37 = vsub.s32 2, %v25534_v24  ;;  %v23047_v46 = vld [vmem:[%s26355_s15 + $0x3a4] ss:$16 sps:$4 sm:$0xff]   ;;  %v23050_v47 = vld [vmem:[%s26355_s15 + $0x3ac] ss:$16 sps:$4 sm:$0xff]  }
0x19e4   :  { %14811 = vmatprep.mubr.bf16.mxu0 %v13985_v29  ;;  %14893 = vmatprep.mubr.bf16.mxu1 %v13985_v29  ;;  %v23045_v29 = vld [vmem:[%s26355_s15 + $0x3a0] ss:$16 sps:$4 sm:$0xff]   ;;  %v23053_v24 = vld [vmem:[%s26355_s15 + $0x3c4] ss:$16 sps:$4 sm:$0xff]  }
0x19e5   :  { %14812 = vmatmul.mubr.bf16.vlgmr.msra.gmra.mrb[76].mxu0 %v13984_v54  ;;  %14894 = vmatmul.mubr.bf16.vlgmr.msra.gmra.mrb[24].mxu1 %v13984_v54  ;;  %v23056_v54 = vld [vmem:[%s26355_s15 + $0x3cc] ss:$16 sps:$4 sm:$0xff]  }
0x19e6   :  { %14821 = vmatpush1.bf16.msra.mxu0 %v22967_v48  ;;  %14903 = vmatpush1.bf16.msra.mxu1 %v22970_v22  ;;  %v23048_v48 = vld [vmem:[%s26355_s15 + $0x3a8] ss:$16 sps:$4 sm:$0xff]   ;;  %v13569_v22 = vrot.slane %v25791_v30, %v25855_v37  ;;  %v23062_v30 = vld [vmem:[%s26355_s15 + $0x3ec] ss:$16 sps:$4 sm:$0xff]  }
0x19e7   :  { %14852 = vmatprep.mubr.bf16.mxu0 %v13987_v15  ;;  %14934 = vmatprep.mubr.bf16.mxu1 %v13987_v15 }
0x19e8   :  { %14822 = vmatprep.subr.bf16.mxu0 %v22975_v14  ;;  %14904 = vmatprep.subr.bf16.mxu1 %v22978_v20  ;;  %v23051_v14 = vld [vmem:[%s26355_s15 + $0x3c0] ss:$16 sps:$4 sm:$0xff]   ;;  %v23054_v20 = vld [vmem:[%s26355_s15 + $0x3c8] ss:$16 sps:$4 sm:$0xff]   ;;  %v13974_v15 = vadd.f32 %v25802_v12, %v13569_v22 }
0x19e9   :  { %v23063_v12 = vld [vmem:[%s26356_s16] ss:$16 sps:$4 sm:$0xff]   ;;  %v23132_v22 = vld [vmem:[%s26356_s16 + $0x168] ss:$16 sps:$4 sm:$0xff]  }
0x19ea   :  { %14823 = vmatpush1.bf16.msra.mxu0 %v22973_v50  ;;  %14905 = vmatpush1.bf16.msra.mxu1 %v22976_v55  ;;  %v23059_v50 = vld [vmem:[%s26355_s15 + $0x3e4] ss:$16 sps:$4 sm:$0xff]   ;;  %v23057_v55 = vld [vmem:[%s26355_s15 + $0x3e0] ss:$16 sps:$4 sm:$0xff]  }
0x19eb   :  { %14824 = vmatprep.subr.bf16.mxu0 %v22981_v19  ;;  %14906 = vmatprep.subr.bf16.mxu1 %v22984_v58  ;;  %v23060_v19 = vld [vmem:[%s26355_s15 + $0x3e8] ss:$16 sps:$4 sm:$0xff]   ;;  %v13982_v58 = vmax.f32 %v13974_v15, 0.0  ;;  %v23143_v15 = vld [vmem:[%s26356_s16 + $0x1a4] ss:$16 sps:$4 sm:$0xff]  }
0x19ee   :  { %14825 = vmatpush1.bf16.msra.mxu0 %v22979_v39  ;;  %14907 = vmatpush1.bf16.msra.mxu1 %v22982_v7  ;;  %v23065_v39 = vld [vmem:[%s26356_s16 + $0x4] ss:$16 sps:$4 sm:$0xff]   ;;  %v23068_v7 = vld [vmem:[%s26356_s16 + $0xc] ss:$16 sps:$4 sm:$0xff]  }
0x19ef   :  { %14826 = vmatprep.subr.bf16.mxu0 %v22987_v28  ;;  %14908 = vmatprep.subr.bf16.mxu1 %v22990_v34  ;;  %v13986_v28 = vpack.c.bf16 %v13982_v58, %v13982_v58  ;;  %v23066_v34 = vld [vmem:[%s26356_s16 + $0x8] ss:$16 sps:$4 sm:$0xff]   ;;  %v23152_v58 = vld [vmem:[%s26356_s16 + $0x1cc] ss:$16 sps:$4 sm:$0xff]  }
0x19f2   :  { %14827 = vmatpush1.bf16.msra.mxu0 %v22985_v51  ;;  %14909 = vmatpush1.bf16.msra.mxu1 %v22988_v52  ;;  %v23071_v51 = vld [vmem:[%s26356_s16 + $0x24] ss:$16 sps:$4 sm:$0xff]   ;;  %v23074_v52 = vld [vmem:[%s26356_s16 + $0x2c] ss:$16 sps:$4 sm:$0xff]  }
0x19f3   :  { %14828 = vmatprep.subr.bf16.mxu0 %v22993_v56  ;;  %14910 = vmatprep.subr.bf16.mxu1 %v22996_v59  ;;  %v23069_v56 = vld [vmem:[%s26356_s16 + $0x20] ss:$16 sps:$4 sm:$0xff]   ;;  %v23072_v59 = vld [vmem:[%s26356_s16 + $0x28] ss:$16 sps:$4 sm:$0xff]  }
0x19f6   :  { %14829 = vmatpush1.bf16.msra.mxu0 %v22991_v60  ;;  %14911 = vmatpush1.bf16.msra.mxu1 %v22994_v61  ;;  %v23077_v60 = vld [vmem:[%s26356_s16 + $0x44] ss:$16 sps:$4 sm:$0xff]   ;;  %v23080_v61 = vld [vmem:[%s26356_s16 + $0x4c] ss:$16 sps:$4 sm:$0xff]  }
0x19f7   :  { %14830 = vmatprep.subr.bf16.mxu0 %v22999_v38  ;;  %14912 = vmatprep.subr.bf16.mxu1 %v23002_v62  ;;  %v23075_v38 = vld [vmem:[%s26356_s16 + $0x40] ss:$16 sps:$4 sm:$0xff]   ;;  %v23078_v62 = vld [vmem:[%s26356_s16 + $0x48] ss:$16 sps:$4 sm:$0xff]  }
0x19fa   :  { %14831 = vmatpush1.bf16.msra.mxu0 %v22997_v0  ;;  %14913 = vmatpush1.bf16.msra.mxu1 %v23000_v1  ;;  %v23083_v0 = vld [vmem:[%s26356_s16 + $0x64] ss:$16 sps:$4 sm:$0xff]   ;;  %v23086_v1 = vld [vmem:[%s26356_s16 + $0x6c] ss:$16 sps:$4 sm:$0xff]  }
0x19fb   :  { %14832 = vmatprep.subr.bf16.mxu0 %v23005_v8  ;;  %14914 = vmatprep.subr.bf16.mxu1 %v23008_v40  ;;  %v23084_v8 = vld [vmem:[%s26356_s16 + $0x68] ss:$16 sps:$4 sm:$0xff]   ;;  %v23089_v40 = vld [vmem:[%s26356_s16 + $0x84] ss:$16 sps:$4 sm:$0xff]  }
0x19fe   :  { %14833 = vmatpush1.bf16.msra.mxu0 %v23003_v35  ;;  %14915 = vmatpush1.bf16.msra.mxu1 %v23006_v33  ;;  %v23092_v35 = vld [vmem:[%s26356_s16 + $0x8c] ss:$16 sps:$4 sm:$0xff]   ;;  %v23087_v33 = vld [vmem:[%s26356_s16 + $0x80] ss:$16 sps:$4 sm:$0xff]  }
0x19ff   :  { %14834 = vmatprep.subr.bf16.mxu0 %v23011_v44  ;;  %14916 = vmatprep.subr.bf16.mxu1 %v23014_v2  ;;  %v23090_v44 = vld [vmem:[%s26356_s16 + $0x88] ss:$16 sps:$4 sm:$0xff]   ;;  %v23095_v2 = vld [vmem:[%s26356_s16 + $0xa4] ss:$16 sps:$4 sm:$0xff]  }
0x1a02   :  { %14835 = vmatpush1.bf16.msra.mxu0 %v23009_v3  ;;  %14917 = vmatpush1.bf16.msra.mxu1 %v23012_v5  ;;  %v23098_v3 = vld [vmem:[%s26356_s16 + $0xac] ss:$16 sps:$4 sm:$0xff]   ;;  %v23093_v5 = vld [vmem:[%s26356_s16 + $0xa0] ss:$16 sps:$4 sm:$0xff]  }
0x1a03   :  { %14836 = vmatprep.subr.bf16.mxu0 %v23017_v41  ;;  %14918 = vmatprep.subr.bf16.mxu1 %v23020_v63  ;;  %v23096_v41 = vld [vmem:[%s26356_s16 + $0xa8] ss:$16 sps:$4 sm:$0xff]   ;;  %v23101_v63 = vld [vmem:[%s26356_s16 + $0xc4] ss:$16 sps:$4 sm:$0xff]  }
0x1a06   :  { %14837 = vmatpush1.bf16.msra.mxu0 %v23015_v4  ;;  %14919 = vmatpush1.bf16.msra.mxu1 %v23018_v6  ;;  %v23104_v4 = vld [vmem:[%s26356_s16 + $0xcc] ss:$16 sps:$4 sm:$0xff]   ;;  %v23099_v6 = vld [vmem:[%s26356_s16 + $0xc0] ss:$16 sps:$4 sm:$0xff]  }
0x1a07   :  { %14838 = vmatprep.subr.bf16.mxu0 %v23023_v42  ;;  %14920 = vmatprep.subr.bf16.mxu1 %v23026_v57  ;;  %v23102_v42 = vld [vmem:[%s26356_s16 + $0xc8] ss:$16 sps:$4 sm:$0xff]   ;;  %v23107_v57 = vld [vmem:[%s26356_s16 + $0xe4] ss:$16 sps:$4 sm:$0xff]  }
0x1a0a   :  { %14839 = vmatpush1.bf16.msra.mxu0 %v23021_v26  ;;  %14921 = vmatpush1.bf16.msra.mxu1 %v23024_v9  ;;  %v23110_v26 = vld [vmem:[%s26356_s16 + $0xec] ss:$16 sps:$4 sm:$0xff]   ;;  %v23105_v9 = vld [vmem:[%s26356_s16 + $0xe0] ss:$16 sps:$4 sm:$0xff]  }
0x1a0b   :  { %14840 = vmatprep.subr.bf16.mxu0 %v23029_v49  ;;  %14922 = vmatprep.subr.bf16.mxu1 %v23032_v10  ;;  %v23108_v49 = vld [vmem:[%s26356_s16 + $0xe8] ss:$16 sps:$4 sm:$0xff]   ;;  %v23113_v10 = vld [vmem:[%s26356_s16 + $0x104] ss:$16 sps:$4 sm:$0xff]  }
0x1a0e   :  { %14841 = vmatpush1.bf16.msra.mxu0 %v23027_v11  ;;  %14923 = vmatpush1.bf16.msra.mxu1 %v23030_v13  ;;  %v23116_v11 = vld [vmem:[%s26356_s16 + $0x10c] ss:$16 sps:$4 sm:$0xff]   ;;  %v23111_v13 = vld [vmem:[%s26356_s16 + $0x100] ss:$16 sps:$4 sm:$0xff]  }
0x1a0f   :  { %14842 = vmatprep.subr.bf16.mxu0 %v23035_v16  ;;  %14924 = vmatprep.subr.bf16.mxu1 %v23038_v17  ;;  %v23114_v16 = vld [vmem:[%s26356_s16 + $0x108] ss:$16 sps:$4 sm:$0xff]   ;;  %v23119_v17 = vld [vmem:[%s26356_s16 + $0x124] ss:$16 sps:$4 sm:$0xff]  }
0x1a12   :  { %14843 = vmatpush1.bf16.msra.mxu0 %v23033_v18  ;;  %14925 = vmatpush1.bf16.msra.mxu1 %v23036_v21  ;;  %v23122_v18 = vld [vmem:[%s26356_s16 + $0x12c] ss:$16 sps:$4 sm:$0xff]   ;;  %v23117_v21 = vld [vmem:[%s26356_s16 + $0x120] ss:$16 sps:$4 sm:$0xff]  }
0x1a13   :  { %14844 = vmatprep.subr.bf16.mxu0 %v23041_v23  ;;  %14926 = vmatprep.subr.bf16.mxu1 %v23044_v25  ;;  %v23120_v23 = vld [vmem:[%s26356_s16 + $0x128] ss:$16 sps:$4 sm:$0xff]   ;;  %v23125_v25 = vld [vmem:[%s26356_s16 + $0x144] ss:$16 sps:$4 sm:$0xff]  }
0x1a16   :  { %14845 = vmatpush1.bf16.msra.mxu0 %v23039_v27  ;;  %14927 = vmatpush1.bf16.msra.mxu1 %v23042_v36  ;;  %v23128_v27 = vld [vmem:[%s26356_s16 + $0x14c] ss:$16 sps:$4 sm:$0xff]   ;;  %v23123_v36 = vld [vmem:[%s26356_s16 + $0x140] ss:$16 sps:$4 sm:$0xff]  }
0x1a17   :  { %14846 = vmatprep.subr.bf16.mxu0 %v23047_v46  ;;  %14928 = vmatprep.subr.bf16.mxu1 %v23050_v47  ;;  %v23126_v46 = vld [vmem:[%s26356_s16 + $0x148] ss:$16 sps:$4 sm:$0xff]   ;;  %v23131_v47 = vld [vmem:[%s26356_s16 + $0x164] ss:$16 sps:$4 sm:$0xff]  }
0x1a1a   :  { %14847 = vmatpush1.bf16.msra.mxu0 %v23045_v29  ;;  %14929 = vmatpush1.bf16.msra.mxu1 %v23048_v48  ;;  %v23134_v29 = vld [vmem:[%s26356_s16 + $0x16c] ss:$16 sps:$4 sm:$0xff]   ;;  %v23129_v48 = vld [vmem:[%s26356_s16 + $0x160] ss:$16 sps:$4 sm:$0xff]  }
0x1a1b   :  { %14848 = vmatprep.subr.bf16.mxu0 %v23053_v24  ;;  %14930 = vmatprep.subr.bf16.mxu1 %v23056_v54  ;;  %v23137_v24 = vld [vmem:[%s26356_s16 + $0x184] ss:$16 sps:$4 sm:$0xff]   ;;  %v23140_v54 = vld [vmem:[%s26356_s16 + $0x18c] ss:$16 sps:$4 sm:$0xff]  }
0x1a1e   :  { %14849 = vmatpush1.bf16.msra.mxu0 %v23051_v14  ;;  %14931 = vmatpush1.bf16.msra.mxu1 %v23054_v20  ;;  %v23135_v14 = vld [vmem:[%s26356_s16 + $0x180] ss:$16 sps:$4 sm:$0xff]   ;;  %v23138_v20 = vld [vmem:[%s26356_s16 + $0x188] ss:$16 sps:$4 sm:$0xff]  }
0x1a1f   :  { %14850 = vmatprep.subr.bf16.mxu0 %v23059_v50  ;;  %14932 = vmatprep.subr.bf16.mxu1 %v23062_v30  ;;  %v23146_v50 = vld [vmem:[%s26356_s16 + $0x1ac] ss:$16 sps:$4 sm:$0xff]   ;;  %v23141_v30 = vld [vmem:[%s26356_s16 + $0x1a0] ss:$16 sps:$4 sm:$0xff]  }
0x1a22   :  { %14851 = vmatpush1.bf16.msra.mxu0 %v23057_v55  ;;  %14933 = vmatpush1.bf16.msra.mxu1 %v23060_v19  ;;  %v23144_v55 = vld [vmem:[%s26356_s16 + $0x1a8] ss:$16 sps:$4 sm:$0xff]   ;;  %v23149_v19 = vld [vmem:[%s26356_s16 + $0x1c4] ss:$16 sps:$4 sm:$0xff]  }
0x1a23   :  { %15350 = vmatprep.subr.bf16.mxu0 %v23065_v39  ;;  %15391 = vmatprep.subr.bf16.mxu1 %v23068_v7  ;;  %v23147_v39 = vld [vmem:[%s26356_s16 + $0x1c0] ss:$16 sps:$4 sm:$0xff]   ;;  %v23150_v7 = vld [vmem:[%s26356_s16 + $0x1c8] ss:$16 sps:$4 sm:$0xff]  }
0x1a25   :  { %14853 = vmatmul.mubr.bf16.vlgmr.msra.gmra.mrb[76].mxu0 %v13986_v28  ;;  %14935 = vmatmul.mubr.bf16.vlgmr.msra.gmra.mrb[24].mxu1 %v13986_v28  ;;  %v23158_v28 = vld [vmem:[%s26356_s16 + $0x1ec] ss:$16 sps:$4 sm:$0xff]  }
0x1a26   :  { %15351 = vmatpush1.bf16.msra.mxu0 %v23063_v12  ;;  %15382 = vmatprep.mubr.bf16.mxu0 %v25718_v31  ;;  %v23155_v12 = vld [vmem:[%s26356_s16 + $0x1e4] ss:$16 sps:$4 sm:$0xff]  }
0x1a27   :  { %15392 = vmatpush1.bf16.msra.mxu1 %v23066_v34  ;;  %15423 = vmatprep.mubr.bf16.mxu1 %v25718_v31  ;;  %v23081_v31 = vld [vmem:[%s26356_s16 + $0x60] ss:$16 sps:$4 sm:$0xff]  }
0x1a28   :  { %15352 = vmatprep.subr.bf16.mxu0 %v23071_v51  ;;  %15393 = vmatprep.subr.bf16.mxu1 %v23074_v52  ;;  %v23153_v34 = vld [vmem:[%s26356_s16 + $0x1e0] ss:$16 sps:$4 sm:$0xff]   ;;  %v23156_v51 = vld [vmem:[%s26356_s16 + $0x1e8] ss:$16 sps:$4 sm:$0xff]   ;;  %v23161_v52 = vld [vmem:[%s26357_s18 + $0x4] ss:$16 sps:$4 sm:$0xff]  }
0x1a2a   :  { %15353 = vmatpush1.bf16.msra.mxu0 %v23069_v56  ;;  %v23164_v56 = vld [vmem:[%s26357_s18 + $0xc] ss:$16 sps:$4 sm:$0xff]  }
0x1a2b   :  { %15394 = vmatpush1.bf16.msra.mxu1 %v23072_v59  ;;  %15354 = vmatprep.subr.bf16.mxu0 %v23077_v60  ;;  %v23159_v59 = vld [vmem:[%s26357_s18] ss:$16 sps:$4 sm:$0xff]   ;;  %v23162_v60 = vld [vmem:[%s26357_s18 + $0x8] ss:$16 sps:$4 sm:$0xff]  }
0x1a2c   :  { %15395 = vmatprep.subr.bf16.mxu1 %v23080_v61  ;;  %v23167_v61 = vld [vmem:[%s26357_s18 + $0x24] ss:$16 sps:$4 sm:$0xff]  }
0x1a2e   :  { %15355 = vmatpush1.bf16.msra.mxu0 %v23075_v38  ;;  %v23170_v38 = vld [vmem:[%s26357_s18 + $0x2c] ss:$16 sps:$4 sm:$0xff]  }
0x1a2f   :  { %15396 = vmatpush1.bf16.msra.mxu1 %v23078_v62  ;;  %15356 = vmatprep.subr.bf16.mxu0 %v23083_v0  ;;  %v23165_v62 = vld [vmem:[%s26357_s18 + $0x20] ss:$16 sps:$4 sm:$0xff]   ;;  %v23168_v0 = vld [vmem:[%s26357_s18 + $0x28] ss:$16 sps:$4 sm:$0xff]  }
0x1a30   :  { %15397 = vmatprep.subr.bf16.mxu1 %v23086_v1  ;;  %v23173_v1 = vld [vmem:[%s26357_s18 + $0x44] ss:$16 sps:$4 sm:$0xff]  }
0x1a32   :  { %15357 = vmatpush1.bf16.msra.mxu0 %v23081_v31  ;;  %v23176_v31 = vld [vmem:[%s26357_s18 + $0x4c] ss:$16 sps:$4 sm:$0xff]  }
0x1a33   :  { %15398 = vmatpush1.bf16.msra.mxu1 %v23084_v8  ;;  %15358 = vmatprep.subr.bf16.mxu0 %v23089_v40  ;;  %v23171_v8 = vld [vmem:[%s26357_s18 + $0x40] ss:$16 sps:$4 sm:$0xff]   ;;  %v23174_v40 = vld [vmem:[%s26357_s18 + $0x48] ss:$16 sps:$4 sm:$0xff]  }
0x1a34   :  { %15399 = vmatprep.subr.bf16.mxu1 %v23092_v35  ;;  %v23182_v35 = vld [vmem:[%s26357_s18 + $0x6c] ss:$16 sps:$4 sm:$0xff]  }
0x1a36   :  { %15359 = vmatpush1.bf16.msra.mxu0 %v23087_v33  ;;  %v23177_v33 = vld [vmem:[%s26357_s18 + $0x60] ss:$16 sps:$4 sm:$0xff]  }
0x1a37   :  { %15400 = vmatpush1.bf16.msra.mxu1 %v23090_v44  ;;  %15360 = vmatprep.subr.bf16.mxu0 %v23095_v2  ;;  %v23180_v44 = vld [vmem:[%s26357_s18 + $0x68] ss:$16 sps:$4 sm:$0xff]   ;;  %v23185_v2 = vld [vmem:[%s26357_s18 + $0x84] ss:$16 sps:$4 sm:$0xff]  }
0x1a38   :  { %15401 = vmatprep.subr.bf16.mxu1 %v23098_v3  ;;  %v23188_v3 = vld [vmem:[%s26357_s18 + $0x8c] ss:$16 sps:$4 sm:$0xff]  }
0x1a3a   :  { %15361 = vmatpush1.bf16.msra.mxu0 %v23093_v5  ;;  %v23183_v5 = vld [vmem:[%s26357_s18 + $0x80] ss:$16 sps:$4 sm:$0xff]  }
0x1a3b   :  { %15402 = vmatpush1.bf16.msra.mxu1 %v23096_v41  ;;  %15362 = vmatprep.subr.bf16.mxu0 %v23101_v63  ;;  %v23186_v41 = vld [vmem:[%s26357_s18 + $0x88] ss:$16 sps:$4 sm:$0xff]   ;;  %v23191_v63 = vld [vmem:[%s26357_s18 + $0xa4] ss:$16 sps:$4 sm:$0xff]  }
0x1a3c   :  { %15403 = vmatprep.subr.bf16.mxu1 %v23104_v4  ;;  %v23194_v4 = vld [vmem:[%s26357_s18 + $0xac] ss:$16 sps:$4 sm:$0xff]  }
0x1a3e   :  { %15363 = vmatpush1.bf16.msra.mxu0 %v23099_v6  ;;  %v23189_v6 = vld [vmem:[%s26357_s18 + $0xa0] ss:$16 sps:$4 sm:$0xff]  }
0x1a3f   :  { %15404 = vmatpush1.bf16.msra.mxu1 %v23102_v42  ;;  %15364 = vmatprep.subr.bf16.mxu0 %v23107_v57  ;;  %v23192_v42 = vld [vmem:[%s26357_s18 + $0xa8] ss:$16 sps:$4 sm:$0xff]   ;;  %v23197_v57 = vld [vmem:[%s26357_s18 + $0xc4] ss:$16 sps:$4 sm:$0xff]  }
0x1a40   :  { %15405 = vmatprep.subr.bf16.mxu1 %v23110_v26  ;;  %v23200_v26 = vld [vmem:[%s26357_s18 + $0xcc] ss:$16 sps:$4 sm:$0xff]  }
0x1a42   :  { %15365 = vmatpush1.bf16.msra.mxu0 %v23105_v9  ;;  %v23195_v9 = vld [vmem:[%s26357_s18 + $0xc0] ss:$16 sps:$4 sm:$0xff]  }
0x1a43   :  { %15406 = vmatpush1.bf16.msra.mxu1 %v23108_v49  ;;  %15366 = vmatprep.subr.bf16.mxu0 %v23113_v10  ;;  %v23198_v49 = vld [vmem:[%s26357_s18 + $0xc8] ss:$16 sps:$4 sm:$0xff]   ;;  %v23203_v10 = vld [vmem:[%s26357_s18 + $0xe4] ss:$16 sps:$4 sm:$0xff]  }
0x1a44   :  { %15407 = vmatprep.subr.bf16.mxu1 %v23116_v11  ;;  %v23206_v11 = vld [vmem:[%s26357_s18 + $0xec] ss:$16 sps:$4 sm:$0xff]  }
0x1a46   :  { %15367 = vmatpush1.bf16.msra.mxu0 %v23111_v13  ;;  %v23201_v13 = vld [vmem:[%s26357_s18 + $0xe0] ss:$16 sps:$4 sm:$0xff]  }
0x1a47   :  { %15408 = vmatpush1.bf16.msra.mxu1 %v23114_v16  ;;  %15368 = vmatprep.subr.bf16.mxu0 %v23119_v17  ;;  %v23204_v16 = vld [vmem:[%s26357_s18 + $0xe8] ss:$16 sps:$4 sm:$0xff]   ;;  %v23209_v17 = vld [vmem:[%s26357_s18 + $0x104] ss:$16 sps:$4 sm:$0xff]  }
0x1a48   :  { %15409 = vmatprep.subr.bf16.mxu1 %v23122_v18  ;;  %v23212_v18 = vld [vmem:[%s26357_s18 + $0x10c] ss:$16 sps:$4 sm:$0xff]  }
0x1a4a   :  { %15369 = vmatpush1.bf16.msra.mxu0 %v23117_v21  ;;  %v23207_v21 = vld [vmem:[%s26357_s18 + $0x100] ss:$16 sps:$4 sm:$0xff]  }
0x1a4b   :  { %15410 = vmatpush1.bf16.msra.mxu1 %v23120_v23  ;;  %15370 = vmatprep.subr.bf16.mxu0 %v23125_v25  ;;  %v23210_v23 = vld [vmem:[%s26357_s18 + $0x108] ss:$16 sps:$4 sm:$0xff]   ;;  %v23215_v25 = vld [vmem:[%s26357_s18 + $0x124] ss:$16 sps:$4 sm:$0xff]  }
0x1a4c   :  { %15411 = vmatprep.subr.bf16.mxu1 %v23128_v27  ;;  %v23218_v27 = vld [vmem:[%s26357_s18 + $0x12c] ss:$16 sps:$4 sm:$0xff]  }
0x1a4e   :  { %15371 = vmatpush1.bf16.msra.mxu0 %v23123_v36  ;;  %v23213_v36 = vld [vmem:[%s26357_s18 + $0x120] ss:$16 sps:$4 sm:$0xff]  }
0x1a4f   :  { %15412 = vmatpush1.bf16.msra.mxu1 %v23126_v46  ;;  %15372 = vmatprep.subr.bf16.mxu0 %v23131_v47  ;;  %v23216_v46 = vld [vmem:[%s26357_s18 + $0x128] ss:$16 sps:$4 sm:$0xff]   ;;  %v23221_v47 = vld [vmem:[%s26357_s18 + $0x144] ss:$16 sps:$4 sm:$0xff]  }
0x1a50   :  { %15413 = vmatprep.subr.bf16.mxu1 %v23134_v29  ;;  %v23224_v29 = vld [vmem:[%s26357_s18 + $0x14c] ss:$16 sps:$4 sm:$0xff]  }
0x1a52   :  { %15373 = vmatpush1.bf16.msra.mxu0 %v23129_v48  ;;  %v23219_v48 = vld [vmem:[%s26357_s18 + $0x140] ss:$16 sps:$4 sm:$0xff]  }
0x1a53   :  { %15414 = vmatpush1.bf16.msra.mxu1 %v23132_v22  ;;  %15374 = vmatprep.subr.bf16.mxu0 %v23137_v24  ;;  %v23222_v22 = vld [vmem:[%s26357_s18 + $0x148] ss:$16 sps:$4 sm:$0xff]   ;;  %v23227_v24 = vld [vmem:[%s26357_s18 + $0x164] ss:$16 sps:$4 sm:$0xff]  }
0x1a54   :  { %15415 = vmatprep.subr.bf16.mxu1 %v23140_v54  ;;  %v23230_v54 = vld [vmem:[%s26357_s18 + $0x16c] ss:$16 sps:$4 sm:$0xff]  }
0x1a56   :  { %15375 = vmatpush1.bf16.msra.mxu0 %v23135_v14  ;;  %v23225_v14 = vld [vmem:[%s26357_s18 + $0x160] ss:$16 sps:$4 sm:$0xff]  }
0x1a57   :  { %15416 = vmatpush1.bf16.msra.mxu1 %v23138_v20  ;;  %15376 = vmatprep.subr.bf16.mxu0 %v23143_v15  ;;  %v23228_v20 = vld [vmem:[%s26357_s18 + $0x168] ss:$16 sps:$4 sm:$0xff]   ;;  %v23233_v15 = vld [vmem:[%s26357_s18 + $0x184] ss:$16 sps:$4 sm:$0xff]  }
0x1a58   :  { %15417 = vmatprep.subr.bf16.mxu1 %v23146_v50  ;;  %v23236_v50 = vld [vmem:[%s26357_s18 + $0x18c] ss:$16 sps:$4 sm:$0xff]  }
0x1a5a   :  { %15377 = vmatpush1.bf16.msra.mxu0 %v23141_v30  ;;  %v23231_v30 = vld [vmem:[%s26357_s18 + $0x180] ss:$16 sps:$4 sm:$0xff]  }
0x1a5b   :  { %15418 = vmatpush1.bf16.msra.mxu1 %v23144_v55  ;;  %15378 = vmatprep.subr.bf16.mxu0 %v23149_v19  ;;  %v23234_v55 = vld [vmem:[%s26357_s18 + $0x188] ss:$16 sps:$4 sm:$0xff]   ;;  %v23239_v19 = vld [vmem:[%s26357_s18 + $0x1a4] ss:$16 sps:$4 sm:$0xff]  }
0x1a5c   :  { %15419 = vmatprep.subr.bf16.mxu1 %v23152_v58  ;;  %v23242_v58 = vld [vmem:[%s26357_s18 + $0x1ac] ss:$16 sps:$4 sm:$0xff]  }
0x1a5e   :  { %15379 = vmatpush1.bf16.msra.mxu0 %v23147_v39  ;;  %v23237_v39 = vld [vmem:[%s26357_s18 + $0x1a0] ss:$16 sps:$4 sm:$0xff]  }
0x1a5f   :  { %15420 = vmatpush1.bf16.msra.mxu1 %v23150_v7  ;;  %15380 = vmatprep.subr.bf16.mxu0 %v23155_v12  ;;  %v23240_v7 = vld [vmem:[%s26357_s18 + $0x1a8] ss:$16 sps:$4 sm:$0xff]   ;;  %v23245_v12 = vld [vmem:[%s26357_s18 + $0x1c4] ss:$16 sps:$4 sm:$0xff]  }
0x1a60   :  { %15421 = vmatprep.subr.bf16.mxu1 %v23158_v28  ;;  %v23248_v28 = vld [vmem:[%s26357_s18 + $0x1cc] ss:$16 sps:$4 sm:$0xff]  }
0x1a62   :  { %15381 = vmatpush1.bf16.msra.mxu0 %v23153_v34  ;;  %v23243_v34 = vld [vmem:[%s26357_s18 + $0x1c0] ss:$16 sps:$4 sm:$0xff]  }
0x1a63   :  { %15422 = vmatpush1.bf16.msra.mxu1 %v23156_v51  ;;  %16235 = vmatprep.subr.bf16.mxu0 %v23161_v52  ;;  %v23246_v51 = vld [vmem:[%s26357_s18 + $0x1c8] ss:$16 sps:$4 sm:$0xff]   ;;  %v23251_v52 = vld [vmem:[%s26357_s18 + $0x1e4] ss:$16 sps:$4 sm:$0xff]  }
0x1a64   :  { %16317 = vmatprep.subr.bf16.mxu1 %v23164_v56  ;;  %v23254_v56 = vld [vmem:[%s26357_s18 + $0x1ec] ss:$16 sps:$4 sm:$0xff]  }
0x1a65   :  { %15383 = vmatmul.mubr.bf16.vlgmr.msra.gmra.mrb[76].mxu0 %v25722_v53 }
0x1a66   :  { %15424 = vmatmul.mubr.bf16.vlgmr.msra.gmra.mrb[24].mxu1 %v25722_v53  ;;  %16236 = vmatpush1.bf16.msra.mxu0 %v23159_v59  ;;  %v23179_v53 = vld [vmem:[%s26357_s18 + $0x64] ss:$16 sps:$4 sm:$0xff]   ;;  %v23249_v59 = vld [vmem:[%s26357_s18 + $0x1e0] ss:$16 sps:$4 sm:$0xff]  }
0x1a67   :  { %16318 = vmatpush1.bf16.msra.mxu1 %v23162_v60  ;;  %16237 = vmatprep.subr.bf16.mxu0 %v23167_v61  ;;  %v23252_v60 = vld [vmem:[%s26357_s18 + $0x1e8] ss:$16 sps:$4 sm:$0xff]   ;;  %v23257_v61 = vld [vmem:[%s26357_s18 + $0x204] ss:$16 sps:$4 sm:$0xff]  }
0x1a68   :  { %16319 = vmatprep.subr.bf16.mxu1 %v23170_v38  ;;  %v23260_v38 = vld [vmem:[%s26357_s18 + $0x20c] ss:$16 sps:$4 sm:$0xff]  }
0x1a6a   :  { %16238 = vmatpush1.bf16.msra.mxu0 %v23165_v62  ;;  %v26007_v62 = vld [vmem:[%s23672_s21 + $0x27] ss:$8 sm:$0xf] }
0x1a6b   :  { %16320 = vmatpush1.bf16.msra.mxu1 %v23168_v0  ;;  %16239 = vmatprep.subr.bf16.mxu0 %v23173_v1  ;;  %v26010_v0 = vld [vmem:[%s23672_s21 + $0x40] ss:$8 sm:$0xf]  ;;  %v14122_v1 = vrot.slane %v26007_v62, %v25537_v45 }
0x1a6c   :  { %16321 = vmatprep.subr.bf16.mxu1 %v23176_v31  ;;  %v15013_v31 = vrot.slane %v26010_v0, %v25537_v45 }
0x1a6e   :  { %16240 = vmatpush1.bf16.msra.mxu0 %v23171_v8  ;;  %v14126_v8 = vrot.slane %v26007_v62, %v25541_v32 }
0x1a6f   :  { %16322 = vmatpush1.bf16.msra.mxu1 %v23174_v40  ;;  %16241 = vmatprep.subr.bf16.mxu0 %v23179_v53  ;;  %v15017_v40 = vrot.slane %v26010_v0, %v25541_v32  ;;  %v14134_v53 = vrot.slane %v26007_v62, %v25794_v43 }
0x1a70   :  { %16323 = vmatprep.subr.bf16.mxu1 %v23182_v35  ;;  %v15025_v35 = vrot.slane %v26010_v0, %v25794_v43 }
0x1a72   :  { %16242 = vmatpush1.bf16.msra.mxu0 %v23177_v33  ;;  %v21736_v33 = vadd.f32 %v15013_v31, %v14122_v1  ;;  %v23303_v1 = vld [vmem:[%s26357_s18 + $0x300] ss:$16 sps:$4 sm:$0xff]   ;;  %v23306_v31 = vld [vmem:[%s26357_s18 + $0x308] ss:$16 sps:$4 sm:$0xff]  }
0x1a73   :  { %16324 = vmatpush1.bf16.msra.mxu1 %v23180_v44  ;;  %16243 = vmatprep.subr.bf16.mxu0 %v23185_v2  ;;  %v21738_v44 = vadd.f32 %v15017_v40, %v14126_v8  ;;  %v21742_v2 = vadd.f32 %v15025_v35, %v14134_v53  ;;  %v23311_v8 = vld [vmem:[%s26357_s18 + $0x324] ss:$16 sps:$4 sm:$0xff]   ;;  %v23314_v40 = vld [vmem:[%s26357_s18 + $0x32c] ss:$16 sps:$4 sm:$0xff]   ;;  %v23309_v53 = vld [vmem:[%s26357_s18 + $0x320] ss:$16 sps:$4 sm:$0xff]  }
0x1a74   :  { %16325 = vmatprep.subr.bf16.mxu1 %v23188_v3  ;;  %v23312_v35 = vld [vmem:[%s26357_s18 + $0x328] ss:$16 sps:$4 sm:$0xff]  }
0x1a76   :  { %16244 = vmatpush1.bf16.msra.mxu0 %v23183_v5 }
0x1a77   :  { %16326 = vmatpush1.bf16.msra.mxu1 %v23186_v41  ;;  %16245 = vmatprep.subr.bf16.mxu0 %v23191_v63 }
0x1a78   :  { %16327 = vmatprep.subr.bf16.mxu1 %v23194_v4 }
0x1a7a   :  { %16246 = vmatpush1.bf16.msra.mxu0 %v23189_v6 }
0x1a7b   :  { %16328 = vmatpush1.bf16.msra.mxu1 %v23192_v42  ;;  %16247 = vmatprep.subr.bf16.mxu0 %v23197_v57 }
0x1a7c   :  { %16329 = vmatprep.subr.bf16.mxu1 %v23200_v26 }
0x1a7e   :  { %16248 = vmatpush1.bf16.msra.mxu0 %v23195_v9 }
0x1a7f   :  { %16330 = vmatpush1.bf16.msra.mxu1 %v23198_v49  ;;  %16249 = vmatprep.subr.bf16.mxu0 %v23203_v10 }
0x1a80   :  { %16331 = vmatprep.subr.bf16.mxu1 %v23206_v11 }
0x1a82   :  { %16250 = vmatpush1.bf16.msra.mxu0 %v23201_v13 }
0x1a83   :  { %16332 = vmatpush1.bf16.msra.mxu1 %v23204_v16  ;;  %16251 = vmatprep.subr.bf16.mxu0 %v23209_v17  ;;  %v23255_v17 = vld [vmem:[%s26357_s18 + $0x200] ss:$16 sps:$4 sm:$0xff]  }
0x1a84   :  { %16333 = vmatprep.subr.bf16.mxu1 %v23212_v18  ;;  %v23258_v18 = vld [vmem:[%s26357_s18 + $0x208] ss:$16 sps:$4 sm:$0xff]  }
0x1a86   :  { %16252 = vmatpush1.bf16.msra.mxu0 %v23207_v21 }
0x1a87   :  { %16334 = vmatpush1.bf16.msra.mxu1 %v23210_v23  ;;  %16253 = vmatprep.subr.bf16.mxu0 %v23215_v25  ;;  %v23263_v23 = vld [vmem:[%s26357_s18 + $0x224] ss:$16 sps:$4 sm:$0xff]   ;;  %v23266_v25 = vld [vmem:[%s26357_s18 + $0x22c] ss:$16 sps:$4 sm:$0xff]  }
0x1a88   :  { %16335 = vmatprep.subr.bf16.mxu1 %v23218_v27 }
0x1a8a   :  { %16254 = vmatpush1.bf16.msra.mxu0 %v23213_v36  ;;  %v23261_v36 = vld [vmem:[%s26357_s18 + $0x220] ss:$16 sps:$4 sm:$0xff]  }
0x1a8b   :  { %16336 = vmatpush1.bf16.msra.mxu1 %v23216_v46  ;;  %16255 = vmatprep.subr.bf16.mxu0 %v23221_v47  ;;  %v23264_v46 = vld [vmem:[%s26357_s18 + $0x228] ss:$16 sps:$4 sm:$0xff]   ;;  %v23269_v47 = vld [vmem:[%s26357_s18 + $0x244] ss:$16 sps:$4 sm:$0xff]  }
0x1a8c   :  { %16337 = vmatprep.subr.bf16.mxu1 %v23224_v29  ;;  %v23272_v29 = vld [vmem:[%s26357_s18 + $0x24c] ss:$16 sps:$4 sm:$0xff]  }
0x1a8e   :  { %16256 = vmatpush1.bf16.msra.mxu0 %v23219_v48  ;;  %v23267_v48 = vld [vmem:[%s26357_s18 + $0x240] ss:$16 sps:$4 sm:$0xff]  }
0x1a8f   :  { %16338 = vmatpush1.bf16.msra.mxu1 %v23222_v22  ;;  %16257 = vmatprep.subr.bf16.mxu0 %v23227_v24  ;;  %v23270_v22 = vld [vmem:[%s26357_s18 + $0x248] ss:$16 sps:$4 sm:$0xff]   ;;  %v23275_v24 = vld [vmem:[%s26357_s18 + $0x264] ss:$16 sps:$4 sm:$0xff]  }
0x1a90   :  { %16339 = vmatprep.subr.bf16.mxu1 %v23230_v54  ;;  %v23278_v54 = vld [vmem:[%s26357_s18 + $0x26c] ss:$16 sps:$4 sm:$0xff]  }
0x1a92   :  { %16258 = vmatpush1.bf16.msra.mxu0 %v23225_v14  ;;  %v23273_v14 = vld [vmem:[%s26357_s18 + $0x260] ss:$16 sps:$4 sm:$0xff]  }
0x1a93   :  { %16340 = vmatpush1.bf16.msra.mxu1 %v23228_v20  ;;  %16259 = vmatprep.subr.bf16.mxu0 %v23233_v15  ;;  %v23276_v20 = vld [vmem:[%s26357_s18 + $0x268] ss:$16 sps:$4 sm:$0xff]   ;;  %v23281_v15 = vld [vmem:[%s26357_s18 + $0x284] ss:$16 sps:$4 sm:$0xff]  }
0x1a94   :  { %16341 = vmatprep.subr.bf16.mxu1 %v23236_v50  ;;  %v23284_v50 = vld [vmem:[%s26357_s18 + $0x28c] ss:$16 sps:$4 sm:$0xff]  }
0x1a96   :  { %16260 = vmatpush1.bf16.msra.mxu0 %v23231_v30  ;;  %v23279_v30 = vld [vmem:[%s26357_s18 + $0x280] ss:$16 sps:$4 sm:$0xff]  }
0x1a97   :  { %16342 = vmatpush1.bf16.msra.mxu1 %v23234_v55  ;;  %16261 = vmatprep.subr.bf16.mxu0 %v23239_v19  ;;  %v23282_v55 = vld [vmem:[%s26357_s18 + $0x288] ss:$16 sps:$4 sm:$0xff]   ;;  %v23287_v19 = vld [vmem:[%s26357_s18 + $0x2a4] ss:$16 sps:$4 sm:$0xff]  }
0x1a98   :  { %16343 = vmatprep.subr.bf16.mxu1 %v23242_v58  ;;  %v23290_v58 = vld [vmem:[%s26357_s18 + $0x2ac] ss:$16 sps:$4 sm:$0xff]  }
0x1a9a   :  { %16262 = vmatpush1.bf16.msra.mxu0 %v23237_v39  ;;  %v23285_v39 = vld [vmem:[%s26357_s18 + $0x2a0] ss:$16 sps:$4 sm:$0xff]  }
0x1a9b   :  { %16344 = vmatpush1.bf16.msra.mxu1 %v23240_v7  ;;  %16263 = vmatprep.subr.bf16.mxu0 %v23245_v12  ;;  %v23288_v7 = vld [vmem:[%s26357_s18 + $0x2a8] ss:$16 sps:$4 sm:$0xff]   ;;  %v23293_v12 = vld [vmem:[%s26357_s18 + $0x2c4] ss:$16 sps:$4 sm:$0xff]  }
0x1a9c   :  { %16345 = vmatprep.subr.bf16.mxu1 %v23248_v28  ;;  %v23296_v28 = vld [vmem:[%s26357_s18 + $0x2cc] ss:$16 sps:$4 sm:$0xff]  }
0x1a9e   :  { %16264 = vmatpush1.bf16.msra.mxu0 %v23243_v34  ;;  %v23291_v34 = vld [vmem:[%s26357_s18 + $0x2c0] ss:$16 sps:$4 sm:$0xff]  }
0x1a9f   :  { %16346 = vmatpush1.bf16.msra.mxu1 %v23246_v51  ;;  %16265 = vmatprep.subr.bf16.mxu0 %v23251_v52  ;;  %v23294_v51 = vld [vmem:[%s26357_s18 + $0x2c8] ss:$16 sps:$4 sm:$0xff]   ;;  %v23299_v52 = vld [vmem:[%s26357_s18 + $0x2e4] ss:$16 sps:$4 sm:$0xff]  }
0x1aa0   :  { %16347 = vmatprep.subr.bf16.mxu1 %v23254_v56  ;;  %v23302_v56 = vld [vmem:[%s26357_s18 + $0x2ec] ss:$16 sps:$4 sm:$0xff]  }
0x1aa2   :  { %16266 = vmatpush1.bf16.msra.mxu0 %v23249_v59  ;;  %v23297_v59 = vld [vmem:[%s26357_s18 + $0x2e0] ss:$16 sps:$4 sm:$0xff]  }
0x1aa3   :  { %16348 = vmatpush1.bf16.msra.mxu1 %v23252_v60  ;;  %16276 = vmatprep.subr.bf16.mxu0 %v23257_v61  ;;  %v23300_v60 = vld [vmem:[%s26357_s18 + $0x2e8] ss:$16 sps:$4 sm:$0xff]   ;;  %v23305_v61 = vld [vmem:[%s26357_s18 + $0x304] ss:$16 sps:$4 sm:$0xff]  }
0x1aa4   :  { %16358 = vmatprep.subr.bf16.mxu1 %v23260_v38  ;;  %v23308_v38 = vld [vmem:[%s26357_s18 + $0x30c] ss:$16 sps:$4 sm:$0xff]  }
0x1b38   :  { %v15384_v3 = vpop.f32.mrb[76].mxu0 }
0x1b39   :  { %v21737_v5 = vadd.f32 %v21736_v33, %v15384_v3  ;;  %v26024_v41 = vpop.f32.mrb[24].mxu1  ;;  %v15386_v63 = vpop.f32.mrb[77].mxu0  ;;  %v23317_v33 = vld [vmem:[%s26357_s18 + $0x344] ss:$16 sps:$4 sm:$0xff]   ;;  %v23318_v3 = vld [vmem:[%s26357_s18 + $0x348] ss:$16 sps:$4 sm:$0xff]  }
0x1b3a   :  { %v21739_v4 = vadd.f32 %v21738_v44, %v15386_v63  ;;  %v15427_v6 = vpop.f32.mrb[25].mxu1  ;;  %v15388_v42 = vpop.f32.mrb[78].mxu0  ;;  %v23320_v44 = vld [vmem:[%s26357_s18 + $0x34c] ss:$16 sps:$4 sm:$0xff]  }
0x1b3b   :  { %v26026_v57 = vmax.f32 %v21737_v5, 0.0  ;;  %v21743_v26 = vadd.f32 %v21742_v2, %v15427_v6  ;;  %v15429_v9 = vpop.f32.mrb[26].mxu1  ;;  %v15389_v49 = vpop.f32.mrb[79].mxu0  ;;  %v23315_v2 = vld [vmem:[%s26357_s18 + $0x340] ss:$16 sps:$4 sm:$0xff]  }
0x1b3c   :  { %v26028_v10 = vmax.f32 %v21739_v4, 0.0  ;;  %v15430_v11 = vpop.f32.mrb[27].mxu1  ;;  %v23323_v5 = vld [vmem:[%s26357_s18 + $0x364] ss:$16 sps:$4 sm:$0xff]   ;;  %v23326_v63 = vld [vmem:[%s26357_s18 + $0x36c] ss:$16 sps:$4 sm:$0xff]  }
0x1b3d   :  { %v26030_v13 = vmax.f32 %v21743_v26, 0.0  ;;  %v15440_v21 = vpack.c.bf16 %v26026_v57, %v26026_v57  ;;  %v23321_v4 = vld [vmem:[%s26357_s18 + $0x360] ss:$16 sps:$4 sm:$0xff]   ;;  %v23324_v6 = vld [vmem:[%s26357_s18 + $0x368] ss:$16 sps:$4 sm:$0xff]   ;;  %v14130_v11 = vrot.slane %v26007_v62, %v25855_v37 }
0x1b3e   :  { %v15441_v16 = vpack.c.bf16 %v26028_v10, %v26028_v10  ;;  %v23329_v42 = vld [vmem:[%s26357_s18 + $0x384] ss:$16 sps:$4 sm:$0xff]   ;;  %v23332_v26 = vld [vmem:[%s26357_s18 + $0x38c] ss:$16 sps:$4 sm:$0xff]   ;;  %v23327_v9 = vld [vmem:[%s26357_s18 + $0x380] ss:$16 sps:$4 sm:$0xff]  }
0x1b3f   :  { %v15443_v27 = vpack.c.bf16 %v26030_v13, %v26030_v13  ;;  %v23330_v49 = vld [vmem:[%s26357_s18 + $0x388] ss:$16 sps:$4 sm:$0xff]   ;;  %v23341_v62 = vld [vmem:[%s26357_s18 + $0x3c4] ss:$16 sps:$4 sm:$0xff]  }
0x1b40   :  { %16267 = vmatprep.mubr.bf16.mxu0 %v15441_v16  ;;  %16349 = vmatprep.mubr.bf16.mxu1 %v15441_v16  ;;  %v15021_v16 = vrot.slane %v26010_v0, %v25855_v37  ;;  %v23339_v0 = vld [vmem:[%s26357_s18 + $0x3c0] ss:$16 sps:$4 sm:$0xff]  }
0x1b41   :  { %16268 = vmatmul.mubr.bf16.vlgmr.msra.gmra.mrb[80].mxu0 %v15440_v21  ;;  %16350 = vmatmul.mubr.bf16.vlgmr.msra.gmra.mrb[28].mxu1 %v15440_v21  ;;  %v23333_v21 = vld [vmem:[%s26357_s18 + $0x3a0] ss:$16 sps:$4 sm:$0xff]  }
0x1b42   :  { %16277 = vmatpush1.bf16.msra.mxu0 %v23255_v17  ;;  %16359 = vmatpush1.bf16.msra.mxu1 %v23258_v18  ;;  %v23335_v17 = vld [vmem:[%s26357_s18 + $0x3a4] ss:$16 sps:$4 sm:$0xff]   ;;  %v23338_v18 = vld [vmem:[%s26357_s18 + $0x3ac] ss:$16 sps:$4 sm:$0xff]  }
0x1b43   :  { %16308 = vmatprep.mubr.bf16.mxu0 %v15443_v27  ;;  %16390 = vmatprep.mubr.bf16.mxu1 %v15443_v27  ;;  %v23344_v27 = vld [vmem:[%s26357_s18 + $0x3cc] ss:$16 sps:$4 sm:$0xff]  }
0x1b44   :  { %16278 = vmatprep.subr.bf16.mxu0 %v23263_v23  ;;  %16360 = vmatprep.subr.bf16.mxu1 %v23266_v25  ;;  %v23336_v23 = vld [vmem:[%s26357_s18 + $0x3a8] ss:$16 sps:$4 sm:$0xff]   ;;  %v21740_v25 = vadd.f32 %v15021_v16, %v14130_v11  ;;  %v23408_v11 = vld [vmem:[%s23822_s12 + $0x320] ss:$16 sps:$4 sm:$0xff]   ;;  %v23413_v16 = vld [vmem:[%s23822_s12 + $0x144] ss:$16 sps:$4 sm:$0xff]  }
0x1b46   :  { %16279 = vmatpush1.bf16.msra.mxu0 %v23261_v36  ;;  %16361 = vmatpush1.bf16.msra.mxu1 %v23264_v46  ;;  %v23342_v36 = vld [vmem:[%s26357_s18 + $0x3c8] ss:$16 sps:$4 sm:$0xff]   ;;  %v21741_v46 = vadd.f32 %v21740_v25, %v26024_v41  ;;  %v23356_v41 = vld [vmem:[%s23822_s12 + $0x204] ss:$16 sps:$4 sm:$0xff]  }
0x1b47   :  { %16280 = vmatprep.subr.bf16.mxu0 %v23269_v47  ;;  %16362 = vmatprep.subr.bf16.mxu1 %v23272_v29  ;;  %v23347_v47 = vld [vmem:[%s26357_s18 + $0x3e4] ss:$16 sps:$4 sm:$0xff]   ;;  %v23350_v29 = vld [vmem:[%s26357_s18 + $0x3ec] ss:$16 sps:$4 sm:$0xff]  }
0x1b48   :  { %v23422_v25 = vld [vmem:[%s23822_s12 + $0x364] ss:$16 sps:$4 sm:$0xff]  }
0x1b4a   :  { %16281 = vmatpush1.bf16.msra.mxu0 %v23267_v48  ;;  %16363 = vmatpush1.bf16.msra.mxu1 %v23270_v22  ;;  %v23345_v48 = vld [vmem:[%s26357_s18 + $0x3e0] ss:$16 sps:$4 sm:$0xff]   ;;  %v23348_v22 = vld [vmem:[%s26357_s18 + $0x3e8] ss:$16 sps:$4 sm:$0xff]  }
0x1b4b   :  { %16282 = vmatprep.subr.bf16.mxu0 %v23275_v24  ;;  %16364 = vmatprep.subr.bf16.mxu1 %v23278_v54  ;;  %v26105_v24 = vmax.f32 %v21741_v46, 0.0  ;;  %v23353_v54 = vld [vmem:[%s23822_s12 + $0x4] ss:$16 sps:$4 sm:$0xff]   ;;  %v23423_v46 = vld [vmem:[%s23822_s12 + $0x180] ss:$16 sps:$4 sm:$0xff]  }
0x1b4e   :  { %16283 = vmatpush1.bf16.msra.mxu0 %v23273_v14  ;;  %16365 = vmatpush1.bf16.msra.mxu1 %v23276_v20  ;;  %v23351_v14 = vld [vmem:[%s23822_s12] ss:$16 sps:$4 sm:$0xff]  }
0x1b4f   :  { %16284 = vmatprep.subr.bf16.mxu0 %v23281_v15  ;;  %16366 = vmatprep.subr.bf16.mxu1 %v23284_v50  ;;  %v23354_v20 = vld [vmem:[%s23822_s12 + $0x200] ss:$16 sps:$4 sm:$0xff]   ;;  %v15442_v15 = vpack.c.bf16 %v26105_v24, %v26105_v24  ;;  %v23359_v50 = vld [vmem:[%s23822_s12 + $0x24] ss:$16 sps:$4 sm:$0xff]  }
0x1b52   :  { %16285 = vmatpush1.bf16.msra.mxu0 %v23279_v30  ;;  %16367 = vmatpush1.bf16.msra.mxu1 %v23282_v55  ;;  %v23362_v30 = vld [vmem:[%s23822_s12 + $0x224] ss:$16 sps:$4 sm:$0xff]   ;;  %v23357_v55 = vld [vmem:[%s23822_s12 + $0x20] ss:$16 sps:$4 sm:$0xff]  }
0x1b53   :  { %16286 = vmatprep.subr.bf16.mxu0 %v23287_v19  ;;  %16368 = vmatprep.subr.bf16.mxu1 %v23290_v58  ;;  %v23360_v19 = vld [vmem:[%s23822_s12 + $0x220] ss:$16 sps:$4 sm:$0xff]   ;;  %v23365_v58 = vld [vmem:[%s23822_s12 + $0x44] ss:$16 sps:$4 sm:$0xff]  }
0x1b56   :  { %16287 = vmatpush1.bf16.msra.mxu0 %v23285_v39  ;;  %16369 = vmatpush1.bf16.msra.mxu1 %v23288_v7  ;;  %v23368_v39 = vld [vmem:[%s23822_s12 + $0x244] ss:$16 sps:$4 sm:$0xff]   ;;  %v23363_v7 = vld [vmem:[%s23822_s12 + $0x40] ss:$16 sps:$4 sm:$0xff]  }
0x1b57   :  { %16288 = vmatprep.subr.bf16.mxu0 %v23293_v12  ;;  %16370 = vmatprep.subr.bf16.mxu1 %v23296_v28  ;;  %v23366_v12 = vld [vmem:[%s23822_s12 + $0x240] ss:$16 sps:$4 sm:$0xff]   ;;  %v23371_v28 = vld [vmem:[%s23822_s12 + $0x64] ss:$16 sps:$4 sm:$0xff]  }
0x1b5a   :  { %16289 = vmatpush1.bf16.msra.mxu0 %v23291_v34  ;;  %16371 = vmatpush1.bf16.msra.mxu1 %v23294_v51  ;;  %v23374_v34 = vld [vmem:[%s23822_s12 + $0x264] ss:$16 sps:$4 sm:$0xff]   ;;  %v23369_v51 = vld [vmem:[%s23822_s12 + $0x60] ss:$16 sps:$4 sm:$0xff]  }
0x1b5b   :  { %16290 = vmatprep.subr.bf16.mxu0 %v23299_v52  ;;  %16372 = vmatprep.subr.bf16.mxu1 %v23302_v56  ;;  %v23372_v52 = vld [vmem:[%s23822_s12 + $0x260] ss:$16 sps:$4 sm:$0xff]   ;;  %v23377_v56 = vld [vmem:[%s23822_s12 + $0x84] ss:$16 sps:$4 sm:$0xff]  }
0x1b5e   :  { %16291 = vmatpush1.bf16.msra.mxu0 %v23297_v59  ;;  %16373 = vmatpush1.bf16.msra.mxu1 %v23300_v60  ;;  %v23380_v59 = vld [vmem:[%s23822_s12 + $0x284] ss:$16 sps:$4 sm:$0xff]   ;;  %v23375_v60 = vld [vmem:[%s23822_s12 + $0x80] ss:$16 sps:$4 sm:$0xff]  }
0x1b5f   :  { %16292 = vmatprep.subr.bf16.mxu0 %v23305_v61  ;;  %16374 = vmatprep.subr.bf16.mxu1 %v23308_v38  ;;  %v23378_v61 = vld [vmem:[%s23822_s12 + $0x280] ss:$16 sps:$4 sm:$0xff]   ;;  %v23383_v38 = vld [vmem:[%s23822_s12 + $0xa4] ss:$16 sps:$4 sm:$0xff]  }
0x1b62   :  { %16293 = vmatpush1.bf16.msra.mxu0 %v23303_v1  ;;  %16375 = vmatpush1.bf16.msra.mxu1 %v23306_v31  ;;  %v23386_v1 = vld [vmem:[%s23822_s12 + $0x2a4] ss:$16 sps:$4 sm:$0xff]   ;;  %v23381_v31 = vld [vmem:[%s23822_s12 + $0xa0] ss:$16 sps:$4 sm:$0xff]  }
0x1b63   :  { %16294 = vmatprep.subr.bf16.mxu0 %v23311_v8  ;;  %16376 = vmatprep.subr.bf16.mxu1 %v23314_v40  ;;  %v23384_v8 = vld [vmem:[%s23822_s12 + $0x2a0] ss:$16 sps:$4 sm:$0xff]   ;;  %v23389_v40 = vld [vmem:[%s23822_s12 + $0xc4] ss:$16 sps:$4 sm:$0xff]  }
0x1b66   :  { %16295 = vmatpush1.bf16.msra.mxu0 %v23309_v53  ;;  %16377 = vmatpush1.bf16.msra.mxu1 %v23312_v35  ;;  %v23392_v53 = vld [vmem:[%s23822_s12 + $0x2c4] ss:$16 sps:$4 sm:$0xff]   ;;  %v23387_v35 = vld [vmem:[%s23822_s12 + $0xc0] ss:$16 sps:$4 sm:$0xff]  }
0x1b67   :  { %16296 = vmatprep.subr.bf16.mxu0 %v23317_v33  ;;  %16378 = vmatprep.subr.bf16.mxu1 %v23320_v44  ;;  %v23390_v33 = vld [vmem:[%s23822_s12 + $0x2c0] ss:$16 sps:$4 sm:$0xff]   ;;  %v23395_v44 = vld [vmem:[%s23822_s12 + $0xe4] ss:$16 sps:$4 sm:$0xff]  }
0x1b6a   :  { %16297 = vmatpush1.bf16.msra.mxu0 %v23315_v2  ;;  %16379 = vmatpush1.bf16.msra.mxu1 %v23318_v3  ;;  %v23398_v2 = vld [vmem:[%s23822_s12 + $0x2e4] ss:$16 sps:$4 sm:$0xff]   ;;  %v23393_v3 = vld [vmem:[%s23822_s12 + $0xe0] ss:$16 sps:$4 sm:$0xff]  }
0x1b6b   :  { %16298 = vmatprep.subr.bf16.mxu0 %v23323_v5  ;;  %16380 = vmatprep.subr.bf16.mxu1 %v23326_v63  ;;  %v23396_v5 = vld [vmem:[%s23822_s12 + $0x2e0] ss:$16 sps:$4 sm:$0xff]   ;;  %v23401_v63 = vld [vmem:[%s23822_s12 + $0x104] ss:$16 sps:$4 sm:$0xff]  }
0x1b6e   :  { %16299 = vmatpush1.bf16.msra.mxu0 %v23321_v4  ;;  %16381 = vmatpush1.bf16.msra.mxu1 %v23324_v6  ;;  %v23404_v4 = vld [vmem:[%s23822_s12 + $0x304] ss:$16 sps:$4 sm:$0xff]   ;;  %v23399_v6 = vld [vmem:[%s23822_s12 + $0x100] ss:$16 sps:$4 sm:$0xff]  }
0x1b6f   :  { %16300 = vmatprep.subr.bf16.mxu0 %v23329_v42  ;;  %16382 = vmatprep.subr.bf16.mxu1 %v23332_v26  ;;  %v23402_v42 = vld [vmem:[%s23822_s12 + $0x300] ss:$16 sps:$4 sm:$0xff]   ;;  %v23407_v26 = vld [vmem:[%s23822_s12 + $0x124] ss:$16 sps:$4 sm:$0xff]  }
0x1b72   :  { %16301 = vmatpush1.bf16.msra.mxu0 %v23327_v9  ;;  %16383 = vmatpush1.bf16.msra.mxu1 %v23330_v49  ;;  %v23410_v9 = vld [vmem:[%s23822_s12 + $0x324] ss:$16 sps:$4 sm:$0xff]   ;;  %v23405_v49 = vld [vmem:[%s23822_s12 + $0x120] ss:$16 sps:$4 sm:$0xff]  }
0x1b73   :  { %16302 = vmatprep.subr.bf16.mxu0 %v23335_v17  ;;  %16384 = vmatprep.subr.bf16.mxu1 %v23338_v18  ;;  %v23416_v17 = vld [vmem:[%s23822_s12 + $0x344] ss:$16 sps:$4 sm:$0xff]   ;;  %v23411_v18 = vld [vmem:[%s23822_s12 + $0x140] ss:$16 sps:$4 sm:$0xff]  }
0x1b76   :  { %16303 = vmatpush1.bf16.msra.mxu0 %v23333_v21  ;;  %16385 = vmatpush1.bf16.msra.mxu1 %v23336_v23  ;;  %v23414_v21 = vld [vmem:[%s23822_s12 + $0x340] ss:$16 sps:$4 sm:$0xff]   ;;  %v23419_v23 = vld [vmem:[%s23822_s12 + $0x164] ss:$16 sps:$4 sm:$0xff]  }
0x1b77   :  { %16304 = vmatprep.subr.bf16.mxu0 %v23341_v62  ;;  %16386 = vmatprep.subr.bf16.mxu1 %v23344_v27  ;;  %v23417_v62 = vld [vmem:[%s23822_s12 + $0x160] ss:$16 sps:$4 sm:$0xff]  }
0x1b78   :  { %v23420_v27 = vld [vmem:[%s23822_s12 + $0x360] ss:$16 sps:$4 sm:$0xff]  }
0x1b7a   :  { %16305 = vmatpush1.bf16.msra.mxu0 %v23339_v0  ;;  %16387 = vmatpush1.bf16.msra.mxu1 %v23342_v36  ;;  %v23425_v0 = vld [vmem:[%s23822_s12 + $0x184] ss:$16 sps:$4 sm:$0xff]  }
0x1b7b   :  { %16306 = vmatprep.subr.bf16.mxu0 %v23347_v47  ;;  %16388 = vmatprep.subr.bf16.mxu1 %v23350_v29  ;;  %v23428_v36 = vld [vmem:[%s23822_s12 + $0x384] ss:$16 sps:$4 sm:$0xff]   ;;  %v23426_v47 = vld [vmem:[%s23822_s12 + $0x380] ss:$16 sps:$4 sm:$0xff]  }
0x1b7c   :  { %v23431_v29 = vld [vmem:[%s23822_s12 + $0x1a4] ss:$16 sps:$4 sm:$0xff]  }
0x1b7e   :  { %16307 = vmatpush1.bf16.msra.mxu0 %v23345_v48  ;;  %16389 = vmatpush1.bf16.msra.mxu1 %v23348_v22  ;;  %v23434_v48 = vld [vmem:[%s23822_s12 + $0x3a4] ss:$16 sps:$4 sm:$0xff]   ;;  %v23429_v22 = vld [vmem:[%s23822_s12 + $0x1a0] ss:$16 sps:$4 sm:$0xff]  }
0x1b7f   :  { %17198 = vmatprep.subr.bf16.mxu0 %v23353_v54  ;;  %17239 = vmatprep.subr.bf16.mxu1 %v23356_v41  ;;  %v23432_v54 = vld [vmem:[%s23822_s12 + $0x3a0] ss:$16 sps:$4 sm:$0xff]   ;;  %v23437_v41 = vld [vmem:[%s23822_s12 + $0x1c4] ss:$16 sps:$4 sm:$0xff]  }
0x1b81   :  { %16309 = vmatmul.mubr.bf16.vlgmr.msra.gmra.mrb[80].mxu0 %v15442_v15  ;;  %16391 = vmatmul.mubr.bf16.vlgmr.msra.gmra.mrb[28].mxu1 %v15442_v15  ;;  %v23438_v15 = vld [vmem:[%s23822_s12 + $0x3c0] ss:$16 sps:$4 sm:$0xff]  }
0x1b82   :  { %17199 = vmatpush1.bf16.msra.mxu0 %v23351_v14  ;;  %17240 = vmatpush1.bf16.msra.mxu1 %v23354_v20  ;;  %v23440_v14 = vld [vmem:[%s23822_s12 + $0x3c4] ss:$16 sps:$4 sm:$0xff]   ;;  %v23435_v20 = vld [vmem:[%s23822_s12 + $0x1c0] ss:$16 sps:$4 sm:$0xff]  }
0x1b83   :  { %17200 = vmatprep.subr.bf16.mxu0 %v23359_v50  ;;  %17241 = vmatprep.subr.bf16.mxu1 %v23362_v30  ;;  %v23443_v50 = vld [vmem:[%s23822_s12 + $0x1e4] ss:$16 sps:$4 sm:$0xff]  }
0x1b84   :  { %v23446_v30 = vld [vmem:[%s23822_s12 + $0x3e4] ss:$16 sps:$4 sm:$0xff]  }
0x1b86   :  { %17201 = vmatpush1.bf16.msra.mxu0 %v23357_v55  ;;  %17242 = vmatpush1.bf16.msra.mxu1 %v23360_v19  ;;  %v23441_v55 = vld [vmem:[%s23822_s12 + $0x1e0] ss:$16 sps:$4 sm:$0xff]  }
0x1b87   :  { %17202 = vmatprep.subr.bf16.mxu0 %v23365_v58  ;;  %17243 = vmatprep.subr.bf16.mxu1 %v23368_v39  ;;  %v23444_v19 = vld [vmem:[%s23822_s12 + $0x3e0] ss:$16 sps:$4 sm:$0xff]   ;;  %v23449_v58 = vld [vmem:[%s23822_s12 + $0xc] ss:$16 sps:$4 sm:$0xff]  }
0x1b88   :  { %v23452_v39 = vld [vmem:[%s23822_s12 + $0x20c] ss:$16 sps:$4 sm:$0xff]  }
0x1b8a   :  { %17203 = vmatpush1.bf16.msra.mxu0 %v23363_v7  ;;  %17244 = vmatpush1.bf16.msra.mxu1 %v23366_v12  ;;  %v19224_v7 = vld [vmem:[%s23672_s21 + $0x41] ss:$8 sm:$0xf] }
0x1b8b   :  { %17204 = vmatprep.subr.bf16.mxu0 %v23371_v28  ;;  %17245 = vmatprep.subr.bf16.mxu1 %v23374_v34  ;;  %v15578_v12 = vrot.slane %v19224_v7, %v25537_v45  ;;  %v15586_v28 = vrot.slane %v19224_v7, %v25855_v37  ;;  %v15582_v34 = vrot.slane %v19224_v7, %v25541_v32 }
0x1b8e   :  { %17205 = vmatpush1.bf16.msra.mxu0 %v23369_v51  ;;  %17246 = vmatpush1.bf16.msra.mxu1 %v23372_v52  ;;  %v15590_v51 = vrot.slane %v19224_v7, %v25794_v43  ;;  %v23500_v7 = vld [vmem:[%s23822_s12 + $0x30c] ss:$16 sps:$4 sm:$0xff]  }
0x1b8f   :  { %17206 = vmatprep.subr.bf16.mxu0 %v23377_v56  ;;  %17247 = vmatprep.subr.bf16.mxu1 %v23380_v59 }
0x1b92   :  { %17207 = vmatpush1.bf16.msra.mxu0 %v23375_v60  ;;  %17248 = vmatpush1.bf16.msra.mxu1 %v23378_v61 }
0x1b93   :  { %17208 = vmatprep.subr.bf16.mxu0 %v23383_v38  ;;  %17249 = vmatprep.subr.bf16.mxu1 %v23386_v1 }
0x1b96   :  { %17209 = vmatpush1.bf16.msra.mxu0 %v23381_v31  ;;  %17250 = vmatpush1.bf16.msra.mxu1 %v23384_v8 }
0x1b97   :  { %17210 = vmatprep.subr.bf16.mxu0 %v23389_v40  ;;  %17251 = vmatprep.subr.bf16.mxu1 %v23392_v53 }
0x1b9a   :  { %17211 = vmatpush1.bf16.msra.mxu0 %v23387_v35  ;;  %17252 = vmatpush1.bf16.msra.mxu1 %v23390_v33 }
0x1b9b   :  { %17212 = vmatprep.subr.bf16.mxu0 %v23395_v44  ;;  %17253 = vmatprep.subr.bf16.mxu1 %v23398_v2 }
0x1b9e   :  { %17213 = vmatpush1.bf16.msra.mxu0 %v23393_v3  ;;  %17254 = vmatpush1.bf16.msra.mxu1 %v23396_v5 }
0x1b9f   :  { %17214 = vmatprep.subr.bf16.mxu0 %v23401_v63  ;;  %17255 = vmatprep.subr.bf16.mxu1 %v23404_v4  ;;  %v23447_v4 = vld [vmem:[%s23822_s12 + $0x8] ss:$16 sps:$4 sm:$0xff]  }
0x1ba2   :  { %17215 = vmatpush1.bf16.msra.mxu0 %v23399_v6  ;;  %17256 = vmatpush1.bf16.msra.mxu1 %v23402_v42  ;;  %v23450_v6 = vld [vmem:[%s23822_s12 + $0x208] ss:$16 sps:$4 sm:$0xff]  }
0x1ba3   :  { %17216 = vmatprep.subr.bf16.mxu0 %v23407_v26  ;;  %17257 = vmatprep.subr.bf16.mxu1 %v23410_v9  ;;  %v23455_v9 = vld [vmem:[%s23822_s12 + $0x2c] ss:$16 sps:$4 sm:$0xff]  }
0x1ba6   :  { %17217 = vmatpush1.bf16.msra.mxu0 %v23405_v49  ;;  %17258 = vmatpush1.bf16.msra.mxu1 %v23408_v11  ;;  %v23458_v49 = vld [vmem:[%s23822_s12 + $0x22c] ss:$16 sps:$4 sm:$0xff]   ;;  %v23453_v11 = vld [vmem:[%s23822_s12 + $0x28] ss:$16 sps:$4 sm:$0xff]  }
0x1ba7   :  { %17218 = vmatprep.subr.bf16.mxu0 %v23413_v16  ;;  %17259 = vmatprep.subr.bf16.mxu1 %v23416_v17  ;;  %v23456_v16 = vld [vmem:[%s23822_s12 + $0x228] ss:$16 sps:$4 sm:$0xff]   ;;  %v23461_v17 = vld [vmem:[%s23822_s12 + $0x4c] ss:$16 sps:$4 sm:$0xff]  }
0x1baa   :  { %17219 = vmatpush1.bf16.msra.mxu0 %v23411_v18  ;;  %17260 = vmatpush1.bf16.msra.mxu1 %v23414_v21  ;;  %v23464_v18 = vld [vmem:[%s23822_s12 + $0x24c] ss:$16 sps:$4 sm:$0xff]   ;;  %v23459_v21 = vld [vmem:[%s23822_s12 + $0x48] ss:$16 sps:$4 sm:$0xff]  }
0x1bab   :  { %17220 = vmatprep.subr.bf16.mxu0 %v23419_v23  ;;  %17261 = vmatprep.subr.bf16.mxu1 %v23422_v25  ;;  %v23462_v23 = vld [vmem:[%s23822_s12 + $0x248] ss:$16 sps:$4 sm:$0xff]   ;;  %v23467_v25 = vld [vmem:[%s23822_s12 + $0x6c] ss:$16 sps:$4 sm:$0xff]  }
0x1bae   :  { %17221 = vmatpush1.bf16.msra.mxu0 %v23417_v62  ;;  %17262 = vmatpush1.bf16.msra.mxu1 %v23420_v27  ;;  %v23470_v62 = vld [vmem:[%s23822_s12 + $0x26c] ss:$16 sps:$4 sm:$0xff]   ;;  %v23465_v27 = vld [vmem:[%s23822_s12 + $0x68] ss:$16 sps:$4 sm:$0xff]  }
0x1baf   :  { %17222 = vmatprep.subr.bf16.mxu0 %v23425_v0  ;;  %17263 = vmatprep.subr.bf16.mxu1 %v23428_v36  ;;  %v23468_v0 = vld [vmem:[%s23822_s12 + $0x268] ss:$16 sps:$4 sm:$0xff]   ;;  %v23473_v36 = vld [vmem:[%s23822_s12 + $0x8c] ss:$16 sps:$4 sm:$0xff]  }
0x1bb2   :  { %17223 = vmatpush1.bf16.msra.mxu0 %v23423_v46  ;;  %17264 = vmatpush1.bf16.msra.mxu1 %v23426_v47  ;;  %v23476_v46 = vld [vmem:[%s23822_s12 + $0x28c] ss:$16 sps:$4 sm:$0xff]   ;;  %v23471_v47 = vld [vmem:[%s23822_s12 + $0x88] ss:$16 sps:$4 sm:$0xff]  }
0x1bb3   :  { %17224 = vmatprep.subr.bf16.mxu0 %v23431_v29  ;;  %17265 = vmatprep.subr.bf16.mxu1 %v23434_v48  ;;  %v23474_v29 = vld [vmem:[%s23822_s12 + $0x288] ss:$16 sps:$4 sm:$0xff]   ;;  %v23479_v48 = vld [vmem:[%s23822_s12 + $0xac] ss:$16 sps:$4 sm:$0xff]  }
0x1bb6   :  { %17225 = vmatpush1.bf16.msra.mxu0 %v23429_v22  ;;  %17266 = vmatpush1.bf16.msra.mxu1 %v23432_v54  ;;  %v23482_v22 = vld [vmem:[%s23822_s12 + $0x2ac] ss:$16 sps:$4 sm:$0xff]   ;;  %v23477_v54 = vld [vmem:[%s23822_s12 + $0xa8] ss:$16 sps:$4 sm:$0xff]  }
0x1bb7   :  { %17226 = vmatprep.subr.bf16.mxu0 %v23437_v41  ;;  %17267 = vmatprep.subr.bf16.mxu1 %v23440_v14  ;;  %v23480_v41 = vld [vmem:[%s23822_s12 + $0x2a8] ss:$16 sps:$4 sm:$0xff]   ;;  %v23485_v14 = vld [vmem:[%s23822_s12 + $0xcc] ss:$16 sps:$4 sm:$0xff]  }
0x1bba   :  { %17227 = vmatpush1.bf16.msra.mxu0 %v23435_v20  ;;  %17268 = vmatpush1.bf16.msra.mxu1 %v23438_v15  ;;  %v23488_v20 = vld [vmem:[%s23822_s12 + $0x2cc] ss:$16 sps:$4 sm:$0xff]   ;;  %v23483_v15 = vld [vmem:[%s23822_s12 + $0xc8] ss:$16 sps:$4 sm:$0xff]  }
0x1bbb   :  { %17228 = vmatprep.subr.bf16.mxu0 %v23443_v50  ;;  %17269 = vmatprep.subr.bf16.mxu1 %v23446_v30  ;;  %v23486_v50 = vld [vmem:[%s23822_s12 + $0x2c8] ss:$16 sps:$4 sm:$0xff]   ;;  %v23491_v30 = vld [vmem:[%s23822_s12 + $0xec] ss:$16 sps:$4 sm:$0xff]  }
0x1bbe   :  { %17229 = vmatpush1.bf16.msra.mxu0 %v23441_v55  ;;  %17270 = vmatpush1.bf16.msra.mxu1 %v23444_v19  ;;  %v23494_v55 = vld [vmem:[%s23822_s12 + $0x2ec] ss:$16 sps:$4 sm:$0xff]   ;;  %v23489_v19 = vld [vmem:[%s23822_s12 + $0xe8] ss:$16 sps:$4 sm:$0xff]  }
0x1bbf   :  { %17280 = vmatprep.subr.bf16.mxu0 %v23449_v58  ;;  %17321 = vmatprep.subr.bf16.mxu1 %v23452_v39  ;;  %v23492_v58 = vld [vmem:[%s23822_s12 + $0x2e8] ss:$16 sps:$4 sm:$0xff]   ;;  %v23497_v39 = vld [vmem:[%s23822_s12 + $0x10c] ss:$16 sps:$4 sm:$0xff]  }
0x1c54   :  { %v16310_v52 = vpop.f32.mrb[80].mxu0  ;;  %v16392_v56 = vpop.f32.mrb[28].mxu1 }
0x1c55   :  { %v21744_v59 = vadd.f32 %v16310_v52, %v15578_v12  ;;  %v21746_v60 = vadd.f32 %v16392_v56, %v15586_v28  ;;  %v16312_v61 = vpop.f32.mrb[81].mxu0  ;;  %v16394_v38 = vpop.f32.mrb[29].mxu1  ;;  %v23495_v12 = vld [vmem:[%s23822_s12 + $0x108] ss:$16 sps:$4 sm:$0xff]  }
0x1c56   :  { %v21745_v1 = vadd.f32 %v16312_v61, %v15582_v34  ;;  %v21747_v31 = vadd.f32 %v16394_v38, %v15590_v51  ;;  %v16314_v8 = vpop.f32.mrb[82].mxu0  ;;  %v16396_v40 = vpop.f32.mrb[30].mxu1  ;;  %v23498_v28 = vld [vmem:[%s23822_s12 + $0x308] ss:$16 sps:$4 sm:$0xff]   ;;  %v23503_v34 = vld [vmem:[%s23822_s12 + $0x12c] ss:$16 sps:$4 sm:$0xff]  }
0x1c57   :  { %v16399_v53 = vmax.f32 %v21744_v59, 0.0  ;;  %v16401_v35 = vmax.f32 %v21746_v60, 0.0  ;;  %v16315_v33 = vpop.f32.mrb[83].mxu0  ;;  %v16397_v44 = vpop.f32.mrb[31].mxu1  ;;  %v23506_v51 = vld [vmem:[%s23822_s12 + $0x32c] ss:$16 sps:$4 sm:$0xff]  }
0x1c58   :  { %v16400_v2 = vmax.f32 %v21745_v1, 0.0  ;;  %v16402_v3 = vmax.f32 %v21747_v31, 0.0  ;;  %v23501_v52 = vld [vmem:[%s23822_s12 + $0x128] ss:$16 sps:$4 sm:$0xff]   ;;  %v23509_v59 = vld [vmem:[%s23822_s12 + $0x14c] ss:$16 sps:$4 sm:$0xff]  }
0x1c59   :  { %v26182_v42 = vpack.c.bf16 %v16399_v53, %v16399_v53  ;;  %v26184_v26 = vpack.c.bf16 %v16401_v35, %v16401_v35  ;;  %v23504_v56 = vld [vmem:[%s23822_s12 + $0x328] ss:$16 sps:$4 sm:$0xff]   ;;  %v23512_v60 = vld [vmem:[%s23822_s12 + $0x34c] ss:$16 sps:$4 sm:$0xff]  }
0x1c5a   :  { %v16404_v5 = vpack.c.bf16 %v16400_v2, %v16400_v2  ;;  %v16406_v63 = vpack.c.bf16 %v16402_v3, %v16402_v3  ;;  %v23507_v61 = vld [vmem:[%s23822_s12 + $0x148] ss:$16 sps:$4 sm:$0xff]   ;;  %v23515_v1 = vld [vmem:[%s23822_s12 + $0x16c] ss:$16 sps:$4 sm:$0xff]  }
0x1c5b   :  { %v23510_v38 = vld [vmem:[%s23822_s12 + $0x348] ss:$16 sps:$4 sm:$0xff]   ;;  %v23518_v31 = vld [vmem:[%s23822_s12 + $0x36c] ss:$16 sps:$4 sm:$0xff]  }
0x1c5c   :  { %17230 = vmatprep.mubr.bf16.mxu0 %v16404_v5  ;;  %17271 = vmatprep.mubr.bf16.mxu1 %v16406_v63  ;;  %v23513_v8 = vld [vmem:[%s23822_s12 + $0x168] ss:$16 sps:$4 sm:$0xff]   ;;  %v23521_v53 = vld [vmem:[%s23822_s12 + $0x18c] ss:$16 sps:$4 sm:$0xff]  }
0x1c5d   :  { %17231 = vmatmul.mubr.bf16.vlgmr.msra.gmra.mrb[84].mxu0 %v26182_v42  ;;  %17272 = vmatmul.mubr.bf16.vlgmr.msra.gmra.mrb[32].mxu1 %v26184_v26  ;;  %v23516_v40 = vld [vmem:[%s23822_s12 + $0x368] ss:$16 sps:$4 sm:$0xff]   ;;  %v23524_v35 = vld [vmem:[%s23822_s12 + $0x38c] ss:$16 sps:$4 sm:$0xff]  }
0x1c5e   :  { %17281 = vmatpush1.bf16.msra.mxu0 %v23447_v4  ;;  %17322 = vmatpush1.bf16.msra.mxu1 %v23450_v6  ;;  %v23519_v33 = vld [vmem:[%s23822_s12 + $0x188] ss:$16 sps:$4 sm:$0xff]   ;;  %v23527_v2 = vld [vmem:[%s23822_s12 + $0x1ac] ss:$16 sps:$4 sm:$0xff]  }
0x1c5f   :  { %17312 = vmatprep.mubr.bf16.mxu0 %v16404_v5  ;;  %17353 = vmatprep.mubr.bf16.mxu1 %v16406_v63  ;;  %v23522_v44 = vld [vmem:[%s23822_s12 + $0x388] ss:$16 sps:$4 sm:$0xff]   ;;  %v23530_v3 = vld [vmem:[%s23822_s12 + $0x3ac] ss:$16 sps:$4 sm:$0xff]  }
0x1c60   :  { %17282 = vmatprep.subr.bf16.mxu0 %v23455_v9  ;;  %17323 = vmatprep.subr.bf16.mxu1 %v23458_v49  ;;  %v23525_v5 = vld [vmem:[%s23822_s12 + $0x1a8] ss:$16 sps:$4 sm:$0xff]   ;;  %v23533_v4 = vld [vmem:[%s23822_s12 + $0x1cc] ss:$16 sps:$4 sm:$0xff]  }
0x1c61   :  { %v23528_v63 = vld [vmem:[%s23822_s12 + $0x3a8] ss:$16 sps:$4 sm:$0xff]   ;;  %v23536_v6 = vld [vmem:[%s23822_s12 + $0x3cc] ss:$16 sps:$4 sm:$0xff]  }
0x1c62   :  { %17283 = vmatpush1.bf16.msra.mxu0 %v23453_v11  ;;  %17324 = vmatpush1.bf16.msra.mxu1 %v23456_v16  ;;  %v23531_v9 = vld [vmem:[%s23822_s12 + $0x1c8] ss:$16 sps:$4 sm:$0xff]   ;;  %v23539_v11 = vld [vmem:[%s23822_s12 + $0x1ec] ss:$16 sps:$4 sm:$0xff]  }
0x1c63   :  { %17284 = vmatprep.subr.bf16.mxu0 %v23461_v17  ;;  %17325 = vmatprep.subr.bf16.mxu1 %v23464_v18  ;;  %v23534_v49 = vld [vmem:[%s23822_s12 + $0x3c8] ss:$16 sps:$4 sm:$0xff]   ;;  %v23542_v16 = vld [vmem:[%s23822_s12 + $0x3ec] ss:$16 sps:$4 sm:$0xff]  }
0x1c64   :  { %v23537_v17 = vld [vmem:[%s23822_s12 + $0x1e8] ss:$16 sps:$4 sm:$0xff]  }
0x1c65   :  { %v23540_v18 = vld [vmem:[%s23822_s12 + $0x3e8] ss:$16 sps:$4 sm:$0xff]  }
0x1c66   :  { %17285 = vmatpush1.bf16.msra.mxu0 %v23459_v21  ;;  %17326 = vmatpush1.bf16.msra.mxu1 %v23462_v23  ;;  %v23543_v21 = vld [vmem:[%s23827_s20 + $0x40] sm:$0xff]  }
0x1c67   :  { %17286 = vmatprep.subr.bf16.mxu0 %v23467_v25  ;;  %17327 = vmatprep.subr.bf16.mxu1 %v23470_v62  ;;  %v23544_v23 = vld [vmem:[%s23827_s20] sm:$0xff]   ;;  %v23545_v25 = vld [vmem:[%s23827_s20 + $0x48] sm:$0xff]  }
0x1c68   :  { %v23546_v62 = vld [vmem:[%s23827_s20 + $0x8] sm:$0xff]  }
0x1c6a   :  { %17287 = vmatpush1.bf16.msra.mxu0 %v23465_v27  ;;  %17328 = vmatpush1.bf16.msra.mxu1 %v23468_v0  ;;  %v23547_v27 = vld [vmem:[%s23827_s20 + $0x50] sm:$0xff]  }
0x1c6b   :  { %17288 = vmatprep.subr.bf16.mxu0 %v23473_v36  ;;  %17329 = vmatprep.subr.bf16.mxu1 %v23476_v46  ;;  %v23548_v0 = vld [vmem:[%s23827_s20 + $0x10] sm:$0xff]   ;;  %v23549_v36 = vld [vmem:[%s23827_s20 + $0x58] sm:$0xff]  }
0x1c6c   :  { %v23550_v46 = vld [vmem:[%s23827_s20 + $0x18] sm:$0xff]  }
0x1c6e   :  { %17289 = vmatpush1.bf16.msra.mxu0 %v23471_v47  ;;  %17330 = vmatpush1.bf16.msra.mxu1 %v23474_v29  ;;  %v23553_v47 = vld [vmem:[%s23827_s20 + $0x68] sm:$0xff]  }
0x1c6f   :  { %17290 = vmatprep.subr.bf16.mxu0 %v23479_v48  ;;  %17331 = vmatprep.subr.bf16.mxu1 %v23482_v22  ;;  %v23554_v29 = vld [vmem:[%s23827_s20 + $0x28] sm:$0xff]   ;;  %v23555_v48 = vld [vmem:[%s23827_s20 + $0x70] sm:$0xff]  }
0x1c70   :  { %v23556_v22 = vld [vmem:[%s23827_s20 + $0x30] sm:$0xff]  }
0x1c72   :  { %17291 = vmatpush1.bf16.msra.mxu0 %v23477_v54  ;;  %17332 = vmatpush1.bf16.msra.mxu1 %v23480_v41  ;;  %v23557_v54 = vld [vmem:[%s23827_s20 + $0x78] sm:$0xff]  }
0x1c73   :  { %17292 = vmatprep.subr.bf16.mxu0 %v23485_v14  ;;  %17333 = vmatprep.subr.bf16.mxu1 %v23488_v20  ;;  %v23558_v41 = vld [vmem:[%s23827_s20 + $0x38] sm:$0xff]   ;;  %v23559_v14 = vld [vmem:[%s23827_s20 + $0xc0] sm:$0xff]  }
0x1c74   :  { %v23560_v20 = vld [vmem:[%s23827_s20 + $0x80] sm:$0xff]  }
0x1c76   :  { %17293 = vmatpush1.bf16.msra.mxu0 %v23483_v15  ;;  %17334 = vmatpush1.bf16.msra.mxu1 %v23486_v50  ;;  %v23561_v15 = vld [vmem:[%s23827_s20 + $0xc8] sm:$0xff]  }
0x1c77   :  { %17294 = vmatprep.subr.bf16.mxu0 %v23491_v30  ;;  %17335 = vmatprep.subr.bf16.mxu1 %v23494_v55  ;;  %v23562_v50 = vld [vmem:[%s23827_s20 + $0x88] sm:$0xff]   ;;  %v23563_v30 = vld [vmem:[%s23827_s20 + $0xd0] sm:$0xff]  }
0x1c78   :  { %v23564_v55 = vld [vmem:[%s23827_s20 + $0x90] sm:$0xff]  }
0x1c7a   :  { %17295 = vmatpush1.bf16.msra.mxu0 %v23489_v19  ;;  %17336 = vmatpush1.bf16.msra.mxu1 %v23492_v58  ;;  %v23565_v19 = vld [vmem:[%s23827_s20 + $0xd8] sm:$0xff]  }
0x1c7b   :  { %17296 = vmatprep.subr.bf16.mxu0 %v23497_v39  ;;  %17337 = vmatprep.subr.bf16.mxu1 %v23500_v7  ;;  %v23566_v58 = vld [vmem:[%s23827_s20 + $0x98] sm:$0xff]   ;;  %v23567_v39 = vld [vmem:[%s23827_s20 + $0xe0] sm:$0xff]  }
0x1c7c   :  { %v23568_v7 = vld [vmem:[%s23827_s20 + $0xa0] sm:$0xff]  }
0x1c7e   :  { %17297 = vmatpush1.bf16.msra.mxu0 %v23495_v12  ;;  %17338 = vmatpush1.bf16.msra.mxu1 %v23498_v28  ;;  %v23569_v12 = vld [vmem:[%s23827_s20 + $0xe8] sm:$0xff]  }
0x1c7f   :  { %17298 = vmatprep.subr.bf16.mxu0 %v23503_v34  ;;  %17339 = vmatprep.subr.bf16.mxu1 %v23506_v51  ;;  %v23570_v28 = vld [vmem:[%s23827_s20 + $0xa8] sm:$0xff]   ;;  %v23571_v34 = vld [vmem:[%s23827_s20 + $0xf0] sm:$0xff]  }
0x1c80   :  { %v23572_v51 = vld [vmem:[%s23827_s20 + $0xb0] sm:$0xff]  }
0x1c82   :  { %17299 = vmatpush1.bf16.msra.mxu0 %v23501_v52  ;;  %17340 = vmatpush1.bf16.msra.mxu1 %v23504_v56  ;;  %v23573_v52 = vld [vmem:[%s23827_s20 + $0xf8] sm:$0xff]  }
0x1c83   :  { %17300 = vmatprep.subr.bf16.mxu0 %v23509_v59  ;;  %17341 = vmatprep.subr.bf16.mxu1 %v23512_v60  ;;  %v23574_v56 = vld [vmem:[%s23827_s20 + $0xb8] sm:$0xff]  }
0x1c84   :  { %v19353_v59 = vld [vmem:[%s23672_s21 + $0x42] ss:$8 sm:$0xf]  ;;  %s23643_s21 = smov [#allocation2]  }
0x1c85   :  { %v16541_v60 = vrot.slane %v19353_v59, %v25537_v45  ;;  %s17736_s12 = sshll.u32 %s23643_s21, 4  ;;  %s17737_s12 = int_to_ptr.vmem [resolvable:$true] %s17736_s12 }
0x1c86   :  { %17301 = vmatpush1.bf16.msra.mxu0 %v23507_v61  ;;  %17342 = vmatpush1.bf16.msra.mxu1 %v23510_v38  ;;  %v16545_v61 = vrot.slane %v19353_v59, %v25541_v32  ;;  %p23584_p1 = scmp.lt.s32.totalorder %s17737_s12, %s17737_s12 }
0x1c87   :  { %17302 = vmatprep.subr.bf16.mxu0 %v23515_v1  ;;  %17343 = vmatprep.subr.bf16.mxu1 %v23518_v31 }
0x1c8a   :  { %17303 = vmatpush1.bf16.msra.mxu0 %v23513_v8  ;;  %17344 = vmatpush1.bf16.msra.mxu1 %v23516_v40 }
0x1c8b   :  { %17304 = vmatprep.subr.bf16.mxu0 %v23521_v53  ;;  %17345 = vmatprep.subr.bf16.mxu1 %v23524_v35 }
0x1c8e   :  { %17305 = vmatpush1.bf16.msra.mxu0 %v23519_v33  ;;  %17346 = vmatpush1.bf16.msra.mxu1 %v23522_v44 }
0x1c8f   :  { %17306 = vmatprep.subr.bf16.mxu0 %v23527_v2  ;;  %17347 = vmatprep.subr.bf16.mxu1 %v23530_v3 }
0x1c92   :  { %17307 = vmatpush1.bf16.msra.mxu0 %v23525_v5  ;;  %17348 = vmatpush1.bf16.msra.mxu1 %v23528_v63 }
0x1c93   :  { %17308 = vmatprep.subr.bf16.mxu0 %v23533_v4  ;;  %17349 = vmatprep.subr.bf16.mxu1 %v23536_v6 }
0x1c96   :  { %17309 = vmatpush1.bf16.msra.mxu0 %v23531_v9  ;;  %17350 = vmatpush1.bf16.msra.mxu1 %v23534_v49  ;;  %v16549_v49 = vrot.slane %v19353_v59, %v25855_v37 }
0x1c97   :  { %17310 = vmatprep.subr.bf16.mxu0 %v23539_v11  ;;  %17351 = vmatprep.subr.bf16.mxu1 %v23542_v16  ;;  %v16553_v11 = vrot.slane %v19353_v59, %v25794_v43 }
0x1c9a   :  { %17311 = vmatpush1.bf16.msra.mxu0 %v23537_v17  ;;  %17352 = vmatpush1.bf16.msra.mxu1 %v23540_v18 }
0x1c9b   :  { %20740 = vmatprep.subr.bf16.mxu0 %v23543_v21  ;;  %20762 = vmatprep.subr.bf16.mxu1 %v23559_v14  ;;  %v19482_v14 = vld [vmem:[%s23832_s27] ss:$0 sm:$0xff] }
0x1c9d   :  { %17313 = vmatmul.mubr.bf16.vlgmr.msra.gmra.mrb[88].mxu0 %v26182_v42  ;;  %17354 = vmatmul.mubr.bf16.vlgmr.msra.gmra.mrb[36].mxu1 %v26184_v26  ;;  %v23551_v42 = vld [vmem:[%s23827_s20 + $0x60] sm:$0xff]  }
0x1c9e   :  { %20741 = vmatpush3.bf16.msra.mxu0 %v23544_v23  ;;  %v23552_v26 = vld [vmem:[%s23827_s20 + $0x20] sm:$0xff]   ;;  %20763 = vmatpush3.bf16.msra.mxu1 %v23560_v20  ;;  %s23579_s20 = scalar_lea.vmem %s17737_s12, 32 }
0x1c9f   :  { %20742 = vmatprep.subr.bf16.mxu0 %v23545_v25  ;;  %20764 = vmatprep.subr.bf16.mxu1 %v23561_v15  ;;  %p23580_p0 = scmp.ne.s32.totalorder %s17737_s12, %s23579_s20  ;;  %p23585_p2 = scmp.lt.s32.totalorder %s23579_s20, %s23579_s20 }
0x1ca1   :  { %p23586_p3 = por %p23585_p2, %p23584_p1 }
0x1ca2   :  { %20743 = vmatpush3.bf16.msra.mxu0 %v23546_v62  ;;  %20765 = vmatpush3.bf16.msra.mxu1 %v23562_v50 }
0x1ca3   :  { %20744 = vmatprep.subr.bf16.mxu0 %v23547_v27  ;;  %20766 = vmatprep.subr.bf16.mxu1 %v23563_v30  ;;  %p23587_p4 = pnand %p23586_p3, %p23580_p0 }
0x1ca6   :  { %20745 = vmatpush3.bf16.msra.mxu0 %v23548_v0  ;;  %20767 = vmatpush3.bf16.msra.mxu1 %v23564_v55 }
0x1ca7   :  { %20746 = vmatprep.subr.bf16.mxu0 %v23549_v36  ;;  %20768 = vmatprep.subr.bf16.mxu1 %v23565_v19 }
0x1caa   :  { %20747 = vmatpush3.bf16.msra.mxu0 %v23550_v46  ;;  %20769 = vmatpush3.bf16.msra.mxu1 %v23566_v58 }
0x1cab   :  { %20748 = vmatprep.subr.bf16.mxu0 %v23551_v42  ;;  %20770 = vmatprep.subr.bf16.mxu1 %v23567_v39 }
0x1cae   :  { %20749 = vmatpush3.bf16.msra.mxu0 %v23552_v26  ;;  %20771 = vmatpush3.bf16.msra.mxu1 %v23568_v7 }
0x1caf   :  { %20750 = vmatprep.subr.bf16.mxu0 %v23553_v47  ;;  %20772 = vmatprep.subr.bf16.mxu1 %v23569_v12 }
0x1cb2   :  { %20751 = vmatpush3.bf16.msra.mxu0 %v23554_v29  ;;  %20773 = vmatpush3.bf16.msra.mxu1 %v23570_v28 }
0x1cb3   :  { %20752 = vmatprep.subr.bf16.mxu0 %v23555_v48  ;;  %20774 = vmatprep.subr.bf16.mxu1 %v23571_v34 }
0x1cb6   :  { %20753 = vmatpush3.bf16.msra.mxu0 %v23556_v22  ;;  %20775 = vmatpush3.bf16.msra.mxu1 %v23572_v51 }
0x1cb7   :  { %20754 = vmatprep.subr.bf16.mxu0 %v23557_v54  ;;  %20776 = vmatprep.subr.bf16.mxu1 %v23573_v52 }
0x1cba   :  { %20755 = vmatpush3.bf16.msra.mxu0 %v23558_v41  ;;  %20777 = vmatpush3.bf16.msra.mxu1 %v23574_v56 }
0x1d30   :  { %v17232_v38 = vpop.f32.mrb[84].mxu0  ;;  %v17273_v1 = vpop.f32.mrb[32].mxu1 }
0x1d31   :  { %v17233_v31 = vadd.f32 %v17232_v38, %v16541_v60  ;;  %v17234_v8 = vpop.f32.mrb[85].mxu0  ;;  %v17275_v40 = vpop.f32.mrb[33].mxu1 }
0x1d32   :  { %v17235_v53 = vadd.f32 %v17234_v8, %v16545_v61  ;;  %v17236_v35 = vpop.f32.mrb[86].mxu0  ;;  %v17277_v33 = vpop.f32.mrb[34].mxu1 }
0x1d33   :  { %v17274_v44 = vadd.f32 %v17273_v1, %v17233_v31  ;;  %v17237_v2 = vpop.f32.mrb[87].mxu0  ;;  %v17278_v3 = vpop.f32.mrb[35].mxu1 }
0x1d34   :  { %v17276_v5 = vadd.f32 %v17275_v40, %v17235_v53 }
0x1d35   :  { %v17362_v63 = vadd.f32 %v17274_v44, %v26026_v57 }
0x1d36   :  { %v17363_v4 = vadd.f32 %v17276_v5, %v26028_v10 }
0x1d37   :  { %v17366_v6 = vmax.f32 %v17362_v63, 0.0 }
0x1d38   :  { %v17367_v45 = vmax.f32 %v17363_v4, 0.0 }
0x1d39   :  { %v17370_v32 = vpack.c.bf16 %v17366_v6, %v17366_v6 }
0x1d3a   :  { %v17371_v9 = vpack.c.bf16 %v17367_v45, %v17367_v45 }
0x1d3c   :  { %17669 = vmatprep.mubr.bf16.mxu0 %v17371_v9 }
0x1d3d   :  { %17670 = vmatmul.mubr.bf16.vlgmr.msra.gmra.mrb[92].mxu0 %v17370_v32 }
0x1d70   :  { %v17314_v16 = vpop.f32.mrb[88].mxu0  ;;  %v17355_v17 = vpop.f32.mrb[36].mxu1 }
0x1d71   :  { %v17315_v18 = vadd.f32 %v17314_v16, %v16549_v49  ;;  %v17316_v21 = vpop.f32.mrb[89].mxu0  ;;  %v17357_v23 = vpop.f32.mrb[37].mxu1 }
0x1d72   :  { %v17317_v25 = vadd.f32 %v17316_v21, %v16553_v11  ;;  %v17318_v62 = vpop.f32.mrb[90].mxu0  ;;  %v17359_v57 = vpop.f32.mrb[38].mxu1 }
0x1d73   :  { %v17356_v27 = vadd.f32 %v17355_v17, %v17315_v18  ;;  %v17319_v10 = vpop.f32.mrb[91].mxu0  ;;  %v17360_v0 = vpop.f32.mrb[39].mxu1 }
0x1d74   :  { %v17358_v36 = vadd.f32 %v17357_v23, %v17317_v25 }
0x1d75   :  { %v17364_v46 = vadd.f32 %v17356_v27, %v26105_v24 }
0x1d76   :  { %v17365_v42 = vadd.f32 %v17358_v36, %v26030_v13 }
0x1d77   :  { %v17368_v37 = vmax.f32 %v17364_v46, 0.0 }
0x1d78   :  { %v17369_v26 = vmax.f32 %v17365_v42, 0.0 }
0x1d79   :  { %v17372_v47 = vpack.c.bf16 %v17368_v37, %v17368_v37 }
0x1d7a   :  { %v17373_v43 = vpack.c.bf16 %v17369_v26, %v17369_v26 }
0x1d7c   :  { %17709 = vmatprep.mubr.bf16.mxu1 %v17373_v43 }
0x1d7d   :  { %17710 = vmatmul.mubr.bf16.vlgmr.msra.gmra.mrb[40].mxu1 %v17372_v47 }
0x1e10   :  { %v20756_v29 = vpop.f32.mrb[92].mxu0 }
0x1e11   :  { %v20757_v48 = vpop.f32.mrb[93].mxu0 }
0x1e12   :  { %v20758_v22 = vadd.f32 %v20757_v48, %v20756_v29  ;;  %v20759_v54 = vpop.f32.mrb[94].mxu0 }
0x1e13   :  { %v20760_v41 = vpop.f32.mrb[95].mxu0 }
0x1e14   :  { %v17672_v50 = vadd.f32 %v20758_v22, %v19482_v14 }
0x1e50   :  { %v20778_v20 = vpop.f32.mrb[40].mxu1 }
0x1e51   :  { %v20779_v15 = vpop.f32.mrb[41].mxu1 }
0x1e52   :  { %v20780_v30 = vadd.f32 %v20779_v15, %v20778_v20  ;;  %v20781_v55 = vpop.f32.mrb[42].mxu1 }
0x1e53   :  { %v20782_v24 = vpop.f32.mrb[43].mxu1 }
0x1e54   :  { %v17712_v13 = vadd.f32 %v20780_v30, %v17672_v50 }
0x1e56   :  { %v17718_v19 = vsel %vm17717_vm5, %v17712_v13, -inf }
0x1e57   :  { %17719 = vmax.xlane.f32.xlu0 %v17718_v19 }
0x1ee4   :  { %v17720_v58 = vpop.xlane.xlu0 %17719 }
0x1ee5   :  { %v17721_v39 = vsub.f32 %v17712_v13, %v17720_v58 }
0x1ee7   :  { %v17722_v7 = vmul.f32 1.442695, %v17721_v39 }
0x1ee9   :  { %23575 = vpow2.f32 %v17722_v7 }
0x1ef3   :  { %v23576_v12 = vpop.eup %23575 }
0x1ef4   :  { %v17724_v28 = vsel %vm17717_vm5, %v23576_v12, 0.0 }
0x1ef5   :  { %17725 = vadd.xlane.f32.xlu0 %v17724_v28 }
0x1f82   :  { %v17726_v34 = vpop.xlane.xlu0 %17725 }
0x1f83   :  { %23577 = vrcp.f32 %v17726_v34 }
0x1f8d   :  { %v23578_v51 = vpop.eup %23577 }
0x1f8e   :  { %v17728_v52 = vmul.f32 %v23578_v51, %v23576_v12 }
0x1f90   :  { %17729 = vst.msk [vmem:[#allocation2] sm:$0x3] %vm17717_vm5, %v17728_v52 }
0x1f91   :  { %23590 = shalt.err (!%p23587_p4)
}
0x1f92   :  { %s23591_s27 = scalar_lea.hbm %s23837_s4, 32 }
0x1f93   :  { %p23592_p5 = scmp.ne.s32.totalorder %s23837_s4, %s23591_s27  ;;  %p23595_p6 = scmp.lt.u32.totalorder %s23591_s27, %s23837_s4 }
0x1f95   :  { %p23597_p7 = pnand %p23595_p6, %p23592_p5 }
0x1f97   :  { %23600 = shalt.err (!%p23597_p7)
}
0x1f98   :  { %17739 = dma.vmem_to_hbm [thread:$0]  %s17737_s12, 32, %s23837_s4, [#allocation3]  }
0x1f99   :  { %23601 = dma.done.wait [#allocation3], 32  }
0x1f9a   :  { %23602 = vsyncadd [#allocation3], 4294967264 }
0x1f9b   :  { %17743 = vsyncpa [#allocation3], 1 }

</bundles_post_ra>
